<compile_context>
chip_gen: v5e
topology: v5e:2x2
jax: 0.10.0
libtpu: 0.0.40
codegen_flags: <defaults>
</compile_context>

<pallas_src>
import functools

import jax
import jax.numpy as jnp
import numpy as np
from jax.experimental import pallas as pl
from jax.experimental.pallas import tpu as pltpu


def bottleneck_kernel(x_ref, w1_ref, w2_ref, w3_ref, b1_ref, b2_ref, b3_ref,
                      o_ref, col_ref):
    Nb, H, W, Cin = x_ref.shape
    Cp = w1_ref.shape[1]
    Cout = w3_ref.shape[1]

    # ---- conv1x1 (+ folded bn1 scale) + bias + relu, batched over Nb -------
    xb = x_ref[...].reshape(Nb * H * W, Cin)                  # bf16, true view
    h1 = jnp.dot(xb, w1_ref[...], preferred_element_type=jnp.float32)
    h1 = jnp.maximum(h1 + b1_ref[...], 0.0).astype(jnp.bfloat16)
    h1 = h1.reshape(Nb, H, W, Cp)

    # ---- build the kx-im2col buffer for the 3x3 conv (bf16) ----------------
    # col[b, y+1, x, kx*Cp:(kx+1)*Cp] = h1_zero_padded[b, y, x + kx - 1, :]
    zcol = jnp.zeros((Nb, H, 1, Cp), jnp.bfloat16)
    left = jnp.concatenate([zcol, h1[:, :, :W - 1, :]], axis=2)   # kx = 0 tap
    right = jnp.concatenate([h1[:, :, 1:, :], zcol], axis=2)      # kx = 2 tap
    col_ref[:, 1:H + 1] = jnp.concatenate([left, h1, right], axis=-1)
    zrow = jnp.zeros((Nb, 1, W, 3 * Cp), jnp.bfloat16)
    col_ref[:, 0:1] = zrow                                        # top halo row
    col_ref[:, H + 1:H + 2] = zrow                                # bottom halo row

    # ---- conv3x3 as 3 fat-K matmuls (K = 3*Cp), one per ky tap -------------
    # Per image so each shifted slice + reshape stays a copy-free view
    # (requires W % 16 == 0 for bf16 sublane packing; asserted in the wrapper).
    h2_rows = []
    for b in range(Nb):                       # Nb is a small static constant
        acc = jnp.dot(col_ref[b, 0:H].reshape(H * W, 3 * Cp), w2_ref[0],
                      preferred_element_type=jnp.float32)
        acc = acc + jnp.dot(col_ref[b, 1:H + 1].reshape(H * W, 3 * Cp), w2_ref[1],
                            preferred_element_type=jnp.float32)
        acc = acc + jnp.dot(col_ref[b, 2:H + 2].reshape(H * W, 3 * Cp), w2_ref[2],
                            preferred_element_type=jnp.float32)
        h2_rows.append(acc)
    h2 = jnp.concatenate(h2_rows, axis=0)                         # (Nb*H*W, Cp) f32
    h2 = jnp.maximum(h2 + b2_ref[...], 0.0).astype(jnp.bfloat16)

    # ---- conv1x1 (+ folded bn3 scale) + bias + residual (f32) + relu -------
    h3 = jnp.dot(h2, w3_ref[...], preferred_element_type=jnp.float32)
    res = x_ref[...].reshape(Nb * H * W, Cout).astype(jnp.float32)  # short live range
    out = jnp.maximum(h3 + b3_ref[...] + res, 0.0)
    o_ref[...] = out.reshape(Nb, H, W, Cout).astype(o_ref.dtype)


def _full_spec(shape):
    zeros = (0,) * len(shape)
    return pl.BlockSpec(shape, lambda n: zeros)


@functools.partial(jax.jit, static_argnames=("block_n",))
def bottleneck_forward_nhwc(x_nhwc, w1, w2, w3, b1, b2, b3, *, block_n=2):
    """Hot path: NHWC bf16 activations in, NHWC bf16 out (chainable).

    Weights must already have BN folded in (see prepare_kernel_params); that
    prep is hoisted out of this function on purpose.
    """
    N, H, W, Cin = x_nhwc.shape
    Cp = w1.shape[1]
    Cout = w3.shape[1]
    assert Cin == Cout, "identity residual requires inplanes == planes * 4"
    assert N % block_n == 0, "batch must be divisible by block_n"
    # bf16 sublane packing is 16 rows / vreg: W % 16 keeps the shifted im2col
    # reads and the (H,W)->rows reshapes true views (no VMEM copies).
    assert W % 16 == 0

    x_nhwc = x_nhwc.astype(jnp.bfloat16)   # no-op when already bf16

    return pl.pallas_call(
        bottleneck_kernel,
        out_shape=jax.ShapeDtypeStruct((N, H, W, Cout), jnp.bfloat16),
        grid_spec=pltpu.PrefetchScalarGridSpec(
            num_scalar_prefetch=0,
            grid=(N // block_n,),
            in_specs=[
                pl.BlockSpec((block_n, H, W, Cin), lambda n: (n, 0, 0, 0)),
                _full_spec((Cin, Cp)),          # w1  bf16, bn1 scale folded
                _full_spec((3, 3 * Cp, Cp)),    # w2  bf16, bn2 folded, (kx,ci) flat
                _full_spec((Cp, Cout)),         # w3  bf16, bn3 scale folded
                _full_spec((1, Cp)),            # b1  f32
                _full_spec((1, Cp)),            # b2  f32
                _full_spec((1, Cout)),          # b3  f32
            ],
            out_specs=pl.BlockSpec((block_n, H, W, Cout), lambda n: (n, 0, 0, 0)),
            scratch_shapes=[
                pltpu.VMEM((block_n, H + 2, W, 3 * Cp), jnp.bfloat16)],
        ),
        compiler_params=pltpu.CompilerParams(
            dimension_semantics=("parallel",),
            # ~1.6 MiB actually needed at this config; explicit limit keeps the
            # same buffering safe across v5e/v6e (128 MiB) and v7x (64 MiB).
            vmem_limit_bytes=32 * 1024 * 1024,
        ),
    )(x_nhwc, w1, w2, w3, b1, b2, b3)


def prepare_kernel_params(params):
    """One-time prep: fold BN scales into conv weights, reshape w2 for im2col,
    cast matmul operands to bf16.  Call once; reuse for every forward."""
    w1, w2, w3, s1, b1, s2, b2, s3, b3 = params
    Cp = w1.shape[1]
    Cout = w3.shape[1]
    w1k = (w1 * s1[None, :]).astype(jnp.bfloat16)
    w2k = (w2 * s2[None, None, None, :]).reshape(3, 3 * Cp, Cp).astype(jnp.bfloat16)
    w3k = (w3 * s3[None, :]).astype(jnp.bfloat16)
    return (w1k, w2k, w3k,
            b1.reshape(1, Cp).astype(jnp.float32),
            b2.reshape(1, Cp).astype(jnp.float32),
            b3.reshape(1, Cout).astype(jnp.float32))


# ---------------------------------------------------------------------------
# Deterministic synthetic parameters (shapes per Bottleneck.__init__), BN in
# eval mode fused exactly into per-channel scale/bias.
# ---------------------------------------------------------------------------
def make_params(key, inplanes, planes, eps=1e-5):
    expansion = 4
    cout = planes * expansion
    keys = jax.random.split(key, 12)

    def bn(kg, kb, km, kv, c):
        gamma = 1.0 + 0.1 * jax.random.normal(kg, (c,), jnp.float32)
        beta = 0.1 * jax.random.normal(kb, (c,), jnp.float32)
        mean = 0.1 * jax.random.normal(km, (c,), jnp.float32)
        var = 0.5 + jnp.abs(jax.random.normal(kv, (c,), jnp.float32))
        scale = gamma / jnp.sqrt(var + eps)
        bias = beta - mean * scale
        return scale, bias

    w1 = 0.1 * jax.random.normal(keys[0], (inplanes, planes), jnp.float32)
    w2 = 0.1 * jax.random.normal(keys[1], (3, 3, planes, planes), jnp.float32)
    w3 = 0.1 * jax.random.normal(keys[2], (planes, cout), jnp.float32)
    s1, b1 = bn(keys[3], keys[4], keys[5], keys[6], planes)
    s2, b2 = bn(keys[7], keys[8], keys[9], keys[10], planes)
    s3, b3 = bn(keys[11], keys[3], keys[7], keys[0], cout)
    return (w1, w2, w3, s1, b1, s2, b2, s3, b3)


# ---------------------------------------------------------------------------
# Pure-JAX f32 reference (for correctness check against the kernel)
# ---------------------------------------------------------------------------
def ref_forward(x_nchw, params):
    w1, w2, w3, s1, b1, s2, b2, s3, b3 = params
    x = jnp.transpose(x_nchw, (0, 2, 3, 1))
    dn = ("NHWC", "HWIO", "NHWC")

    def conv(v, w, pad):
        return jax.lax.conv_general_dilated(v, w, (1, 1), pad,
                                            dimension_numbers=dn)

    h = conv(x, w1[None, None], "VALID") * s1 + b1
    h = jnp.maximum(h, 0.0)
    h = conv(h, w2, [(1, 1), (1, 1)]) * s2 + b2
    h = jnp.maximum(h, 0.0)
    h = conv(h, w3[None, None], "VALID") * s3 + b3
    out = jnp.maximum(h + x, 0.0)
    return jnp.transpose(out, (0, 3, 1, 2))


if __name__ == "__main__":
    # Real ResNet-50 block config (non-downsample): inplanes=256, planes=64.
    # N=8 with block_n=2 gives 4 pipelined grid steps (~0.5 MiB DMA each) and
    # keeps both v7x TensorCores busy while staying a small demo size.
    N, inplanes, planes, H, W = 8, 256, 64, 16, 16
    key = jax.random.PRNGKey(0)
    kx_, kp_ = jax.random.split(key)
    x = jax.random.normal(kx_, (N, inplanes, H, W), jnp.float32)
    params = make_params(kp_, inplanes, planes)

    # Weight prep (BN folding + bf16 cast) done once, off the hot path.
    kparams = prepare_kernel_params(params)

    # One-time boundary conversion to the NHWC bf16 activation format.  When
    # chaining Bottleneck blocks, keep activations in this layout/dtype and
    # feed the kernel output straight into the next block (no transposes).
    x_nhwc = jnp.transpose(x, (0, 2, 3, 1)).astype(jnp.bfloat16)

    out_nhwc = jax.block_until_ready(
        bottleneck_forward_nhwc(x_nhwc, *kparams, block_n=2))

    ref = jax.block_until_ready(ref_forward(x, params))
    out_nchw = jnp.transpose(out_nhwc.astype(jnp.float32), (0, 3, 1, 2))

    # bf16 activation I/O + bf16 matmul operands -> relaxed tolerance vs the
    # f32 reference (residual add itself is done in f32 inside the kernel).
    np.testing.assert_allclose(np.asarray(out_nchw), np.asarray(ref),
                               rtol=2e-2, atol=1e-1)
    print("KERNEL_OK")
</pallas_src>

<mosaic_0001>
module attributes {stable_mosaic.version = 11 : i64} {
  func.func @bottleneck_kernel(%arg0: i32, %arg1: memref<2x16x16x256xbf16, #tpu.memory_space<vmem>>, %arg2: memref<256x64xbf16, #tpu.memory_space<vmem>>, %arg3: memref<3x192x64xbf16, #tpu.memory_space<vmem>>, %arg4: memref<64x256xbf16, #tpu.memory_space<vmem>>, %arg5: memref<1x64xf32, #tpu.memory_space<vmem>>, %arg6: memref<1x64xf32, #tpu.memory_space<vmem>>, %arg7: memref<1x256xf32, #tpu.memory_space<vmem>>, %arg8: memref<2x16x16x256xbf16, #tpu.memory_space<vmem>>, %arg9: memref<2x18x16x192xbf16, #tpu.memory_space<vmem>>) attributes {dimension_semantics = [#tpu.dimension_semantics<parallel>], iteration_bounds = array<i64: 4>, scalar_prefetch = 0 : i64, scratch_operands = 1 : i64, tpu.core_type = #tpu.core_type<tc>, window_params = [{transform_indices = @transform_0, window_bounds = array<i64: 2, 16, 16, 256>}, {pipeline_mode = #tpu.pipeline_mode<synchronous>, transform_indices = @transform_1, window_bounds = array<i64: 256, 64>}, {pipeline_mode = #tpu.pipeline_mode<synchronous>, transform_indices = @transform_2, window_bounds = array<i64: 3, 192, 64>}, {pipeline_mode = #tpu.pipeline_mode<synchronous>, transform_indices = @transform_3, window_bounds = array<i64: 64, 256>}, {pipeline_mode = #tpu.pipeline_mode<synchronous>, transform_indices = @transform_4, window_bounds = array<i64: 1, 64>}, {pipeline_mode = #tpu.pipeline_mode<synchronous>, transform_indices = @transform_5, window_bounds = array<i64: 1, 64>}, {pipeline_mode = #tpu.pipeline_mode<synchronous>, transform_indices = @transform_6, window_bounds = array<i64: 1, 256>}, {transform_indices = @transform_7, window_bounds = array<i64: 2, 16, 16, 256>}]} {
    %c0 = arith.constant 0 : index
    %c0_0 = arith.constant 0 : index
    %c0_1 = arith.constant 0 : index
    %c0_2 = arith.constant 0 : index
    %0 = vector.load %arg1[%c0, %c0_0, %c0_1, %c0_2] : memref<2x16x16x256xbf16, #tpu.memory_space<vmem>>, vector<2x16x16x256xbf16>
    %1 = vector.shape_cast %0 : vector<2x16x16x256xbf16> to vector<512x256xbf16>
    %c0_3 = arith.constant 0 : index
    %c0_4 = arith.constant 0 : index
    %2 = vector.load %arg2[%c0_3, %c0_4] : memref<256x64xbf16, #tpu.memory_space<vmem>>, vector<256x64xbf16>
    %cst = arith.constant dense<0.000000e+00> : vector<512x64xf32>
    %3 = tpu.matmul %1, %2, %cst {dimension_numbers = #tpu.dot_dimension_numbers<[1], [0], [0], [1], [0, 0, 1, 1], [], []>} : vector<512x256xbf16>, vector<256x64xbf16>, vector<512x64xf32> -> vector<512x64xf32>
    %c0_5 = arith.constant 0 : index
    %c0_6 = arith.constant 0 : index
    %4 = vector.load %arg5[%c0_5, %c0_6] : memref<1x64xf32, #tpu.memory_space<vmem>>, vector<1x64xf32>
    %5 = vector.broadcast %4 : vector<1x64xf32> to vector<512x64xf32>
    %6 = arith.addf %3, %5 : vector<512x64xf32>
    %cst_7 = arith.constant 0.000000e+00 : f32
    %7 = vector.broadcast %cst_7 : f32 to vector<512x64xf32>
    %8 = arith.maximumf %6, %7 : vector<512x64xf32>
    %9 = arith.truncf %8 : vector<512x64xf32> to vector<512x64xbf16>
    %10 = vector.shape_cast %9 : vector<512x64xbf16> to vector<2x16x16x64xbf16>
    %cst_8 = arith.constant 0.000000e+00 : bf16
    %11 = vector.broadcast %cst_8 : bf16 to vector<2x16x1x64xbf16>
    %12 = vector.extract_strided_slice %10 {offsets = [0, 0, 0, 0], sizes = [2, 16, 15, 64], strides = [1, 1, 1, 1]} : vector<2x16x16x64xbf16> to vector<2x16x15x64xbf16>
    %13 = tpu.concatenate %11, %12 in 2 : vector<2x16x1x64xbf16>, vector<2x16x15x64xbf16> -> vector<2x16x16x64xbf16>
    %14 = vector.extract_strided_slice %10 {offsets = [0, 0, 1, 0], sizes = [2, 16, 15, 64], strides = [1, 1, 1, 1]} : vector<2x16x16x64xbf16> to vector<2x16x15x64xbf16>
    %15 = tpu.concatenate %14, %11 in 2 : vector<2x16x15x64xbf16>, vector<2x16x1x64xbf16> -> vector<2x16x16x64xbf16>
    %16 = tpu.concatenate %13, %10, %15 in 3 : vector<2x16x16x64xbf16>, vector<2x16x16x64xbf16>, vector<2x16x16x64xbf16> -> vector<2x16x16x192xbf16>
    %c0_9 = arith.constant 0 : index
    %c1 = arith.constant 1 : index
    %c0_10 = arith.constant 0 : index
    %c0_11 = arith.constant 0 : index
    %17 = vector.load %arg9[%c0_9, %c1, %c0_10, %c0_11] : memref<2x18x16x192xbf16, #tpu.memory_space<vmem>>, vector<2x16x16x192xbf16>
    tpu.vector_store %arg9[%c0_9, %c1, %c0_10, %c0_11], %16 {strides = array<i32>} : memref<2x18x16x192xbf16, #tpu.memory_space<vmem>>, vector<2x16x16x192xbf16>,
    %cst_12 = arith.constant 0.000000e+00 : bf16
    %18 = vector.broadcast %cst_12 : bf16 to vector<2x1x16x192xbf16>
    %c0_13 = arith.constant 0 : index
    %c0_14 = arith.constant 0 : index
    %c0_15 = arith.constant 0 : index
    %c0_16 = arith.constant 0 : index
    %19 = vector.load %arg9[%c0_13, %c0_14, %c0_15, %c0_16] : memref<2x18x16x192xbf16, #tpu.memory_space<vmem>>, vector<2x1x16x192xbf16>
    tpu.vector_store %arg9[%c0_13, %c0_14, %c0_15, %c0_16], %18 {strides = array<i32>} : memref<2x18x16x192xbf16, #tpu.memory_space<vmem>>, vector<2x1x16x192xbf16>,
    %c0_17 = arith.constant 0 : index
    %c17 = arith.constant 17 : index
    %c0_18 = arith.constant 0 : index
    %c0_19 = arith.constant 0 : index
    %20 = vector.load %arg9[%c0_17, %c17, %c0_18, %c0_19] : memref<2x18x16x192xbf16, #tpu.memory_space<vmem>>, vector<2x1x16x192xbf16>
    tpu.vector_store %arg9[%c0_17, %c17, %c0_18, %c0_19], %18 {strides = array<i32>} : memref<2x18x16x192xbf16, #tpu.memory_space<vmem>>, vector<2x1x16x192xbf16>,
    %c0_20 = arith.constant 0 : index
    %c0_21 = arith.constant 0 : index
    %c0_22 = arith.constant 0 : index
    %c0_23 = arith.constant 0 : index
    %21 = vector.load %arg9[%c0_20, %c0_21, %c0_22, %c0_23] : memref<2x18x16x192xbf16, #tpu.memory_space<vmem>>, vector<1x16x16x192xbf16>
    %22 = vector.shape_cast %21 : vector<1x16x16x192xbf16> to vector<16x16x192xbf16>
    %23 = vector.shape_cast %22 : vector<16x16x192xbf16> to vector<256x192xbf16>
    %c0_24 = arith.constant 0 : index
    %c0_25 = arith.constant 0 : index
    %c0_26 = arith.constant 0 : index
    %24 = vector.load %arg3[%c0_24, %c0_25, %c0_26] : memref<3x192x64xbf16, #tpu.memory_space<vmem>>, vector<1x192x64xbf16>
    %25 = vector.shape_cast %24 : vector<1x192x64xbf16> to vector<192x64xbf16>
    %cst_27 = arith.constant dense<0.000000e+00> : vector<256x64xf32>
    %26 = tpu.matmul %23, %25, %cst_27 {dimension_numbers = #tpu.dot_dimension_numbers<[1], [0], [0], [1], [0, 0, 1, 1], [], []>} : vector<256x192xbf16>, vector<192x64xbf16>, vector<256x64xf32> -> vector<256x64xf32>
    %c0_28 = arith.constant 0 : index
    %c1_29 = arith.constant 1 : index
    %c0_30 = arith.constant 0 : index
    %c0_31 = arith.constant 0 : index
    %27 = vector.load %arg9[%c0_28, %c1_29, %c0_30, %c0_31] : memref<2x18x16x192xbf16, #tpu.memory_space<vmem>>, vector<1x16x16x192xbf16>
    %28 = vector.shape_cast %27 : vector<1x16x16x192xbf16> to vector<16x16x192xbf16>
    %29 = vector.shape_cast %28 : vector<16x16x192xbf16> to vector<256x192xbf16>
    %c1_32 = arith.constant 1 : index
    %c0_33 = arith.constant 0 : index
    %c0_34 = arith.constant 0 : index
    %30 = vector.load %arg3[%c1_32, %c0_33, %c0_34] : memref<3x192x64xbf16, #tpu.memory_space<vmem>>, vector<1x192x64xbf16>
    %31 = vector.shape_cast %30 : vector<1x192x64xbf16> to vector<192x64xbf16>
    %cst_35 = arith.constant dense<0.000000e+00> : vector<256x64xf32>
    %32 = tpu.matmul %29, %31, %cst_35 {dimension_numbers = #tpu.dot_dimension_numbers<[1], [0], [0], [1], [0, 0, 1, 1], [], []>} : vector<256x192xbf16>, vector<192x64xbf16>, vector<256x64xf32> -> vector<256x64xf32>
    %33 = arith.addf %26, %32 : vector<256x64xf32>
    %c0_36 = arith.constant 0 : index
    %c2 = arith.constant 2 : index
    %c0_37 = arith.constant 0 : index
    %c0_38 = arith.constant 0 : index
    %34 = vector.load %arg9[%c0_36, %c2, %c0_37, %c0_38] : memref<2x18x16x192xbf16, #tpu.memory_space<vmem>>, vector<1x16x16x192xbf16>
    %35 = vector.shape_cast %34 : vector<1x16x16x192xbf16> to vector<16x16x192xbf16>
    %36 = vector.shape_cast %35 : vector<16x16x192xbf16> to vector<256x192xbf16>
    %c2_39 = arith.constant 2 : index
    %c0_40 = arith.constant 0 : index
    %c0_41 = arith.constant 0 : index
    %37 = vector.load %arg3[%c2_39, %c0_40, %c0_41] : memref<3x192x64xbf16, #tpu.memory_space<vmem>>, vector<1x192x64xbf16>
    %38 = vector.shape_cast %37 : vector<1x192x64xbf16> to vector<192x64xbf16>
    %cst_42 = arith.constant dense<0.000000e+00> : vector<256x64xf32>
    %39 = tpu.matmul %36, %38, %cst_42 {dimension_numbers = #tpu.dot_dimension_numbers<[1], [0], [0], [1], [0, 0, 1, 1], [], []>} : vector<256x192xbf16>, vector<192x64xbf16>, vector<256x64xf32> -> vector<256x64xf32>
    %40 = arith.addf %33, %39 : vector<256x64xf32>
    %c1_43 = arith.constant 1 : index
    %c0_44 = arith.constant 0 : index
    %c0_45 = arith.constant 0 : index
    %c0_46 = arith.constant 0 : index
    %41 = vector.load %arg9[%c1_43, %c0_44, %c0_45, %c0_46] : memref<2x18x16x192xbf16, #tpu.memory_space<vmem>>, vector<1x16x16x192xbf16>
    %42 = vector.shape_cast %41 : vector<1x16x16x192xbf16> to vector<16x16x192xbf16>
    %43 = vector.shape_cast %42 : vector<16x16x192xbf16> to vector<256x192xbf16>
    %c0_47 = arith.constant 0 : index
    %c0_48 = arith.constant 0 : index
    %c0_49 = arith.constant 0 : index
    %44 = vector.load %arg3[%c0_47, %c0_48, %c0_49] : memref<3x192x64xbf16, #tpu.memory_space<vmem>>, vector<1x192x64xbf16>
    %45 = vector.shape_cast %44 : vector<1x192x64xbf16> to vector<192x64xbf16>
    %cst_50 = arith.constant dense<0.000000e+00> : vector<256x64xf32>
    %46 = tpu.matmul %43, %45, %cst_50 {dimension_numbers = #tpu.dot_dimension_numbers<[1], [0], [0], [1], [0, 0, 1, 1], [], []>} : vector<256x192xbf16>, vector<192x64xbf16>, vector<256x64xf32> -> vector<256x64xf32>
    %c1_51 = arith.constant 1 : index
    %c1_52 = arith.constant 1 : index
    %c0_53 = arith.constant 0 : index
    %c0_54 = arith.constant 0 : index
    %47 = vector.load %arg9[%c1_51, %c1_52, %c0_53, %c0_54] : memref<2x18x16x192xbf16, #tpu.memory_space<vmem>>, vector<1x16x16x192xbf16>
    %48 = vector.shape_cast %47 : vector<1x16x16x192xbf16> to vector<16x16x192xbf16>
    %49 = vector.shape_cast %48 : vector<16x16x192xbf16> to vector<256x192xbf16>
    %c1_55 = arith.constant 1 : index
    %c0_56 = arith.constant 0 : index
    %c0_57 = arith.constant 0 : index
    %50 = vector.load %arg3[%c1_55, %c0_56, %c0_57] : memref<3x192x64xbf16, #tpu.memory_space<vmem>>, vector<1x192x64xbf16>
    %51 = vector.shape_cast %50 : vector<1x192x64xbf16> to vector<192x64xbf16>
    %cst_58 = arith.constant dense<0.000000e+00> : vector<256x64xf32>
    %52 = tpu.matmul %49, %51, %cst_58 {dimension_numbers = #tpu.dot_dimension_numbers<[1], [0], [0], [1], [0, 0, 1, 1], [], []>} : vector<256x192xbf16>, vector<192x64xbf16>, vector<256x64xf32> -> vector<256x64xf32>
    %53 = arith.addf %46, %52 : vector<256x64xf32>
    %c1_59 = arith.constant 1 : index
    %c2_60 = arith.constant 2 : index
    %c0_61 = arith.constant 0 : index
    %c0_62 = arith.constant 0 : index
    %54 = vector.load %arg9[%c1_59, %c2_60, %c0_61, %c0_62] : memref<2x18x16x192xbf16, #tpu.memory_space<vmem>>, vector<1x16x16x192xbf16>
    %55 = vector.shape_cast %54 : vector<1x16x16x192xbf16> to vector<16x16x192xbf16>
    %56 = vector.shape_cast %55 : vector<16x16x192xbf16> to vector<256x192xbf16>
    %c2_63 = arith.constant 2 : index
    %c0_64 = arith.constant 0 : index
    %c0_65 = arith.constant 0 : index
    %57 = vector.load %arg3[%c2_63, %c0_64, %c0_65] : memref<3x192x64xbf16, #tpu.memory_space<vmem>>, vector<1x192x64xbf16>
    %58 = vector.shape_cast %57 : vector<1x192x64xbf16> to vector<192x64xbf16>
    %cst_66 = arith.constant dense<0.000000e+00> : vector<256x64xf32>
    %59 = tpu.matmul %56, %58, %cst_66 {dimension_numbers = #tpu.dot_dimension_numbers<[1], [0], [0], [1], [0, 0, 1, 1], [], []>} : vector<256x192xbf16>, vector<192x64xbf16>, vector<256x64xf32> -> vector<256x64xf32>
    %60 = arith.addf %53, %59 : vector<256x64xf32>
    %61 = tpu.concatenate %40, %60 in 0 : vector<256x64xf32>, vector<256x64xf32> -> vector<512x64xf32>
    %c0_67 = arith.constant 0 : index
    %c0_68 = arith.constant 0 : index
    %62 = vector.load %arg6[%c0_67, %c0_68] : memref<1x64xf32, #tpu.memory_space<vmem>>, vector<1x64xf32>
    %63 = vector.broadcast %62 : vector<1x64xf32> to vector<512x64xf32>
    %64 = arith.addf %61, %63 : vector<512x64xf32>
    %cst_69 = arith.constant 0.000000e+00 : f32
    %65 = vector.broadcast %cst_69 : f32 to vector<512x64xf32>
    %66 = arith.maximumf %64, %65 : vector<512x64xf32>
    %67 = arith.truncf %66 : vector<512x64xf32> to vector<512x64xbf16>
    %c0_70 = arith.constant 0 : index
    %c0_71 = arith.constant 0 : index
    %68 = vector.load %arg4[%c0_70, %c0_71] : memref<64x256xbf16, #tpu.memory_space<vmem>>, vector<64x256xbf16>
    %cst_72 = arith.constant dense<0.000000e+00> : vector<512x256xf32>
    %69 = tpu.matmul %67, %68, %cst_72 {dimension_numbers = #tpu.dot_dimension_numbers<[1], [0], [0], [1], [0, 0, 1, 1], [], []>} : vector<512x64xbf16>, vector<64x256xbf16>, vector<512x256xf32> -> vector<512x256xf32>
    %c0_73 = arith.constant 0 : index
    %c0_74 = arith.constant 0 : index
    %c0_75 = arith.constant 0 : index
    %c0_76 = arith.constant 0 : index
    %70 = vector.load %arg1[%c0_73, %c0_74, %c0_75, %c0_76] : memref<2x16x16x256xbf16, #tpu.memory_space<vmem>>, vector<2x16x16x256xbf16>
    %71 = vector.shape_cast %70 : vector<2x16x16x256xbf16> to vector<512x256xbf16>
    %72 = arith.extf %71 : vector<512x256xbf16> to vector<512x256xf32>
    %c0_77 = arith.constant 0 : index
    %c0_78 = arith.constant 0 : index
    %73 = vector.load %arg7[%c0_77, %c0_78] : memref<1x256xf32, #tpu.memory_space<vmem>>, vector<1x256xf32>
    %74 = vector.broadcast %73 : vector<1x256xf32> to vector<512x256xf32>
    %75 = arith.addf %69, %74 : vector<512x256xf32>
    %76 = arith.addf %75, %72 : vector<512x256xf32>
    %cst_79 = arith.constant 0.000000e+00 : f32
    %77 = vector.broadcast %cst_79 : f32 to vector<512x256xf32>
    %78 = arith.maximumf %76, %77 : vector<512x256xf32>
    %79 = vector.shape_cast %78 : vector<512x256xf32> to vector<2x16x16x256xf32>
    %80 = arith.truncf %79 : vector<2x16x16x256xf32> to vector<2x16x16x256xbf16>
    %c0_80 = arith.constant 0 : index
    %c0_81 = arith.constant 0 : index
    %c0_82 = arith.constant 0 : index
    %c0_83 = arith.constant 0 : index
    %81 = vector.load %arg8[%c0_80, %c0_81, %c0_82, %c0_83] : memref<2x16x16x256xbf16, #tpu.memory_space<vmem>>, vector<2x16x16x256xbf16>
    tpu.vector_store %arg8[%c0_80, %c0_81, %c0_82, %c0_83], %80 {strides = array<i32>} : memref<2x16x16x256xbf16, #tpu.memory_space<vmem>>, vector<2x16x16x256xbf16>,
    return
  }
  func.func @transform_0(%arg0: i32) -> (i32, i32, i32, i32) {
    %c0_i32 = arith.constant 0 : i32
    %c0_i32_0 = arith.constant 0 : i32
    %c0_i32_1 = arith.constant 0 : i32
    %c0_i32_2 = arith.constant 0 : i32
    return %arg0, %c0_i32, %c0_i32_0, %c0_i32_1 : i32, i32, i32, i32
  }
  func.func @transform_1(%arg0: i32) -> (i32, i32) {
    %c0_i32 = arith.constant 0 : i32
    %c0_i32_0 = arith.constant 0 : i32
    %c0_i32_1 = arith.constant 0 : i32
    return %c0_i32, %c0_i32_0 : i32, i32
  }
  func.func @transform_2(%arg0: i32) -> (i32, i32, i32) {
    %c0_i32 = arith.constant 0 : i32
    %c0_i32_0 = arith.constant 0 : i32
    %c0_i32_1 = arith.constant 0 : i32
    %c0_i32_2 = arith.constant 0 : i32
    return %c0_i32, %c0_i32_0, %c0_i32_1 : i32, i32, i32
  }
  func.func @transform_3(%arg0: i32) -> (i32, i32) {
    %c0_i32 = arith.constant 0 : i32
    %c0_i32_0 = arith.constant 0 : i32
    %c0_i32_1 = arith.constant 0 : i32
    return %c0_i32, %c0_i32_0 : i32, i32
  }
  func.func @transform_4(%arg0: i32) -> (i32, i32) {
    %c0_i32 = arith.constant 0 : i32
    %c0_i32_0 = arith.constant 0 : i32
    %c0_i32_1 = arith.constant 0 : i32
    return %c0_i32, %c0_i32_0 : i32, i32
  }
  func.func @transform_5(%arg0: i32) -> (i32, i32) {
    %c0_i32 = arith.constant 0 : i32
    %c0_i32_0 = arith.constant 0 : i32
    %c0_i32_1 = arith.constant 0 : i32
    return %c0_i32, %c0_i32_0 : i32, i32
  }
  func.func @transform_6(%arg0: i32) -> (i32, i32) {
    %c0_i32 = arith.constant 0 : i32
    %c0_i32_0 = arith.constant 0 : i32
    %c0_i32_1 = arith.constant 0 : i32
    return %c0_i32, %c0_i32_0 : i32, i32
  }
  func.func @transform_7(%arg0: i32) -> (i32, i32, i32, i32) {
    %c0_i32 = arith.constant 0 : i32
    %c0_i32_0 = arith.constant 0 : i32
    %c0_i32_1 = arith.constant 0 : i32
    %c0_i32_2 = arith.constant 0 : i32
    return %arg0, %c0_i32, %c0_i32_0, %c0_i32_1 : i32, i32, i32, i32
  }
}

</mosaic_0001>

<bundles_post_ra>
// kernel: bottleneck_forward_nhwc.1
= control target key start
LH: loop header
LB: loop body
LE: loop exit
PB: predicated region body
PF: predicated region fallthrough
CT: control target
= control target key end

     0   :  { %12 = vsyncpa [#allocation4], 0  ;;  %s11312_s0 = inlined_call_operand.hbm [shape: bf16[8,16,16,256], index: 0, kind: input, shape index: {}]   ;;  %s11313_s1 = inlined_call_operand.vmem [shape: bf16[256,64], index: 1, kind: input, shape index: {}]   ;;  %s11314_s2 = inlined_call_operand.vmem [shape: bf16[3,192,64], index: 2, kind: input, shape index: {}]   ;;  %s11315_s3 = inlined_call_operand.vmem [shape: bf16[64,256], index: 3, kind: input, shape index: {}]   ;;  %s11316_s4 = inlined_call_operand.vmem [shape: f32[1,64], index: 4, kind: input, shape index: {}]   ;;  %s11317_s5 = inlined_call_operand.vmem [shape: f32[1,64], index: 5, kind: input, shape index: {}]   ;;  %s11318_s6 = inlined_call_operand.vmem [shape: f32[1,256], index: 6, kind: input, shape index: {}]   ;;  %s11319_s7 = inlined_call_operand.hbm [shape: bf16[8,16,16,256], index: 7, kind: output, shape index: {}]  }
   0x1   :  { %14 = vsyncpa [#allocation4 + $0x1], 0 }
   0x2   :  { %15 = vsyncpa [#allocation5], 0 }
   0x3   :  { %17 = vsyncpa [#allocation5 + $0x1], 0  ;;  %s8546_s24 = smov 0   ;;  %s8548_s25 = smov 0  }
   0x4   :  { %s8550_s26 = smov 0   ;;  %s8552_s27 = smov 0  }
   0x5 LB: > { %s8567_s28 = sadd.s32 4294967295, %s8498_s27   ;;  %s6513_s29 = sadd.s32 4294967294, %s8498_s27   ;;  %s8498_s27 = sphi %s8552_s27, %s11760_s27   ;;  %s8494_s26 = sphi %s8550_s26, %s11759_s26   ;;  %s8490_s25 = sphi %s8548_s25, %s11758_s25   ;;  %s8486_s24 = sphi %s8546_s24, %s11757_s24  }
   0x6   : > { %s8571_s30 = sadd.s32 1, %s8498_s27   ;;  %s30_s8 = sadd.s32 1, %s8494_s26 }
   0x7   : > { %s27_s9 = ssub.s32 %s8498_s27, %s8571_s30  ;;  %p37_p0 = scmp.ne.s32.totalorder %s8494_s26, %s8490_s25 }
   0x8   : > { %p28_p1 = scmp.eq.s32.totalorder %s27_s9, 0  ;;  %p38_p2 = scmp.eq.s32.totalorder %s8498_s27, 0 }
   0x9   : > { %p43_p3 = scmp.ne.s32.totalorder %s8490_s25, %s8486_s24  ;;  %p44_p4 = scmp.eq.s32.totalorder %s8567_s28, 0 }
   0xa   : > { %s8583_s10 = scalar_select %p28_p1, %s8494_s26, %s30_s8  }
   0xb   : > { %p8585_p5 = por %p38_p2, %p37_p0  ;;  %p8589_p6 = por %p44_p4, %p43_p3 }
   0xc   : > { %11320 = sst [smem:[#allocation9_spill]] %s8583_s10  ;;  %p193_p7 = scmp.eq.s32.totalorder %s8567_s28, 3 }
   0xd   : > { %p199_p8 = scmp.eq.s32.totalorder %s6513_s29, 3  ;;  %p8341_p9 = scmp.lt.s32.totalorder %s8498_s27, 4 }
   0xe   : > { %p8595_p10 = por %p193_p7, %p37_p0  ;;  %s237_s15 = sand.u32 1, %s8494_s26  }
   0xf   : > { %p8599_p11 = por %p199_p8, %p43_p3  ;;  %s8002_s16 = sshll.u32 %s8498_s27, 9 }
  0x10   : > { %s6516_s17 = sshll.u32 %s237_s15, 9  ;;  %s247_s20 = scalar_lea.hbm %s11312_s0, %s8002_s16 }
  0x11   : > { %s248_s21 = sshll.u32 %s247_s20, 4  ;;  %s241_s22 = scalar_lea.vmem [#allocation3], %s6516_s17  ;;  %s249_s21 = int_to_ptr.hbm [resolvable:$true] %s248_s21 }
  0x12   : > { %s250_s23 = sshll.u32 %s241_s22, 4  ;;  %p8610_p12 = pnand %p8341_p9, %p8585_p5  ;;  %s251_s23 = int_to_ptr.vmem [resolvable:$true] %s250_s23 }
  0x13   : > { %p6520_p13 = scmp.ge.s32.totalorder %s8498_s27, 1  ;;  %p258_p0 = scmp.lt.s32.totalorder %s8498_s27, 5 }
  0x14   : > { %s238_s8 = scalar_lea.sflag [#allocation4], %s237_s15  ;;  %s8402_s9 = sshra.s32 %s249_s21, 4  ;;  %s8403_s9 = int_to_ptr.hbm [resolvable:$true] %s8402_s9 }
  0x15   : > { %s8404_s10 = scalar_lea.hbm %s8403_s9, 512  ;;  %p8406_p2 = pneg %p8610_p12 }
  0x16   : > { %p8405_p1 = scmp.ne.s32.totalorder %s8403_s9, %s8404_s10  ;;  %s8409_s11 = scalar_lea.hbm %s11312_s0, 2048 }
  0x17   : > { %p8410_p5 = scmp.lt.s32.totalorder %s8403_s9, %s11312_s0  ;;  %p8411_p7 = scmp.lt.s32.totalorder %s8409_s11, %s8404_s10 }
  0x18   : > { %p8407_p3 = pnand %p8406_p2, %p8405_p1 }
  0x19   : > { %p8412_p8 = por %p8411_p7, %p8410_p5 }
  0x1a   : > { %p8408_p4 = pneg %p8407_p3 }
  0x1c   : > { %p8413_p9 = pnand %p8412_p8, %p8408_p4 }
  0x1e   : > { %8416 = shalt.err (!%p8413_p9)
}
  0x1f   : > { %s8500_s15 = smov 128   ;;  %s8501_s20 = smov 8  }
  0x20   : > { %8336 = dma.hbm_to_vmem [thread:$0]  (!%p8610_p12), %s249_s21, 8192, %s251_s23, %s238_s8, %s8500_s15, %s8500_s15, %s8501_s20  }
  0x21   : > { %p259_p1 = pnand %p6520_p13, %p258_p0 }
  0x23   : > { %262 = sbr.rel (%p259_p1) target bundleno = 2174 (0x87e), region = 48 }
  0x28   : > { %s8631_s22 = sand.u32 1, %s8490_s25  }
  0x29   : > { %s6521_s10 = sshll.u32 %s8631_s22, 9  ;;  %s265_s9 = scalar_lea.sflag [#allocation4], %s8631_s22 }
  0x2a   : > { %s8637_s16 = scalar_lea.vmem [#allocation3], %s6521_s10 }
  0x2b   : > { %8477 = dma.done.wait (%p8589_p6), %s265_s9, 8192  }
  0x2c   : > { %8479 = vsyncadd (%p8589_p6), %s265_s9, 4294959104  ;;  %v8074_v0 = vld [vmem:[%s11313_s1 + $0x38] sm:$0xff]  ;;  %v8073_v1 = vld [vmem:[%s11313_s1 + $0x30] sm:$0xff]  ;;  %s8502_s20 = smov 64   ;;  %vm2349_vm0 = vcmask 1043456   ;;  %vm2350_vm1 = vcmask 523268  }
  0x2d   : > { %8321 = vmatpush.bf16.msra.mxu1 %v8074_v0  ;;  %819 = vmatpush.bf16.msra.mxu0 %v8074_v0  ;;  %v8072_v2 = vld [vmem:[%s11313_s1 + $0x28] sm:$0xff]  ;;  %v8071_v3 = vld [vmem:[%s11313_s1 + $0x20] sm:$0xff]  ;;  %v8070_v4 = vld [vmem:[%s11313_s1 + $0x18] sm:$0xff]  ;;  %vm1832_vm3 = vcmask 1047552   ;;  %vm1833_vm4 = vsmask.f32 7424 }
  0x2e   : > { %v8069_v5 = vld [vmem:[%s11313_s1 + $0x10] sm:$0xff]  ;;  %v8068_v6 = vld [vmem:[%s11313_s1 + $0x8] sm:$0xff]  ;;  %v8067_v7 = vld [vmem:[%s11313_s1] sm:$0xff]  ;;  %vm1701_vm5 = vcmask 1040384   ;;  %vm1702_vm6 = vsmask.f32 256 }
  0x2f   : > { %v6653_v8 = vld [vmem:[%s8637_s16 + $0x100] sm:$0xf]  ;;  %v8036_v9 = vld [vmem:[%s8637_s16 + $0x104] sm:$0xf0]  ;;  %v8082_v10 = vld [vmem:[%s11313_s1 + $0x78] sm:$0xff]  ;;  %vm1931_vm9 = vcmask 523264  }
  0x30   : > { %v6654_v11 = vor.u32 %v8036_v9, %v6653_v8  ;;  %v8081_v12 = vld [vmem:[%s11313_s1 + $0x70] sm:$0xff]  ;;  %v8038_v14 = vld [vmem:[%s8637_s16 + $0x114] sm:$0xf0]  ;;  %v6669_v16 = vld [vmem:[%s8637_s16 + $0x120] sm:$0xf]  ;;  %s10656_s11 = scalar_lea.vmem [#allocation6], %s6521_s10 }
  0x31   : > { %8322 = vmatpush.bf16.msra.mxu1 %v8073_v1  ;;  %820 = vmatpush.bf16.msra.mxu0 %v8073_v1  ;;  %v6661_v13 = vld [vmem:[%s8637_s16 + $0x110] sm:$0xf]  ;;  %v8040_v17 = vld [vmem:[%s8637_s16 + $0x124] sm:$0xf0]  ;;  %v8042_v21 = vld [vmem:[%s8637_s16 + $0x134] sm:$0xf0] }
  0x32   : > { %v6662_v15 = vor.u32 %v8038_v14, %v6661_v13  ;;  %v6670_v18 = vor.u32 %v8040_v17, %v6669_v16  ;;  %v8080_v19 = vld [vmem:[%s11313_s1 + $0x68] sm:$0xff]  ;;  %v6677_v20 = vld [vmem:[%s8637_s16 + $0x130] sm:$0xf]  ;;  %v6685_v23 = vld [vmem:[%s8637_s16 + $0x140] sm:$0xf]  ;;  %s8452_s12 = scalar_lea.hbm %s11319_s7, 2048 }
  0x33   : > { %v6678_v22 = vor.u32 %v8042_v21, %v6677_v20  ;;  %v8044_v24 = vld [vmem:[%s8637_s16 + $0x144] sm:$0xf0]  ;;  %v8079_v26 = vld [vmem:[%s11313_s1 + $0x60] sm:$0xff]  ;;  %v6693_v27 = vld [vmem:[%s8637_s16 + $0x150] sm:$0xf] }
  0x34   : > { %v6686_v25 = vor.u32 %v8044_v24, %v6685_v23  ;;  %v8046_v28 = vld [vmem:[%s8637_s16 + $0x154] sm:$0xf0]  ;;  %v6701_v30 = vld [vmem:[%s8637_s16 + $0x160] sm:$0xf]  ;;  %v8048_v31 = vld [vmem:[%s8637_s16 + $0x164] sm:$0xf0] }
  0x35   : > { %8323 = vmatpush.bf16.msra.mxu1 %v8072_v2  ;;  %821 = vmatpush.bf16.msra.mxu0 %v8072_v2  ;;  %v6694_v29 = vor.u32 %v8046_v28, %v6693_v27  ;;  %v6702_v32 = vor.u32 %v8048_v31, %v6701_v30  ;;  %v8078_v33 = vld [vmem:[%s11313_s1 + $0x58] sm:$0xff]  ;;  %v6709_v34 = vld [vmem:[%s8637_s16 + $0x170] sm:$0xf]  ;;  %v6717_v37 = vld [vmem:[%s8637_s16 + $0x180] sm:$0xf] }
  0x36   : > { %v8050_v35 = vld [vmem:[%s8637_s16 + $0x174] sm:$0xf0]  ;;  %v8052_v38 = vld [vmem:[%s8637_s16 + $0x184] sm:$0xf0]  ;;  %v8077_v41 = vld [vmem:[%s11313_s1 + $0x50] sm:$0xff] }
  0x37   : > { %v6710_v36 = vor.u32 %v8050_v35, %v6709_v34  ;;  %v6718_v39 = vor.u32 %v8052_v38, %v6717_v37  ;;  %v6725_v43 = vld [vmem:[%s8637_s16 + $0x190] sm:$0xf]  ;;  %v8054_v44 = vld [vmem:[%s8637_s16 + $0x194] sm:$0xf0]  ;;  %v6733_v48 = vld [vmem:[%s8637_s16 + $0x1a0] sm:$0xf] }
  0x38   : > { %v6726_v45 = vor.u32 %v8054_v44, %v6725_v43  ;;  %v8056_v49 = vld [vmem:[%s8637_s16 + $0x1a4] sm:$0xf0]  ;;  %v6741_v54 = vld [vmem:[%s8637_s16 + $0x1b0] sm:$0xf]  ;;  %v8058_v55 = vld [vmem:[%s8637_s16 + $0x1b4] sm:$0xf0] }
  0x39   : > { %8324 = vmatpush.bf16.msra.mxu1 %v8071_v3  ;;  %822 = vmatpush.bf16.msra.mxu0 %v8071_v3  ;;  %v6734_v50 = vor.u32 %v8056_v49, %v6733_v48  ;;  %v8076_v52 = vld [vmem:[%s11313_s1 + $0x48] sm:$0xff]  ;;  %v6742_v56 = vor.u32 %v8058_v55, %v6741_v54  ;;  %v6749_v59 = vld [vmem:[%s8637_s16 + $0x1c0] sm:$0xf]  ;;  %v6757_v1 = vld [vmem:[%s8637_s16 + $0x1d0] sm:$0xf] }
  0x3a   : > { %v8060_v60 = vld [vmem:[%s8637_s16 + $0x1c4] sm:$0xf0]  ;;  %v8075_v63 = vld [vmem:[%s11313_s1 + $0x40] sm:$0xff]  ;;  %v8062_v2 = vld [vmem:[%s8637_s16 + $0x1d4] sm:$0xf0] }
  0x3b   : > { %v6750_v61 = vor.u32 %v8060_v60, %v6749_v59  ;;  %v6758_v3 = vor.u32 %v8062_v2, %v6757_v1  ;;  %v6765_v9 = vld [vmem:[%s8637_s16 + $0x1e0] sm:$0xf]  ;;  %v6533_v13 = vld [vmem:[%s8637_s16 + $0x10] sm:$0xf]  ;;  %v8006_v14 = vld [vmem:[%s8637_s16 + $0x14] sm:$0xf0] }
  0x3c   : > { %v6773_v17 = vld [vmem:[%s8637_s16 + $0x1f0] sm:$0xf]  ;;  %v6541_v21 = vld [vmem:[%s8637_s16 + $0x20] sm:$0xf]  ;;  %v8010_v30 = vld [vmem:[%s8637_s16 + $0x34] sm:$0xf0] }
  0x3d   : > { %8325 = vmatpush.bf16.msra.mxu1 %v8070_v4  ;;  %823 = vmatpush.bf16.msra.mxu0 %v8070_v4  ;;  %v6535_v34 = vld [vmem:[%s8637_s16 + $0x18] sm:$0xf0]  ;;  %v6557_v37 = vld [vmem:[%s8637_s16 + $0x40] sm:$0xf]  ;;  %v8012_v38 = vld [vmem:[%s8637_s16 + $0x44] sm:$0xf0] }
  0x3e   : > { %v8007_v43 = vld [vmem:[%s8637_s16 + $0x24] sm:$0xf]  ;;  %v6543_v44 = vld [vmem:[%s8637_s16 + $0x28] sm:$0xf0]  ;;  %v6565_v49 = vld [vmem:[%s8637_s16 + $0x50] sm:$0xf] }
  0x3f   : > { %v8009_v55 = vld [vmem:[%s8637_s16 + $0x34] sm:$0xf]  ;;  %vm8928_vm2 = vmor %vm2350_vm1, %vm2349_vm0 }
  0x40   : > { %vm9018_vm7 = vmand %vm1832_vm3, %vm1833_vm4 }
  0x41   : > { %8326 = vmatpush.bf16.msra.mxu1 %v8069_v5  ;;  %824 = vmatpush.bf16.msra.mxu0 %v8069_v5  ;;  %v6525_v5 = vld [vmem:[%s8637_s16] sm:$0xf]  ;;  %vm9027_vm8 = vmand %vm1701_vm5, %vm1702_vm6 }
  0x45   : > { %8327 = vmatpush.bf16.msra.mxu1 %v8068_v6  ;;  %825 = vmatpush.bf16.msra.mxu0 %v8068_v6  ;;  %v8004_v6 = vld [vmem:[%s8637_s16 + $0x4] sm:$0xf0] }
  0x49   : > { %8328 = vmatpush.bf16.msra.mxu1 %v8067_v7  ;;  %826 = vmatpush.bf16.msra.mxu0 %v8067_v7  ;;  %v6526_v7 = vor.u32 %v8004_v6, %v6525_v5  ;;  %v6559_v5 = vld [vmem:[%s8637_s16 + $0x48] sm:$0xf0] }
  0x4c   : > { %907 = vmatmul.bf16.vlgmr.msra.gmra.mxu1 %v6654_v11  ;;  %827 = vmatmul.bf16.vlgmr.msra.gmra.mxu0 %v6526_v7 }
  0x4d   : > { %988 = vmatpush.bf16.msrb.mxu1 %v8082_v10  ;;  %v8064_v10 = vld [vmem:[%s8637_s16 + $0x1e4] sm:$0xf0] }
  0x4e   : > { %v6766_v11 = vor.u32 %v8064_v10, %v6765_v9  ;;  %v6581_v9 = vld [vmem:[%s8637_s16 + $0x70] sm:$0xf]  ;;  %v8018_v10 = vld [vmem:[%s8637_s16 + $0x74] sm:$0xf0] }
  0x51   : > { %989 = vmatpush.bf16.msrb.mxu1 %v8081_v12 }
  0x55   : > { %990 = vmatpush.bf16.msrb.mxu1 %v8080_v19 }
  0x59   : > { %991 = vmatpush.bf16.msrb.mxu1 %v8079_v26  ;;  %v6527_v26 = vld [vmem:[%s8637_s16 + $0x8] sm:$0xf0] }
  0x5c   : > { %912 = vmatmul.bf16.gmra.mxu1 %v6662_v15  ;;  %v6534_v15 = vor.u32 %v8006_v14, %v6533_v13  ;;  %v8013_v14 = vld [vmem:[%s8637_s16 + $0x54] sm:$0xf] }
  0x5d   : > { %992 = vmatpush.bf16.msrb.mxu1 %v8078_v33  ;;  %v8005_v33 = vld [vmem:[%s8637_s16 + $0x14] sm:$0xf] }
  0x5e   : > { %832 = vmatmul.bf16.gmra.mxu0 %v6534_v15  ;;  %v6538_v35 = vor.u32 %v8005_v33, %v6535_v34  ;;  %v6567_v15 = vld [vmem:[%s8637_s16 + $0x58] sm:$0xf0]  ;;  %v6597_v34 = vld [vmem:[%s8637_s16 + $0x90] sm:$0xf] }
  0x61   : > { %993 = vmatpush.bf16.msrb.mxu1 %v8077_v41 }
  0x65   : > { %994 = vmatpush.bf16.msrb.mxu1 %v8076_v52 }
  0x69   : > { %995 = vmatpush.bf16.msrb.mxu1 %v8075_v63  ;;  %v8016_v63 = vld [vmem:[%s8637_s16 + $0x64] sm:$0xf0] }
  0x6c   : > { %917 = vmatmul.bf16.gmra.mxu1 %v6670_v18  ;;  %v8066_v18 = vld [vmem:[%s8637_s16 + $0x1f4] sm:$0xf0] }
  0x6d   : > { %v6774_v19 = vor.u32 %v8066_v18, %v6773_v17  ;;  %v6570_v17 = vor.u32 %v8013_v14, %v6567_v15  ;;  %v6613_v14 = vld [vmem:[%s8637_s16 + $0xb0] sm:$0xf]  ;;  %v8026_v15 = vld [vmem:[%s8637_s16 + $0xb4] sm:$0xf0] }
  0x7c   : > { %922 = vmatmul.bf16.gmra.mxu1 %v6678_v22  ;;  %v8008_v22 = vld [vmem:[%s8637_s16 + $0x24] sm:$0xf0] }
  0x7d   : > { %v6542_v23 = vor.u32 %v8008_v22, %v6541_v21  ;;  %v6589_v21 = vld [vmem:[%s8637_s16 + $0x80] sm:$0xf]  ;;  %v8020_v22 = vld [vmem:[%s8637_s16 + $0x84] sm:$0xf0] }
  0x7f   : > { %837 = vmatmul.bf16.gmra.mxu0 %v6542_v23  ;;  %v6590_v23 = vor.u32 %v8020_v22, %v6589_v21  ;;  %v6614_v22 = vor.u32 %v8026_v15, %v6613_v14 }
  0x8c   : > { %927 = vmatmul.bf16.gmra.mxu1 %v6686_v25  ;;  %v8003_v25 = vld [vmem:[%s8637_s16 + $0x4] sm:$0xf] }
  0x8d   : > { %v6530_v27 = vor.u32 %v8003_v25, %v6527_v26  ;;  %v8015_v26 = vld [vmem:[%s8637_s16 + $0x64] sm:$0xf] }
  0x9c   : > { %932 = vmatmul.bf16.gmra.mxu1 %v6694_v29  ;;  %v6549_v29 = vld [vmem:[%s8637_s16 + $0x30] sm:$0xf] }
  0x9d   : > { %v6550_v31 = vor.u32 %v8010_v30, %v6549_v29 }
  0x9f   : > { %842 = vmatmul.bf16.gmra.mxu0 %v6550_v31 }
  0xac   : > { %937 = vmatmul.bf16.gmra.mxu1 %v6702_v32 }
  0xbc   : > { %942 = vmatmul.bf16.gmra.mxu1 %v6710_v36 }
  0xc9   : > { %v8700_v40 = vpop.f32.mrf.mxu1 }
  0xcc   : > { %947 = vmatmul.bf16.gmra.mxu1 %v6718_v39  ;;  %v6558_v39 = vor.u32 %v8012_v38, %v6557_v37 }
  0xce   : > { %847 = vmatmul.bf16.gmra.mxu0 %v6558_v39  ;;  %v8017_v39 = vld [vmem:[%s8637_s16 + $0x74] sm:$0xf] }
  0xd1   : > { %v8705_v42 = vpop.f32.mrf.mxu1 }
  0xd9   : > { %v8709_v46 = vpop.f32.mrf.mxu1 }
  0xdc   : > { %952 = vmatmul.bf16.gmra.mxu1 %v6726_v45  ;;  %v6546_v45 = vor.u32 %v8007_v43, %v6543_v44  ;;  %v6583_v43 = vld [vmem:[%s8637_s16 + $0x78] sm:$0xf0] }
  0xe1   : > { %v8711_v47 = vpop.f32.mrf.mxu1 }
  0xe9   : > { %v8715_v51 = vpop.f32.mrf.mxu1 }
  0xec   : > { %957 = vmatmul.bf16.gmra.mxu1 %v6734_v50  ;;  %v8014_v50 = vld [vmem:[%s8637_s16 + $0x54] sm:$0xf0] }
  0xed   : > { %v6566_v52 = vor.u32 %v8014_v50, %v6565_v49 }
  0xef   : > { %852 = vmatmul.bf16.gmra.mxu0 %v6566_v52  ;;  %v6605_v52 = vld [vmem:[%s8637_s16 + $0xa0] sm:$0xf] }
  0xf1   : > { %v8720_v53 = vpop.f32.mrf.mxu1 }
  0xf9   : > { %v8724_v57 = vpop.f32.mrf.mxu1 }
  0xfc   : > { %962 = vmatmul.bf16.gmra.mxu1 %v6742_v56  ;;  %v6551_v56 = vld [vmem:[%s8637_s16 + $0x38] sm:$0xf0] }
  0xfd   : > { %v6554_v59 = vor.u32 %v8009_v55, %v6551_v56  ;;  %v8024_v55 = vld [vmem:[%s8637_s16 + $0xa4] sm:$0xf0] }
  0xfe   : > { %v6606_v56 = vor.u32 %v8024_v55, %v6605_v52 }
 0x101   : > { %v8726_v58 = vpop.f32.mrf.mxu1 }
 0x109   : > { %v8730_v62 = vpop.f32.mrf.mxu1 }
 0x10c   : > { %967 = vmatmul.bf16.gmra.mxu1 %v6750_v61  ;;  %v6573_v61 = vld [vmem:[%s8637_s16 + $0x60] sm:$0xf] }
 0x10d   : > { %v6574_v1 = vor.u32 %v8016_v63, %v6573_v61  ;;  %v8019_v61 = vld [vmem:[%s8637_s16 + $0x84] sm:$0xf]  ;;  %v6591_v63 = vld [vmem:[%s8637_s16 + $0x88] sm:$0xf0] }
 0x10f   : > { %857 = vmatmul.bf16.gmra.mxu0 %v6574_v1  ;;  %v8830_v1 = vld [vmem:[%s11316_s4] ss:$0 sm:$0xff] }
 0x111   : > { %v8735_v0 = vpop.f32.mrf.mxu1 }
 0x119   : > { %v8739_v4 = vpop.f32.mrf.mxu1 }
 0x11c   : > { %972 = vmatmul.bf16.gmra.mxu1 %v6758_v3  ;;  %v8011_v3 = vld [vmem:[%s8637_s16 + $0x44] sm:$0xf] }
 0x11d   : > { %v6562_v6 = vor.u32 %v8011_v3, %v6559_v5 }
 0x121   : > { %v8743_v8 = vpop.f32.mrf.mxu1 }
 0x129   : > { %v8747_v12 = vpop.f32.mrf.mxu1 }
 0x12c   : > { %977 = vmatmul.bf16.gmra.mxu1 %v6766_v11  ;;  %v6582_v11 = vor.u32 %v8018_v10, %v6581_v9 }
 0x12e   : > { %862 = vmatmul.bf16.gmra.mxu0 %v6582_v11 }
 0x131   : > { %v8751_v16 = vpop.f32.mrf.mxu1 }
 0x139   : > { %v8755_v20 = vpop.f32.mrf.mxu1 }
 0x13c   : > { %982 = vmatmul.bf16.gmra.mxu1 %v6774_v19  ;;  %v828_v19 = vpop.f32.mrf.mxu0 }
 0x13d   : > { %v829_v5 = vadd.f32 %v8830_v1, %v828_v19  ;;  %v8021_v19 = vld [vmem:[%s8637_s16 + $0x94] sm:$0xf] }
 0x13e   : > { %867 = vmatmul.bf16.gmra.mxu0 %v6590_v23 }
 0x141   : > { %v8759_v24 = vpop.f32.mrf.mxu1 }
 0x144   : > { %v830_v29 = vpop.f32.mrf.mxu0 }
 0x149   : > { %v8763_v28 = vpop.f32.mrf.mxu1 }
 0x14c   : > { %996 = vmatmul.bf16.vlgmr.msrb.gmra.mxu1 %v6530_v27  ;;  %v6575_v27 = vld [vmem:[%s8637_s16 + $0x68] sm:$0xf0]  ;;  %v833_v33 = vpop.f32.mrf.mxu0 }
 0x14d   : > { %v6578_v30 = vor.u32 %v8015_v26, %v6575_v27 }
 0x151   : > { %v8767_v32 = vpop.f32.mrf.mxu1 }
 0x154   : > { %v835_v44 = vpop.f32.mrf.mxu0 }
 0x159   : > { %v8771_v36 = vpop.f32.mrf.mxu1 }
 0x15c   : > { %1001 = vmatmul.bf16.gmra.mxu1 %v6538_v35  ;;  %v8022_v35 = vld [vmem:[%s8637_s16 + $0x94] sm:$0xf0]  ;;  %v838_v50 = vpop.f32.mrf.mxu0 }
 0x15d   : > { %v6598_v37 = vor.u32 %v8022_v35, %v6597_v34  ;;  %v6599_v34 = vld [vmem:[%s8637_s16 + $0x98] sm:$0xf0] }
 0x15e   : > { %v6602_v52 = vor.u32 %v8021_v19, %v6599_v34 }
 0x15f   : > { %872 = vmatmul.bf16.gmra.mxu0 %v6598_v37 }
 0x161   : > { %v8775_v41 = vpop.f32.mrf.mxu1 }
 0x164   : > { %v840_v3 = vpop.f32.mrf.mxu0 }
 0x169   : > { %v8779_v48 = vpop.f32.mrf.mxu1 }
 0x16c   : > { %1006 = vmatmul.bf16.gmra.mxu1 %v6546_v45  ;;  %v6586_v45 = vor.u32 %v8017_v39, %v6583_v43  ;;  %v8833_v11 = vpop.f32.mrf.mxu0  ;;  %v834_v43 = vadd.f32 %v8830_v1, %v833_v33 }
 0x16f   : > { %877 = vmatmul.bf16.gmra.mxu0 %v6606_v56 }
 0x171   : > { %v8783_v54 = vpop.f32.mrf.mxu1 }
 0x174   : > { %v845_v37 = vpop.f32.mrf.mxu0 }
 0x179   : > { %v8787_v60 = vpop.f32.mrf.mxu1 }
 0x17c   : > { %1011 = vmatmul.bf16.gmra.mxu1 %v6554_v59 }
 0x17f   : > { %882 = vmatmul.bf16.gmra.mxu0 %v6614_v22  ;;  %v6607_v22 = vld [vmem:[%s8637_s16 + $0xa8] sm:$0xf0] }
 0x181   : > { %v8791_v2 = vpop.f32.mrf.mxu1 }
 0x182   : > { %11326 = vst [vmem:[#allocation10_spill] sm:$0xff] %v8791_v2 }
 0x189   : > { %v8795_v7 = vpop.f32.mrf.mxu1 }
 0x18a   : > { %11327 = vst [vmem:[#allocation11_spill] sm:$0xff] %v8795_v7 }
 0x18c   : > { %1016 = vmatmul.bf16.gmra.mxu1 %v6562_v6  ;;  %v6594_v6 = vor.u32 %v8019_v61, %v6591_v63  ;;  %v8845_v61 = vpop.f32.mrf.mxu0  ;;  %v6621_v63 = vld [vmem:[%s8637_s16 + $0xc0] sm:$0xf] }
 0x191   : > { %v8799_v13 = vpop.f32.mrf.mxu1 }
 0x192   : > { %11328 = vst [vmem:[#allocation12_spill] sm:$0xff] %v8799_v13 }
 0x199   : > { %v8803_v18 = vpop.f32.mrf.mxu1 }
 0x19a   : > { %11329 = vst [vmem:[#allocation13_spill] sm:$0xff] %v8803_v18 }
 0x19c   : > { %1021 = vmatmul.bf16.gmra.mxu1 %v6570_v17  ;;  %v831_v17 = vadd.f32 %v8830_v1, %v830_v29 }
 0x1a1   : > { %v8807_v25 = vpop.f32.mrf.mxu1 }
 0x1a2   : > { %11330 = vst [vmem:[#allocation14_spill] sm:$0xff] %v8807_v25 }
 0x1a9   : > { %v8811_v31 = vpop.f32.mrf.mxu1 }
 0x1aa   : > { %11331 = vst [vmem:[#allocation15_spill] sm:$0xff] %v8811_v31 }
 0x1ac   : > { %1026 = vmatmul.bf16.gmra.mxu1 %v6578_v30 }
 0x1b1   : > { %v8815_v38 = vpop.f32.mrf.mxu1 }
 0x1b2   : > { %11332 = vst [vmem:[#allocation16_spill] sm:$0xff] %v8815_v38 }
 0x1b9   : > { %v8819_v49 = vpop.f32.mrf.mxu1 }
 0x1ba   : > { %11333 = vst [vmem:[#allocation17_spill] sm:$0xff] %v8819_v49 }
 0x1bc   : > { %1031 = vmatmul.bf16.gmra.mxu1 %v6586_v45 }
 0x1c1   : > { %v8823_v59 = vpop.f32.mrf.mxu1 }
 0x1c2   : > { %11334 = vst [vmem:[#allocation18_spill] sm:$0xff] %v8823_v59  ;;  %v8037_v59 = vld [vmem:[%s8637_s16 + $0x114] sm:$0xf] }
 0x1c9   : > { %v997_v9 = vpop.f32.mrf.mxu1 }
 0x1ca   : > { %v998_v10 = vadd.f32 %v997_v9, %v829_v5  ;;  %v8028_v5 = vld [vmem:[%s8637_s16 + $0xc4] sm:$0xf0] }
 0x1cb   : > { %v6622_v9 = vor.u32 %v8028_v5, %v6621_v63 }
 0x1cc   : > { %1036 = vmatmul.bf16.gmra.mxu1 %v6594_v6  ;;  %v1157_v21 = vmax.f32 %v998_v10, 0.0  ;;  %v836_v6 = vadd.f32 %v8830_v1, %v835_v44 }
 0x1cd   : > { %887 = vmatmul.bf16.gmra.mxu0 %v6622_v9  ;;  %v8025_v9 = vld [vmem:[%s8637_s16 + $0xb4] sm:$0xf] }
 0x1ce   : > { %v1221_v27 = vpack.c.bf16 %v1157_v21, %v1157_v21  ;;  %v8023_v21 = vld [vmem:[%s8637_s16 + $0xa4] sm:$0xf] }
 0x1cf   : > { %v6610_v34 = vor.u32 %v8023_v21, %v6607_v22  ;;  %v844_v21 = vadd.f32 %v8830_v1, %v8833_v11 }
 0x1d0   : > { %v1349_v39 = vunpack.c.l.b16 %v1221_v27 }
 0x1d1   : > { %v999_v23 = vpop.f32.mrf.mxu1 }
 0x1d2   : > { %v1000_v26 = vadd.f32 %v999_v23, %v831_v17 }
 0x1d4   : > { %v1158_v30 = vmax.f32 %v1000_v26, 0.0  ;;  %v850_v26 = vpop.f32.mrf.mxu0 }
 0x1d6   : > { %v1222_v35 = vpack.c.bf16 %v1158_v30, %v1158_v30  ;;  %v839_v30 = vadd.f32 %v8830_v1, %v838_v50 }
 0x1d8   : > { %v1350_v45 = vunpack.c.l.b16 %v1222_v35 }
 0x1d9   : > { %v1002_v55 = vpop.f32.mrf.mxu1 }
 0x1da   : > { %v8841_v29 = vpack.c.b16 %v1350_v45, %v1349_v39  ;;  %v1003_v56 = vadd.f32 %v1002_v55, %v834_v43  ;;  %v6629_v45 = vld [vmem:[%s8637_s16 + $0xd0] sm:$0xf]  ;;  %v841_v55 = vadd.f32 %v8830_v1, %v840_v3 }
 0x1dc   : > { %1041 = vmatmul.bf16.gmra.mxu1 %v6602_v52  ;;  %1867 = vrot.lane.b32.xlu0 %v8841_v29, %s8502_s20  ;;  %v1159_v33 = vmax.f32 %v1003_v56, 0.0  ;;  %v8857_v43 = vpop.f32.mrf.mxu0  ;;  %v8030_v52 = vld [vmem:[%s8637_s16 + $0xd4] sm:$0xf0] }
 0x1dd   : > { %v6630_v50 = vor.u32 %v8030_v52, %v6629_v45 }
 0x1de   : > { %v1223_v15 = vpack.c.bf16 %v1159_v33, %v1159_v33 }
 0x1df   : > { %892 = vmatmul.bf16.gmra.mxu0 %v6630_v50 }
 0x1e0   : > { %v1351_v27 = vunpack.c.l.b16 %v1223_v15 }
 0x1e1   : > { %v1004_v10 = vpop.f32.mrf.mxu1 }
 0x1e2   : > { %v1005_v14 = vadd.f32 %v1004_v10, %v836_v6  ;;  %v6615_v10 = vld [vmem:[%s8637_s16 + $0xb8] sm:$0xf0] }
 0x1e3   : > { %v6618_v3 = vor.u32 %v8025_v9, %v6615_v10  ;;  %v849_v9 = vadd.f32 %v8830_v1, %v8845_v61  ;;  %v6645_v61 = vld [vmem:[%s8637_s16 + $0xf0] sm:$0xf] }
 0x1e4   : > { %v1160_v17 = vmax.f32 %v1005_v14, 0.0  ;;  %v8864_v15 = vpop.f32.mrf.mxu0 }
 0x1e6   : > { %v1224_v23 = vpack.c.bf16 %v1160_v17, %v1160_v17 }
 0x1e8   : > { %v1352_v19 = vunpack.c.l.b16 %v1224_v23 }
 0x1e9   : > { %v1007_v35 = vpop.f32.mrf.mxu1 }
 0x1ea   : > { %v8853_v44 = vpack.c.b16 %v1352_v19, %v1351_v27  ;;  %v1008_v39 = vadd.f32 %v1007_v35, %v839_v30  ;;  %v8032_v35 = vld [vmem:[%s8637_s16 + $0xe4] sm:$0xf0] }
 0x1ec   : > { %1046 = vmatmul.bf16.gmra.mxu1 %v6610_v34  ;;  %1869 = vrot.lane.b32.xlu0 %v8853_v44, %s8502_s20  ;;  %v1161_v56 = vmax.f32 %v1008_v39, 0.0  ;;  %v8872_v19 = vpop.f32.mrf.mxu0  ;;  %v6637_v34 = vld [vmem:[%s8637_s16 + $0xe0] sm:$0xf]  ;;  %v846_v39 = vadd.f32 %v8830_v1, %v845_v37 }
 0x1ed   : > { %v6638_v11 = vor.u32 %v8032_v35, %v6637_v34 }
 0x1ee   : > { %v1225_v6 = vpack.c.bf16 %v1161_v56, %v1161_v56 }
 0x1ef   : > { %897 = vmatmul.bf16.gmra.mxu0 %v6638_v11 }
 0x1f0   : > { %v1353_v17 = vunpack.c.l.b16 %v1225_v6 }
 0x1f1   : > { %v1009_v63 = vpop.f32.mrf.mxu1 }
 0x1f2   : > { %v1010_v5 = vadd.f32 %v1009_v63, %v841_v55  ;;  %v8027_v63 = vld [vmem:[%s8637_s16 + $0xc4] sm:$0xf] }
 0x1f4   : > { %v1162_v33 = vmax.f32 %v1010_v5, 0.0  ;;  %v6623_v5 = vld [vmem:[%s8637_s16 + $0xc8] sm:$0xf0]  ;;  %v8881_v37 = vpop.f32.mrf.mxu0 }
 0x1f6   : > { %v1226_v14 = vpack.c.bf16 %v1162_v33, %v1162_v33 }
 0x1f8   : > { %v1354_v22 = vunpack.c.l.b16 %v1226_v14  ;;  %v6626_v14 = vor.u32 %v8027_v63, %v6623_v5  ;;  %v6631_v63 = vld [vmem:[%s8637_s16 + $0xd8] sm:$0xf0] }
 0x1f9   : > { %v1012_v23 = vpop.f32.mrf.mxu1 }
 0x1fa   : > { %v8868_v27 = vpack.c.b16 %v1354_v22, %v1353_v17  ;;  %v1013_v30 = vadd.f32 %v1012_v23, %v844_v21  ;;  %v8034_v23 = vld [vmem:[%s8637_s16 + $0xf4] sm:$0xf0] }
 0x1fb   : > { %v6646_v35 = vor.u32 %v8034_v23, %v6645_v61  ;;  %v8118_v23 = vld [vmem:[%s11314_s2 + $0x18] sm:$0xff] }
 0x1fc   : > { %1051 = vmatmul.bf16.gmra.mxu1 %v6618_v3  ;;  %1871 = vrot.lane.b32.xlu1 %v8868_v27, %s8502_s20  ;;  %v1163_v45 = vmax.f32 %v1013_v30, 0.0  ;;  %v8122_v3 = vld [vmem:[%s11314_s2 + $0x38] sm:$0xff]  ;;  %v851_v30 = vadd.f32 %v8830_v1, %v850_v26  ;;  %v8120_v26 = vld [vmem:[%s11314_s2 + $0x28] sm:$0xff] }
 0x1fd   : > { %3244 = vmatpush.bf16.msra.mxu3 %v8122_v3 }
 0x1fe   : > { %v1227_v56 = vpack.c.bf16 %v1163_v45, %v1163_v45  ;;  %v8121_v45 = vld [vmem:[%s11314_s2 + $0x30] sm:$0xff] }
 0x1ff   : > { %902 = vmatmul.bf16.gmra.mxu0 %v6646_v35 }
 0x200   : > { %v1355_v33 = vunpack.c.l.b16 %v1227_v56 }
 0x201   : > { %v1014_v52 = vpop.f32.mrf.mxu1  ;;  %3245 = vmatpush.bf16.msra.mxu3 %v8121_v45  ;;  %v8117_v45 = vld [vmem:[%s11314_s2 + $0x10] sm:$0xff] }
 0x202   : > { %v1015_v55 = vadd.f32 %v1014_v52, %v846_v39  ;;  %v8896_v52 = vpop.f32.mrf.mxu0 }
 0x204   : > { %v1164_v50 = vmax.f32 %v1015_v55, 0.0 }
 0x205   : > { %3246 = vmatpush.bf16.msra.mxu3 %v8120_v26  ;;  %v6639_v26 = vld [vmem:[%s8637_s16 + $0xe8] sm:$0xf0] }
 0x206   : > { %v1228_v6 = vpack.c.bf16 %v1164_v50, %v1164_v50  ;;  %v8029_v50 = vld [vmem:[%s8637_s16 + $0xd4] sm:$0xf] }
 0x208   : > { %v1356_v10 = vunpack.c.l.b16 %v1228_v6 }
 0x209   : > { %v1017_v17 = vpop.f32.mrf.mxu1 }
 0x20a   : > { %v8883_v21 = vpack.c.b16 %v1356_v10, %v1355_v33  ;;  %v1018_v22 = vadd.f32 %v1017_v17, %v849_v9  ;;  %v854_v33 = vadd.f32 %v8830_v1, %v8857_v43  ;;  %v6634_v10 = vor.u32 %v8029_v50, %v6631_v63  ;;  %v8119_v17 = vld [vmem:[%s11314_s2 + $0x20] sm:$0xff]  ;;  %v8912_v61 = vpop.f32.mrf.mxu0  ;;  %v8166_v43 = vld [vmem:[%s11314_s2 + $0x98] sm:$0xff] }
 0x20b   : > { %3247 = vmatpush.bf16.msra.mxu3 %v8119_v17  ;;  %2802 = vmatpush.bf16.msra.mxu2 %v8166_v43  ;;  %v8031_v50 = vld [vmem:[%s8637_s16 + $0xe4] sm:$0xf]  ;;  %v8503_v63 = vmov 0  }
 0x20c   : > { %1056 = vmatmul.bf16.gmra.mxu1 %v6626_v14  ;;  %1873 = vrot.lane.b32.xlu1 %v8883_v21, %s8502_s20  ;;  %v1165_v34 = vmax.f32 %v1018_v22, 0.0  ;;  %2416 = vst.msk [vmem:[#allocation2] sm:$0xff] %vm8928_vm2, %v8503_v63 }
 0x20d   : > { %4212 = vmatpush.bf16.msra.mxu1 %v8166_v43  ;;  %2417 = vst.msk [vmem:[#allocation2 + $0x8] sm:$0xff] %vm8928_vm2, %v8503_v63 }
 0x20e   : > { %v1229_v55 = vpack.c.bf16 %v1165_v34, %v1165_v34  ;;  %2418 = vst.msk [vmem:[#allocation2 + $0x120] sm:$0xff] %vm8928_vm2, %v8503_v63 }
 0x20f   : > { %3248 = vmatpush.bf16.msra.mxu3 %v8118_v23  ;;  %2419 = vst.msk [vmem:[#allocation2 + $0x128] sm:$0xff] %vm8928_vm2, %v8503_v63  ;;  %v8163_v23 = vld [vmem:[%s11314_s2 + $0x80] sm:$0xff] }
 0x210   : > { %v1357_v6 = vunpack.c.l.b16 %v1229_v55  ;;  %2421 = vst.msk [vmem:[#allocation2 + $0x110] sm:$0xff] %vm8928_vm2, %v8503_v63 }
 0x211   : > { %v1019_v39 = vpop.f32.mrf.mxu1  ;;  %2422 = vst.msk [vmem:[#allocation2 + $0x118] sm:$0xff] %vm8928_vm2, %v8503_v63 }
 0x212   : > { %v1020_v11 = vadd.f32 %v1019_v39, %v851_v30  ;;  %v856_v30 = vadd.f32 %v8830_v1, %v8864_v15  ;;  %v8165_v39 = vld [vmem:[%s11314_s2 + $0x90] sm:$0xff]  ;;  %2423 = vst.msk [vmem:[#allocation2 + $0x230] sm:$0xff] %vm8928_vm2, %v8503_v63 }
 0x213   : > { %2803 = vmatpush.bf16.msra.mxu2 %v8165_v39  ;;  %3249 = vmatpush.bf16.msra.mxu3 %v8117_v45  ;;  %2424 = vst.msk [vmem:[#allocation2 + $0x238] sm:$0xff] %vm8928_vm2, %v8503_v63 }
 0x214   : > { %v1166_v56 = vmax.f32 %v1020_v11, 0.0  ;;  %4213 = vmatpush.bf16.msra.mxu1 %v8165_v39  ;;  %v8084_v39 = vld [vmem:[#allocation2 + $0x4] sm:$0xf0] }
 0x216   : > { %v1230_v5 = vpack.c.bf16 %v1166_v56, %v1166_v56 }
 0x218   : > { %v1358_v9 = vunpack.c.l.b16 %v1230_v5  ;;  %v8164_v5 = vld [vmem:[%s11314_s2 + $0x88] sm:$0xff] }
 0x219   : > { %v1022_v14 = vpop.f32.mrf.mxu1  ;;  %2804 = vmatpush.bf16.msra.mxu2 %v8164_v5  ;;  %4214 = vmatpush.bf16.msra.mxu1 %v8164_v5  ;;  %v8161_v5 = vld [vmem:[%s11314_s2 + $0x70] sm:$0xff] }
 0x21a   : > { %v8908_v22 = vpack.c.b16 %v1358_v9, %v1357_v6  ;;  %v1023_v3 = vadd.f32 %v1022_v14, %v854_v33  ;;  %v8116_v6 = vld [vmem:[%s11314_s2 + $0x8] sm:$0xff]  ;;  %v8946_v9 = vpop.f32.mrf.mxu0  ;;  %v859_v14 = vadd.f32 %v8830_v1, %v8872_v19  ;;  %v7061_v19 = vld [vmem:[#allocation2] sm:$0xf] }
 0x21b   : > { %3250 = vmatpush.bf16.msra.mxu3 %v8116_v6  ;;  %v7062_v45 = vor.u32 %v8084_v39, %v7061_v19  ;;  %v8159_v39 = vld [vmem:[%s11314_s2 + $0x60] sm:$0xff] }
 0x21c   : > { %1061 = vmatmul.bf16.gmra.mxu1 %v6634_v10  ;;  %1875 = vrot.lane.b32.xlu2 %v8908_v22, %s8502_s20  ;;  %v1167_v34 = vmax.f32 %v1023_v3, 0.0  ;;  %v6642_v3 = vor.u32 %v8031_v50, %v6639_v26 }
 0x21d   : > { %2805 = vmatpush.bf16.msra.mxu2 %v8163_v23  ;;  %4215 = vmatpush.bf16.msra.mxu1 %v8163_v23 }
 0x21e   : > { %v1231_v15 = vpack.c.bf16 %v1167_v34, %v1167_v34 }
 0x220   : > { %v1359_v10 = vunpack.c.l.b16 %v1231_v15  ;;  %v861_v15 = vadd.f32 %v8830_v1, %v8881_v37  ;;  %v8160_v37 = vld [vmem:[%s11314_s2 + $0x68] sm:$0xff] }
 0x221   : > { %v1024_v35 = vpop.f32.mrf.mxu1 }
 0x222   : > { %v1025_v11 = vadd.f32 %v1024_v35, %v856_v30  ;;  %v8115_v30 = vld [vmem:[%s11314_s2] sm:$0xff]  ;;  %v8975_v63 = vpop.f32.mrf.mxu0 }
 0x223   : > { %3251 = vmatpush.bf16.msra.mxu3 %v8115_v30 }
 0x224   : > { %v1168_v56 = vmax.f32 %v1025_v11, 0.0  ;;  %v8162_v11 = vld [vmem:[%s11314_s2 + $0x78] sm:$0xff] }
 0x225   : > { %2806 = vmatpush.bf16.msra.mxu2 %v8162_v11  ;;  %4216 = vmatpush.bf16.msra.mxu1 %v8162_v11 }
 0x226   : > { %v1232_v33 = vpack.c.bf16 %v1168_v56, %v1168_v56  ;;  %3252 = vmatmul.bf16.vlgmr.msra.gmra.mxu3 %v7062_v45 }
 0x228   : > { %v1360_v17 = vunpack.c.l.b16 %v1232_v33 }
 0x229   : > { %v1027_v43 = vpop.f32.mrf.mxu1  ;;  %2807 = vmatpush.bf16.msra.mxu2 %v8161_v5  ;;  %4217 = vmatpush.bf16.msra.mxu1 %v8161_v5 }
 0x22a   : > { %v8962_v34 = vpack.c.b16 %v1360_v17, %v1359_v10  ;;  %v1028_v35 = vadd.f32 %v1027_v43, %v859_v14  ;;  %v8033_v10 = vld [vmem:[%s8637_s16 + $0xf4] sm:$0xf]  ;;  %v6647_v14 = vld [vmem:[%s8637_s16 + $0xf8] sm:$0xf0]  ;;  %v864_v43 = vadd.f32 %v8830_v1, %v8896_v52  ;;  %v8992_v45 = vpop.f32.mrf.mxu0 }
 0x22b   : > { %v6650_v30 = vor.u32 %v8033_v10, %v6647_v14  ;;  %v8214_v52 = vld [vmem:[%s11314_s2 + $0x118] sm:$0xff]  ;;  %v8213_v10 = vld [vmem:[%s11314_s2 + $0x110] sm:$0xff] }
 0x22c   : > { %1066 = vmatmul.bf16.gmra.mxu1 %v6642_v3  ;;  %1877 = vrot.lane.b32.xlu2 %v8962_v34, %s8502_s20  ;;  %v1169_v56 = vmax.f32 %v1028_v35, 0.0 }
 0x22d   : > { %2808 = vmatpush.bf16.msra.mxu2 %v8160_v37  ;;  %4218 = vmatpush.bf16.msra.mxu1 %v8160_v37 }
 0x22e   : > { %v1233_v6 = vpack.c.bf16 %v1169_v56, %v1169_v56  ;;  %v866_v56 = vadd.f32 %v8830_v1, %v8912_v61  ;;  %3837 = vmatpush.bf16.msrb.mxu0 %v8214_v52  ;;  %v8035_v61 = vld [vmem:[%s8637_s16 + $0x104] sm:$0xf] }
 0x230   : > { %v1361_v3 = vunpack.c.l.b16 %v1233_v6  ;;  %v1446_v6 = vshrl.u32 %v8841_v29, 16 }
 0x231   : > { %v1029_v50 = vpop.f32.mrf.mxu1  ;;  %2809 = vmatpush.bf16.msra.mxu2 %v8159_v39  ;;  %4219 = vmatpush.bf16.msra.mxu1 %v8159_v39 }
 0x232   : > { %v1030_v26 = vadd.f32 %v1029_v50, %v861_v15  ;;  %v1449_v15 = vshll.u32 %v8841_v29, 16  ;;  %3838 = vmatpush.bf16.msrb.mxu0 %v8213_v10  ;;  %v8212_v29 = vld [vmem:[%s11314_s2 + $0x108] sm:$0xff]  ;;  %v8211_v10 = vld [vmem:[%s11314_s2 + $0x100] sm:$0xff] }
 0x234   : > { %v1170_v33 = vmax.f32 %v1030_v26, 0.0  ;;  %v8170_v26 = vld [vmem:[%s11314_s2 + $0xb8] sm:$0xff]  ;;  %v1736_v14 = vrot.slane %v1449_v15, 1 }
 0x235   : > { %2895 = vmatpush.bf16.msrb.mxu2 %v8170_v26 }
 0x236   : > { %v1234_v17 = vpack.c.bf16 %v1170_v33, %v1170_v33  ;;  %3839 = vmatpush.bf16.msrb.mxu0 %v8212_v29  ;;  %v871_v29 = vadd.f32 %v8830_v1, %v8975_v63  ;;  %v6663_v63 = vld [vmem:[%s8637_s16 + $0x118] sm:$0xf0] }
 0x238   : > { %v1362_v23 = vunpack.c.l.b16 %v1234_v17 }
 0x239   : > { %v1032_v19 = vpop.f32.mrf.mxu1 }
 0x23a   : > { %v8987_v35 = vpack.c.b16 %v1362_v23, %v1361_v3  ;;  %v1033_v11 = vadd.f32 %v1032_v19, %v864_v43  ;;  %v6655_v3 = vld [vmem:[%s8637_s16 + $0x108] sm:$0xf0]  ;;  %v9011_v43 = vpop.f32.mrf.mxu0  ;;  %v1737_v19 = vor.u32 %v1736_v14, %v1446_v6  ;;  %3840 = vmatpush.bf16.msrb.mxu0 %v8211_v10 }
 0x23c   : > { %1071 = vmatmul.bf16.gmra.mxu1 %v6650_v30  ;;  %1879 = vrot.lane.b32.xlu0 %v8987_v35, %s8502_s20  ;;  %v1171_v50 = vmax.f32 %v1033_v11, 0.0  ;;  %v1448_v30 = vrot.slane %v1446_v6, 7  ;;  %v869_v11 = vadd.f32 %v8830_v1, %v8946_v9  ;;  %v1835_v14 = vsel %vm9018_vm7, %v1737_v19, 0 }
 0x23e   : > { %v1235_v17 = vpack.c.bf16 %v1171_v50, %v1171_v50 }
 0x240   : > { %v1363_v39 = vunpack.c.l.b16 %v1235_v17 }
 0x241   : > { %v1034_v5 = vpop.f32.mrf.mxu1 }
 0x242   : > { %v1035_v33 = vadd.f32 %v1034_v5, %v866_v56  ;;  %v6658_v56 = vor.u32 %v8035_v61, %v6655_v3  ;;  %v2093_v61 = vunpack.c.l.b16 %v1835_v14  ;;  %v2095_v3 = vunpack.c.h.b16 %v1835_v14 }
 0x244   : > { %v1172_v37 = vmax.f32 %v1035_v33, 0.0  ;;  %v1451_v33 = vor.u32 %v1449_v15, %v1448_v30  ;;  %v9039_v30 = vpop.f32.mrf.mxu0 }
 0x246   : > { %v1236_v23 = vpack.c.bf16 %v1172_v37, %v1172_v37  ;;  %v1704_v15 = vsel %vm9027_vm8, 0, %v1451_v33 }
 0x248   : > { %v1364_v52 = vunpack.c.l.b16 %v1236_v23  ;;  %v1456_v23 = vshll.u32 %v8853_v44, 16 }
 0x249   : > { %v1037_v50 = vpop.f32.mrf.mxu1 }
 0x24a   : > { %v9022_v5 = vpack.c.b16 %v1364_v52, %v1363_v39  ;;  %v1038_v9 = vadd.f32 %v1037_v50, %v869_v11 }
 0x24c   : > { %1076 = vmatmul.bf16.gmra.mxu1 %v6658_v56  ;;  %1881 = vrot.lane.b32.xlu1 %v9022_v5, %s8502_s20  ;;  %v1173_v39 = vmax.f32 %v1038_v9, 0.0  ;;  %v1453_v56 = vshrl.u32 %v8853_v44, 16  ;;  %v874_v44 = vadd.f32 %v8830_v1, %v8992_v45 }
 0x24e   : > { %v1868_v17 = vpop.permute.xlu0 %1867  ;;  %v1237_v14 = vpack.c.bf16 %v1173_v39, %v1173_v39  ;;  %v1455_v49 = vrot.slane %v1453_v56, 7  ;;  %v9052_v39 = vpop.f32.mrf.mxu0 }
 0x24f   : > { %v1934_v37 = vsel %vm1931_vm9, %v1704_v15, %v1868_v17  ;;  %v1738_v17 = vrot.slane %v1456_v23, 1 }
 0x250   : > { %v2092_v19 = vunpack.c.l.b16 %v1934_v37  ;;  %v2094_v11 = vunpack.c.h.b16 %v1934_v37  ;;  %v1365_v38 = vunpack.c.l.b16 %v1237_v14 }
 0x251   : > { %v1039_v52 = vpop.f32.mrf.mxu1  ;;  %v1739_v37 = vor.u32 %v1738_v17, %v1453_v56 }
 0x252   : > { %v2220_v50 = vpack.c.b16 %v2093_v61, %v2092_v19  ;;  %v2221_v33 = vpack.c.b16 %v2095_v3, %v2094_v11  ;;  %v1040_v10 = vadd.f32 %v1039_v52, %v871_v29  ;;  %v6666_v3 = vor.u32 %v8037_v59, %v6663_v63 }
 0x253   : > { %v1458_v11 = vor.u32 %v1456_v23, %v1455_v49  ;;  %v1836_v56 = vsel %vm9018_vm7, %v1739_v37, 0  ;;  %v1463_v63 = vshll.u32 %v8868_v27, 16 }
 0x254   : > { %2352 = vst.msk [vmem:[#allocation2 + $0x10] sm:$0xff] %vm8928_vm2, %v2220_v50  ;;  %v1174_v15 = vmax.f32 %v1040_v10, 0.0  ;;  %v2099_v49 = vunpack.c.h.b16 %v1836_v56 }
 0x255   : > { %2353 = vst.msk [vmem:[#allocation2 + $0x18] sm:$0xff] %vm8928_vm2, %v2221_v33  ;;  %v1705_v14 = vsel %vm9027_vm8, 0, %v1458_v11 }
 0x256   : > { %v1238_v9 = vpack.c.bf16 %v1174_v15, %v1174_v15  ;;  %v2097_v15 = vunpack.c.l.b16 %v1836_v56  ;;  %v1740_v56 = vrot.slane %v1463_v63, 1 }
 0x258   : > { %v1366_v61 = vunpack.c.l.b16 %v1238_v9  ;;  %v876_v9 = vadd.f32 %v8830_v1, %v9011_v43  ;;  %v8039_v43 = vld [vmem:[%s8637_s16 + $0x124] sm:$0xf] }
 0x259   : > { %v1042_v29 = vpop.f32.mrf.mxu1 }
 0x25a   : > { %v9054_v19 = vpack.c.b16 %v1366_v61, %v1365_v38  ;;  %v1043_v33 = vadd.f32 %v1042_v29, %v874_v44  ;;  %v1460_v29 = vshrl.u32 %v8868_v27, 16  ;;  %v1477_v27 = vshll.u32 %v8908_v22, 16 }
 0x25b   : > { %v6869_v52 = vld [vmem:[#allocation2 + $0x10] sm:$0xf] }
 0x25c   : > { %v7069_v50 = vld [vmem:[#allocation2 + $0x10] sm:$0xf]  ;;  %1081 = vmatmul.bf16.gmra.mxu1 %v6666_v3  ;;  %1883 = vrot.lane.b32.xlu2 %v9054_v19, %s8502_s20  ;;  %v8128_v10 = vld [vmem:[#allocation2 + $0x14] sm:$0xf0]  ;;  %v1175_v37 = vmax.f32 %v1043_v33, 0.0 }
 0x25d   : > { %v8086_v45 = vld [vmem:[#allocation2 + $0x14] sm:$0xf0]  ;;  %v6870_v17 = vor.u32 %v8128_v10, %v6869_v52  ;;  %v9067_v10 = vpop.f32.mrf.mxu0  ;;  %v6671_v33 = vld [vmem:[%s8637_s16 + $0x128] sm:$0xf0] }
 0x25e   : > { %v7070_v59 = vor.u32 %v8086_v45, %v7069_v50  ;;  %v1870_v38 = vpop.permute.xlu0 %1869  ;;  %v1239_v45 = vpack.c.bf16 %v1175_v37, %v1175_v37 }
 0x25f   : > { %v1937_v23 = vsel %vm1931_vm9, %v1705_v14, %v1870_v38  ;;  %2810 = vmatmul.bf16.vlgmr.msra.gmra.mxu2 %v6870_v17  ;;  %v1462_v14 = vrot.slane %v1460_v29, 7  ;;  %v1741_v38 = vor.u32 %v1740_v56, %v1460_v29 }
 0x260   : > { %3257 = vmatmul.bf16.gmra.mxu3 %v7070_v59  ;;  %v2096_v44 = vunpack.c.l.b16 %v1937_v23  ;;  %v2098_v61 = vunpack.c.h.b16 %v1937_v23 }
 0x261   : > { %v1044_v3 = vpop.f32.mrf.mxu1 }
 0x262   : > { %v2222_v11 = vpack.c.b16 %v2097_v15, %v2096_v44  ;;  %v2223_v52 = vpack.c.b16 %v2099_v49, %v2098_v61  ;;  %v1045_v50 = vadd.f32 %v1044_v3, %v876_v9  ;;  %v1367_v15 = vunpack.c.l.b16 %v1239_v45 }
 0x263   : > { %v879_v49 = vadd.f32 %v8830_v1, %v9039_v30  ;;  %v6674_v9 = vor.u32 %v8039_v43, %v6671_v33  ;;  %v1474_v44 = vshrl.u32 %v8908_v22, 16  ;;  %v1465_v3 = vor.u32 %v1463_v63, %v1462_v14 }
 0x264   : > { %2354 = vst.msk [vmem:[#allocation2 + $0x20] sm:$0xff] %vm8928_vm2, %v2222_v11  ;;  %v1176_v17 = vmax.f32 %v1045_v50, 0.0  ;;  %v1744_v11 = vrot.slane %v1477_v27, 1  ;;  %v1837_v30 = vsel %vm9018_vm7, %v1741_v38, 0  ;;  %v1470_v63 = vshll.u32 %v8883_v21, 16 }
 0x265   : > { %2355 = vst.msk [vmem:[#allocation2 + $0x28] sm:$0xff] %vm8928_vm2, %v2223_v52  ;;  %v9085_v33 = vpop.f32.mrf.mxu0  ;;  %v1706_v14 = vsel %vm9027_vm8, 0, %v1465_v3  ;;  %v1467_v3 = vshrl.u32 %v8883_v21, 16 }
 0x266   : > { %v1240_v59 = vpack.c.bf16 %v1176_v17, %v1176_v17  ;;  %v1745_v38 = vor.u32 %v1744_v11, %v1474_v44 }
 0x267   : > { %v1469_v21 = vrot.slane %v1467_v3, 7 }
 0x268   : > { %v1368_v23 = vunpack.c.l.b16 %v1240_v59 }
 0x269   : > { %v1047_v37 = vpop.f32.mrf.mxu1 }
 0x26a   : > { %v9079_v61 = vpack.c.b16 %v1368_v23, %v1367_v15  ;;  %v1048_v31 = vadd.f32 %v1047_v37, %v879_v49  ;;  %v1476_v49 = vrot.slane %v1474_v44, 7  ;;  %v2103_v37 = vunpack.c.h.b16 %v1837_v30 }
 0x26b   : > { %v6877_v52 = vld [vmem:[#allocation2 + $0x20] sm:$0xf]  ;;  %v8171_v17 = vld [vmem:[#allocation2 + $0x24] sm:$0xf]  ;;  %v1839_v44 = vsel %vm9018_vm7, %v1745_v38, 0  ;;  %v884_v38 = vadd.f32 %v8830_v1, %v9067_v10 }
 0x26c   : > { %v7077_v50 = vld [vmem:[#allocation2 + $0x20] sm:$0xf]  ;;  %1086 = vmatmul.bf16.gmra.mxu1 %v6674_v9  ;;  %1885 = vrot.lane.b32.xlu0 %v9079_v61, %s8502_s20  ;;  %v8130_v29 = vld [vmem:[#allocation2 + $0x24] sm:$0xf0]  ;;  %v7279_v22 = vld [vmem:[#allocation2 + $0x28] sm:$0xf0]  ;;  %v2101_v9 = vunpack.c.l.b16 %v1837_v30 }
 0x26d   : > { %v8088_v56 = vld [vmem:[#allocation2 + $0x24] sm:$0xf0]  ;;  %v6878_v45 = vor.u32 %v8130_v29, %v6877_v52  ;;  %v7282_v15 = vor.u32 %v8171_v17, %v7279_v22  ;;  %v881_v52 = vadd.f32 %v8830_v1, %v9052_v39  ;;  %v1742_v22 = vrot.slane %v1470_v63, 1  ;;  %v8041_v39 = vld [vmem:[%s8637_s16 + $0x134] sm:$0xf] }
 0x26e   : > { %v7078_v43 = vor.u32 %v8088_v56, %v7077_v50  ;;  %v1872_v59 = vpop.permute.xlu1 %1871  ;;  %v1177_v50 = vmax.f32 %v1048_v31, 0.0 }
 0x26f   : > { %v1940_v23 = vsel %vm1931_vm9, %v1706_v14, %v1872_v59  ;;  %2815 = vmatmul.bf16.gmra.mxu2 %v6878_v45  ;;  %7451 = vmatmul.msk.bf16.vlgmr.msrb.gmra.mxu0 %vm1931_vm9, %v7282_v15  ;;  %v1479_v45 = vor.u32 %v1477_v27, %v1476_v49  ;;  %v1743_v15 = vor.u32 %v1742_v22, %v1467_v3  ;;  %v2109_v49 = vunpack.c.l.b16 %v1839_v44 }
 0x270   : > { %3262 = vmatmul.bf16.gmra.mxu3 %v7078_v43  ;;  %v2100_v29 = vunpack.c.l.b16 %v1940_v23  ;;  %v2102_v56 = vunpack.c.h.b16 %v1940_v23  ;;  %v1241_v11 = vpack.c.bf16 %v1177_v50, %v1177_v50  ;;  %v6679_v43 = vld [vmem:[%s8637_s16 + $0x138] sm:$0xf0]  ;;  %v2111_v50 = vunpack.c.h.b16 %v1839_v44 }
 0x271   : > { %v1049_v17 = vpop.f32.mrf.mxu1  ;;  %v1708_v27 = vsel %vm9027_vm8, 0, %v1479_v45  ;;  %v1481_v22 = vshrl.u32 %v8962_v34, 16 }
 0x272   : > { %v2224_v59 = vpack.c.b16 %v2101_v9, %v2100_v29  ;;  %v2225_v14 = vpack.c.b16 %v2103_v37, %v2102_v56  ;;  %v1050_v30 = vadd.f32 %v1049_v17, %v881_v52  ;;  %v1484_v37 = vshll.u32 %v8962_v34, 16  ;;  %v888_v56 = vpop.f32.mrf.mxu0 }
 0x273   : > { %v6682_v29 = vor.u32 %v8041_v39, %v6679_v43  ;;  %v1369_v17 = vunpack.c.l.b16 %v1241_v11  ;;  %v1838_v34 = vsel %vm9018_vm7, %v1743_v15, 0 }
 0x274   : > { %2356 = vst.msk [vmem:[#allocation2 + $0x30] sm:$0xff] %vm8928_vm2, %v2224_v59  ;;  %v1178_v31 = vmax.f32 %v1050_v30, 0.0  ;;  %v1746_v13 = vrot.slane %v1484_v37, 1 }
 0x275   : > { %2357 = vst.msk [vmem:[#allocation2 + $0x38] sm:$0xff] %vm8928_vm2, %v2225_v14 }
 0x276   : > { %v1242_v23 = vpack.c.bf16 %v1178_v31, %v1178_v31  ;;  %v1876_v9 = vpop.permute.xlu2 %1875  ;;  %v1472_v31 = vor.u32 %v1470_v63, %v1469_v21  ;;  %v1747_v15 = vor.u32 %v1746_v13, %v1481_v22 }
 0x277   : > { %v1946_v52 = vsel %vm1931_vm9, %v1708_v27, %v1876_v9 }
 0x278   : > { %v1370_v59 = vunpack.c.l.b16 %v1242_v23  ;;  %v2108_v14 = vunpack.c.l.b16 %v1946_v52  ;;  %v2110_v3 = vunpack.c.h.b16 %v1946_v52  ;;  %v1707_v21 = vsel %vm9027_vm8, 0, %v1472_v31 }
 0x279   : > { %v1052_v30 = vpop.f32.mrf.mxu1  ;;  %v2107_v52 = vunpack.c.h.b16 %v1838_v34 }
 0x27a   : > { %v2228_v45 = vpack.c.b16 %v2109_v49, %v2108_v14  ;;  %v2229_v25 = vpack.c.b16 %v2111_v50, %v2110_v3  ;;  %v9110_v18 = vpack.c.b16 %v1370_v59, %v1369_v17  ;;  %v1053_v44 = vadd.f32 %v1052_v30, %v884_v38  ;;  %v890_v14 = vpop.f32.mrf.mxu0 }
 0x27b   : > { %v6885_v7 = vld [vmem:[#allocation2 + $0x30] sm:$0xf]  ;;  %v8173_v2 = vld [vmem:[#allocation2 + $0x34] sm:$0xf]  ;;  %v1483_v49 = vrot.slane %v1481_v22, 7  ;;  %v2105_v38 = vunpack.c.l.b16 %v1838_v34 }
 0x27c   : > { %v7085_v10 = vld [vmem:[#allocation2 + $0x30] sm:$0xf]  ;;  %2360 = vst.msk [vmem:[#allocation2 + $0x50] sm:$0xff] %vm8928_vm2, %v2228_v45  ;;  %1091 = vmatmul.bf16.gmra.mxu1 %v6682_v29  ;;  %1887 = vrot.lane.b32.xlu1 %v9110_v18, %s8502_s20  ;;  %v8132_v63 = vld [vmem:[#allocation2 + $0x34] sm:$0xf0]  ;;  %v886_v29 = vadd.f32 %v8830_v1, %v9085_v33  ;;  %v1840_v33 = vsel %vm9018_vm7, %v1747_v15, 0 }
 0x27d   : > { %2361 = vst.msk [vmem:[#allocation2 + $0x58] sm:$0xff] %vm8928_vm2, %v2229_v25  ;;  %v6886_v11 = vor.u32 %v8132_v63, %v6885_v7  ;;  %v8090_v39 = vld [vmem:[#allocation2 + $0x34] sm:$0xf0]  ;;  %v7287_v43 = vld [vmem:[#allocation2 + $0x38] sm:$0xf0]  ;;  %v1179_v25 = vmax.f32 %v1053_v44, 0.0  ;;  %v1486_v22 = vor.u32 %v1484_v37, %v1483_v49 }
 0x27e   : > { %v1874_v23 = vpop.permute.xlu1 %1873  ;;  %v7086_v9 = vor.u32 %v8090_v39, %v7085_v10  ;;  %v7290_v27 = vor.u32 %v8173_v2, %v7287_v43  ;;  %v8169_v2 = vld [vmem:[%s11314_s2 + $0xb0] sm:$0xff]  ;;  %v8043_v10 = vld [vmem:[%s8637_s16 + $0x144] sm:$0xf]  ;;  %v6687_v44 = vld [vmem:[%s8637_s16 + $0x148] sm:$0xf0]  ;;  %v889_v39 = vadd.f32 %v8830_v1, %v888_v56  ;;  %v2115_v43 = vunpack.c.h.b16 %v1840_v33 }
 0x27f   : > { %v1943_v50 = vsel %vm1931_vm9, %v1707_v21, %v1874_v23  ;;  %2820 = vmatmul.bf16.gmra.mxu2 %v6886_v11  ;;  %v1243_v31 = vpack.c.bf16 %v1179_v25, %v1179_v25  ;;  %v1709_v63 = vsel %vm9027_vm8, 0, %v1486_v22  ;;  %v2113_v11 = vunpack.c.l.b16 %v1840_v33 }
 0x280   : > { %v2104_v7 = vunpack.c.l.b16 %v1943_v50  ;;  %v2106_v17 = vunpack.c.h.b16 %v1943_v50  ;;  %3267 = vmatmul.bf16.gmra.mxu3 %v7086_v9  ;;  %7452 = vmatmul.msk.bf16.gmra.mxu0 %vm1931_vm9, %v7290_v27  ;;  %v6690_v23 = vor.u32 %v8043_v10, %v6687_v44 }
 0x281   : > { %v1054_v59 = vpop.f32.mrf.mxu1  ;;  %2896 = vmatpush.bf16.msrb.mxu2 %v8169_v2  ;;  %v1371_v9 = vunpack.c.l.b16 %v1243_v31  ;;  %v891_v31 = vadd.f32 %v8830_v1, %v890_v14 }
 0x282   : > { %v2226_v3 = vpack.c.b16 %v2105_v38, %v2104_v7  ;;  %v2227_v30 = vpack.c.b16 %v2107_v52, %v2106_v17  ;;  %v1055_v13 = vadd.f32 %v1054_v59, %v886_v29  ;;  %v893_v2 = vpop.f32.mrf.mxu0 }
 0x283   : > { %v6901_v14 = vld [vmem:[#allocation2 + $0x50] sm:$0xf] }
 0x284   : > { %2358 = vst.msk [vmem:[#allocation2 + $0x40] sm:$0xff] %vm8928_vm2, %v2226_v3  ;;  %v1180_v45 = vmax.f32 %v1055_v13, 0.0 }
 0x285   : > { %2359 = vst.msk [vmem:[#allocation2 + $0x48] sm:$0xff] %vm8928_vm2, %v2227_v30 }
 0x286   : > { %v1244_v34 = vpack.c.bf16 %v1180_v45, %v1180_v45  ;;  %v1878_v37 = vpop.permute.xlu2 %1877 }
 0x287   : > { %v1949_v21 = vsel %vm1931_vm9, %v1709_v63, %v1878_v37  ;;  %v8045_v37 = vld [vmem:[%s8637_s16 + $0x154] sm:$0xf] }
 0x288   : > { %v1372_v27 = vunpack.c.l.b16 %v1244_v34  ;;  %v2112_v49 = vunpack.c.l.b16 %v1949_v21  ;;  %v2114_v38 = vunpack.c.h.b16 %v1949_v21 }
 0x289   : > { %v1057_v52 = vpop.f32.mrf.mxu1 }
 0x28a   : > { %v2230_v50 = vpack.c.b16 %v2113_v11, %v2112_v49  ;;  %v2231_v15 = vpack.c.b16 %v2115_v43, %v2114_v38  ;;  %v9141_v29 = vpack.c.b16 %v1372_v27, %v1371_v9  ;;  %v1058_v56 = vadd.f32 %v1057_v52, %v889_v39  ;;  %v895_v11 = vpop.f32.mrf.mxu0  ;;  %v6695_v39 = vld [vmem:[%s8637_s16 + $0x158] sm:$0xf0]  ;;  %v8136_v52 = vld [vmem:[#allocation2 + $0x54] sm:$0xf0] }
 0x28b   : > { %v6893_v25 = vld [vmem:[#allocation2 + $0x40] sm:$0xf]  ;;  %v8175_v17 = vld [vmem:[#allocation2 + $0x44] sm:$0xf]  ;;  %v6698_v27 = vor.u32 %v8045_v37, %v6695_v39  ;;  %v6703_v37 = vld [vmem:[%s8637_s16 + $0x168] sm:$0xf0] }
 0x28c   : > { %v7093_v7 = vld [vmem:[#allocation2 + $0x40] sm:$0xf]  ;;  %2362 = vst.msk [vmem:[#allocation2 + $0x60] sm:$0xff] %vm8928_vm2, %v2230_v50  ;;  %1096 = vmatmul.bf16.gmra.mxu1 %v6690_v23  ;;  %1889 = vrot.lane.b32.xlu2 %v9141_v29, %s8502_s20  ;;  %v8134_v59 = vld [vmem:[#allocation2 + $0x44] sm:$0xf0]  ;;  %v1181_v45 = vmax.f32 %v1058_v56, 0.0  ;;  %v894_v23 = vadd.f32 %v8830_v1, %v893_v2  ;;  %v6902_v56 = vor.u32 %v8136_v52, %v6901_v14 }
 0x28d   : > { %2363 = vst.msk [vmem:[#allocation2 + $0x68] sm:$0xff] %vm8928_vm2, %v2231_v15  ;;  %v6894_v3 = vor.u32 %v8134_v59, %v6893_v25  ;;  %v8092_v30 = vld [vmem:[#allocation2 + $0x44] sm:$0xf0]  ;;  %v7295_v13 = vld [vmem:[#allocation2 + $0x48] sm:$0xf0]  ;;  %v1505_v39 = vshll.u32 %v9054_v19, 16 }
 0x28e   : > { %v7094_v22 = vor.u32 %v8092_v30, %v7093_v7  ;;  %v7298_v33 = vor.u32 %v8175_v17, %v7295_v13  ;;  %v1245_v34 = vpack.c.bf16 %v1181_v45, %v1181_v45  ;;  %v7101_v50 = vld [vmem:[#allocation2 + $0x50] sm:$0xf]  ;;  %v8094_v15 = vld [vmem:[#allocation2 + $0x54] sm:$0xf0]  ;;  %v8177_v25 = vld [vmem:[#allocation2 + $0x54] sm:$0xf] }
 0x28f   : > { %2825 = vmatmul.bf16.gmra.mxu2 %v6894_v3  ;;  %v7303_v7 = vld [vmem:[#allocation2 + $0x58] sm:$0xf0]  ;;  %v7102_v59 = vor.u32 %v8094_v15, %v7101_v50  ;;  %v1491_v3 = vshll.u32 %v8987_v35, 16  ;;  %v9162_v30 = vld [vmem:[%s11316_s4] ss:$0 sm:$0xff]  ;;  %v1502_v14 = vshrl.u32 %v9054_v19, 16 }
 0x290   : > { %3272 = vmatmul.bf16.gmra.mxu3 %v7094_v22  ;;  %7453 = vmatmul.msk.bf16.gmra.mxu0 %vm1931_vm9, %v7298_v33  ;;  %v1373_v21 = vunpack.c.l.b16 %v1245_v34  ;;  %v7306_v1 = vor.u32 %v8177_v25, %v7303_v7  ;;  %v896_v13 = vadd.f32 %v9162_v30, %v895_v11  ;;  %v1752_v50 = vrot.slane %v1505_v39, 1 }
 0x291   : > { %v1059_v10 = vpop.f32.mrf.mxu1 }
 0x292   : > { %v1060_v44 = vadd.f32 %v1059_v10, %v891_v31  ;;  %v898_v2 = vpop.f32.mrf.mxu0  ;;  %v1488_v31 = vshrl.u32 %v8987_v35, 16  ;;  %v1748_v10 = vrot.slane %v1491_v3, 1 }
 0x293   : > { %v899_v11 = vadd.f32 %v9162_v30, %v898_v2  ;;  %v8179_v25 = vld [vmem:[#allocation2 + $0x64] sm:$0xf] }
 0x294   : > { %v1182_v63 = vmax.f32 %v1060_v44, 0.0 }
 0x296   : > { %v1246_v43 = vpack.c.bf16 %v1182_v63, %v1182_v63  ;;  %v8047_v63 = vld [vmem:[%s8637_s16 + $0x164] sm:$0xf] }
 0x298   : > { %v1374_v9 = vunpack.c.l.b16 %v1246_v43 }
 0x299   : > { %v1062_v49 = vpop.f32.mrf.mxu1 }
 0x29a   : > { %v9154_v38 = vpack.c.b16 %v1374_v9, %v1373_v21  ;;  %v1063_v17 = vadd.f32 %v1062_v49, %v894_v23  ;;  %v1490_v21 = vrot.slane %v1488_v31, 7  ;;  %v1749_v23 = vor.u32 %v1748_v10, %v1488_v31  ;;  %v900_v52 = vpop.f32.mrf.mxu0 }
 0x29b   : > { %v6706_v49 = vor.u32 %v8047_v63, %v6703_v37 }
 0x29c   : > { %1101 = vmatmul.bf16.gmra.mxu1 %v6698_v27  ;;  %1891 = vrot.lane.b32.xlu0 %v9154_v38, %s8502_s20  ;;  %v1183_v22 = vmax.f32 %v1063_v17, 0.0  ;;  %v1493_v7 = vor.u32 %v1491_v3, %v1490_v21  ;;  %v6909_v17 = vld [vmem:[#allocation2 + $0x60] sm:$0xf]  ;;  %v1841_v19 = vsel %vm9018_vm7, %v1749_v23, 0  ;;  %v901_v21 = vadd.f32 %v9162_v30, %v900_v52 }
 0x29d   : > { %v2119_v63 = vunpack.c.h.b16 %v1841_v19 }
 0x29e   : > { %v1247_v44 = vpack.c.bf16 %v1183_v22, %v1183_v22  ;;  %v1710_v3 = vsel %vm9027_vm8, 0, %v1493_v7 }
 0x29f   : > { %2830 = vmatmul.bf16.gmra.mxu2 %v6902_v56  ;;  %v8138_v56 = vld [vmem:[#allocation2 + $0x64] sm:$0xf0] }
 0x2a0   : > { %3277 = vmatmul.bf16.gmra.mxu3 %v7102_v59  ;;  %7454 = vmatmul.msk.bf16.gmra.mxu0 %vm1931_vm9, %v7306_v1  ;;  %v1375_v9 = vunpack.c.l.b16 %v1247_v44  ;;  %v7311_v59 = vld [vmem:[#allocation2 + $0x68] sm:$0xf0]  ;;  %v7109_v1 = vld [vmem:[#allocation2 + $0x60] sm:$0xf]  ;;  %v6910_v2 = vor.u32 %v8138_v56, %v6909_v17  ;;  %v1504_v44 = vrot.slane %v1502_v14, 7 }
 0x2a1   : > { %v1064_v33 = vpop.f32.mrf.mxu1  ;;  %v7314_v31 = vor.u32 %v8179_v25, %v7311_v59 }
 0x2a2   : > { %v1065_v45 = vadd.f32 %v1064_v33, %v896_v13  ;;  %v8096_v13 = vld [vmem:[#allocation2 + $0x64] sm:$0xf0]  ;;  %v1498_v33 = vshll.u32 %v9022_v5, 16  ;;  %v1507_v56 = vor.u32 %v1505_v39, %v1504_v44  ;;  %v903_v59 = vpop.f32.mrf.mxu0 }
 0x2a3   : > { %v7110_v10 = vor.u32 %v8096_v13, %v7109_v1  ;;  %v8049_v1 = vld [vmem:[%s8637_s16 + $0x174] sm:$0xf]  ;;  %v6711_v13 = vld [vmem:[%s8637_s16 + $0x178] sm:$0xf0] }
 0x2a4   : > { %v1184_v34 = vmax.f32 %v1065_v45, 0.0  ;;  %v6714_v44 = vor.u32 %v8049_v1, %v6711_v13 }
 0x2a6   : > { %v1248_v43 = vpack.c.bf16 %v1184_v34, %v1184_v34  ;;  %v2117_v34 = vunpack.c.l.b16 %v1841_v19  ;;  %v1712_v19 = vsel %vm9027_vm8, 0, %v1507_v56 }
 0x2a8   : > { %v1376_v27 = vunpack.c.l.b16 %v1248_v43  ;;  %v1753_v43 = vor.u32 %v1752_v50, %v1502_v14 }
 0x2a9   : > { %v1067_v35 = vpop.f32.mrf.mxu1 }
 0x2aa   : > { %v9172_v15 = vpack.c.b16 %v1376_v27, %v1375_v9  ;;  %v1068_v22 = vadd.f32 %v1067_v35, %v899_v11  ;;  %v1495_v27 = vshrl.u32 %v9022_v5, 16  ;;  %v1750_v35 = vrot.slane %v1498_v33, 1 }
 0x2ab   : > { %v1843_v14 = vsel %vm9018_vm7, %v1753_v43, 0 }
 0x2ac   : > { %1106 = vmatmul.bf16.gmra.mxu1 %v6706_v49  ;;  %1893 = vrot.lane.b32.xlu1 %v9172_v15, %s8502_s20  ;;  %v1185_v9 = vmax.f32 %v1068_v22, 0.0  ;;  %v1497_v5 = vrot.slane %v1495_v27, 7  ;;  %v2125_v39 = vunpack.c.l.b16 %v1843_v14 }
 0x2ae   : > { %v1880_v45 = vpop.permute.xlu0 %1879  ;;  %v1249_v52 = vpack.c.bf16 %v1185_v9, %v1185_v9 }
 0x2af   : > { %v1952_v37 = vsel %vm1931_vm9, %v1710_v3, %v1880_v45  ;;  %2835 = vmatmul.bf16.gmra.mxu2 %v6910_v2  ;;  %v904_v3 = vadd.f32 %v9162_v30, %v903_v59  ;;  %v2127_v45 = vunpack.c.h.b16 %v1843_v14  ;;  %v905_v59 = vpop.f32.mrf.mxu0 }
 0x2b0   : > { %7455 = vmatmul.msk.bf16.gmra.mxu0 %vm1931_vm9, %v7314_v31  ;;  %v2116_v23 = vunpack.c.l.b16 %v1952_v37  ;;  %v2118_v11 = vunpack.c.h.b16 %v1952_v37  ;;  %3282 = vmatmul.bf16.gmra.mxu3 %v7110_v10  ;;  %v1751_v31 = vor.u32 %v1750_v35, %v1495_v27 }
 0x2b1   : > { %v1069_v49 = vpop.f32.mrf.mxu1 }
 0x2b2   : > { %v2232_v25 = vpack.c.b16 %v2117_v34, %v2116_v23  ;;  %v2233_v7 = vpack.c.b16 %v2119_v63, %v2118_v11  ;;  %v1070_v17 = vadd.f32 %v1069_v49, %v901_v21  ;;  %v1377_v34 = vunpack.c.l.b16 %v1249_v52 }
 0x2b3   : > { %v1500_v49 = vor.u32 %v1498_v33, %v1497_v5  ;;  %v1842_v35 = vsel %vm9018_vm7, %v1751_v31, 0 }
 0x2b4   : > { %2364 = vst.msk [vmem:[#allocation2 + $0x70] sm:$0xff] %vm8928_vm2, %v2232_v25  ;;  %v1186_v50 = vmax.f32 %v1070_v17, 0.0 }
 0x2b5   : > { %2365 = vst.msk [vmem:[#allocation2 + $0x78] sm:$0xff] %vm8928_vm2, %v2233_v7 }
 0x2b6   : > { %v1250_v22 = vpack.c.bf16 %v1186_v50, %v1186_v50  ;;  %v1884_v2 = vpop.permute.xlu2 %1883  ;;  %v1711_v50 = vsel %vm9027_vm8, 0, %v1500_v49 }
 0x2b7   : > { %v1958_v10 = vsel %vm1931_vm9, %v1712_v19, %v1884_v2  ;;  %v2123_v19 = vunpack.c.h.b16 %v1842_v35  ;;  %v906_v2 = vadd.f32 %v9162_v30, %v905_v59 }
 0x2b8   : > { %v1378_v63 = vunpack.c.l.b16 %v1250_v22  ;;  %v2124_v37 = vunpack.c.l.b16 %v1958_v10  ;;  %v2126_v43 = vunpack.c.h.b16 %v1958_v10  ;;  %v2121_v22 = vunpack.c.l.b16 %v1842_v35  ;;  %v8168_v10 = vld [vmem:[%s11314_s2 + $0xa8] sm:$0xff] }
 0x2b9   : > { %v1072_v21 = vpop.f32.mrf.mxu1  ;;  %2897 = vmatpush.bf16.msrb.mxu2 %v8168_v10  ;;  %v909_v35 = vadd.f32 %v9162_v30, %v8700_v40  ;;  %v911_v40 = vadd.f32 %v9162_v30, %v8705_v42 }
 0x2ba   : > { %v2236_v9 = vpack.c.b16 %v2125_v39, %v2124_v37  ;;  %v2237_v23 = vpack.c.b16 %v2127_v45, %v2126_v43  ;;  %v9197_v11 = vpack.c.b16 %v1378_v63, %v1377_v34  ;;  %v1073_v27 = vadd.f32 %v1072_v21, %v904_v3 }
 0x2bb   : > { %v6917_v25 = vld [vmem:[#allocation2 + $0x70] sm:$0xf]  ;;  %v8181_v17 = vld [vmem:[#allocation2 + $0x74] sm:$0xf] }
 0x2bc   : > { %v7117_v7 = vld [vmem:[#allocation2 + $0x70] sm:$0xf]  ;;  %2368 = vst.msk [vmem:[#allocation2 + $0x90] sm:$0xff] %vm8928_vm2, %v2236_v9  ;;  %1111 = vmatmul.bf16.gmra.mxu1 %v6714_v44  ;;  %1895 = vrot.lane.b32.xlu2 %v9197_v11, %s8502_s20  ;;  %v8140_v56 = vld [vmem:[#allocation2 + $0x74] sm:$0xf0]  ;;  %v1187_v31 = vmax.f32 %v1073_v27, 0.0 }
 0x2bd   : > { %2369 = vst.msk [vmem:[#allocation2 + $0x98] sm:$0xff] %vm8928_vm2, %v2237_v23  ;;  %v6918_v33 = vor.u32 %v8140_v56, %v6917_v25  ;;  %v8098_v14 = vld [vmem:[#allocation2 + $0x74] sm:$0xf0]  ;;  %v7319_v52 = vld [vmem:[#allocation2 + $0x78] sm:$0xf0] }
 0x2be   : > { %v1882_v1 = vpop.permute.xlu1 %1881  ;;  %v7118_v13 = vor.u32 %v8098_v14, %v7117_v7  ;;  %v7322_v5 = vor.u32 %v8181_v17, %v7319_v52  ;;  %v1251_v43 = vpack.c.bf16 %v1187_v31, %v1187_v31  ;;  %v8051_v9 = vld [vmem:[%s8637_s16 + $0x184] sm:$0xf]  ;;  %v6719_v23 = vld [vmem:[%s8637_s16 + $0x188] sm:$0xf0]  ;;  %v1512_v31 = vshll.u32 %v9079_v61, 16 }
 0x2bf   : > { %v1955_v39 = vsel %vm1931_vm9, %v1711_v50, %v1882_v1  ;;  %2840 = vmatmul.bf16.gmra.mxu2 %v6918_v33  ;;  %v6722_v17 = vor.u32 %v8051_v9, %v6719_v23 }
 0x2c0   : > { %v2120_v3 = vunpack.c.l.b16 %v1955_v39  ;;  %v2122_v45 = vunpack.c.h.b16 %v1955_v39  ;;  %3287 = vmatmul.bf16.gmra.mxu3 %v7118_v13  ;;  %7456 = vmatmul.msk.bf16.gmra.mxu0 %vm1931_vm9, %v7322_v5  ;;  %v1379_v25 = vunpack.c.l.b16 %v1251_v43  ;;  %v9227_v39 = vpop.f32.mrf.mxu3  ;;  %v6727_v43 = vld [vmem:[%s8637_s16 + $0x198] sm:$0xf0] }
 0x2c1   : > { %v1074_v44 = vpop.f32.mrf.mxu1 }
 0x2c2   : > { %v2234_v34 = vpack.c.b16 %v2121_v22, %v2120_v3  ;;  %v2235_v63 = vpack.c.b16 %v2123_v19, %v2122_v45  ;;  %v1075_v37 = vadd.f32 %v1074_v44, %v906_v2  ;;  %v1509_v45 = vshrl.u32 %v9079_v61, 16  ;;  %v8210_v61 = vld [vmem:[%s11314_s2 + $0xf8] sm:$0xff] }
 0x2c3   : > { %3744 = vmatpush.bf16.msrb.mxu3 %v8210_v61  ;;  %4985 = vmatpush.bf16.msrb.mxu1 %v8210_v61 }
 0x2c4   : > { %2366 = vst.msk [vmem:[#allocation2 + $0x80] sm:$0xff] %vm8928_vm2, %v2234_v34  ;;  %v1188_v21 = vmax.f32 %v1075_v37, 0.0  ;;  %v8053_v37 = vld [vmem:[%s8637_s16 + $0x194] sm:$0xf]  ;;  %v1511_v23 = vrot.slane %v1509_v45, 7 }
 0x2c5   : > { %2367 = vst.msk [vmem:[#allocation2 + $0x88] sm:$0xff] %vm8928_vm2, %v2235_v63  ;;  %v1754_v63 = vrot.slane %v1512_v31, 1 }
 0x2c6   : > { %v1252_v49 = vpack.c.bf16 %v1188_v21, %v1188_v21  ;;  %v1526_v21 = vshll.u32 %v9141_v29, 16 }
 0x2c8   : > { %v1380_v7 = vunpack.c.l.b16 %v1252_v49 }
 0x2c9   : > { %v1077_v27 = vpop.f32.mrf.mxu1 }
 0x2ca   : > { %v9223_v56 = vpack.c.b16 %v1380_v7, %v1379_v25  ;;  %v1078_v52 = vadd.f32 %v1077_v27, %v909_v35  ;;  %v9237_v25 = vpop.f32.mrf.mxu3  ;;  %v6730_v7 = vor.u32 %v8053_v37, %v6727_v43  ;;  %v1523_v27 = vshrl.u32 %v9141_v29, 16 }
 0x2cb   : > { %v6925_v59 = vld [vmem:[#allocation2 + $0x80] sm:$0xf]  ;;  %v8183_v14 = vld [vmem:[#allocation2 + $0x84] sm:$0xf] }
 0x2cc   : > { %v7125_v33 = vld [vmem:[#allocation2 + $0x80] sm:$0xf]  ;;  %1116 = vmatmul.bf16.gmra.mxu1 %v6722_v17  ;;  %1897 = vrot.lane.b32.xlu0 %v9223_v56, %s8502_s20  ;;  %v8142_v50 = vld [vmem:[#allocation2 + $0x84] sm:$0xf0]  ;;  %v7327_v22 = vld [vmem:[#allocation2 + $0x88] sm:$0xf0]  ;;  %v1755_v17 = vor.u32 %v1754_v63, %v1509_v45 }
 0x2cd   : > { %v8100_v1 = vld [vmem:[#allocation2 + $0x84] sm:$0xf0]  ;;  %v6926_v13 = vor.u32 %v8142_v50, %v6925_v59  ;;  %v7330_v19 = vor.u32 %v8183_v14, %v7327_v22  ;;  %v1189_v2 = vmax.f32 %v1078_v52, 0.0  ;;  %v1758_v59 = vrot.slane %v1526_v21, 1  ;;  %v8185_v52 = vld [vmem:[#allocation2 + $0x94] sm:$0xf] }
 0x2ce   : > { %v7126_v5 = vor.u32 %v8100_v1, %v7125_v33  ;;  %v914_v33 = vadd.f32 %v9162_v30, %v8709_v46  ;;  %v1514_v50 = vor.u32 %v1512_v31, %v1511_v23  ;;  %v6933_v1 = vld [vmem:[#allocation2 + $0x90] sm:$0xf]  ;;  %v1844_v29 = vsel %vm9018_vm7, %v1755_v17, 0 }
 0x2cf   : > { %2845 = vmatmul.bf16.gmra.mxu2 %v6926_v13  ;;  %v1253_v44 = vpack.c.bf16 %v1189_v2, %v1189_v2  ;;  %v8144_v13 = vld [vmem:[#allocation2 + $0x94] sm:$0xf0]  ;;  %v7133_v22 = vld [vmem:[#allocation2 + $0x90] sm:$0xf]  ;;  %v1519_v2 = vshll.u32 %v9110_v18, 16  ;;  %v2129_v63 = vunpack.c.l.b16 %v1844_v29  ;;  %v1759_v43 = vor.u32 %v1758_v59, %v1523_v27 }
 0x2d0   : > { %3292 = vmatmul.bf16.gmra.mxu3 %v7126_v5  ;;  %7457 = vmatmul.msk.bf16.gmra.mxu0 %vm1931_vm9, %v7330_v19  ;;  %v7335_v5 = vld [vmem:[#allocation2 + $0x98] sm:$0xf0]  ;;  %v8102_v19 = vld [vmem:[#allocation2 + $0x94] sm:$0xf0]  ;;  %v6934_v46 = vor.u32 %v8144_v13, %v6933_v1  ;;  %v1713_v31 = vsel %vm9027_vm8, 0, %v1514_v50  ;;  %v2131_v23 = vunpack.c.h.b16 %v1844_v29 }
 0x2d1   : > { %v1079_v3 = vpop.f32.mrf.mxu1  ;;  %v1381_v42 = vunpack.c.l.b16 %v1253_v44  ;;  %v1525_v44 = vrot.slane %v1523_v27, 7  ;;  %v1756_v61 = vrot.slane %v1519_v2, 1  ;;  %v1846_v59 = vsel %vm9018_vm7, %v1759_v43, 0 }
 0x2d2   : > { %v1080_v10 = vadd.f32 %v1079_v3, %v911_v40  ;;  %v7338_v3 = vor.u32 %v8185_v52, %v7335_v5  ;;  %v8055_v5 = vld [vmem:[%s8637_s16 + $0x1a4] sm:$0xf] }
 0x2d3   : > { %v1528_v27 = vor.u32 %v1526_v21, %v1525_v44 }
 0x2d4   : > { %v1190_v34 = vmax.f32 %v1080_v10, 0.0  ;;  %v7134_v10 = vor.u32 %v8102_v19, %v7133_v22 }
 0x2d5   : > { %v1715_v19 = vsel %vm9027_vm8, 0, %v1528_v27 }
 0x2d6   : > { %v1254_v9 = vpack.c.bf16 %v1190_v34, %v1190_v34  ;;  %v916_v34 = vadd.f32 %v9162_v30, %v8711_v47 }
 0x2d8   : > { %v1382_v49 = vunpack.c.l.b16 %v1254_v9 }
 0x2d9   : > { %v1082_v35 = vpop.f32.mrf.mxu1 }
 0x2da   : > { %v9245_v14 = vpack.c.b16 %v1382_v49, %v1381_v42  ;;  %v1083_v40 = vadd.f32 %v1082_v35, %v914_v33 }
 0x2dc   : > { %1121 = vmatmul.bf16.gmra.mxu1 %v6730_v7  ;;  %1899 = vrot.lane.b32.xlu1 %v9245_v14, %s8502_s20  ;;  %v1191_v9 = vmax.f32 %v1083_v40, 0.0  ;;  %v1516_v7 = vshrl.u32 %v9110_v18, 16  ;;  %v6735_v18 = vld [vmem:[%s8637_s16 + $0x1a8] sm:$0xf0] }
 0x2de   : > { %v1886_v45 = vpop.permute.xlu0 %1885  ;;  %v1255_v1 = vpack.c.bf16 %v1191_v9, %v1191_v9  ;;  %v1518_v29 = vrot.slane %v1516_v7, 7  ;;  %v1757_v21 = vor.u32 %v1756_v61, %v1516_v7 }
 0x2df   : > { %v1961_v37 = vsel %vm1931_vm9, %v1713_v31, %v1886_v45  ;;  %2850 = vmatmul.bf16.gmra.mxu2 %v6934_v46  ;;  %v2137_v46 = vunpack.c.l.b16 %v1846_v59  ;;  %v6738_v45 = vor.u32 %v8055_v5, %v6735_v18 }
 0x2e0   : > { %7458 = vmatmul.msk.bf16.gmra.mxu0 %vm1931_vm9, %v7338_v3  ;;  %v2128_v42 = vunpack.c.l.b16 %v1961_v37  ;;  %v2130_v49 = vunpack.c.h.b16 %v1961_v37  ;;  %3297 = vmatmul.bf16.gmra.mxu3 %v7134_v10  ;;  %v2139_v3 = vunpack.c.h.b16 %v1846_v59  ;;  %v1383_v10 = vunpack.c.l.b16 %v1255_v1 }
 0x2e1   : > { %v1084_v17 = vpop.f32.mrf.mxu1  ;;  %v919_v37 = vadd.f32 %v9162_v30, %v8715_v51  ;;  %v1845_v51 = vsel %vm9018_vm7, %v1757_v21, 0 }
 0x2e2   : > { %v2238_v35 = vpack.c.b16 %v2129_v63, %v2128_v42  ;;  %v2239_v47 = vpack.c.b16 %v2131_v23, %v2130_v49  ;;  %v1085_v33 = vadd.f32 %v1084_v17, %v916_v34  ;;  %v9259_v52 = vpop.f32.mrf.mxu2  ;;  %v1521_v17 = vor.u32 %v1519_v2, %v1518_v29 }
 0x2e3   : > { %v9261_v50 = vpop.f32.mrf.mxu3  ;;  %v2133_v29 = vunpack.c.l.b16 %v1845_v51 }
 0x2e4   : > { %2370 = vst.msk [vmem:[#allocation2 + $0xa0] sm:$0xff] %vm8928_vm2, %v2238_v35  ;;  %v1192_v13 = vmax.f32 %v1085_v33, 0.0  ;;  %v1714_v5 = vsel %vm9027_vm8, 0, %v1521_v17  ;;  %v8057_v17 = vld [vmem:[%s8637_s16 + $0x1b4] sm:$0xf] }
 0x2e5   : > { %2371 = vst.msk [vmem:[#allocation2 + $0xa8] sm:$0xff] %vm8928_vm2, %v2239_v47 }
 0x2e6   : > { %v1256_v22 = vpack.c.bf16 %v1192_v13, %v1192_v13  ;;  %v1890_v40 = vpop.permute.xlu2 %1889 }
 0x2e7   : > { %v1967_v31 = vsel %vm1931_vm9, %v1715_v19, %v1890_v40  ;;  %v921_v40 = vadd.f32 %v9162_v30, %v8720_v53 }
 0x2e8   : > { %v1384_v44 = vunpack.c.l.b16 %v1256_v22  ;;  %v2136_v34 = vunpack.c.l.b16 %v1967_v31  ;;  %v2138_v63 = vunpack.c.h.b16 %v1967_v31 }
 0x2e9   : > { %v1087_v43 = vpop.f32.mrf.mxu1 }
 0x2ea   : > { %v2242_v9 = vpack.c.b16 %v2137_v46, %v2136_v34  ;;  %v2243_v23 = vpack.c.b16 %v2139_v3, %v2138_v63  ;;  %v9276_v42 = vpop.f32.mrf.mxu2  ;;  %v9280_v7 = vpack.c.b16 %v1384_v44, %v1383_v10  ;;  %v1088_v33 = vadd.f32 %v1087_v43, %v919_v37 }
 0x2eb   : > { %v9278_v49 = vpop.f32.mrf.mxu3  ;;  %v6941_v61 = vld [vmem:[#allocation2 + $0xa0] sm:$0xf]  ;;  %v8187_v47 = vld [vmem:[#allocation2 + $0xa4] sm:$0xf]  ;;  %v2135_v3 = vunpack.c.h.b16 %v1845_v51 }
 0x2ec   : > { %v7141_v35 = vld [vmem:[#allocation2 + $0xa0] sm:$0xf]  ;;  %2374 = vst.msk [vmem:[#allocation2 + $0xc0] sm:$0xff] %vm8928_vm2, %v2242_v9  ;;  %1126 = vmatmul.bf16.gmra.mxu1 %v6738_v45  ;;  %1901 = vrot.lane.b32.xlu2 %v9280_v7, %s8502_s20  ;;  %v8146_v27 = vld [vmem:[#allocation2 + $0xa4] sm:$0xf0]  ;;  %v9290_v59 = vpop.f32.mrf.mxu0  ;;  %v1193_v46 = vmax.f32 %v1088_v33, 0.0 }
 0x2ed   : > { %2375 = vst.msk [vmem:[#allocation2 + $0xc8] sm:$0xff] %vm8928_vm2, %v2243_v23  ;;  %v6942_v2 = vor.u32 %v8146_v27, %v6941_v61  ;;  %v8104_v1 = vld [vmem:[#allocation2 + $0xa4] sm:$0xf0]  ;;  %v7343_v13 = vld [vmem:[#allocation2 + $0xa8] sm:$0xf0]  ;;  %v8209_v27 = vld [vmem:[%s11314_s2 + $0xf0] sm:$0xff] }
 0x2ee   : > { %v1888_v18 = vpop.permute.xlu1 %1887  ;;  %v7142_v22 = vor.u32 %v8104_v1, %v7141_v35  ;;  %v7346_v19 = vor.u32 %v8187_v47, %v7343_v13  ;;  %v1257_v43 = vpack.c.bf16 %v1193_v46, %v1193_v46  ;;  %v6743_v61 = vld [vmem:[%s8637_s16 + $0x1b8] sm:$0xf0]  ;;  %v924_v1 = vadd.f32 %v9162_v30, %v8724_v57  ;;  %3745 = vmatpush.bf16.msrb.mxu3 %v8209_v27 }
 0x2ef   : > { %v1964_v21 = vsel %vm1931_vm9, %v1714_v5, %v1888_v18  ;;  %2855 = vmatmul.bf16.gmra.mxu2 %v6942_v2  ;;  %v6746_v51 = vor.u32 %v8057_v17, %v6743_v61  ;;  %4986 = vmatpush.bf16.msrb.mxu1 %v8209_v27  ;;  %v1530_v17 = vshrl.u32 %v9154_v38, 16 }
 0x2f0   : > { %v2132_v31 = vunpack.c.l.b16 %v1964_v21  ;;  %v2134_v45 = vunpack.c.h.b16 %v1964_v21  ;;  %3302 = vmatmul.bf16.gmra.mxu3 %v7142_v22  ;;  %7459 = vmatmul.msk.bf16.gmra.mxu0 %vm1931_vm9, %v7346_v19  ;;  %v1385_v47 = vunpack.c.l.b16 %v1257_v43  ;;  %v9332_v43 = vld [vmem:[%s11314_s2 + $0xa0] sm:$0xff] }
 0x2f1   : > { %v1089_v10 = vpop.f32.mrf.mxu1  ;;  %2898 = vmatpush.bf16.msrb.mxu2 %v9332_v43 }
 0x2f2   : > { %v2240_v44 = vpack.c.b16 %v2133_v29, %v2132_v31  ;;  %v2241_v34 = vpack.c.b16 %v2135_v3, %v2134_v45  ;;  %v1090_v63 = vadd.f32 %v1089_v10, %v921_v40  ;;  %v9298_v37 = vpop.f32.mrf.mxu2 }
 0x2f3   : > { %v9300_v53 = vpop.f32.mrf.mxu3 }
 0x2f4   : > { %11341 = vst [vmem:[#allocation19_spill] sm:$0xff] %v9300_v53  ;;  %v1194_v9 = vmax.f32 %v1090_v63, 0.0  ;;  %v9306_v23 = vpop.f32.mrf.mxu0  ;;  %v1533_v63 = vshll.u32 %v9154_v38, 16 }
 0x2f5   : > { %2372 = vst.msk [vmem:[#allocation2 + $0xb0] sm:$0xff] %vm8928_vm2, %v2240_v44  ;;  %v926_v44 = vadd.f32 %v9162_v30, %v8726_v58 }
 0x2f6   : > { %2373 = vst.msk [vmem:[#allocation2 + $0xb8] sm:$0xff] %vm8928_vm2, %v2241_v34  ;;  %v1258_v35 = vpack.c.bf16 %v1194_v9, %v1194_v9 }
 0x2f8   : > { %v1386_v33 = vunpack.c.l.b16 %v1258_v35 }
 0x2f9   : > { %v1092_v2 = vpop.f32.mrf.mxu1 }
 0x2fa   : > { %v9315_v13 = vpop.f32.mrf.mxu2  ;;  %v9319_v18 = vpack.c.b16 %v1386_v33, %v1385_v47  ;;  %v1093_v29 = vadd.f32 %v1092_v2, %v924_v1  ;;  %v8059_v2 = vld [vmem:[%s8637_s16 + $0x1c4] sm:$0xf]  ;;  %v6751_v1 = vld [vmem:[%s8637_s16 + $0x1c8] sm:$0xf0] }
 0x2fb   : > { %v9317_v5 = vpop.f32.mrf.mxu3 }
 0x2fc   : > { %11342 = vst [vmem:[#allocation20_spill] sm:$0xff] %v9317_v5  ;;  %v6949_v22 = vld [vmem:[#allocation2 + $0xb0] sm:$0xf]  ;;  %v8189_v40 = vld [vmem:[#allocation2 + $0xb4] sm:$0xf]  ;;  %1131 = vmatmul.bf16.gmra.mxu1 %v6746_v51  ;;  %1903 = vrot.lane.b32.xlu0 %v9319_v18, %s8502_s20  ;;  %v1195_v34 = vmax.f32 %v1093_v29, 0.0 }
 0x2fd   : > { %v7149_v19 = vld [vmem:[#allocation2 + $0xb0] sm:$0xf]  ;;  %v8148_v21 = vld [vmem:[#allocation2 + $0xb4] sm:$0xf0]  ;;  %v9323_v3 = vpop.f32.mrf.mxu0  ;;  %v7351_v45 = vld [vmem:[#allocation2 + $0xb8] sm:$0xf0] }
 0x2fe   : > { %v8106_v46 = vld [vmem:[#allocation2 + $0xb4] sm:$0xf0]  ;;  %v6950_v57 = vor.u32 %v8148_v21, %v6949_v22  ;;  %v7354_v10 = vor.u32 %v8189_v40, %v7351_v45  ;;  %v1259_v47 = vpack.c.bf16 %v1195_v34, %v1195_v34  ;;  %v1760_v51 = vrot.slane %v1533_v63, 1 }
 0x2ff   : > { %v7150_v31 = vor.u32 %v8106_v46, %v7149_v19  ;;  %v1547_v22 = vshll.u32 %v9197_v11, 16  ;;  %v1532_v40 = vrot.slane %v1530_v17, 7  ;;  %v6754_v21 = vor.u32 %v8059_v2, %v6751_v1  ;;  %v7157_v2 = vld [vmem:[#allocation2 + $0xc0] sm:$0xf] }
 0x300   : > { %2860 = vmatmul.bf16.gmra.mxu2 %v6950_v57  ;;  %7460 = vmatmul.msk.bf16.gmra.mxu0 %vm1931_vm9, %v7354_v10  ;;  %v1387_v29 = vunpack.c.l.b16 %v1259_v47  ;;  %v1761_v46 = vor.u32 %v1760_v51, %v1530_v17  ;;  %v1544_v57 = vshrl.u32 %v9197_v11, 16  ;;  %v929_v10 = vadd.f32 %v9162_v30, %v8730_v62  ;;  %v7359_v47 = vld [vmem:[#allocation2 + $0xc8] sm:$0xf0]  ;;  %v8108_v17 = vld [vmem:[#allocation2 + $0xc4] sm:$0xf0] }
 0x301   : > { %3307 = vmatmul.bf16.gmra.mxu3 %v7150_v31  ;;  %v1094_v9 = vpop.f32.mrf.mxu1  ;;  %v1764_v45 = vrot.slane %v1547_v22, 1 }
 0x302   : > { %v1095_v61 = vadd.f32 %v1094_v9, %v926_v44  ;;  %v9335_v35 = vpop.f32.mrf.mxu2  ;;  %v8191_v9 = vld [vmem:[#allocation2 + $0xc4] sm:$0xf]  ;;  %v1847_v62 = vsel %vm9018_vm7, %v1761_v46, 0 }
 0x303   : > { %v9338_v58 = vpop.f32.mrf.mxu3  ;;  %v1765_v46 = vor.u32 %v1764_v45, %v1544_v57 }
 0x304   : > { %11343 = vst [vmem:[#allocation21_spill] sm:$0xff] %v9338_v58  ;;  %v1196_v33 = vmax.f32 %v1095_v61, 0.0  ;;  %v1535_v61 = vor.u32 %v1533_v63, %v1532_v40  ;;  %v6957_v58 = vld [vmem:[#allocation2 + $0xc0] sm:$0xf]  ;;  %v1540_v63 = vshll.u32 %v9172_v15, 16 }
 0x305   : > { %v9340_v27 = vpop.f32.mrf.mxu0  ;;  %v1849_v45 = vsel %vm9018_vm7, %v1765_v46, 0 }
 0x306   : > { %v1260_v19 = vpack.c.bf16 %v1196_v33, %v1196_v33  ;;  %v8150_v33 = vld [vmem:[#allocation2 + $0xc4] sm:$0xf0]  ;;  %v1716_v40 = vsel %vm9027_vm8, 0, %v1535_v61  ;;  %v1537_v61 = vshrl.u32 %v9172_v15, 16  ;;  %v6759_v15 = vld [vmem:[%s8637_s16 + $0x1d8] sm:$0xf0] }
 0x307   : > { %v6958_v1 = vor.u32 %v8150_v33, %v6957_v58  ;;  %v2143_v58 = vunpack.c.h.b16 %v1847_v62 }
 0x308   : > { %v1388_v38 = vunpack.c.l.b16 %v1260_v19  ;;  %v7362_v19 = vor.u32 %v8191_v9, %v7359_v47 }
 0x309   : > { %v1097_v31 = vpop.f32.mrf.mxu1 }
 0x30a   : > { %v9348_v44 = vpop.f32.mrf.mxu2  ;;  %v9350_v34 = vpack.c.b16 %v1388_v38, %v1387_v29  ;;  %v1098_v51 = vadd.f32 %v1097_v31, %v929_v10  ;;  %v7158_v38 = vor.u32 %v8108_v17, %v7157_v2  ;;  %v2141_v31 = vunpack.c.l.b16 %v1847_v62 }
 0x30b   : > { %11344 = vst [vmem:[#allocation22_spill] sm:$0xff] %v9348_v44  ;;  %v9352_v5 = vpop.f32.mrf.mxu3  ;;  %v1762_v2 = vrot.slane %v1540_v63, 1 }
 0x30c   : > { %11345 = vst [vmem:[#allocation23_spill] sm:$0xff] %v9352_v5  ;;  %1136 = vmatmul.bf16.gmra.mxu1 %v6754_v21  ;;  %1905 = vrot.lane.b32.xlu1 %v9350_v34, %s8502_s20  ;;  %v1546_v5 = vrot.slane %v1544_v57, 7  ;;  %v931_v21 = vadd.f32 %v9162_v30, %v8735_v0  ;;  %v1197_v44 = vmax.f32 %v1098_v51, 0.0 }
 0x30d   : > { %v9358_v11 = vpop.f32.mrf.mxu0 }
 0x30e   : > { %11346 = vst [vmem:[#allocation24_spill] sm:$0xff] %v9358_v11  ;;  %v1892_v29 = vpop.permute.xlu0 %1891  ;;  %v1261_v51 = vpack.c.bf16 %v1197_v44, %v1197_v44  ;;  %v2151_v44 = vunpack.c.h.b16 %v1849_v45 }
 0x30f   : > { %v1970_v10 = vsel %vm1931_vm9, %v1716_v40, %v1892_v29 }
 0x310   : > { %2865 = vmatmul.bf16.gmra.mxu2 %v6958_v1  ;;  %7461 = vmatmul.msk.bf16.gmra.mxu0 %vm1931_vm9, %v7362_v19  ;;  %v2140_v33 = vunpack.c.l.b16 %v1970_v10  ;;  %v2142_v9 = vunpack.c.h.b16 %v1970_v10  ;;  %v1549_v1 = vor.u32 %v1547_v22, %v1546_v5  ;;  %v8061_v19 = vld [vmem:[%s8637_s16 + $0x1d4] sm:$0xf] }
 0x311   : > { %3312 = vmatmul.bf16.gmra.mxu3 %v7158_v38  ;;  %v1099_v47 = vpop.f32.mrf.mxu1  ;;  %v1539_v38 = vrot.slane %v1537_v61, 7  ;;  %v6762_v46 = vor.u32 %v8061_v19, %v6759_v15 }
 0x312   : > { %v2244_v17 = vpack.c.b16 %v2141_v31, %v2140_v33  ;;  %v2245_v0 = vpack.c.b16 %v2143_v58, %v2142_v9  ;;  %v1100_v11 = vadd.f32 %v1099_v47, %v931_v21  ;;  %v9368_v53 = vpop.f32.mrf.mxu2  ;;  %v1718_v5 = vsel %vm9027_vm8, 0, %v1549_v1  ;;  %v8208_v47 = vld [vmem:[%s11314_s2 + $0xe8] sm:$0xff] }
 0x313   : > { %v9370_v57 = vpop.f32.mrf.mxu3  ;;  %v1763_v21 = vor.u32 %v1762_v2, %v1537_v61  ;;  %v2149_v31 = vunpack.c.l.b16 %v1849_v45  ;;  %v1542_v45 = vor.u32 %v1540_v63, %v1539_v38  ;;  %3746 = vmatpush.bf16.msrb.mxu3 %v8208_v47  ;;  %4987 = vmatpush.bf16.msrb.mxu1 %v8208_v47  ;;  %v8207_v63 = vld [vmem:[%s11314_s2 + $0xe0] sm:$0xff] }
 0x314   : > { %2376 = vst.msk [vmem:[#allocation2 + $0xd0] sm:$0xff] %vm8928_vm2, %v2244_v17  ;;  %v1198_v62 = vmax.f32 %v1100_v11, 0.0  ;;  %v1389_v11 = vunpack.c.l.b16 %v1261_v51  ;;  %v934_v17 = vadd.f32 %v9162_v30, %v8739_v4 }
 0x315   : > { %2377 = vst.msk [vmem:[#allocation2 + $0xd8] sm:$0xff] %vm8928_vm2, %v2245_v0  ;;  %v9380_v40 = vpop.f32.mrf.mxu0  ;;  %v1848_v4 = vsel %vm9018_vm7, %v1763_v21, 0  ;;  %v936_v21 = vadd.f32 %v9162_v30, %v8743_v8 }
 0x316   : > { %v1262_v29 = vpack.c.bf16 %v1198_v62, %v1198_v62  ;;  %v1896_v22 = vpop.permute.xlu2 %1895 }
 0x317   : > { %v1976_v10 = vsel %vm1931_vm9, %v1718_v5, %v1896_v22  ;;  %3747 = vmatpush.bf16.msrb.mxu3 %v8207_v63  ;;  %4988 = vmatpush.bf16.msrb.mxu1 %v8207_v63 }
 0x318   : > { %v1390_v58 = vunpack.c.l.b16 %v1262_v29  ;;  %v2148_v33 = vunpack.c.l.b16 %v1976_v10  ;;  %v2150_v9 = vunpack.c.h.b16 %v1976_v10 }
 0x319   : > { %v1102_v0 = vpop.f32.mrf.mxu1 }
 0x31a   : > { %v2248_v1 = vpack.c.b16 %v2149_v31, %v2148_v33  ;;  %v2249_v62 = vpack.c.b16 %v2151_v44, %v2150_v9  ;;  %v9390_v61 = vpop.f32.mrf.mxu2  ;;  %v9392_v2 = vpack.c.b16 %v1390_v58, %v1389_v11  ;;  %v1103_v5 = vadd.f32 %v1102_v0, %v934_v17 }
 0x31b   : > { %v9394_v51 = vpop.f32.mrf.mxu3  ;;  %v6965_v19 = vld [vmem:[#allocation2 + $0xd0] sm:$0xf]  ;;  %v8193_v29 = vld [vmem:[#allocation2 + $0xd4] sm:$0xf]  ;;  %v2145_v9 = vunpack.c.l.b16 %v1848_v4  ;;  %v2147_v0 = vunpack.c.h.b16 %v1848_v4 }
 0x31c   : > { %11347 = vst [vmem:[#allocation25_spill] sm:$0xff] %v9394_v51  ;;  %v7165_v15 = vld [vmem:[#allocation2 + $0xd0] sm:$0xf]  ;;  %1141 = vmatmul.bf16.gmra.mxu1 %v6762_v46  ;;  %1907 = vrot.lane.b32.xlu2 %v9392_v2, %s8502_s20  ;;  %v8152_v22 = vld [vmem:[#allocation2 + $0xd4] sm:$0xf0]  ;;  %v1717_v46 = vsel %vm9027_vm8, 0, %v1542_v45 }
 0x31d   : > { %2380 = vst.msk [vmem:[#allocation2 + $0xf0] sm:$0xff] %vm8928_vm2, %v2248_v1  ;;  %v9407_v38 = vpop.f32.mrf.mxu0  ;;  %v6966_v31 = vor.u32 %v8152_v22, %v6965_v19  ;;  %v8110_v44 = vld [vmem:[#allocation2 + $0xd4] sm:$0xf0]  ;;  %v7367_v10 = vld [vmem:[#allocation2 + $0xd8] sm:$0xf0]  ;;  %v1199_v17 = vmax.f32 %v1103_v5, 0.0 }
 0x31e   : > { %2381 = vst.msk [vmem:[#allocation2 + $0xf8] sm:$0xff] %vm8928_vm2, %v2249_v62  ;;  %v1894_v11 = vpop.permute.xlu1 %1893  ;;  %v7166_v58 = vor.u32 %v8110_v44, %v7165_v15  ;;  %v7370_v33 = vor.u32 %v8193_v29, %v7367_v10  ;;  %v8206_v45 = vld [vmem:[%s11314_s2 + $0xd8] sm:$0xff]  ;;  %v8063_v44 = vld [vmem:[%s8637_s16 + $0x1e4] sm:$0xf]  ;;  %v6767_v10 = vld [vmem:[%s8637_s16 + $0x1e8] sm:$0xf0] }
 0x31f   : > { %v1973_v47 = vsel %vm1931_vm9, %v1717_v46, %v1894_v11  ;;  %3748 = vmatpush.bf16.msrb.mxu3 %v8206_v45  ;;  %4989 = vmatpush.bf16.msrb.mxu1 %v8206_v45  ;;  %v1263_v4 = vpack.c.bf16 %v1199_v17, %v1199_v17  ;;  %v8205_v46 = vld [vmem:[%s11314_s2 + $0xd0] sm:$0xff]  ;;  %v939_v17 = vadd.f32 %v9162_v30, %v8747_v12 }
 0x320   : > { %2870 = vmatmul.bf16.gmra.mxu2 %v6966_v31  ;;  %v2144_v1 = vunpack.c.l.b16 %v1973_v47  ;;  %v2146_v62 = vunpack.c.h.b16 %v1973_v47  ;;  %7462 = vmatmul.msk.bf16.gmra.mxu0 %vm1931_vm9, %v7370_v33 }
 0x321   : > { %3317 = vmatmul.bf16.gmra.mxu3 %v7166_v58  ;;  %v1104_v19 = vpop.f32.mrf.mxu1  ;;  %v1391_v58 = vunpack.c.l.b16 %v1263_v4 }
 0x322   : > { %v2246_v8 = vpack.c.b16 %v2145_v9, %v2144_v1  ;;  %v2247_v15 = vpack.c.b16 %v2147_v0, %v2146_v62  ;;  %v1105_v29 = vadd.f32 %v1104_v19, %v936_v21  ;;  %v9418_v22 = vpop.f32.mrf.mxu2  ;;  %v6770_v21 = vor.u32 %v8063_v44, %v6767_v10  ;;  %v8204_v9 = vld [vmem:[%s11314_s2 + $0xc8] sm:$0xff] }
 0x323   : > { %v9420_v5 = vpop.f32.mrf.mxu3  ;;  %3749 = vmatpush.bf16.msrb.mxu3 %v8205_v46  ;;  %4990 = vmatpush.bf16.msrb.mxu1 %v8205_v46  ;;  %v8203_v46 = vld [vmem:[%s11314_s2 + $0xc0] sm:$0xff] }
 0x324   : > { %11348 = vst [vmem:[#allocation26_spill] sm:$0xff] %v9420_v5  ;;  %v1200_v63 = vmax.f32 %v1105_v29, 0.0 }
 0x325   : > { %2378 = vst.msk [vmem:[#allocation2 + $0xe0] sm:$0xff] %vm8928_vm2, %v2246_v8  ;;  %v9426_v31 = vpop.f32.mrf.mxu0  ;;  %v8114_v5 = vld [vmem:[#allocation2 + $0xf4] sm:$0xf0] }
 0x326   : > { %2379 = vst.msk [vmem:[#allocation2 + $0xe8] sm:$0xff] %vm8928_vm2, %v2247_v15  ;;  %v1264_v11 = vpack.c.bf16 %v1200_v63, %v1200_v63 }
 0x327   : > { %3750 = vmatpush.bf16.msrb.mxu3 %v8204_v9  ;;  %4991 = vmatpush.bf16.msrb.mxu1 %v8204_v9 }
 0x328   : > { %v1392_v33 = vunpack.c.l.b16 %v1264_v11 }
 0x329   : > { %v1107_v47 = vpop.f32.mrf.mxu1 }
 0x32a   : > { %v9438_v0 = vpop.f32.mrf.mxu2  ;;  %v9440_v1 = vpack.c.b16 %v1392_v33, %v1391_v58  ;;  %v1108_v15 = vadd.f32 %v1107_v47, %v939_v17  ;;  %v1554_v58 = vshll.u32 %v9223_v56, 16  ;;  %v941_v33 = vadd.f32 %v9162_v30, %v8751_v16  ;;  %v8384_v47 = vld [vmem:[%s11314_s2 + $0x38] sm:$0xff] }
 0x32b   : > { %11349 = vst [vmem:[#allocation27_spill] sm:$0xff] %v9438_v0  ;;  %v9442_v62 = vpop.f32.mrf.mxu3  ;;  %3751 = vmatpush.bf16.msrb.mxu3 %v8203_v46  ;;  %4992 = vmatpush.bf16.msrb.mxu1 %v8203_v46  ;;  %v1551_v17 = vshrl.u32 %v9223_v56, 16 }
 0x32c   : > { %11350 = vst [vmem:[#allocation28_spill] sm:$0xff] %v9442_v62  ;;  %v6973_v45 = vld [vmem:[#allocation2 + $0xe0] sm:$0xf]  ;;  %v8195_v8 = vld [vmem:[#allocation2 + $0xe4] sm:$0xf]  ;;  %1146 = vmatmul.bf16.gmra.mxu1 %v6770_v21  ;;  %1909 = vrot.lane.b32.xlu0 %v9440_v1, %s8502_s20  ;;  %v1201_v21 = vmax.f32 %v1108_v15, 0.0 }
 0x32d   : > { %v7173_v19 = vld [vmem:[#allocation2 + $0xe0] sm:$0xf]  ;;  %v8154_v29 = vld [vmem:[#allocation2 + $0xe4] sm:$0xf0]  ;;  %v9446_v63 = vpop.f32.mrf.mxu0  ;;  %v7375_v10 = vld [vmem:[#allocation2 + $0xe8] sm:$0xf0] }
 0x32e   : > { %v8112_v4 = vld [vmem:[#allocation2 + $0xe4] sm:$0xf0]  ;;  %v6974_v12 = vor.u32 %v8154_v29, %v6973_v45  ;;  %v7378_v11 = vor.u32 %v8195_v8, %v7375_v10  ;;  %v1766_v16 = vrot.slane %v1554_v58, 1  ;;  %v1265_v30 = vpack.c.bf16 %v1201_v21, %v1201_v21  ;;  %v7383_v62 = vld [vmem:[#allocation2 + $0xf8] sm:$0xf0] }
 0x32f   : > { %v7174_v44 = vor.u32 %v8112_v4, %v7173_v19  ;;  %4582 = vmatpush.bf16.msra.mxu3 %v8384_v47  ;;  %v8065_v4 = vld [vmem:[%s8637_s16 + $0x1f4] sm:$0xf]  ;;  %v1553_v46 = vrot.slane %v1551_v17, 7  ;;  %v1568_v47 = vshll.u32 %v9280_v7, 16  ;;  %v1565_v21 = vshrl.u32 %v9280_v7, 16 }
 0x330   : > { %2875 = vmatmul.bf16.gmra.mxu2 %v6974_v12  ;;  %7463 = vmatmul.msk.bf16.gmra.mxu0 %vm1931_vm9, %v7378_v11  ;;  %v6775_v12 = vld [vmem:[%s8637_s16 + $0x1f8] sm:$0xf0]  ;;  %v1767_v56 = vor.u32 %v1766_v16, %v1551_v17  ;;  %v1393_v11 = vunpack.c.l.b16 %v1265_v30 }
 0x331   : > { %3322 = vmatmul.bf16.gmra.mxu3 %v7174_v44  ;;  %v1109_v9 = vpop.f32.mrf.mxu1  ;;  %v8385_v44 = vld [vmem:[%s11314_s2 + $0x30] sm:$0xff]  ;;  %v1556_v7 = vor.u32 %v1554_v58, %v1553_v46  ;;  %v8388_v58 = vld [vmem:[%s11314_s2 + $0x20] sm:$0xff] }
 0x332   : > { %v1110_v45 = vadd.f32 %v1109_v9, %v941_v33  ;;  %v9459_v19 = vpop.f32.mrf.mxu2  ;;  %v6778_v9 = vor.u32 %v8065_v4, %v6775_v12  ;;  %v6981_v4 = vld [vmem:[#allocation2 + $0xf0] sm:$0xf]  ;;  %v8156_v12 = vld [vmem:[#allocation2 + $0xf4] sm:$0xf0] }
 0x333   : > { %11351 = vst [vmem:[#allocation29_spill] sm:$0xff] %v9459_v19  ;;  %v9461_v8 = vpop.f32.mrf.mxu3  ;;  %4583 = vmatpush.bf16.msra.mxu3 %v8385_v44  ;;  %v9478_v44 = vld [vmem:[%s11316_s4] ss:$0 sm:$0xff] }
 0x334   : > { %11352 = vst [vmem:[#allocation30_spill] sm:$0xff] %v9461_v8  ;;  %v1202_v15 = vmax.f32 %v1110_v45, 0.0  ;;  %v8386_v8 = vld [vmem:[%s11314_s2 + $0x28] sm:$0xff]  ;;  %v944_v17 = vadd.f32 %v9478_v44, %v8755_v20  ;;  %v1850_v20 = vsel %vm9018_vm7, %v1767_v56, 0  ;;  %v946_v46 = vadd.f32 %v9478_v44, %v8759_v24 }
 0x335   : > { %v9463_v29 = vpop.f32.mrf.mxu0  ;;  %v2153_v56 = vunpack.c.l.b16 %v1850_v20  ;;  %v2155_v51 = vunpack.c.h.b16 %v1850_v20 }
 0x336   : > { %11353 = vst [vmem:[#allocation31_spill] sm:$0xff] %v9463_v29  ;;  %v1266_v10 = vpack.c.bf16 %v1202_v15, %v1202_v15  ;;  %v8197_v15 = vld [vmem:[#allocation2 + $0xf4] sm:$0xf] }
 0x337   : > { %4584 = vmatpush.bf16.msra.mxu3 %v8386_v8  ;;  %v7181_v8 = vld [vmem:[#allocation2 + $0xf0] sm:$0xf] }
 0x338   : > { %v1394_v33 = vunpack.c.l.b16 %v1266_v10  ;;  %v7182_v29 = vor.u32 %v8114_v5, %v7181_v8  ;;  %v1558_v8 = vshrl.u32 %v9245_v14, 16 }
 0x339   : > { %v1112_v45 = vpop.f32.mrf.mxu1 }
 0x33a   : > { %v9482_v16 = vpop.f32.mrf.mxu2  ;;  %v9484_v30 = vpack.c.b16 %v1394_v33, %v1393_v11  ;;  %v1113_v19 = vadd.f32 %v1112_v45, %v944_v17  ;;  %v6982_v11 = vor.u32 %v8156_v12, %v6981_v4  ;;  %v1567_v33 = vrot.slane %v1565_v21, 7 }
 0x33b   : > { %11354 = vst [vmem:[#allocation32_spill] sm:$0xff] %v9482_v16  ;;  %v9486_v10 = vpop.f32.mrf.mxu3  ;;  %v1770_v16 = vrot.slane %v1568_v47, 1  ;;  %4585 = vmatpush.bf16.msra.mxu3 %v8388_v58  ;;  %v1719_v45 = vsel %vm9027_vm8, 0, %v1556_v7  ;;  %v1561_v12 = vshll.u32 %v9245_v14, 16  ;;  %v8389_v7 = vld [vmem:[%s11314_s2 + $0x18] sm:$0xff]  ;;  %v8390_v14 = vld [vmem:[%s11314_s2 + $0x10] sm:$0xff] }
 0x33c   : > { %11355 = vst [vmem:[#allocation33_spill] sm:$0xff] %v9486_v10  ;;  %1151 = vmatmul.bf16.gmra.mxu1 %v6778_v9  ;;  %1911 = vrot.lane.b32.xlu1 %v9484_v30, %s8502_s20  ;;  %v7386_v9 = vor.u32 %v8197_v15, %v7383_v62  ;;  %v1203_v0 = vmax.f32 %v1113_v19, 0.0  ;;  %v8126_v62 = vld [vmem:[%s11314_s2 + $0x58] sm:$0xff]  ;;  %v1570_v5 = vor.u32 %v1568_v47, %v1567_v33 }
 0x33d   : > { %v9497_v10 = vpop.f32.mrf.mxu0  ;;  %3337 = vmatpush.bf16.msra.mxu2 %v8126_v62  ;;  %4675 = vmatpush.bf16.msra.mxu0 %v8126_v62 }
 0x33e   : > { %11356 = vst [vmem:[#allocation34_spill] sm:$0xff] %v9497_v10  ;;  %v1898_v17 = vpop.permute.xlu0 %1897  ;;  %v1771_v10 = vor.u32 %v1770_v16, %v1565_v21  ;;  %v1768_v21 = vrot.slane %v1561_v12, 1  ;;  %v1267_v16 = vpack.c.bf16 %v1203_v0, %v1203_v0 }
 0x33f   : > { %v1979_v4 = vsel %vm1931_vm9, %v1719_v45, %v1898_v17  ;;  %4586 = vmatpush.bf16.msra.mxu3 %v8389_v7  ;;  %v1560_v45 = vrot.slane %v1558_v8, 7  ;;  %v8125_v17 = vld [vmem:[%s11314_s2 + $0x50] sm:$0xff] }
 0x340   : > { %2880 = vmatmul.bf16.gmra.mxu2 %v6982_v11  ;;  %7464 = vmatmul.msk.bf16.gmra.mxu0 %vm1931_vm9, %v7386_v9  ;;  %v2152_v58 = vunpack.c.l.b16 %v1979_v4  ;;  %v2154_v24 = vunpack.c.h.b16 %v1979_v4  ;;  %v1852_v33 = vsel %vm9018_vm7, %v1771_v10, 0 }
 0x341   : > { %3327 = vmatmul.bf16.gmra.mxu3 %v7182_v29  ;;  %v1114_v15 = vpop.f32.mrf.mxu1  ;;  %v2163_v10 = vunpack.c.h.b16 %v1852_v33  ;;  %4676 = vmatpush.bf16.msra.mxu0 %v8125_v17 }
 0x342   : > { %v2250_v19 = vpack.c.b16 %v2153_v56, %v2152_v58  ;;  %v2251_v20 = vpack.c.b16 %v2155_v51, %v2154_v24  ;;  %v1115_v11 = vadd.f32 %v1114_v15, %v946_v46  ;;  %v9511_v9 = vpop.f32.mrf.mxu2  ;;  %v1721_v46 = vsel %vm9027_vm8, 0, %v1570_v5  ;;  %v8124_v5 = vld [vmem:[%s11314_s2 + $0x48] sm:$0xff]  ;;  %3338 = vmatpush.bf16.msra.mxu2 %v8125_v17 }
 0x343   : > { %11357 = vst [vmem:[#allocation35_spill] sm:$0xff] %v9511_v9  ;;  %v9513_v29 = vpop.f32.mrf.mxu3  ;;  %4587 = vmatpush.bf16.msra.mxu3 %v8390_v14  ;;  %v2161_v56 = vunpack.c.l.b16 %v1852_v33  ;;  %v1769_v58 = vor.u32 %v1768_v21, %v1558_v8  ;;  %v1395_v24 = vunpack.c.l.b16 %v1267_v16  ;;  %v8391_v8 = vld [vmem:[%s11314_s2 + $0x8] sm:$0xff]  ;;  %v1563_v14 = vor.u32 %v1561_v12, %v1560_v45 }
 0x344   : > { %11358 = vst [vmem:[#allocation36_spill] sm:$0xff] %v9513_v29  ;;  %v1204_v47 = vmax.f32 %v1115_v11, 0.0  ;;  %v8172_v17 = vld [vmem:[#allocation2 + $0x24] sm:$0xf0] }
 0x345   : > { %2382 = vst.msk [vmem:[#allocation2 + $0x100] sm:$0xff] %vm8928_vm2, %v2250_v19  ;;  %v9530_v15 = vpop.f32.mrf.mxu0  ;;  %4677 = vmatpush.bf16.msra.mxu0 %v8124_v5 }
 0x346   : > { %2383 = vst.msk [vmem:[#allocation2 + $0x108] sm:$0xff] %vm8928_vm2, %v2251_v20  ;;  %v1268_v51 = vpack.c.bf16 %v1204_v47, %v1204_v47  ;;  %v1902_v0 = vpop.permute.xlu2 %1901  ;;  %v949_v20 = vadd.f32 %v9478_v44, %v8763_v28  ;;  %3339 = vmatpush.bf16.msra.mxu2 %v8124_v5 }
 0x347   : > { %v1985_v4 = vsel %vm1931_vm9, %v1721_v46, %v1902_v0  ;;  %11359 = vst [vmem:[#allocation37_spill] sm:$0xff] %v9530_v15  ;;  %4588 = vmatpush.bf16.msra.mxu3 %v8391_v8 }
 0x348   : > { %v1396_v62 = vunpack.c.l.b16 %v1268_v51  ;;  %v2160_v7 = vunpack.c.l.b16 %v1985_v4  ;;  %v2162_v19 = vunpack.c.h.b16 %v1985_v4  ;;  %v7277_v51 = vld [vmem:[#allocation2 + $0x20] sm:$0xf] }
 0x349   : > { %v1117_v11 = vpop.f32.mrf.mxu1 }
 0x34a   : > { %v2254_v21 = vpack.c.b16 %v2161_v56, %v2160_v7  ;;  %v2255_v16 = vpack.c.b16 %v2163_v10, %v2162_v19  ;;  %v9540_v47 = vpop.f32.mrf.mxu2  ;;  %v9542_v33 = vpack.c.b16 %v1396_v62, %v1395_v24  ;;  %v1118_v28 = vadd.f32 %v1117_v11, %v949_v20  ;;  %v8392_v24 = vld [vmem:[%s11314_s2] sm:$0xff] }
 0x34b   : > { %11360 = vst [vmem:[#allocation38_spill] sm:$0xff] %v9540_v47  ;;  %v9544_v46 = vpop.f32.mrf.mxu3  ;;  %v1851_v56 = vsel %vm9018_vm7, %v1769_v58, 0  ;;  %4589 = vmatpush.bf16.msra.mxu3 %v8392_v24  ;;  %v1720_v62 = vsel %vm9027_vm8, 0, %v1563_v14  ;;  %v7278_v19 = vor.u32 %v8172_v17, %v7277_v51  ;;  %v8123_v58 = vld [vmem:[%s11314_s2 + $0x40] sm:$0xff]  ;;  %v951_v11 = vadd.f32 %v9478_v44, %v8767_v32 }
 0x34c   : > { %11361 = vst [vmem:[#allocation39_spill] sm:$0xff] %v9544_v46  ;;  %v6989_v0 = vld [vmem:[#allocation2 + $0x100] sm:$0xf]  ;;  %v8199_v4 = vld [vmem:[#allocation2 + $0x104] sm:$0xf]  ;;  %1913 = vrot.lane.b32.xlu2 %v9542_v33, %s8502_s20  ;;  %v2157_v8 = vunpack.c.l.b16 %v1851_v56  ;;  %4678 = vmatpush.bf16.msra.mxu0 %v8123_v58 }
 0x34d   : > { %2386 = vst.msk [vmem:[#allocation2 + $0x140] sm:$0xff] %vm8928_vm2, %v2254_v21  ;;  %v8158_v10 = vld [vmem:[#allocation2 + $0x104] sm:$0xf0]  ;;  %v7391_v45 = vld [vmem:[#allocation2 + $0x108] sm:$0xf0]  ;;  %v1205_v21 = vmax.f32 %v1118_v28, 0.0  ;;  %3340 = vmatpush.bf16.msra.mxu2 %v8123_v58  ;;  %v9566_v51 = vpop.f32.mrf.mxu0 }
 0x34e   : > { %2387 = vst.msk [vmem:[#allocation2 + $0x148] sm:$0xff] %vm8928_vm2, %v2255_v16  ;;  %v6990_v12 = vor.u32 %v8158_v10, %v6989_v0  ;;  %v1900_v7 = vpop.permute.xlu1 %1899  ;;  %v7394_v20 = vor.u32 %v8199_v4, %v7391_v45  ;;  %v2159_v16 = vunpack.c.h.b16 %v1851_v56  ;;  %v7399_v58 = vld [vmem:[#allocation2 + $0x118] sm:$0xf0] }
 0x34f   : > { %v1982_v5 = vsel %vm1931_vm9, %v1720_v62, %v1900_v7  ;;  %11362 = vst [vmem:[#allocation40_spill] sm:$0xff] %v9566_v51 }
 0x350   : > { %2885 = vmatmul.bf16.gmra.mxu2 %v6990_v12  ;;  %v2156_v0 = vunpack.c.l.b16 %v1982_v5  ;;  %v2158_v10 = vunpack.c.h.b16 %v1982_v5  ;;  %7465 = vmatmul.msk.bf16.gmra.mxu0 %vm1931_vm9, %v7394_v20  ;;  %v1269_v12 = vpack.c.bf16 %v1205_v21, %v1205_v21  ;;  %v8201_v20 = vld [vmem:[#allocation2 + $0x114] sm:$0xf] }
 0x351   : > { %3752 = vmatmul.bf16.vlgmr.msrb.gmra.mxu3 %v7278_v19  ;;  %v1119_v14 = vpop.f32.mrf.mxu1  ;;  %v8127_v21 = vld [vmem:[#allocation2 + $0x14] sm:$0xf] }
 0x352   : > { %v2252_v17 = vpack.c.b16 %v2157_v8, %v2156_v0  ;;  %v2253_v4 = vpack.c.b16 %v2159_v16, %v2158_v10  ;;  %v1120_v45 = vadd.f32 %v1119_v14, %v951_v11  ;;  %v9568_v32 = vpop.f32.mrf.mxu2  ;;  %v1397_v62 = vunpack.c.l.b16 %v1269_v12  ;;  %v6871_v16 = vld [vmem:[#allocation2 + $0x18] sm:$0xf0]  ;;  %v7285_v10 = vld [vmem:[#allocation2 + $0x30] sm:$0xf]  ;;  %v8174_v14 = vld [vmem:[#allocation2 + $0x34] sm:$0xf0] }
 0x353   : > { %11363 = vst [vmem:[#allocation41_spill] sm:$0xff] %v9568_v32  ;;  %v9570_v24 = vpop.f32.mrf.mxu3  ;;  %v954_v11 = vadd.f32 %v9478_v44, %v8771_v36  ;;  %v7402_v12 = vor.u32 %v8201_v20, %v7399_v58  ;;  %v6874_v36 = vor.u32 %v8127_v21, %v6871_v16  ;;  %v8393_v20 = vld [vmem:[%s11314_s2 + $0xb8] sm:$0xff]  ;;  %v1572_v58 = vshrl.u32 %v9319_v18, 16 }
 0x354   : > { %11364 = vst [vmem:[#allocation42_spill] sm:$0xff] %v9570_v24  ;;  %v1206_v28 = vmax.f32 %v1120_v45, 0.0  ;;  %v7286_v24 = vor.u32 %v8174_v14, %v7285_v10 }
 0x355   : > { %2384 = vst.msk [vmem:[#allocation2 + $0x130] sm:$0xff] %vm8928_vm2, %v2252_v17 }
 0x356   : > { %2385 = vst.msk [vmem:[#allocation2 + $0x138] sm:$0xff] %vm8928_vm2, %v2253_v4  ;;  %v1270_v56 = vpack.c.bf16 %v1206_v28, %v1206_v28  ;;  %v9584_v4 = vpop.f32.mrf.mxu0 }
 0x357   : > { %11367 = vst [vmem:[#allocation45_spill] sm:$0xff] %v9584_v4 }
 0x358   : > { %v1398_v7 = vunpack.c.l.b16 %v1270_v56 }
 0x359   : > { %v1122_v19 = vpop.f32.mrf.mxu1 }
 0x35a   : > { %v9578_v8 = vpop.f32.mrf.mxu2  ;;  %v9580_v5 = vpack.c.b16 %v1398_v7, %v1397_v62  ;;  %v1123_v45 = vadd.f32 %v1122_v19, %v954_v11  ;;  %v956_v62 = vadd.f32 %v9478_v44, %v8775_v41  ;;  %v1575_v19 = vshll.u32 %v9319_v18, 16 }
 0x35b   : > { %11365 = vst [vmem:[#allocation43_spill] sm:$0xff] %v9578_v8  ;;  %v9582_v0 = vpop.f32.mrf.mxu3  ;;  %v7293_v8 = vld [vmem:[#allocation2 + $0x40] sm:$0xf] }
 0x35c   : > { %11366 = vst [vmem:[#allocation44_spill] sm:$0xff] %v9582_v0  ;;  %v7469_v17 = vld [vmem:[#allocation2 + $0x130] sm:$0xf]  ;;  %1915 = vrot.lane.b32.xlu0 %v9580_v5, %s8502_s20  ;;  %v1207_v7 = vmax.f32 %v1123_v45, 0.0  ;;  %v8395_v0 = vld [vmem:[%s11314_s2 + $0xa8] sm:$0xff] }
 0x35d   : > { %v8248_v28 = vld [vmem:[#allocation2 + $0x134] sm:$0xf0] }
 0x35e   : > { %v7470_v56 = vor.u32 %v8248_v28, %v7469_v17  ;;  %v1271_v41 = vpack.c.bf16 %v1207_v7, %v1207_v7  ;;  %v8394_v17 = vld [vmem:[%s11314_s2 + $0xb0] sm:$0xff]  ;;  %v9604_v45 = vpop.f32.mrf.mxu0  ;;  %v1574_v28 = vrot.slane %v1572_v58, 7  ;;  %v7615_v7 = vld [vmem:[#allocation2 + $0x128] sm:$0xf0] }
 0x35f   : > { %11370 = vst [vmem:[#allocation48_spill] sm:$0xff] %v9604_v45  ;;  %v8176_v45 = vld [vmem:[#allocation2 + $0x44] sm:$0xf0] }
 0x360   : > { %7043 = vmatmul.msk.bf16.vlgmr.msrb.gmra.mxu2 %vm1931_vm9, %v6874_v36  ;;  %4220 = vmatmul.bf16.vlgmr.msra.gmra.mxu1 %v7470_v56  ;;  %v1399_v36 = vunpack.c.l.b16 %v1271_v41 }
 0x361   : > { %3757 = vmatmul.bf16.gmra.mxu3 %v7286_v24  ;;  %7466 = vmatmul.msk.bf16.gmra.mxu0 %vm1931_vm9, %v7402_v12  ;;  %v1124_v11 = vpop.f32.mrf.mxu1  ;;  %v1772_v24 = vrot.slane %v1575_v19, 1 }
 0x362   : > { %4305 = vmatpush.bf16.msrb.mxu2 %v8393_v20  ;;  %v1125_v21 = vadd.f32 %v1124_v11, %v956_v62  ;;  %v9597_v16 = vpop.f32.mrf.mxu2  ;;  %v8129_v62 = vld [vmem:[#allocation2 + $0x24] sm:$0xf]  ;;  %v1589_v11 = vshll.u32 %v9392_v2, 16 }
 0x363   : > { %11368 = vst [vmem:[#allocation46_spill] sm:$0xff] %v9597_v16  ;;  %v9599_v10 = vpop.f32.mrf.mxu3  ;;  %v1773_v18 = vor.u32 %v1772_v24, %v1572_v58  ;;  %v7477_v24 = vld [vmem:[#allocation2 + $0x140] sm:$0xf]  ;;  %v1577_v16 = vor.u32 %v1575_v19, %v1574_v28  ;;  %v961_v19 = vadd.f32 %v9478_v44, %v8783_v54 }
 0x364   : > { %11369 = vst [vmem:[#allocation47_spill] sm:$0xff] %v9599_v10  ;;  %v1208_v14 = vmax.f32 %v1125_v21, 0.0  ;;  %v8215_v10 = vld [vmem:[#allocation2 + $0x124] sm:$0xf]  ;;  %v6879_v21 = vld [vmem:[#allocation2 + $0x28] sm:$0xf0] }
 0x365   : > { %v1722_v28 = vsel %vm9027_vm8, 0, %v1577_v16 }
 0x366   : > { %4306 = vmatpush.bf16.msrb.mxu2 %v8394_v17  ;;  %v1272_v12 = vpack.c.bf16 %v1208_v14, %v1208_v14  ;;  %v959_v17 = vadd.f32 %v9478_v44, %v8779_v48  ;;  %v1586_v14 = vshrl.u32 %v9392_v2, 16  ;;  %v1853_v48 = vsel %vm9018_vm7, %v1773_v18, 0 }
 0x367   : > { %v1776_v2 = vrot.slane %v1589_v11, 1  ;;  %v1582_v18 = vshll.u32 %v9350_v34, 16 }
 0x368   : > { %v1400_v56 = vunpack.c.l.b16 %v1272_v12  ;;  %v8250_v12 = vld [vmem:[#allocation2 + $0x144] sm:$0xf0] }
 0x369   : > { %v1127_v20 = vpop.f32.mrf.mxu1  ;;  %v7478_v32 = vor.u32 %v8250_v12, %v7477_v24  ;;  %v1777_v16 = vor.u32 %v1776_v2, %v1586_v14 }
 0x36a   : > { %4307 = vmatpush.bf16.msrb.mxu2 %v8395_v0  ;;  %v9613_v41 = vpop.f32.mrf.mxu2  ;;  %v9615_v58 = vpack.c.b16 %v1400_v56, %v1399_v36  ;;  %v1128_v29 = vadd.f32 %v1127_v20, %v959_v17  ;;  %v7618_v0 = vor.u32 %v8215_v10, %v7615_v7  ;;  %v7294_v56 = vor.u32 %v8176_v45, %v7293_v8 }
 0x36b   : > { %11371 = vst [vmem:[#allocation49_spill] sm:$0xff] %v9613_v41  ;;  %v9617_v46 = vpop.f32.mrf.mxu3  ;;  %v6882_v41 = vor.u32 %v8129_v62, %v6879_v21  ;;  %v1588_v20 = vrot.slane %v1586_v14, 7  ;;  %v2165_v17 = vunpack.c.l.b16 %v1853_v48  ;;  %v2167_v10 = vunpack.c.h.b16 %v1853_v48  ;;  %v9631_v62 = vpop.f32.mrf.mxu0 }
 0x36c   : > { %11372 = vst [vmem:[#allocation50_spill] sm:$0xff] %v9617_v46  ;;  %1917 = vrot.lane.b32.xlu1 %v9615_v58, %s8502_s20  ;;  %v1579_v8 = vshrl.u32 %v9350_v34, 16  ;;  %v1855_v14 = vsel %vm9018_vm7, %v1777_v16, 0 }
 0x36d   : > { %11373 = vst [vmem:[#allocation51_spill] sm:$0xff] %v9631_v62 }
 0x36e   : > { %4308 = vmatpush.bf16.msrb.mxu2 %v9332_v43  ;;  %v1904_v36 = vpop.permute.xlu0 %1903  ;;  %v1209_v43 = vmax.f32 %v1128_v29, 0.0 }
 0x36f   : > { %v1988_v7 = vsel %vm1931_vm9, %v1722_v28, %v1904_v36  ;;  %v1774_v36 = vrot.slane %v1582_v18, 1 }
 0x370   : > { %4225 = vmatmul.bf16.gmra.mxu1 %v7478_v32  ;;  %7044 = vmatmul.msk.bf16.gmra.mxu2 %vm1931_vm9, %v6882_v41  ;;  %v2164_v54 = vunpack.c.l.b16 %v1988_v7  ;;  %v2166_v21 = vunpack.c.h.b16 %v1988_v7  ;;  %v1591_v41 = vor.u32 %v1589_v11, %v1588_v20  ;;  %v1273_v46 = vpack.c.bf16 %v1209_v43, %v1209_v43 }
 0x371   : > { %7739 = vmatmul.msk.bf16.vlgmr.msra.gmra.mxu0 %vm1931_vm9, %v7618_v0  ;;  %3762 = vmatmul.bf16.gmra.mxu3 %v7294_v56  ;;  %v1129_v32 = vpop.f32.mrf.mxu1  ;;  %v1581_v11 = vrot.slane %v1579_v8, 7  ;;  %v2175_v56 = vunpack.c.h.b16 %v1855_v14 }
 0x372   : > { %v2256_v45 = vpack.c.b16 %v2165_v17, %v2164_v54  ;;  %v2257_v24 = vpack.c.b16 %v2167_v10, %v2166_v21  ;;  %v1130_v12 = vadd.f32 %v1129_v32, %v961_v19  ;;  %v9635_v48 = vpop.f32.mrf.mxu2  ;;  %v1724_v0 = vsel %vm9027_vm8, 0, %v1591_v41  ;;  %v8131_v32 = vld [vmem:[#allocation2 + $0x34] sm:$0xf] }
 0x373   : > { %11374 = vst [vmem:[#allocation52_spill] sm:$0xff] %v9635_v48  ;;  %v9637_v28 = vpop.f32.mrf.mxu3  ;;  %v2173_v19 = vunpack.c.l.b16 %v1855_v14  ;;  %v1775_v17 = vor.u32 %v1774_v36, %v1579_v8  ;;  %v1401_v10 = vunpack.c.l.b16 %v1273_v46  ;;  %v964_v21 = vadd.f32 %v9478_v44, %v8787_v60  ;;  %v7301_v8 = vld [vmem:[#allocation2 + $0x50] sm:$0xf]  ;;  %v8178_v46 = vld [vmem:[#allocation2 + $0x54] sm:$0xf0] }
 0x374   : > { %11375 = vst [vmem:[#allocation53_spill] sm:$0xff] %v9637_v28  ;;  %v1210_v29 = vmax.f32 %v1130_v12, 0.0  ;;  %v1584_v14 = vor.u32 %v1582_v18, %v1581_v11 }
 0x375   : > { %2388 = vst.msk [vmem:[#allocation2 + $0x150] sm:$0xff] %vm8928_vm2, %v2256_v45  ;;  %v9650_v45 = vpop.f32.mrf.mxu0 }
 0x376   : > { %2389 = vst.msk [vmem:[#allocation2 + $0x158] sm:$0xff] %vm8928_vm2, %v2257_v24  ;;  %v1274_v34 = vpack.c.bf16 %v1210_v29, %v1210_v29  ;;  %v1908_v2 = vpop.permute.xlu2 %1907 }
 0x377   : > { %v1994_v20 = vsel %vm1931_vm9, %v1724_v0, %v1908_v2  ;;  %11376 = vst [vmem:[#allocation54_spill] sm:$0xff] %v9650_v45  ;;  %v6887_v0 = vld [vmem:[#allocation2 + $0x38] sm:$0xf0]  ;;  %v8217_v2 = vld [vmem:[#allocation2 + $0x134] sm:$0xf] }
 0x378   : > { %v1402_v7 = vunpack.c.l.b16 %v1274_v34  ;;  %v2172_v43 = vunpack.c.l.b16 %v1994_v20  ;;  %v2174_v54 = vunpack.c.h.b16 %v1994_v20  ;;  %v7623_v20 = vld [vmem:[#allocation2 + $0x138] sm:$0xf0]  ;;  %v6890_v18 = vor.u32 %v8131_v32, %v6887_v0 }
 0x379   : > { %v1132_v16 = vpop.f32.mrf.mxu1 }
 0x37a   : > { %v2260_v24 = vpack.c.b16 %v2173_v19, %v2172_v43  ;;  %v2261_v12 = vpack.c.b16 %v2175_v56, %v2174_v54  ;;  %v9652_v41 = vpop.f32.mrf.mxu2  ;;  %v9654_v29 = vpack.c.b16 %v1402_v7, %v1401_v10  ;;  %v1133_v60 = vadd.f32 %v1132_v16, %v964_v21 }
 0x37b   : > { %11377 = vst [vmem:[#allocation55_spill] sm:$0xff] %v9652_v41  ;;  %v9656_v36 = vpop.f32.mrf.mxu3  ;;  %v1854_v19 = vsel %vm9018_vm7, %v1775_v17, 0  ;;  %v1723_v10 = vsel %vm9027_vm8, 0, %v1584_v14  ;;  %v7302_v43 = vor.u32 %v8178_v46, %v7301_v8  ;;  %v7626_v54 = vor.u32 %v8217_v2, %v7623_v20 }
 0x37c   : > { %11378 = vst [vmem:[#allocation56_spill] sm:$0xff] %v9656_v36  ;;  %v7485_v34 = vld [vmem:[#allocation2 + $0x150] sm:$0xf]  ;;  %1919 = vrot.lane.b32.xlu2 %v9654_v29, %s8502_s20  ;;  %v2169_v16 = vunpack.c.l.b16 %v1854_v19  ;;  %v1211_v17 = vmax.f32 %v1133_v60, 0.0  ;;  %v2171_v28 = vunpack.c.h.b16 %v1854_v19 }
 0x37d   : > { %2392 = vst.msk [vmem:[#allocation2 + $0x170] sm:$0xff] %vm8928_vm2, %v2260_v24  ;;  %v8252_v56 = vld [vmem:[#allocation2 + $0x154] sm:$0xf0]  ;;  %v11379_v24 = vld [vmem:[#allocation10_spill] sm:$0xff]  ;;  %v9677_v20 = vpop.f32.mrf.mxu0 }
 0x37e   : > { %2393 = vst.msk [vmem:[#allocation2 + $0x178] sm:$0xff] %vm8928_vm2, %v2261_v12  ;;  %v7486_v11 = vor.u32 %v8252_v56, %v7485_v34  ;;  %v1906_v7 = vpop.permute.xlu1 %1905  ;;  %v966_v21 = vadd.f32 %v9478_v44, %v11379_v24  ;;  %v1275_v56 = vpack.c.bf16 %v1211_v17, %v1211_v17  ;;  %v6895_v24 = vld [vmem:[#allocation2 + $0x48] sm:$0xf0] }
 0x37f   : > { %v1991_v36 = vsel %vm1931_vm9, %v1723_v10, %v1906_v7  ;;  %11382 = vst [vmem:[#allocation58_spill] sm:$0xff] %v9677_v20  ;;  %v11383_v10 = vld [vmem:[#allocation11_spill] sm:$0xff] }
 0x380   : > { %7045 = vmatmul.msk.bf16.gmra.mxu2 %vm1931_vm9, %v6890_v18  ;;  %4230 = vmatmul.bf16.gmra.mxu1 %v7486_v11  ;;  %v2168_v12 = vunpack.c.l.b16 %v1991_v36  ;;  %v2170_v32 = vunpack.c.h.b16 %v1991_v36  ;;  %v1403_v19 = vunpack.c.l.b16 %v1275_v56  ;;  %v969_v7 = vadd.f32 %v9478_v44, %v11383_v10 }
 0x381   : > { %3767 = vmatmul.bf16.gmra.mxu3 %v7302_v43  ;;  %7740 = vmatmul.msk.bf16.gmra.mxu0 %vm1931_vm9, %v7626_v54  ;;  %v1134_v14 = vpop.f32.mrf.mxu1 }
 0x382   : > { %v2258_v0 = vpack.c.b16 %v2169_v16, %v2168_v12  ;;  %v2259_v8 = vpack.c.b16 %v2171_v28, %v2170_v32  ;;  %v1135_v46 = vadd.f32 %v1134_v14, %v966_v21  ;;  %v8133_v28 = vld [vmem:[#allocation2 + $0x44] sm:$0xf]  ;;  %v7309_v21 = vld [vmem:[#allocation2 + $0x60] sm:$0xf]  ;;  %v8180_v16 = vld [vmem:[#allocation2 + $0x64] sm:$0xf0] }
 0x383   : > { %v9673_v34 = vpop.f32.mrf.mxu2  ;;  %v8219_v32 = vld [vmem:[#allocation2 + $0x144] sm:$0xf]  ;;  %v7631_v14 = vld [vmem:[#allocation2 + $0x148] sm:$0xf0] }
 0x384   : > { %11380 = vst [vmem:[#allocation10_spill] sm:$0xff] %v9673_v34  ;;  %v9675_v2 = vpop.f32.mrf.mxu3  ;;  %v1212_v60 = vmax.f32 %v1135_v46, 0.0  ;;  %v6898_v46 = vor.u32 %v8133_v28, %v6895_v24  ;;  %v1593_v28 = vshrl.u32 %v9440_v1, 16 }
 0x385   : > { %11381 = vst [vmem:[#allocation57_spill] sm:$0xff] %v9675_v2  ;;  %v8256_v34 = vld [vmem:[#allocation2 + $0x174] sm:$0xf0] }
 0x386   : > { %2390 = vst.msk [vmem:[#allocation2 + $0x160] sm:$0xff] %vm8928_vm2, %v2258_v0  ;;  %v1276_v36 = vpack.c.bf16 %v1212_v60, %v1212_v60  ;;  %v9693_v60 = vpop.f32.mrf.mxu0 }
 0x387   : > { %2391 = vst.msk [vmem:[#allocation2 + $0x168] sm:$0xff] %vm8928_vm2, %v2259_v8 }
 0x388   : > { %v1404_v18 = vunpack.c.l.b16 %v1276_v36  ;;  %11386 = vst [vmem:[#allocation60_spill] sm:$0xff] %v9693_v60  ;;  %v7310_v36 = vor.u32 %v8180_v16, %v7309_v21  ;;  %v11394_v60 = vld [vmem:[#allocation14_spill] sm:$0xff] }
 0x389   : > { %v1137_v11 = vpop.f32.mrf.mxu1 }
 0x38a   : > { %v9687_v54 = vpack.c.b16 %v1404_v18, %v1403_v19  ;;  %v1138_v0 = vadd.f32 %v1137_v11, %v969_v7  ;;  %v7634_v19 = vor.u32 %v8219_v32, %v7631_v14  ;;  %v11387_v18 = vld [vmem:[#allocation12_spill] sm:$0xff]  ;;  %v1596_v11 = vshll.u32 %v9440_v1, 16  ;;  %v6903_v1 = vld [vmem:[#allocation2 + $0x58] sm:$0xf0] }
 0x38b   : > { %v9685_v43 = vpop.f32.mrf.mxu2  ;;  %v971_v10 = vadd.f32 %v9478_v44, %v11387_v18  ;;  %v1610_v18 = vshll.u32 %v9542_v33, 16 }
 0x38c   : > { %11384 = vst [vmem:[#allocation11_spill] sm:$0xff] %v9685_v43  ;;  %v9689_v17 = vpop.f32.mrf.mxu3  ;;  %1921 = vrot.lane.b32.xlu0 %v9687_v54, %s8502_s20  ;;  %v1778_v14 = vrot.slane %v1596_v11, 1  ;;  %v8135_v43 = vld [vmem:[#allocation2 + $0x54] sm:$0xf] }
 0x38d   : > { %11385 = vst [vmem:[#allocation59_spill] sm:$0xff] %v9689_v17  ;;  %v7493_v12 = vld [vmem:[#allocation2 + $0x160] sm:$0xf]  ;;  %v1213_v17 = vmax.f32 %v1138_v0, 0.0 }
 0x38e   : > { %v8254_v8 = vld [vmem:[#allocation2 + $0x164] sm:$0xf0] }
 0x38f   : > { %v7494_v56 = vor.u32 %v8254_v8, %v7493_v12  ;;  %v1277_v16 = vpack.c.bf16 %v1213_v17, %v1213_v17  ;;  %v1607_v17 = vshrl.u32 %v9542_v33, 16  ;;  %v1782_v33 = vrot.slane %v1610_v18, 1 }
 0x390   : > { %7046 = vmatmul.msk.bf16.gmra.mxu2 %vm1931_vm9, %v6898_v46  ;;  %v1595_v46 = vrot.slane %v1593_v28, 7 }
 0x391   : > { %4235 = vmatmul.bf16.gmra.mxu1 %v7494_v56  ;;  %3772 = vmatmul.bf16.gmra.mxu3 %v7310_v36  ;;  %v1139_v7 = vpop.f32.mrf.mxu1  ;;  %v9705_v56 = vpop.f32.mrf.mxu0  ;;  %v1405_v0 = vunpack.c.l.b16 %v1277_v16  ;;  %v1609_v20 = vrot.slane %v1607_v17, 7 }
 0x392   : > { %7741 = vmatmul.msk.bf16.gmra.mxu0 %vm1931_vm9, %v7634_v19  ;;  %v1140_v24 = vadd.f32 %v1139_v7, %v971_v10  ;;  %11390 = vst [vmem:[#allocation62_spill] sm:$0xff] %v9705_v56  ;;  %v1779_v19 = vor.u32 %v1778_v14, %v1593_v28  ;;  %v7317_v10 = vld [vmem:[#allocation2 + $0x70] sm:$0xf]  ;;  %v11391_v7 = vld [vmem:[#allocation13_spill] sm:$0xff]  ;;  %v1598_v16 = vor.u32 %v1596_v11, %v1595_v46  ;;  %v8221_v28 = vld [vmem:[#allocation2 + $0x154] sm:$0xf] }
 0x393   : > { %v9701_v12 = vpop.f32.mrf.mxu2  ;;  %v7639_v14 = vld [vmem:[#allocation2 + $0x158] sm:$0xf0]  ;;  %v8182_v56 = vld [vmem:[#allocation2 + $0x74] sm:$0xf0] }
 0x394   : > { %11388 = vst [vmem:[#allocation12_spill] sm:$0xff] %v9701_v12  ;;  %v9703_v21 = vpop.f32.mrf.mxu3  ;;  %v1214_v32 = vmax.f32 %v1140_v24, 0.0  ;;  %v974_v12 = vadd.f32 %v9478_v44, %v11391_v7  ;;  %v1856_v7 = vsel %vm9018_vm7, %v1779_v19, 0  ;;  %v7642_v48 = vor.u32 %v8221_v28, %v7639_v14 }
 0x395   : > { %11389 = vst [vmem:[#allocation61_spill] sm:$0xff] %v9703_v21  ;;  %v7501_v21 = vld [vmem:[#allocation2 + $0x170] sm:$0xf]  ;;  %v1725_v11 = vsel %vm9027_vm8, 0, %v1598_v16  ;;  %v1603_v19 = vshll.u32 %v9484_v30, 16 }
 0x396   : > { %v1278_v8 = vpack.c.bf16 %v1214_v32, %v1214_v32 }
 0x398   : > { %v1406_v36 = vunpack.c.l.b16 %v1278_v8 }
 0x399   : > { %v1142_v2 = vpop.f32.mrf.mxu1 }
 0x39a   : > { %v9713_v32 = vpack.c.b16 %v1406_v36, %v1405_v0  ;;  %v1143_v41 = vadd.f32 %v1142_v2, %v974_v12  ;;  %v976_v0 = vadd.f32 %v9478_v44, %v11394_v60  ;;  %v7502_v36 = vor.u32 %v8256_v34, %v7501_v21 }
 0x39b   : > { %v9711_v24 = vpop.f32.mrf.mxu2  ;;  %v2177_v2 = vunpack.c.l.b16 %v1856_v7  ;;  %v2179_v12 = vunpack.c.h.b16 %v1856_v7  ;;  %v1783_v60 = vor.u32 %v1782_v33, %v1607_v17  ;;  %v1600_v21 = vshrl.u32 %v9484_v30, 16 }
 0x39c   : > { %11392 = vst [vmem:[#allocation13_spill] sm:$0xff] %v9711_v24  ;;  %v9715_v8 = vpop.f32.mrf.mxu3  ;;  %1923 = vrot.lane.b32.xlu1 %v9713_v32, %s8502_s20  ;;  %v6906_v24 = vor.u32 %v8135_v43, %v6903_v1  ;;  %v1215_v62 = vmax.f32 %v1143_v41, 0.0  ;;  %v9730_v1 = vpop.f32.mrf.mxu0  ;;  %v1780_v41 = vrot.slane %v1603_v19, 1 }
 0x39d   : > { %11393 = vst [vmem:[#allocation63_spill] sm:$0xff] %v9715_v8  ;;  %v7318_v8 = vor.u32 %v8182_v56, %v7317_v10  ;;  %v1858_v30 = vsel %vm9018_vm7, %v1783_v60, 0 }
 0x39e   : > { %v1910_v46 = vpop.permute.xlu0 %1909  ;;  %11395 = vst [vmem:[#allocation14_spill] sm:$0xff] %v9730_v1  ;;  %v2187_v33 = vunpack.c.h.b16 %v1858_v30 }
 0x39f   : > { %v1997_v45 = vsel %vm1931_vm9, %v1725_v11, %v1910_v46 }
 0x3a0   : > { %7047 = vmatmul.msk.bf16.gmra.mxu2 %vm1931_vm9, %v6906_v24  ;;  %v2176_v34 = vunpack.c.l.b16 %v1997_v45  ;;  %v2178_v43 = vunpack.c.h.b16 %v1997_v45  ;;  %v1612_v24 = vor.u32 %v1610_v18, %v1609_v20  ;;  %v1602_v20 = vrot.slane %v1600_v21, 7 }
 0x3a1   : > { %4240 = vmatmul.bf16.gmra.mxu1 %v7502_v36  ;;  %3777 = vmatmul.bf16.gmra.mxu3 %v7318_v8  ;;  %v1144_v56 = vpop.f32.mrf.mxu1  ;;  %v1279_v36 = vpack.c.bf16 %v1215_v62, %v1215_v62  ;;  %v2185_v18 = vunpack.c.l.b16 %v1858_v30  ;;  %v6911_v30 = vld [vmem:[#allocation2 + $0x68] sm:$0xf0] }
 0x3a2   : > { %7742 = vmatmul.msk.bf16.gmra.mxu0 %vm1931_vm9, %v7642_v48  ;;  %v2262_v10 = vpack.c.b16 %v2177_v2, %v2176_v34  ;;  %v2263_v16 = vpack.c.b16 %v2179_v12, %v2178_v43  ;;  %v1145_v28 = vadd.f32 %v1144_v56, %v976_v0  ;;  %v1727_v17 = vsel %vm9027_vm8, 0, %v1612_v24  ;;  %v11398_v34 = vld [vmem:[#allocation15_spill] sm:$0xff]  ;;  %v8137_v56 = vld [vmem:[#allocation2 + $0x64] sm:$0xf] }
 0x3a3   : > { %v9732_v14 = vpop.f32.mrf.mxu2  ;;  %v1781_v0 = vor.u32 %v1780_v41, %v1600_v21  ;;  %v1407_v11 = vunpack.c.l.b16 %v1279_v36  ;;  %v979_v43 = vadd.f32 %v9478_v44, %v11398_v34  ;;  %v8223_v36 = vld [vmem:[#allocation2 + $0x164] sm:$0xf]  ;;  %v11402_v34 = vld [vmem:[#allocation16_spill] sm:$0xff] }
 0x3a4   : > { %11396 = vst [vmem:[#allocation64_spill] sm:$0xff] %v9732_v14  ;;  %v9734_v7 = vpop.f32.mrf.mxu3  ;;  %v1216_v48 = vmax.f32 %v1145_v28, 0.0 }
 0x3a5   : > { %11397 = vst [vmem:[#allocation65_spill] sm:$0xff] %v9734_v7  ;;  %v7325_v7 = vld [vmem:[#allocation2 + $0x80] sm:$0xf] }
 0x3a6   : > { %2394 = vst.msk [vmem:[#allocation2 + $0x180] sm:$0xff] %vm8928_vm2, %v2262_v10  ;;  %v1280_v45 = vpack.c.bf16 %v1216_v48, %v1216_v48  ;;  %v1914_v8 = vpop.permute.xlu2 %1913  ;;  %v1605_v48 = vor.u32 %v1603_v19, %v1602_v20  ;;  %v1857_v19 = vsel %vm9018_vm7, %v1781_v0, 0 }
 0x3a7   : > { %2395 = vst.msk [vmem:[#allocation2 + $0x188] sm:$0xff] %vm8928_vm2, %v2263_v16  ;;  %v2003_v62 = vsel %vm1931_vm9, %v1727_v17, %v1914_v8  ;;  %v8184_v17 = vld [vmem:[#allocation2 + $0x84] sm:$0xf0]  ;;  %v9753_v8 = vpop.f32.mrf.mxu0 }
 0x3a8   : > { %v1408_v46 = vunpack.c.l.b16 %v1280_v45  ;;  %v2184_v2 = vunpack.c.l.b16 %v2003_v62  ;;  %v2186_v12 = vunpack.c.h.b16 %v2003_v62  ;;  %v7647_v45 = vld [vmem:[#allocation2 + $0x168] sm:$0xf0]  ;;  %11401 = vst [vmem:[#allocation67_spill] sm:$0xff] %v9753_v8 }
 0x3a9   : > { %v1147_v60 = vpop.f32.mrf.mxu1 }
 0x3aa   : > { %v2266_v10 = vpack.c.b16 %v2185_v18, %v2184_v2  ;;  %v2267_v16 = vpack.c.b16 %v2187_v33, %v2186_v12  ;;  %v9749_v24 = vpack.c.b16 %v1408_v46, %v1407_v11  ;;  %v1148_v18 = vadd.f32 %v1147_v60, %v979_v43 }
 0x3ab   : > { %v9747_v28 = vpop.f32.mrf.mxu2  ;;  %v6914_v33 = vor.u32 %v8137_v56, %v6911_v30  ;;  %v1726_v11 = vsel %vm9027_vm8, 0, %v1605_v48  ;;  %v7326_v2 = vor.u32 %v8184_v17, %v7325_v7  ;;  %v7650_v12 = vor.u32 %v8223_v36, %v7647_v45 }
 0x3ac   : > { %11399 = vst [vmem:[#allocation15_spill] sm:$0xff] %v9747_v28  ;;  %v9751_v21 = vpop.f32.mrf.mxu3  ;;  %1925 = vrot.lane.b32.xlu2 %v9749_v24, %s8502_s20  ;;  %v981_v43 = vadd.f32 %v9478_v44, %v11402_v34  ;;  %v2181_v60 = vunpack.c.l.b16 %v1857_v19  ;;  %v1217_v0 = vmax.f32 %v1148_v18, 0.0 }
 0x3ad   : > { %11400 = vst [vmem:[#allocation66_spill] sm:$0xff] %v9751_v21  ;;  %v7509_v41 = vld [vmem:[#allocation2 + $0x180] sm:$0xf]  ;;  %v2183_v21 = vunpack.c.h.b16 %v1857_v19 }
 0x3ae   : > { %2398 = vst.msk [vmem:[#allocation2 + $0x1a0] sm:$0xff] %vm8928_vm2, %v2266_v10  ;;  %v8258_v20 = vld [vmem:[#allocation2 + $0x184] sm:$0xf0]  ;;  %v1912_v46 = vpop.permute.xlu1 %1911  ;;  %v1281_v45 = vpack.c.bf16 %v1217_v0, %v1217_v0 }
 0x3af   : > { %2399 = vst.msk [vmem:[#allocation2 + $0x1a8] sm:$0xff] %vm8928_vm2, %v2267_v16  ;;  %v7510_v62 = vor.u32 %v8258_v20, %v7509_v41  ;;  %v2000_v10 = vsel %vm1931_vm9, %v1726_v11, %v1912_v46  ;;  %v9778_v18 = vpop.f32.mrf.mxu0  ;;  %v11406_v46 = vld [vmem:[#allocation17_spill] sm:$0xff] }
 0x3b0   : > { %7048 = vmatmul.msk.bf16.gmra.mxu2 %vm1931_vm9, %v6914_v33  ;;  %v2180_v16 = vunpack.c.l.b16 %v2000_v10  ;;  %v2182_v56 = vunpack.c.h.b16 %v2000_v10  ;;  %11405 = vst [vmem:[#allocation69_spill] sm:$0xff] %v9778_v18  ;;  %v1409_v33 = vunpack.c.l.b16 %v1281_v45  ;;  %v8186_v10 = vld [vmem:[#allocation2 + $0x94] sm:$0xf0] }
 0x3b1   : > { %4245 = vmatmul.bf16.gmra.mxu1 %v7510_v62  ;;  %3782 = vmatmul.bf16.gmra.mxu3 %v7326_v2  ;;  %v1149_v48 = vpop.f32.mrf.mxu1  ;;  %v984_v2 = vadd.f32 %v9478_v44, %v11406_v46 }
 0x3b2   : > { %7743 = vmatmul.msk.bf16.gmra.mxu0 %vm1931_vm9, %v7650_v12  ;;  %v2264_v30 = vpack.c.b16 %v2181_v60, %v2180_v16  ;;  %v2265_v7 = vpack.c.b16 %v2183_v21, %v2182_v56  ;;  %v1150_v17 = vadd.f32 %v1149_v48, %v981_v43  ;;  %v8139_v21 = vld [vmem:[#allocation2 + $0x74] sm:$0xf]  ;;  %v6919_v43 = vld [vmem:[#allocation2 + $0x78] sm:$0xf0]  ;;  %v7333_v60 = vld [vmem:[#allocation2 + $0x90] sm:$0xf] }
 0x3b3   : > { %v9770_v41 = vpop.f32.mrf.mxu2  ;;  %v8225_v56 = vld [vmem:[#allocation2 + $0x174] sm:$0xf]  ;;  %v7655_v48 = vld [vmem:[#allocation2 + $0x178] sm:$0xf0] }
 0x3b4   : > { %11403 = vst [vmem:[#allocation16_spill] sm:$0xff] %v9770_v41  ;;  %v9772_v36 = vpop.f32.mrf.mxu3  ;;  %v1218_v20 = vmax.f32 %v1150_v17, 0.0  ;;  %v6922_v17 = vor.u32 %v8139_v21, %v6919_v43  ;;  %v1614_v21 = vshrl.u32 %v9580_v5, 16 }
 0x3b5   : > { %11404 = vst [vmem:[#allocation68_spill] sm:$0xff] %v9772_v36  ;;  %v1631_v36 = vshll.u32 %v9654_v29, 16 }
 0x3b6   : > { %2396 = vst.msk [vmem:[#allocation2 + $0x190] sm:$0xff] %vm8928_vm2, %v2264_v30  ;;  %v1282_v19 = vpack.c.bf16 %v1218_v20, %v1218_v20  ;;  %v7334_v20 = vor.u32 %v8186_v10, %v7333_v60 }
 0x3b7   : > { %2397 = vst.msk [vmem:[#allocation2 + $0x198] sm:$0xff] %vm8928_vm2, %v2265_v7  ;;  %v9793_v46 = vpop.f32.mrf.mxu0  ;;  %v1788_v41 = vrot.slane %v1631_v36, 1 }
 0x3b8   : > { %v1410_v62 = vunpack.c.l.b16 %v1282_v19  ;;  %v7658_v19 = vor.u32 %v8225_v56, %v7655_v48 }
 0x3b9   : > { %v1152_v11 = vpop.f32.mrf.mxu1 }
 0x3ba   : > { %v9784_v34 = vpack.c.b16 %v1410_v62, %v1409_v33  ;;  %v1153_v30 = vadd.f32 %v1152_v11, %v984_v2  ;;  %v11409_v33 = vld [vmem:[#allocation18_spill] sm:$0xff]  ;;  %v1617_v2 = vshll.u32 %v9580_v5, 16  ;;  %v1628_v5 = vshrl.u32 %v9654_v29, 16 }
 0x3bb   : > { %v9782_v12 = vpop.f32.mrf.mxu2  ;;  %v986_v62 = vadd.f32 %v9478_v44, %v11409_v33  ;;  %11410 = vst [vmem:[#allocation18_spill] sm:$0xff] %v9793_v46  ;;  %v7341_v33 = vld [vmem:[#allocation2 + $0xa0] sm:$0xf] }
 0x3bc   : > { %11407 = vst [vmem:[#allocation17_spill] sm:$0xff] %v9782_v12  ;;  %v9786_v0 = vpop.f32.mrf.mxu3  ;;  %1927 = vrot.lane.b32.xlu0 %v9784_v34, %s8502_s20  ;;  %v1784_v48 = vrot.slane %v1617_v2, 1 }
 0x3bd   : > { %11408 = vst [vmem:[#allocation70_spill] sm:$0xff] %v9786_v0  ;;  %v7517_v16 = vld [vmem:[#allocation2 + $0x190] sm:$0xf]  ;;  %v1219_v0 = vmax.f32 %v1153_v30, 0.0 }
 0x3be   : > { %v8260_v7 = vld [vmem:[#allocation2 + $0x194] sm:$0xf0]  ;;  %v7671_v14 = vld [vmem:[#allocation2 + $0x198] sm:$0xf0] }
 0x3bf   : > { %v7518_v45 = vor.u32 %v8260_v7, %v7517_v16  ;;  %v1283_v16 = vpack.c.bf16 %v1219_v0, %v1219_v0  ;;  %v1616_v7 = vrot.slane %v1614_v21, 7  ;;  %v7525_v0 = vld [vmem:[#allocation2 + $0x1a0] sm:$0xf] }
 0x3c0   : > { %7049 = vmatmul.msk.bf16.gmra.mxu2 %vm1931_vm9, %v6922_v17 }
 0x3c1   : > { %4250 = vmatmul.bf16.gmra.mxu1 %v7518_v45  ;;  %3787 = vmatmul.bf16.gmra.mxu3 %v7334_v20  ;;  %v1154_v11 = vpop.f32.mrf.mxu1  ;;  %v1411_v17 = vunpack.c.l.b16 %v1283_v16  ;;  %v8141_v45 = vld [vmem:[#allocation2 + $0x84] sm:$0xf]  ;;  %v1785_v20 = vor.u32 %v1784_v48, %v1614_v21  ;;  %v8188_v21 = vld [vmem:[#allocation2 + $0xa4] sm:$0xf0] }
 0x3c2   : > { %7744 = vmatmul.msk.bf16.gmra.mxu0 %vm1931_vm9, %v7658_v19  ;;  %v1155_v43 = vadd.f32 %v1154_v11, %v986_v62  ;;  %v6927_v19 = vld [vmem:[#allocation2 + $0x88] sm:$0xf0]  ;;  %v9804_v62 = vpop.f32.mrf.mxu0  ;;  %v8227_v16 = vld [vmem:[#allocation2 + $0x184] sm:$0xf] }
 0x3c3   : > { %v9798_v60 = vpop.f32.mrf.mxu2  ;;  %11413 = vst [vmem:[#allocation73_spill] sm:$0xff] %v9804_v62  ;;  %v1859_v29 = vsel %vm9018_vm7, %v1785_v20, 0  ;;  %v6930_v12 = vor.u32 %v8141_v45, %v6927_v19  ;;  %v1789_v45 = vor.u32 %v1788_v41, %v1628_v5  ;;  %v1624_v19 = vshll.u32 %v9615_v58, 16  ;;  %v8229_v62 = vld [vmem:[#allocation2 + $0x194] sm:$0xf] }
 0x3c4   : > { %11411 = vst [vmem:[#allocation71_spill] sm:$0xff] %v9798_v60  ;;  %v9800_v10 = vpop.f32.mrf.mxu3  ;;  %v1220_v56 = vmax.f32 %v1155_v43, 0.0  ;;  %v8262_v43 = vld [vmem:[#allocation2 + $0x1a4] sm:$0xf0] }
 0x3c5   : > { %11412 = vst [vmem:[#allocation72_spill] sm:$0xff] %v9800_v10  ;;  %v7526_v48 = vor.u32 %v8262_v43, %v7525_v0  ;;  %v2189_v0 = vunpack.c.l.b16 %v1859_v29  ;;  %v2191_v43 = vunpack.c.h.b16 %v1859_v29  ;;  %v1861_v41 = vsel %vm9018_vm7, %v1789_v45, 0  ;;  %v6935_v45 = vld [vmem:[#allocation2 + $0x98] sm:$0xf0] }
 0x3c6   : > { %v1284_v44 = vpack.c.bf16 %v1220_v56, %v1220_v56  ;;  %v1619_v56 = vor.u32 %v1617_v2, %v1616_v7  ;;  %v7342_v2 = vor.u32 %v8188_v21, %v7341_v33  ;;  %v1630_v7 = vrot.slane %v1628_v5, 7 }
 0x3c7   : > { %v2199_v29 = vunpack.c.h.b16 %v1861_v41 }
 0x3c8   : > { %v1412_v30 = vunpack.c.l.b16 %v1284_v44  ;;  %v7663_v44 = vld [vmem:[#allocation2 + $0x188] sm:$0xf0]  ;;  %v1633_v21 = vor.u32 %v1631_v36, %v1630_v7  ;;  %v8143_v7 = vld [vmem:[#allocation2 + $0x94] sm:$0xf] }
 0x3ca   : > { %v9808_v10 = vpack.c.b16 %v1412_v30, %v1411_v17  ;;  %v1728_v17 = vsel %vm9027_vm8, 0, %v1619_v56  ;;  %v1621_v56 = vshrl.u32 %v9615_v58, 16  ;;  %v1730_v58 = vsel %vm9027_vm8, 0, %v1633_v21 }
 0x3cb   : > { %v9806_v11 = vpop.f32.mrf.mxu2 }
 0x3cc   : > { %11414 = vst [vmem:[#allocation74_spill] sm:$0xff] %v9806_v11  ;;  %v9810_v60 = vpop.f32.mrf.mxu3  ;;  %1929 = vrot.lane.b32.xlu1 %v9808_v10, %s8502_s20  ;;  %v7666_v11 = vor.u32 %v8227_v16, %v7663_v44  ;;  %v1623_v5 = vrot.slane %v1621_v56, 7  ;;  %s8320_s20 = sshll.u32 %s8567_s28, 9  ;;  %s6424_s28 = scalar_lea.sflag [#allocation5], %s8631_s22 }
 0x3cd   : > { %11415 = vst [vmem:[#allocation75_spill] sm:$0xff] %v9810_v60  ;;  %s6436_s21 = scalar_lea.hbm %s11319_s7, %s8320_s20 }
 0x3ce   : > { %v1916_v30 = vpop.permute.xlu0 %1915  ;;  %s6439_s23 = sshll.u32 %s6436_s21, 4  ;;  %s6440_s23 = int_to_ptr.hbm [resolvable:$true] %s6439_s23 }
 0x3cf   : > { %v2006_v60 = vsel %vm1931_vm9, %v1728_v17, %v1916_v30  ;;  %s8446_s29 = sshra.s32 %s6440_s23, 4  ;;  %s8447_s29 = int_to_ptr.hbm [resolvable:$true] %s8446_s29 }
 0x3d0   : > { %7050 = vmatmul.msk.bf16.gmra.mxu2 %vm1931_vm9, %v6930_v12  ;;  %v2188_v28 = vunpack.c.l.b16 %v2006_v60  ;;  %v2190_v20 = vunpack.c.h.b16 %v2006_v60  ;;  %v9827_v12 = vpop.f32.mrf.mxu0  ;;  %v1786_v60 = vrot.slane %v1624_v19, 1  ;;  %s8448_s8 = scalar_lea.hbm %s8447_s29, 512  ;;  %p8453_p0 = scmp.lt.s32.totalorder %s8447_s29, %s11319_s7 }
 0x3d1   : > { %4255 = vmatmul.bf16.gmra.mxu1 %v7526_v48  ;;  %3792 = vmatmul.bf16.gmra.mxu3 %v7342_v2  ;;  %11417 = vst [vmem:[#allocation77_spill] sm:$0xff] %v9827_v12  ;;  %p8449_p6 = scmp.ne.s32.totalorder %s8447_s29, %s8448_s8  ;;  %p8454_p2 = scmp.lt.s32.totalorder %s8452_s12, %s8448_s8 }
 0x3d2   : > { %7745 = vmatmul.msk.bf16.gmra.mxu0 %vm1931_vm9, %v7666_v11  ;;  %v2268_v16 = vpack.c.b16 %v2189_v0, %v2188_v28  ;;  %v2269_v33 = vpack.c.b16 %v2191_v43, %v2190_v20  ;;  %v2197_v11 = vunpack.c.l.b16 %v1861_v41  ;;  %v1787_v2 = vor.u32 %v1786_v60, %v1621_v56 }
 0x3d3   : > { %v9823_v44 = vpop.f32.mrf.mxu2  ;;  %v6938_v60 = vor.u32 %v8143_v7, %v6935_v45  ;;  %p8450_p12 = pnand %p8449_p6, %p8595_p10  ;;  %p8455_p3 = por %p8454_p2, %p8453_p0 }
 0x3d4   : > { %11416 = vst [vmem:[#allocation76_spill] sm:$0xff] %v9823_v44  ;;  %v9825_v48 = vpop.f32.mrf.mxu3  ;;  %v8190_v44 = vld [vmem:[#allocation2 + $0xb4] sm:$0xf0] }
 0x3d5   : > { %2400 = vst.msk [vmem:[#allocation2 + $0x1b0] sm:$0xff] %vm8928_vm2, %v2268_v16  ;;  %v1626_v16 = vor.u32 %v1624_v19, %v1623_v5  ;;  %v1860_v19 = vsel %vm9018_vm7, %v1787_v2, 0  ;;  %p8451_p13 = pneg %p8450_p12 }
 0x3d6   : > { %2401 = vst.msk [vmem:[#allocation2 + $0x1b8] sm:$0xff] %vm8928_vm2, %v2269_v33  ;;  %v1920_v28 = vpop.permute.xlu2 %1919  ;;  %v7349_v33 = vld [vmem:[#allocation2 + $0xb0] sm:$0xf] }
 0x3d7   : > { %v2012_v36 = vsel %vm1931_vm9, %v1730_v58, %v1920_v28  ;;  %v1729_v5 = vsel %vm9027_vm8, 0, %v1626_v16  ;;  %p8456_p4 = pnand %p8455_p3, %p8451_p13 }
 0x3d8   : > { %v2196_v17 = vunpack.c.l.b16 %v2012_v36  ;;  %v2198_v30 = vunpack.c.h.b16 %v2012_v36  ;;  %v9850_v28 = vpop.f32.mrf.mxu0 }
 0x3d9   : > { %11420 = vst [vmem:[#allocation80_spill] sm:$0xff] %v9850_v28 }
 0x3da   : > { %v2272_v0 = vpack.c.b16 %v2197_v11, %v2196_v17  ;;  %v2273_v43 = vpack.c.b16 %v2199_v29, %v2198_v30  ;;  %v7350_v11 = vor.u32 %v8190_v44, %v7349_v33  ;;  %v7674_v29 = vor.u32 %v8229_v62, %v7671_v14  ;;  %v8145_v44 = vld [vmem:[#allocation2 + $0xa4] sm:$0xf] }
 0x3db   : > { %v9838_v20 = vpop.f32.mrf.mxu2  ;;  %v2193_v30 = vunpack.c.l.b16 %v1860_v19 }
 0x3dc   : > { %11418 = vst [vmem:[#allocation78_spill] sm:$0xff] %v9838_v20  ;;  %v9840_v12 = vpop.f32.mrf.mxu3  ;;  %v7533_v21 = vld [vmem:[#allocation2 + $0x1b0] sm:$0xf] }
 0x3dd   : > { %2404 = vst.msk [vmem:[#allocation2 + $0x1d0] sm:$0xff] %vm8928_vm2, %v2272_v0  ;;  %v9844_v41 = vpop.f32.mrf.mxu1  ;;  %v8264_v56 = vld [vmem:[#allocation2 + $0x1b4] sm:$0xf0]  ;;  %v2195_v0 = vunpack.c.h.b16 %v1860_v19 }
 0x3de   : > { %11419 = vst [vmem:[#allocation79_spill] sm:$0xff] %v9844_v41  ;;  %v7534_v58 = vor.u32 %v8264_v56, %v7533_v21  ;;  %v1918_v36 = vpop.permute.xlu1 %1917  ;;  %v6943_v21 = vld [vmem:[#allocation2 + $0xa8] sm:$0xf0]  ;;  %v7357_v56 = vld [vmem:[#allocation2 + $0xc0] sm:$0xf] }
 0x3df   : > { %2405 = vst.msk [vmem:[#allocation2 + $0x1d8] sm:$0xff] %vm8928_vm2, %v2273_v43  ;;  %v2009_v17 = vsel %vm1931_vm9, %v1729_v5, %v1918_v36  ;;  %v7679_v5 = vld [vmem:[#allocation2 + $0x1a8] sm:$0xf0] }
 0x3e0   : > { %7051 = vmatmul.msk.bf16.gmra.mxu2 %vm1931_vm9, %v6938_v60  ;;  %v2192_v43 = vunpack.c.l.b16 %v2009_v17  ;;  %v2194_v41 = vunpack.c.h.b16 %v2009_v17  ;;  %v9867_v62 = vpop.f32.mrf.mxu0 }
 0x3e1   : > { %4260 = vmatmul.bf16.gmra.mxu1 %v7534_v58  ;;  %3797 = vmatmul.bf16.gmra.mxu3 %v7350_v11  ;;  %11422 = vst [vmem:[#allocation82_spill] sm:$0xff] %v9867_v62  ;;  %v8231_v58 = vld [vmem:[#allocation2 + $0x1a4] sm:$0xf]  ;;  %v7687_v62 = vld [vmem:[#allocation2 + $0x1b8] sm:$0xf0] }
 0x3e2   : > { %7746 = vmatmul.msk.bf16.gmra.mxu0 %vm1931_vm9, %v7674_v29  ;;  %v2270_v2 = vpack.c.b16 %v2193_v30, %v2192_v43  ;;  %v2271_v7 = vpack.c.b16 %v2195_v0, %v2194_v41  ;;  %v8192_v41 = vld [vmem:[#allocation2 + $0xc4] sm:$0xf0]  ;;  %v6946_v29 = vor.u32 %v8145_v44, %v6943_v21  ;;  %v7682_v0 = vor.u32 %v8231_v58, %v7679_v5  ;;  %v6951_v58 = vld [vmem:[#allocation2 + $0xb8] sm:$0xf0]  ;;  %v7365_v5 = vld [vmem:[#allocation2 + $0xd0] sm:$0xf] }
 0x3e3   : > { %v9857_v45 = vpop.f32.mrf.mxu2  ;;  %v7358_v30 = vor.u32 %v8192_v41, %v7357_v56  ;;  %v1638_v43 = vshll.u32 %v9687_v54, 16  ;;  %v8147_v41 = vld [vmem:[#allocation2 + $0xb4] sm:$0xf] }
 0x3e4   : > { %v9859_v16 = vpop.f32.mrf.mxu3  ;;  %2402 = vst.msk [vmem:[#allocation2 + $0x1c0] sm:$0xff] %vm8928_vm2, %v2270_v2  ;;  %v1635_v2 = vshrl.u32 %v9687_v54, 16  ;;  %v7549_v54 = vld [vmem:[#allocation2 + $0x1d0] sm:$0xf]  ;;  %v6954_v18 = vor.u32 %v8147_v41, %v6951_v58 }
 0x3e5   : > { %v9863_v14 = vpop.f32.mrf.mxu1  ;;  %2403 = vst.msk [vmem:[#allocation2 + $0x1c8] sm:$0xff] %vm8928_vm2, %v2271_v7  ;;  %v1790_v21 = vrot.slane %v1638_v43, 1 }
 0x3e6   : > { %11421 = vst [vmem:[#allocation81_spill] sm:$0xff] %v9863_v14  ;;  %v1637_v56 = vrot.slane %v1635_v2, 7 }
 0x3e8   : > { %v9879_v7 = vpop.f32.mrf.mxu0 }
 0x3e9   : > { %11424 = vst [vmem:[#allocation84_spill] sm:$0xff] %v9879_v7  ;;  %v8233_v7 = vld [vmem:[#allocation2 + $0x1b4] sm:$0xf] }
 0x3ea   : > { %v7690_v8 = vor.u32 %v8233_v7, %v7687_v62  ;;  %v1645_v62 = vshll.u32 %v9713_v32, 16  ;;  %v1642_v7 = vshrl.u32 %v9713_v32, 16 }
 0x3eb   : > { %v9869_v33 = vpop.f32.mrf.mxu2  ;;  %v7541_v60 = vld [vmem:[#allocation2 + $0x1c0] sm:$0xf]  ;;  %v8235_v51 = vld [vmem:[#allocation2 + $0x1c4] sm:$0xf] }
 0x3ec   : > { %v9871_v19 = vpop.f32.mrf.mxu3  ;;  %v8266_v11 = vld [vmem:[#allocation2 + $0x1c4] sm:$0xf0]  ;;  %v7695_v9 = vld [vmem:[#allocation2 + $0x1c8] sm:$0xf0] }
 0x3ed   : > { %v9873_v36 = vpop.f32.mrf.mxu1  ;;  %v7542_v17 = vor.u32 %v8266_v11, %v7541_v60  ;;  %v1791_v60 = vor.u32 %v1790_v21, %v1635_v2  ;;  %v1652_v11 = vshll.u32 %v9749_v24, 16 }
 0x3ee   : > { %11423 = vst [vmem:[#allocation83_spill] sm:$0xff] %v9873_v36 }
 0x3ef   : > { %v1862_v21 = vsel %vm9018_vm7, %v1791_v60, 0 }
 0x3f0   : > { %7052 = vmatmul.msk.bf16.gmra.mxu2 %vm1931_vm9, %v6946_v29  ;;  %v1649_v29 = vshrl.u32 %v9749_v24, 16  ;;  %v9893_v28 = vpop.f32.mrf.mxu0  ;;  %v1794_v24 = vrot.slane %v1652_v11, 1 }
 0x3f1   : > { %4265 = vmatmul.bf16.gmra.mxu1 %v7542_v17  ;;  %3802 = vmatmul.bf16.gmra.mxu3 %v7358_v30  ;;  %v8268_v30 = vld [vmem:[#allocation2 + $0x1d4] sm:$0xf0]  ;;  %11426 = vst [vmem:[#allocation86_spill] sm:$0xff] %v9893_v28 }
 0x3f2   : > { %7747 = vmatmul.msk.bf16.gmra.mxu0 %vm1931_vm9, %v7682_v0  ;;  %v1640_v0 = vor.u32 %v1638_v43, %v1637_v56  ;;  %v7550_v2 = vor.u32 %v8268_v30, %v7549_v54  ;;  %v1651_v4 = vrot.slane %v1649_v29, 7  ;;  %v2201_v54 = vunpack.c.l.b16 %v1862_v21 }
 0x3f3   : > { %v9881_v14 = vpop.f32.mrf.mxu2  ;;  %v2203_v30 = vunpack.c.h.b16 %v1862_v21  ;;  %v1795_v41 = vor.u32 %v1794_v24, %v1649_v29 }
 0x3f4   : > { %v9883_v36 = vpop.f32.mrf.mxu3  ;;  %v1731_v1 = vsel %vm9027_vm8, 0, %v1640_v0  ;;  %v1654_v0 = vor.u32 %v1652_v11, %v1651_v4  ;;  %v1644_v11 = vrot.slane %v1642_v7, 7 }
 0x3f5   : > { %v9885_v44 = vpop.f32.mrf.mxu1 }
 0x3f6   : > { %11425 = vst [vmem:[#allocation85_spill] sm:$0xff] %v9885_v44  ;;  %v8194_v44 = vld [vmem:[#allocation2 + $0xd4] sm:$0xf0] }
 0x3f7   : > { %v7366_v56 = vor.u32 %v8194_v44, %v7365_v5 }
 0x3f8   : > { %v9918_v32 = vpop.f32.mrf.mxu0 }
 0x3f9   : > { %11429 = vst [vmem:[#allocation89_spill] sm:$0xff] %v9918_v32  ;;  %v8196_v32 = vld [vmem:[#allocation2 + $0xe4] sm:$0xf0] }
 0x3fb   : > { %v9889_v17 = vpop.f32.mrf.mxu2 }
 0x3fc   : > { %v9891_v20 = vpop.f32.mrf.mxu3 }
 0x3fd   : > { %v9895_v46 = vpop.f32.mrf.mxu1 }
 0x3fe   : > { %11427 = vst [vmem:[#allocation87_spill] sm:$0xff] %v9895_v46  ;;  %v1922_v43 = vpop.permute.xlu0 %1921 }
 0x3ff   : > { %v2015_v47 = vsel %vm1931_vm9, %v1731_v1, %v1922_v43 }
 0x400   : > { %7053 = vmatmul.msk.bf16.gmra.mxu2 %vm1931_vm9, %v6954_v18  ;;  %v2200_v46 = vunpack.c.l.b16 %v2015_v47  ;;  %v2202_v60 = vunpack.c.h.b16 %v2015_v47  ;;  %v1864_v47 = vsel %vm9018_vm7, %v1795_v41, 0  ;;  %v1792_v18 = vrot.slane %v1645_v62, 1 }
 0x401   : > { %4270 = vmatmul.bf16.gmra.mxu1 %v7550_v2  ;;  %3807 = vmatmul.bf16.gmra.mxu3 %v7366_v56  ;;  %v2209_v2 = vunpack.c.l.b16 %v1864_v47  ;;  %v2211_v21 = vunpack.c.h.b16 %v1864_v47  ;;  %v1647_v41 = vor.u32 %v1645_v62, %v1644_v11 }
 0x402   : > { %7748 = vmatmul.msk.bf16.gmra.mxu0 %vm1931_vm9, %v7690_v8  ;;  %v2274_v58 = vpack.c.b16 %v2201_v54, %v2200_v46  ;;  %v2275_v44 = vpack.c.b16 %v2203_v30, %v2202_v60  ;;  %v1733_v46 = vsel %vm9027_vm8, 0, %v1654_v0  ;;  %v1793_v56 = vor.u32 %v1792_v18, %v1642_v7  ;;  %v8149_v54 = vld [vmem:[#allocation2 + $0xc4] sm:$0xf] }
 0x403   : > { %v9906_v5 = vpop.f32.mrf.mxu2 }
 0x404   : > { %v9908_v1 = vpop.f32.mrf.mxu3  ;;  %2406 = vst.msk [vmem:[#allocation2 + $0x1e0] sm:$0xff] %vm8928_vm2, %v2274_v58  ;;  %v1863_v62 = vsel %vm9018_vm7, %v1793_v56, 0 }
 0x405   : > { %v9912_v8 = vpop.f32.mrf.mxu1  ;;  %2407 = vst.msk [vmem:[#allocation2 + $0x1e8] sm:$0xff] %vm8928_vm2, %v2275_v44  ;;  %v6959_v44 = vld [vmem:[#allocation2 + $0xc8] sm:$0xf0] }
 0x406   : > { %11428 = vst [vmem:[#allocation88_spill] sm:$0xff] %v9912_v8  ;;  %v1926_v4 = vpop.permute.xlu2 %1925  ;;  %v7373_v8 = vld [vmem:[#allocation2 + $0xe0] sm:$0xf]  ;;  %v6962_v18 = vor.u32 %v8149_v54, %v6959_v44 }
 0x407   : > { %v2021_v29 = vsel %vm1931_vm9, %v1733_v46, %v1926_v4  ;;  %v1732_v4 = vsel %vm9027_vm8, 0, %v1647_v41 }
 0x408   : > { %v2208_v24 = vunpack.c.l.b16 %v2021_v29  ;;  %v2210_v43 = vunpack.c.h.b16 %v2021_v29  ;;  %v7374_v29 = vor.u32 %v8196_v32, %v7373_v8 }
 0x40a   : > { %v2278_v30 = vpack.c.b16 %v2209_v2, %v2208_v24  ;;  %v2279_v60 = vpack.c.b16 %v2211_v21, %v2210_v43  ;;  %v7698_v2 = vor.u32 %v8235_v51, %v7695_v9  ;;  %v9939_v24 = vpop.f32.mrf.mxu0  ;;  %v2205_v43 = vunpack.c.l.b16 %v1863_v62  ;;  %v8151_v51 = vld [vmem:[#allocation2 + $0xd4] sm:$0xf] }
 0x40b   : > { %v9923_v58 = vpop.f32.mrf.mxu2  ;;  %v7557_v0 = vld [vmem:[#allocation2 + $0x1e0] sm:$0xf]  ;;  %11431 = vst [vmem:[#allocation91_spill] sm:$0xff] %v9939_v24  ;;  %v8200_v24 = vld [vmem:[#allocation2 + $0x104] sm:$0xf0] }
 0x40c   : > { %v9925_v28 = vpop.f32.mrf.mxu3  ;;  %2410 = vst.msk [vmem:[#allocation2 + $0x200] sm:$0xff] %vm8928_vm2, %v2278_v30  ;;  %v8270_v7 = vld [vmem:[#allocation2 + $0x1e4] sm:$0xf0]  ;;  %v2207_v30 = vunpack.c.h.b16 %v1863_v62 }
 0x40d   : > { %2411 = vst.msk [vmem:[#allocation2 + $0x208] sm:$0xff] %vm8928_vm2, %v2279_v60  ;;  %v7558_v46 = vor.u32 %v8270_v7, %v7557_v0  ;;  %v6967_v0 = vld [vmem:[#allocation2 + $0xd8] sm:$0xf0]  ;;  %v7381_v7 = vld [vmem:[#allocation2 + $0xf0] sm:$0xf] }
 0x40e   : > { %v9929_v47 = vpop.f32.mrf.mxu1  ;;  %v1924_v11 = vpop.permute.xlu1 %1923 }
 0x40f   : > { %11430 = vst [vmem:[#allocation90_spill] sm:$0xff] %v9929_v47  ;;  %v2018_v21 = vsel %vm1931_vm9, %v1732_v4, %v1924_v11  ;;  %v7703_v4 = vld [vmem:[#allocation2 + $0x1d8] sm:$0xf0] }
 0x410   : > { %7054 = vmatmul.msk.bf16.gmra.mxu2 %vm1931_vm9, %v6962_v18  ;;  %v2204_v60 = vunpack.c.l.b16 %v2018_v21  ;;  %v2206_v47 = vunpack.c.h.b16 %v2018_v21 }
 0x411   : > { %4275 = vmatmul.bf16.gmra.mxu1 %v7558_v46  ;;  %3812 = vmatmul.bf16.gmra.mxu3 %v7374_v29  ;;  %v8237_v46 = vld [vmem:[#allocation2 + $0x1d4] sm:$0xf] }
 0x412   : > { %7749 = vmatmul.msk.bf16.gmra.mxu0 %vm1931_vm9, %v7698_v2  ;;  %v2276_v56 = vpack.c.b16 %v2205_v43, %v2204_v60  ;;  %v2277_v54 = vpack.c.b16 %v2207_v30, %v2206_v47  ;;  %v9952_v32 = vpop.f32.mrf.mxu0  ;;  %v8198_v47 = vld [vmem:[#allocation2 + $0xf4] sm:$0xf0]  ;;  %v6970_v2 = vor.u32 %v8151_v51, %v6967_v0  ;;  %v7706_v30 = vor.u32 %v8237_v46, %v7703_v4  ;;  %v6975_v46 = vld [vmem:[#allocation2 + $0xe8] sm:$0xf0] }
 0x413   : > { %v9942_v41 = vpop.f32.mrf.mxu2  ;;  %11433 = vst [vmem:[#allocation93_spill] sm:$0xff] %v9952_v32  ;;  %v7382_v43 = vor.u32 %v8198_v47, %v7381_v7  ;;  %v1659_v60 = vshll.u32 %v9784_v34, 16 }
 0x414   : > { %v9944_v8 = vpop.f32.mrf.mxu3  ;;  %2408 = vst.msk [vmem:[#allocation2 + $0x1f0] sm:$0xff] %vm8928_vm2, %v2276_v56  ;;  %v1656_v56 = vshrl.u32 %v9784_v34, 16 }
 0x415   : > { %2409 = vst.msk [vmem:[#allocation2 + $0x1f8] sm:$0xff] %vm8928_vm2, %v2277_v54  ;;  %v1796_v51 = vrot.slane %v1659_v60, 1 }
 0x416   : > { %v9948_v9 = vpop.f32.mrf.mxu1  ;;  %v1658_v0 = vrot.slane %v1656_v56, 7 }
 0x417   : > { %11432 = vst [vmem:[#allocation92_spill] sm:$0xff] %v9948_v9  ;;  %v1797_v47 = vor.u32 %v1796_v51, %v1656_v56 }
 0x41a   : > { %v9968_v32 = vpop.f32.mrf.mxu0 }
 0x41b   : > { %v9954_v44 = vpop.f32.mrf.mxu2  ;;  %v7565_v18 = vld [vmem:[#allocation2 + $0x1f0] sm:$0xf]  ;;  %11437 = vst [vmem:[#allocation97_spill] sm:$0xff] %v9968_v32  ;;  %v1865_v32 = vsel %vm9018_vm7, %v1797_v47, 0 }
 0x41c   : > { %v9956_v62 = vpop.f32.mrf.mxu3  ;;  %v8272_v11 = vld [vmem:[#allocation2 + $0x1f4] sm:$0xf0] }
 0x41d   : > { %11434 = vst [vmem:[#allocation94_spill] sm:$0xff] %v9956_v62  ;;  %v7566_v21 = vor.u32 %v8272_v11, %v7565_v18  ;;  %v8153_v18 = vld [vmem:[#allocation2 + $0xe4] sm:$0xf]  ;;  %v7573_v11 = vld [vmem:[#allocation2 + $0x200] sm:$0xf] }
 0x41e   : > { %v9958_v29 = vpop.f32.mrf.mxu1 }
 0x41f   : > { %11435 = vst [vmem:[#allocation95_spill] sm:$0xff] %v9958_v29  ;;  %v7711_v29 = vld [vmem:[#allocation2 + $0x1e8] sm:$0xf0] }
 0x420   : > { %7055 = vmatmul.msk.bf16.gmra.mxu2 %vm1931_vm9, %v6970_v2  ;;  %v8274_v2 = vld [vmem:[#allocation2 + $0x204] sm:$0xf0] }
 0x421   : > { %4280 = vmatmul.bf16.gmra.mxu1 %v7566_v21  ;;  %3817 = vmatmul.bf16.gmra.mxu3 %v7382_v43  ;;  %v1661_v21 = vor.u32 %v1659_v60, %v1658_v0  ;;  %v7389_v43 = vld [vmem:[#allocation2 + $0x100] sm:$0xf]  ;;  %v7574_v15 = vor.u32 %v8274_v2, %v7573_v11  ;;  %v2213_v0 = vunpack.c.l.b16 %v1865_v32  ;;  %v2215_v11 = vunpack.c.h.b16 %v1865_v32 }
 0x422   : > { %7750 = vmatmul.msk.bf16.gmra.mxu0 %vm1931_vm9, %v7706_v30  ;;  %v8239_v30 = vld [vmem:[#allocation2 + $0x1e4] sm:$0xf] }
 0x423   : > { %v9964_v54 = vpop.f32.mrf.mxu2  ;;  %v7714_v56 = vor.u32 %v8239_v30, %v7711_v29  ;;  %v1734_v51 = vsel %vm9027_vm8, 0, %v1661_v21  ;;  %v1666_v29 = vshll.u32 %v9808_v10, 16  ;;  %v7397_v30 = vld [vmem:[#allocation2 + $0x110] sm:$0xf] }
 0x424   : > { %v9966_v9 = vpop.f32.mrf.mxu3 }
 0x425   : > { %11436 = vst [vmem:[#allocation96_spill] sm:$0xff] %v9966_v9  ;;  %v6978_v9 = vor.u32 %v8153_v18, %v6975_v46  ;;  %v1663_v46 = vshrl.u32 %v9808_v10, 16 }
 0x426   : > { %v9970_v7 = vpop.f32.mrf.mxu1 }
 0x427   : > { %11438 = vst [vmem:[#allocation98_spill] sm:$0xff] %v9970_v7  ;;  %v9978_v7 = vpop.f32.mrf.mxu0  ;;  %v1665_v32 = vrot.slane %v1663_v46, 7 }
 0x428   : > { %11441 = vst [vmem:[#allocation101_spill] sm:$0xff] %v9978_v7 }
 0x42b   : > { %v9972_v4 = vpop.f32.mrf.mxu2 }
 0x42c   : > { %11439 = vst [vmem:[#allocation99_spill] sm:$0xff] %v9972_v4  ;;  %v9974_v34 = vpop.f32.mrf.mxu3  ;;  %v7390_v4 = vor.u32 %v8200_v24, %v7389_v43 }
 0x42d   : > { %11440 = vst [vmem:[#allocation100_spill] sm:$0xff] %v9974_v34 }
 0x42e   : > { %v1928_v62 = vpop.permute.xlu0 %1927  ;;  %v9985_v18 = vpop.f32.mrf.mxu1 }
 0x42f   : > { %v2024_v60 = vsel %vm1931_vm9, %v1734_v51, %v1928_v62  ;;  %11442 = vst [vmem:[#allocation102_spill] sm:$0xff] %v9985_v18  ;;  %v1668_v51 = vor.u32 %v1666_v29, %v1665_v32  ;;  %v7719_v18 = vld [vmem:[#allocation2 + $0x1f8] sm:$0xf0] }
 0x430   : > { %7056 = vmatmul.msk.bf16.gmra.mxu2 %vm1931_vm9, %v6978_v9  ;;  %v2212_v2 = vunpack.c.l.b16 %v2024_v60  ;;  %v2214_v47 = vunpack.c.h.b16 %v2024_v60  ;;  %v1798_v9 = vrot.slane %v1666_v29, 1  ;;  %v8155_v60 = vld [vmem:[#allocation2 + $0xf4] sm:$0xf] }
 0x431   : > { %4285 = vmatmul.bf16.gmra.mxu1 %v7574_v15  ;;  %3822 = vmatmul.bf16.gmra.mxu3 %v7390_v4  ;;  %v9997_v4 = vpop.f32.mrf.mxu0 }
 0x432   : > { %7751 = vmatmul.msk.bf16.gmra.mxu0 %vm1931_vm9, %v7714_v56  ;;  %v2280_v21 = vpack.c.b16 %v2213_v0, %v2212_v2  ;;  %v2281_v24 = vpack.c.b16 %v2215_v11, %v2214_v47  ;;  %11444 = vst [vmem:[#allocation104_spill] sm:$0xff] %v9997_v4  ;;  %v1799_v43 = vor.u32 %v1798_v9, %v1663_v46  ;;  %v8202_v56 = vld [vmem:[#allocation2 + $0x114] sm:$0xf0]  ;;  %v6983_v0 = vld [vmem:[#allocation2 + $0xf8] sm:$0xf0] }
 0x433   : > { %v9989_v15 = vpop.f32.mrf.mxu2  ;;  %v6986_v46 = vor.u32 %v8155_v60, %v6983_v0  ;;  %v6991_v60 = vld [vmem:[#allocation2 + $0x108] sm:$0xf0] }
 0x434   : > { %v9991_v62 = vpop.f32.mrf.mxu3  ;;  %2412 = vst.msk [vmem:[#allocation2 + $0x210] sm:$0xff] %vm8928_vm2, %v2280_v21  ;;  %v8241_v21 = vld [vmem:[#allocation2 + $0x1f4] sm:$0xf]  ;;  %v1866_v4 = vsel %vm9018_vm7, %v1799_v43, 0 }
 0x435   : > { %11443 = vst [vmem:[#allocation103_spill] sm:$0xff] %v9991_v62  ;;  %v1735_v62 = vsel %vm9027_vm8, 0, %v1668_v51  ;;  %v7722_v32 = vor.u32 %v8241_v21, %v7719_v18  ;;  %v8157_v51 = vld [vmem:[#allocation2 + $0x104] sm:$0xf] }
 0x436   : > { %2413 = vst.msk [vmem:[#allocation2 + $0x218] sm:$0xff] %vm8928_vm2, %v2281_v24  ;;  %v10001_v11 = vpop.f32.mrf.mxu1  ;;  %v7398_v24 = vor.u32 %v8202_v56, %v7397_v30 }
 0x437   : > { %11446 = vst [vmem:[#allocation106_spill] sm:$0xff] %v10001_v11  ;;  %v2217_v11 = vunpack.c.l.b16 %v1866_v4 }
 0x439   : > { %v10012_v26 = vpop.f32.mrf.mxu0 }
 0x43a   : > { %11448 = vst [vmem:[#allocation108_spill] sm:$0xff] %v10012_v26 }
 0x43b   : > { %v9999_v10 = vpop.f32.mrf.mxu2  ;;  %v7581_v47 = vld [vmem:[#allocation2 + $0x210] sm:$0xf] }
 0x43c   : > { %11445 = vst [vmem:[#allocation105_spill] sm:$0xff] %v9999_v10  ;;  %v10003_v2 = vpop.f32.mrf.mxu3 }
 0x43d   : > { %11447 = vst [vmem:[#allocation107_spill] sm:$0xff] %v10003_v2  ;;  %v8276_v7 = vld [vmem:[#allocation2 + $0x214] sm:$0xf0]  ;;  %v2219_v2 = vunpack.c.h.b16 %v1866_v4 }
 0x43e   : > { %v7582_v9 = vor.u32 %v8276_v7, %v7581_v47  ;;  %v1930_v29 = vpop.permute.xlu1 %1929  ;;  %v10020_v18 = vpop.f32.mrf.mxu1 }
 0x43f   : > { %v2027_v34 = vsel %vm1931_vm9, %v1735_v62, %v1930_v29  ;;  %11449 = vst [vmem:[#allocation109_spill] sm:$0xff] %v10020_v18  ;;  %v8216_v62 = vld [vmem:[#allocation2 + $0x124] sm:$0xf0]  ;;  %v7063_v18 = vld [vmem:[#allocation2 + $0x8] sm:$0xf0] }
 0x440   : > { %7057 = vmatmul.msk.bf16.gmra.mxu2 %vm1931_vm9, %v6986_v46  ;;  %v2216_v10 = vunpack.c.l.b16 %v2027_v34  ;;  %v2218_v30 = vunpack.c.h.b16 %v2027_v34  ;;  %v7613_v34 = vld [vmem:[#allocation2 + $0x120] sm:$0xf]  ;;  %v6994_v46 = vor.u32 %v8157_v51, %v6991_v60  ;;  %v7621_v51 = vld [vmem:[#allocation2 + $0x130] sm:$0xf] }
 0x441   : > { %4290 = vmatmul.bf16.gmra.mxu1 %v7582_v9  ;;  %3827 = vmatmul.bf16.gmra.mxu3 %v7398_v24  ;;  %v10028_v47 = vpop.f32.mrf.mxu0  ;;  %v7614_v24 = vor.u32 %v8216_v62, %v7613_v34  ;;  %v7757_v60 = vld [vmem:[#allocation2 + $0x140] sm:$0xf] }
 0x442   : > { %7752 = vmatmul.msk.bf16.gmra.mxu0 %vm1931_vm9, %v7722_v32  ;;  %v2282_v7 = vpack.c.b16 %v2217_v11, %v2216_v10  ;;  %v2283_v43 = vpack.c.b16 %v2219_v2, %v2218_v30  ;;  %v8243_v11 = vld [vmem:[#allocation2 + $0x204] sm:$0xf]  ;;  %v7727_v2 = vld [vmem:[#allocation2 + $0x208] sm:$0xf0]  ;;  %11450 = vst [vmem:[#allocation110_spill] sm:$0xff] %v10028_v47 }
 0x443   : > { %v10014_v6 = vpop.f32.mrf.mxu2  ;;  %v7730_v29 = vor.u32 %v8243_v11, %v7727_v2 }
 0x444   : > { %v10016_v56 = vpop.f32.mrf.mxu3  ;;  %2414 = vst.msk [vmem:[#allocation2 + $0x220] sm:$0xff] %vm8928_vm2, %v2282_v7 }
 0x445   : > { %2415 = vst.msk [vmem:[#allocation2 + $0x228] sm:$0xff] %vm8928_vm2, %v2283_v43  ;;  %v8083_v43 = vld [vmem:[#allocation2 + $0x4] sm:$0xf] }
 0x446   : > { %v10030_v55 = vpop.f32.mrf.mxu1  ;;  %v7066_v2 = vor.u32 %v8083_v43, %v7063_v18 }
 0x447   : > { %11451 = vst [vmem:[#allocation111_spill] sm:$0xff] %v10030_v55 }
 0x449   : > { %v10038_v7 = vpop.f32.mrf.mxu0 }
 0x44a   : > { %11453 = vst [vmem:[#allocation113_spill] sm:$0xff] %v10038_v7 }
 0x44b   : > { %v10024_v4 = vpop.f32.mrf.mxu2  ;;  %v7589_v0 = vld [vmem:[#allocation2 + $0x220] sm:$0xf] }
 0x44c   : > { %v10026_v10 = vpop.f32.mrf.mxu3  ;;  %v8278_v21 = vld [vmem:[#allocation2 + $0x224] sm:$0xf0] }
 0x44d   : > { %v7590_v9 = vor.u32 %v8278_v21, %v7589_v0  ;;  %v8280_v0 = vld [vmem:[#allocation2 + $0x144] sm:$0xf0]  ;;  %v8218_v21 = vld [vmem:[#allocation2 + $0x134] sm:$0xf0] }
 0x44e   : > { %v10040_v34 = vpop.f32.mrf.mxu1 }
 0x44f   : > { %11454 = vst [vmem:[#allocation114_spill] sm:$0xff] %v10040_v34  ;;  %v8396_v34 = vld [vmem:[%s11314_s2 + $0x118] sm:$0xff] }
 0x450   : > { %7058 = vmatmul.msk.bf16.gmra.mxu2 %vm1931_vm9, %v6994_v46  ;;  %v7735_v46 = vld [vmem:[#allocation2 + $0x218] sm:$0xf0] }
 0x451   : > { %4295 = vmatmul.bf16.gmra.mxu1 %v7590_v9  ;;  %4590 = vmatmul.bf16.vlgmr.msra.gmra.mxu3 %v7614_v24  ;;  %v8245_v24 = vld [vmem:[#allocation2 + $0x214] sm:$0xf]  ;;  %v7758_v9 = vor.u32 %v8280_v0, %v7757_v60  ;;  %v10047_v7 = vpop.f32.mrf.mxu0 }
 0x452   : > { %7753 = vmatmul.msk.bf16.gmra.mxu0 %vm1931_vm9, %v7730_v29  ;;  %v7622_v29 = vor.u32 %v8218_v21, %v7621_v51  ;;  %v7738_v55 = vor.u32 %v8245_v24, %v7735_v46  ;;  %11456 = vst [vmem:[#allocation116_spill] sm:$0xff] %v10047_v7  ;;  %v8397_v51 = vld [vmem:[%s11314_s2 + $0x110] sm:$0xff]  ;;  %v8282_v24 = vld [vmem:[#allocation2 + $0x154] sm:$0xf0] }
 0x453   : > { %v10034_v32 = vpop.f32.mrf.mxu2  ;;  %v8085_v0 = vld [vmem:[#allocation2 + $0x14] sm:$0xf]  ;;  %v7765_v21 = vld [vmem:[#allocation2 + $0x150] sm:$0xf] }
 0x454   : > { %v10036_v30 = vpop.f32.mrf.mxu3  ;;  %v7766_v47 = vor.u32 %v8282_v24, %v7765_v21  ;;  %v8284_v21 = vld [vmem:[#allocation2 + $0x164] sm:$0xf0] }
 0x455   : > { %11452 = vst [vmem:[#allocation112_spill] sm:$0xff] %v10036_v30  ;;  %v8286_v30 = vld [vmem:[#allocation2 + $0x174] sm:$0xf0] }
 0x456   : > { %v10055_v43 = vpop.f32.mrf.mxu1 }
 0x457   : > { %11458 = vst [vmem:[#allocation118_spill] sm:$0xff] %v10055_v43 }
 0x45b   : > { %v10042_v62 = vpop.f32.mrf.mxu2 }
 0x45c   : > { %v10044_v11 = vpop.f32.mrf.mxu3 }
 0x45d   : > { %11455 = vst [vmem:[#allocation115_spill] sm:$0xff] %v10044_v11  ;;  %v8087_v11 = vld [vmem:[#allocation2 + $0x24] sm:$0xf] }
 0x45e   : > { %v10069_v43 = vpop.f32.mrf.mxu1 }
 0x45f   : > { %11462 = vst [vmem:[#allocation122_spill] sm:$0xff] %v10069_v43 }
 0x460   : > { %7235 = vmatmul.msk.bf16.vlgmr.msra.gmra.mxu2 %vm1931_vm9, %v7066_v2 }
 0x461   : > { %4993 = vmatmul.bf16.vlgmr.msrb.gmra.mxu1 %v7758_v9  ;;  %4595 = vmatmul.bf16.gmra.mxu3 %v7622_v29  ;;  %v7629_v9 = vld [vmem:[#allocation2 + $0x140] sm:$0xf]  ;;  %v8220_v29 = vld [vmem:[#allocation2 + $0x144] sm:$0xf0] }
 0x462   : > { %7754 = vmatmul.msk.bf16.gmra.mxu0 %vm1931_vm9, %v7738_v55  ;;  %5078 = vmatpush.bf16.msra.mxu2 %v8396_v34  ;;  %v8398_v55 = vld [vmem:[%s11314_s2 + $0x108] sm:$0xff]  ;;  %v7071_v34 = vld [vmem:[#allocation2 + $0x18] sm:$0xf0]  ;;  %v7630_v26 = vor.u32 %v8220_v29, %v7629_v9  ;;  %v8222_v9 = vld [vmem:[#allocation2 + $0x154] sm:$0xf0] }
 0x463   : > { %v10053_v18 = vpop.f32.mrf.mxu2  ;;  %v7074_v7 = vor.u32 %v8085_v0, %v7071_v34  ;;  %v7079_v0 = vld [vmem:[#allocation2 + $0x28] sm:$0xf0]  ;;  %v7773_v34 = vld [vmem:[#allocation2 + $0x160] sm:$0xf] }
 0x464   : > { %11457 = vst [vmem:[#allocation117_spill] sm:$0xff] %v10053_v18  ;;  %v10057_v60 = vpop.f32.mrf.mxu3  ;;  %v7082_v29 = vor.u32 %v8087_v11, %v7079_v0  ;;  %v7645_v0 = vld [vmem:[#allocation2 + $0x160] sm:$0xf] }
 0x465   : > { %11459 = vst [vmem:[#allocation119_spill] sm:$0xff] %v10057_v60 }
 0x466   : > { %5079 = vmatpush.bf16.msra.mxu2 %v8397_v51  ;;  %v8399_v51 = vld [vmem:[%s11314_s2 + $0x100] sm:$0xff] }
 0x46a   : > { %5080 = vmatpush.bf16.msra.mxu2 %v8398_v55 }
 0x46b   : > { %v10065_v2 = vpop.f32.mrf.mxu2 }
 0x46c   : > { %11460 = vst [vmem:[#allocation120_spill] sm:$0xff] %v10065_v2  ;;  %v10067_v46 = vpop.f32.mrf.mxu3  ;;  %v7087_v2 = vld [vmem:[#allocation2 + $0x38] sm:$0xf0] }
 0x46d   : > { %11461 = vst [vmem:[#allocation121_spill] sm:$0xff] %v10067_v46  ;;  %v10079_v46 = vpop.f32.mrf.mxu1 }
 0x46e   : > { %5081 = vmatpush.bf16.msra.mxu2 %v8399_v51  ;;  %11465 = vst [vmem:[#allocation125_spill] sm:$0xff] %v10079_v46  ;;  %v7637_v51 = vld [vmem:[#allocation2 + $0x150] sm:$0xf] }
 0x470   : > { %7236 = vmatmul.msk.bf16.gmra.mxu2 %vm1931_vm9, %v7074_v7  ;;  %v7774_v7 = vor.u32 %v8284_v21, %v7773_v34  ;;  %v8224_v34 = vld [vmem:[#allocation2 + $0x164] sm:$0xf0] }
 0x471   : > { %4998 = vmatmul.bf16.gmra.mxu1 %v7766_v47  ;;  %4600 = vmatmul.bf16.gmra.mxu3 %v7630_v26  ;;  %v7638_v47 = vor.u32 %v8222_v9, %v7637_v51  ;;  %v7646_v9 = vor.u32 %v8224_v34, %v7645_v0 }
 0x473   : > { %v10075_v55 = vpop.f32.mrf.mxu2 }
 0x474   : > { %11463 = vst [vmem:[#allocation123_spill] sm:$0xff] %v10075_v55  ;;  %v10077_v60 = vpop.f32.mrf.mxu3 }
 0x475   : > { %11464 = vst [vmem:[#allocation124_spill] sm:$0xff] %v10077_v60  ;;  %v10086_v26 = vpop.f32.mrf.mxu1 }
 0x476   : > { %11468 = vst [vmem:[#allocation128_spill] sm:$0xff] %v10086_v26  ;;  %v8091_v26 = vld [vmem:[#allocation2 + $0x44] sm:$0xf] }
 0x47b   : > { %v10081_v43 = vpop.f32.mrf.mxu2 }
 0x47c   : > { %11466 = vst [vmem:[#allocation126_spill] sm:$0xff] %v10081_v43  ;;  %v10083_v24 = vpop.f32.mrf.mxu3  ;;  %v8089_v43 = vld [vmem:[#allocation2 + $0x34] sm:$0xf] }
 0x47d   : > { %11467 = vst [vmem:[#allocation127_spill] sm:$0xff] %v10083_v24  ;;  %v7781_v24 = vld [vmem:[#allocation2 + $0x170] sm:$0xf]  ;;  %v10094_v18 = vpop.f32.mrf.mxu1  ;;  %v7090_v21 = vor.u32 %v8089_v43, %v7087_v2  ;;  %v8226_v43 = vld [vmem:[#allocation2 + $0x174] sm:$0xf0] }
 0x47e   : > { %11472 = vst [vmem:[#allocation132_spill] sm:$0xff] %v10094_v18  ;;  %v7782_v51 = vor.u32 %v8286_v30, %v7781_v24  ;;  %v7095_v18 = vld [vmem:[#allocation2 + $0x48] sm:$0xf0]  ;;  %v7653_v30 = vld [vmem:[#allocation2 + $0x170] sm:$0xf] }
 0x47f   : > { %v7098_v2 = vor.u32 %v8091_v26, %v7095_v18  ;;  %v7654_v0 = vor.u32 %v8226_v43, %v7653_v30  ;;  %v7103_v18 = vld [vmem:[#allocation2 + $0x58] sm:$0xf0]  ;;  %v8290_v26 = vld [vmem:[#allocation2 + $0x194] sm:$0xf0]  ;;  %v7661_v43 = vld [vmem:[#allocation2 + $0x180] sm:$0xf] }
 0x480   : > { %7237 = vmatmul.msk.bf16.gmra.mxu2 %vm1931_vm9, %v7082_v29 }
 0x481   : > { %5003 = vmatmul.bf16.gmra.mxu1 %v7774_v7  ;;  %4605 = vmatmul.bf16.gmra.mxu3 %v7638_v47 }
 0x483   : > { %v10088_v46 = vpop.f32.mrf.mxu2 }
 0x484   : > { %11469 = vst [vmem:[#allocation129_spill] sm:$0xff] %v10088_v46  ;;  %v10090_v60 = vpop.f32.mrf.mxu3 }
 0x485   : > { %11470 = vst [vmem:[#allocation130_spill] sm:$0xff] %v10090_v60  ;;  %v10103_v47 = vpop.f32.mrf.mxu1 }
 0x486   : > { %11475 = vst [vmem:[#allocation135_spill] sm:$0xff] %v10103_v47 }
 0x48b   : > { %v10092_v55 = vpop.f32.mrf.mxu2 }
 0x48c   : > { %11471 = vst [vmem:[#allocation131_spill] sm:$0xff] %v10092_v55  ;;  %v10096_v11 = vpop.f32.mrf.mxu3  ;;  %v8288_v55 = vld [vmem:[#allocation2 + $0x184] sm:$0xf0] }
 0x48d   : > { %11473 = vst [vmem:[#allocation133_spill] sm:$0xff] %v10096_v11  ;;  %v7789_v11 = vld [vmem:[#allocation2 + $0x180] sm:$0xf]  ;;  %v10109_v34 = vpop.f32.mrf.mxu1 }
 0x48e   : > { %v7790_v24 = vor.u32 %v8288_v55, %v7789_v11  ;;  %11478 = vst [vmem:[#allocation138_spill] sm:$0xff] %v10109_v34  ;;  %v7797_v55 = vld [vmem:[#allocation2 + $0x190] sm:$0xf] }
 0x490   : > { %7238 = vmatmul.msk.bf16.gmra.mxu2 %vm1931_vm9, %v7090_v21  ;;  %v10112_v21 = vpop.f32.mrf.mxu0 }
 0x491   : > { %5008 = vmatmul.bf16.gmra.mxu1 %v7782_v51  ;;  %4610 = vmatmul.bf16.gmra.mxu3 %v7646_v9  ;;  %11479 = vst [vmem:[#allocation139_spill] sm:$0xff] %v10112_v21 }
 0x493   : > { %v10099_v29 = vpop.f32.mrf.mxu2 }
 0x494   : > { %v10101_v7 = vpop.f32.mrf.mxu3 }
 0x495   : > { %11474 = vst [vmem:[#allocation134_spill] sm:$0xff] %v10101_v7  ;;  %v10118_v47 = vpop.f32.mrf.mxu1 }
 0x496   : > { %11482 = vst [vmem:[#allocation142_spill] sm:$0xff] %v10118_v47 }
 0x498   : > { %v10122_v11 = vpop.f32.mrf.mxu0 }
 0x499   : > { %11484 = vst [vmem:[#allocation144_spill] sm:$0xff] %v10122_v11  ;;  %v8095_v11 = vld [vmem:[#allocation2 + $0x64] sm:$0xf] }
 0x49b   : > { %v10105_v60 = vpop.f32.mrf.mxu2 }
 0x49c   : > { %11476 = vst [vmem:[#allocation136_spill] sm:$0xff] %v10105_v60  ;;  %v10107_v46 = vpop.f32.mrf.mxu3  ;;  %v7805_v60 = vld [vmem:[#allocation2 + $0x1a0] sm:$0xf] }
 0x49d   : > { %11477 = vst [vmem:[#allocation137_spill] sm:$0xff] %v10107_v46  ;;  %v8093_v46 = vld [vmem:[#allocation2 + $0x54] sm:$0xf]  ;;  %v10129_v21 = vpop.f32.mrf.mxu1 }
 0x49e   : > { %11487 = vst [vmem:[#allocation147_spill] sm:$0xff] %v10129_v21 }
 0x4a0   : > { %7239 = vmatmul.msk.bf16.gmra.mxu2 %vm1931_vm9, %v7098_v2  ;;  %v8228_v2 = vld [vmem:[#allocation2 + $0x184] sm:$0xf0] }
 0x4a1   : > { %5013 = vmatmul.bf16.gmra.mxu1 %v7790_v24  ;;  %4615 = vmatmul.bf16.gmra.mxu3 %v7654_v0  ;;  %v7106_v24 = vor.u32 %v8093_v46, %v7103_v18  ;;  %v7798_v0 = vor.u32 %v8290_v26, %v7797_v55  ;;  %v7662_v34 = vor.u32 %v8228_v2, %v7661_v43  ;;  %v8292_v46 = vld [vmem:[#allocation2 + $0x1a4] sm:$0xf0]  ;;  %v7669_v55 = vld [vmem:[#allocation2 + $0x190] sm:$0xf]  ;;  %v8230_v26 = vld [vmem:[#allocation2 + $0x194] sm:$0xf0] }
 0x4a2   : > { %v7806_v2 = vor.u32 %v8292_v46, %v7805_v60  ;;  %v8317_v60 = vld [vmem:[%s11315_s3 + $0x34] sm:$0xf]  ;;  %v7119_v46 = vld [vmem:[#allocation2 + $0x78] sm:$0xf0] }
 0x4a3   : > { %v10114_v51 = vpop.f32.mrf.mxu2 }
 0x4a4   : > { %11480 = vst [vmem:[#allocation140_spill] sm:$0xff] %v10114_v51  ;;  %v10116_v9 = vpop.f32.mrf.mxu3 }
 0x4a5   : > { %11481 = vst [vmem:[#allocation141_spill] sm:$0xff] %v10116_v9  ;;  %v10139_v43 = vpop.f32.mrf.mxu1 }
 0x4a6   : > { %11492 = vst [vmem:[#allocation152_spill] sm:$0xff] %v10139_v43 }
 0x4ab   : > { %v10120_v7 = vpop.f32.mrf.mxu2 }
 0x4ac   : > { %11483 = vst [vmem:[#allocation143_spill] sm:$0xff] %v10120_v7  ;;  %v10124_v30 = vpop.f32.mrf.mxu3  ;;  %v10133_v7 = vpop.f32.mrf.mxu0 }
 0x4ad   : > { %11485 = vst [vmem:[#allocation145_spill] sm:$0xff] %v10124_v30  ;;  %v7111_v30 = vld [vmem:[#allocation2 + $0x68] sm:$0xf0] }
 0x4ae   : > { %11489 = vst [vmem:[#allocation149_spill] sm:$0xff] %v10133_v7 }
 0x4b0   : > { %7240 = vmatmul.msk.bf16.gmra.mxu2 %vm1931_vm9, %v7106_v24  ;;  %v7670_v24 = vor.u32 %v8230_v26, %v7669_v55  ;;  %v7813_v55 = vld [vmem:[#allocation2 + $0x1b0] sm:$0xf]  ;;  %v8294_v26 = vld [vmem:[#allocation2 + $0x1b4] sm:$0xf0] }
 0x4b1   : > { %5018 = vmatmul.bf16.gmra.mxu1 %v7798_v0  ;;  %4620 = vmatmul.bf16.gmra.mxu3 %v7662_v34  ;;  %v7114_v34 = vor.u32 %v8095_v11, %v7111_v30  ;;  %v7927_v11 = vld [vmem:[%s11315_s3 + $0x38] sm:$0xf0] }
 0x4b3   : > { %v10127_v47 = vpop.f32.mrf.mxu2 }
 0x4b4   : > { %11486 = vst [vmem:[#allocation146_spill] sm:$0xff] %v10127_v47  ;;  %v10131_v9 = vpop.f32.mrf.mxu3  ;;  %v10141_v0 = vpop.f32.mrf.mxu0 }
 0x4b5   : > { %11488 = vst [vmem:[#allocation148_spill] sm:$0xff] %v10131_v9  ;;  %v10148_v9 = vpop.f32.mrf.mxu1 }
 0x4b6   : > { %11493 = vst [vmem:[#allocation153_spill] sm:$0xff] %v10141_v0  ;;  %v8315_v0 = vld [vmem:[%s11315_s3 + $0x24] sm:$0xf] }
 0x4b7   : > { %11496 = vst [vmem:[#allocation156_spill] sm:$0xff] %v10148_v9  ;;  %v8232_v9 = vld [vmem:[#allocation2 + $0x1a4] sm:$0xf0] }
 0x4bb   : > { %v10135_v51 = vpop.f32.mrf.mxu2 }
 0x4bc   : > { %11490 = vst [vmem:[#allocation150_spill] sm:$0xff] %v10135_v51  ;;  %v10137_v18 = vpop.f32.mrf.mxu3  ;;  %v8097_v51 = vld [vmem:[#allocation2 + $0x74] sm:$0xf] }
 0x4bd   : > { %11491 = vst [vmem:[#allocation151_spill] sm:$0xff] %v10137_v18  ;;  %v10150_v18 = vpop.f32.mrf.mxu0  ;;  %v7122_v43 = vor.u32 %v8097_v51, %v7119_v46  ;;  %v8313_v51 = vld [vmem:[%s11315_s3 + $0x14] sm:$0xf] }
 0x4be   : > { %11497 = vst [vmem:[#allocation157_spill] sm:$0xff] %v10150_v18  ;;  %v7814_v18 = vor.u32 %v8294_v26, %v7813_v55  ;;  %v8318_v26 = vld [vmem:[%s11315_s3 + $0x34] sm:$0xf0] }
 0x4c0   : > { %7241 = vmatmul.msk.bf16.gmra.mxu2 %vm1931_vm9, %v7114_v34  ;;  %v7930_v34 = vor.u32 %v8317_v60, %v7927_v11  ;;  %v10169_v60 = vpop.f32.mrf.mxu1  ;;  %v7911_v11 = vld [vmem:[%s11315_s3 + $0x18] sm:$0xf0] }
 0x4c1   : > { %5023 = vmatmul.bf16.gmra.mxu1 %v7806_v2  ;;  %4625 = vmatmul.bf16.gmra.mxu3 %v7670_v24  ;;  %v7677_v24 = vld [vmem:[#allocation2 + $0x1a0] sm:$0xf]  ;;  %11500 = vst [vmem:[#allocation160_spill] sm:$0xff] %v10169_v60  ;;  %v7914_v55 = vor.u32 %v8313_v51, %v7911_v11  ;;  %v8296_v11 = vld [vmem:[#allocation2 + $0x1c4] sm:$0xf0] }
 0x4c2   : > { %5874 = vmatpush.bf16.msrb.mxu0 %v7930_v34  ;;  %v7821_v51 = vld [vmem:[#allocation2 + $0x1c0] sm:$0xf] }
 0x4c3   : > { %v10144_v21 = vpop.f32.mrf.mxu2 }
 0x4c4   : > { %11494 = vst [vmem:[#allocation154_spill] sm:$0xff] %v10144_v21  ;;  %v10146_v7 = vpop.f32.mrf.mxu3 }
 0x4c5   : > { %11495 = vst [vmem:[#allocation155_spill] sm:$0xff] %v10146_v7  ;;  %v7919_v7 = vld [vmem:[%s11315_s3 + $0x28] sm:$0xf0] }
 0x4c6   : > { %v7922_v21 = vor.u32 %v8315_v0, %v7919_v7  ;;  %v8099_v0 = vld [vmem:[#allocation2 + $0x84] sm:$0xf] }
 0x4c8   : > { %5875 = vmatpush.bf16.msrb.mxu0 %v7922_v21  ;;  %v8311_v21 = vld [vmem:[%s11315_s3 + $0x4] sm:$0xf]  ;;  %v10197_v60 = vpop.f32.mrf.mxu1 }
 0x4c9   : > { %11504 = vst [vmem:[#allocation164_spill] sm:$0xff] %v10197_v60  ;;  %v3843_v60 = vadd.f32 %v9290_v59, %v9825_v48  ;;  %v7135_v59 = vld [vmem:[#allocation2 + $0x98] sm:$0xf0] }
 0x4cb   : > { %v10158_v30 = vpop.f32.mrf.mxu2 }
 0x4cc   : > { %11498 = vst [vmem:[#allocation158_spill] sm:$0xff] %v10158_v30  ;;  %v10160_v2 = vpop.f32.mrf.mxu3  ;;  %v7678_v30 = vor.u32 %v8232_v9, %v7677_v24  ;;  %v10179_v9 = vpop.f32.mrf.mxu0  ;;  %5876 = vmatpush.bf16.msrb.mxu0 %v7914_v55  ;;  %v7127_v24 = vld [vmem:[#allocation2 + $0x88] sm:$0xf0] }
 0x4cd   : > { %11499 = vst [vmem:[#allocation159_spill] sm:$0xff] %v10160_v2  ;;  %v7130_v2 = vor.u32 %v8099_v0, %v7127_v24 }
 0x4ce   : > { %11502 = vst [vmem:[#allocation162_spill] sm:$0xff] %v10179_v9 }
 0x4d0   : > { %7242 = vmatmul.msk.bf16.gmra.mxu2 %vm1931_vm9, %v7122_v43 }
 0x4d1   : > { %5028 = vmatmul.bf16.gmra.mxu1 %v7814_v18  ;;  %4630 = vmatmul.bf16.gmra.mxu3 %v7678_v30  ;;  %v7903_v18 = vld [vmem:[%s11315_s3 + $0x8] sm:$0xf0]  ;;  %v7925_v30 = vld [vmem:[%s11315_s3 + $0x30] sm:$0xf] }
 0x4d2   : > { %v7906_v43 = vor.u32 %v8311_v21, %v7903_v18  ;;  %v7926_v55 = vor.u32 %v8318_v26, %v7925_v30  ;;  %v7685_v21 = vld [vmem:[#allocation2 + $0x1b0] sm:$0xf]  ;;  %v8234_v18 = vld [vmem:[#allocation2 + $0x1b4] sm:$0xf0] }
 0x4d3   : > { %v10177_v46 = vpop.f32.mrf.mxu2  ;;  %v7686_v47 = vor.u32 %v8234_v18, %v7685_v21  ;;  %v2906_v18 = vadd.f32 %v9881_v14, %v9298_v37  ;;  %v3848_v14 = vadd.f32 %v9323_v3, %v9859_v16  ;;  %v7837_v3 = vld [vmem:[#allocation2 + $0x1e0] sm:$0xf]  ;;  %v8300_v16 = vld [vmem:[#allocation2 + $0x1e4] sm:$0xf0] }
 0x4d4   : > { %11501 = vst [vmem:[#allocation161_spill] sm:$0xff] %v10177_v46  ;;  %v10181_v7 = vpop.f32.mrf.mxu3  ;;  %5877 = vmatpush.bf16.msrb.mxu0 %v7906_v43  ;;  %5705 = vmatpush.bf16.msrb.mxu3 %v7926_v55  ;;  %v2901_v43 = vadd.f32 %v9857_v45, %v9259_v52  ;;  %v7822_v46 = vor.u32 %v8296_v11, %v7821_v51  ;;  %v10213_v45 = vpop.f32.mrf.mxu1  ;;  %v8298_v51 = vld [vmem:[#allocation2 + $0x1d4] sm:$0xf0] }
 0x4d5   : > { %11503 = vst [vmem:[#allocation163_spill] sm:$0xff] %v10181_v7  ;;  %v10203_v7 = vpop.f32.mrf.mxu0  ;;  %v2903_v52 = vadd.f32 %v9869_v33, %v9276_v42  ;;  %v3845_v42 = vadd.f32 %v9306_v23, %v9840_v12 }
 0x4d6   : > { %v3254_v30 = vadd.f32 %v9227_v39, %v2901_v43  ;;  %11506 = vst [vmem:[#allocation166_spill] sm:$0xff] %v10213_v45 }
 0x4d7   : > { %v3256_v39 = vadd.f32 %v9237_v25, %v2903_v52 }
 0x4db   : > { %v10195_v34 = vpop.f32.mrf.mxu2 }
 0x4dc   : > { %v10199_v9 = vpop.f32.mrf.mxu3  ;;  %v10230_v52 = vpop.f32.mrf.mxu1 }
 0x4dd   : > { %11505 = vst [vmem:[#allocation165_spill] sm:$0xff] %v10199_v9  ;;  %v10215_v24 = vpop.f32.mrf.mxu0 }
 0x4de   : > { %11507 = vst [vmem:[#allocation167_spill] sm:$0xff] %v10230_v52  ;;  %v7479_v52 = vld [vmem:[#allocation2 + $0x148] sm:$0xf0] }
 0x4e0   : > { %7243 = vmatmul.msk.bf16.gmra.mxu2 %vm1931_vm9, %v7130_v2  ;;  %v8101_v2 = vld [vmem:[#allocation2 + $0x94] sm:$0xf] }
 0x4e1   : > { %5033 = vmatmul.bf16.gmra.mxu1 %v7822_v46  ;;  %4635 = vmatmul.bf16.gmra.mxu3 %v7686_v47  ;;  %v10220_v47 = vld [vmem:[%s11317_s5] ss:$0 sm:$0xff]  ;;  %v7829_v46 = vld [vmem:[#allocation2 + $0x1d0] sm:$0xf]  ;;  %v7138_v21 = vor.u32 %v8101_v2, %v7135_v59  ;;  %v3259_v2 = vadd.f32 %v9261_v50, %v2906_v18 }
 0x4e3   : > { %v3342_v26 = vpop.f32.mrf.mxu2 }
 0x4e4   : > { %v3343_v9 = vadd.f32 %v3342_v26, %v3254_v30  ;;  %v10209_v55 = vpop.f32.mrf.mxu3  ;;  %v7830_v30 = vor.u32 %v8298_v51, %v7829_v46  ;;  %v2908_v46 = vadd.f32 %v9889_v17, %v9315_v13  ;;  %v7701_v17 = vld [vmem:[#allocation2 + $0x1d0] sm:$0xf] }
 0x4e5   : > { %v10234_v23 = vpop.f32.mrf.mxu0 }
 0x4e6   : > { %v3922_v0 = vadd.f32 %v3843_v60, %v3343_v9  ;;  %v7693_v60 = vld [vmem:[#allocation2 + $0x1c0] sm:$0xf]  ;;  %v8236_v9 = vld [vmem:[#allocation2 + $0x1c4] sm:$0xf0]  ;;  %11508 = vst [vmem:[#allocation168_spill] sm:$0xff] %v10234_v23  ;;  %v3261_v50 = vadd.f32 %v9278_v49, %v2908_v46  ;;  %v11512_v46 = vld [vmem:[#allocation24_spill] sm:$0xff] }
 0x4e7   : > { %v7694_v26 = vor.u32 %v8236_v9, %v7693_v60  ;;  %v3850_v9 = vadd.f32 %v9340_v27, %v9871_v19 }
 0x4e8   : > { %v5199_v43 = vadd.f32 %v10220_v47, %v3922_v0 }
 0x4ea   : > { %v5263_v12 = vmax.f32 %v5199_v43, 0.0  ;;  %v8238_v43 = vld [vmem:[#allocation2 + $0x1d4] sm:$0xf0] }
 0x4eb   : > { %v3344_v48 = vpop.f32.mrf.mxu2 }
 0x4ec   : > { %v3345_v33 = vadd.f32 %v3344_v48, %v3256_v39  ;;  %v10225_v11 = vpop.f32.mrf.mxu3 }
 0x4ee   : > { %v3923_v25 = vadd.f32 %v3845_v42, %v3345_v33  ;;  %v10247_v42 = vpop.f32.mrf.mxu1  ;;  %v7143_v33 = vld [vmem:[#allocation2 + $0xa8] sm:$0xf0] }
 0x4ef   : > { %11509 = vst [vmem:[#allocation169_spill] sm:$0xff] %v10247_v42 }
 0x4f0   : > { %v5200_v45 = vadd.f32 %v10220_v47, %v3923_v25  ;;  %7244 = vmatmul.msk.bf16.gmra.mxu2 %vm1931_vm9, %v7138_v21  ;;  %v10252_v21 = vpop.f32.mrf.mxu0 }
 0x4f1   : > { %5038 = vmatmul.bf16.gmra.mxu1 %v7830_v30  ;;  %4640 = vmatmul.bf16.gmra.mxu3 %v7694_v26  ;;  %11510 = vst [vmem:[#allocation170_spill] sm:$0xff] %v10252_v21  ;;  %v2911_v30 = vadd.f32 %v9906_v5, %v9335_v35 }
 0x4f2   : > { %v5264_v39 = vmax.f32 %v5200_v45, 0.0  ;;  %v8103_v45 = vld [vmem:[#allocation2 + $0xa4] sm:$0xf] }
 0x4f3   : > { %v3347_v37 = vpop.f32.mrf.mxu2  ;;  %v7146_v25 = vor.u32 %v8103_v45, %v7143_v33  ;;  %v11514_v33 = vld [vmem:[#allocation22_spill] sm:$0xff] }
 0x4f4   : > { %v10239_v0 = vpack.c.bf16 %v5264_v39, %v5263_v12  ;;  %v3348_v59 = vadd.f32 %v3347_v37, %v3259_v2  ;;  %v10241_v48 = vpop.f32.mrf.mxu3  ;;  %v7838_v12 = vor.u32 %v8300_v16, %v7837_v3  ;;  %v7702_v39 = vor.u32 %v8238_v43, %v7701_v17  ;;  %v11511_v37 = vld [vmem:[#allocation19_spill] sm:$0xff]  ;;  %v8105_v17 = vld [vmem:[#allocation2 + $0xb4] sm:$0xf] }
 0x4f6   : > { %v3924_v51 = vadd.f32 %v3848_v14, %v3348_v59  ;;  %7963 = vmatmul.msk.bf16.vlgmr.msrb.gmra.mxu0 %vm1931_vm9, %v10239_v0  ;;  %v3264_v14 = vadd.f32 %v11511_v37, %v2911_v30  ;;  %v10264_v35 = vpop.f32.mrf.mxu1  ;;  %v8302_v30 = vld [vmem:[#allocation2 + $0x1f4] sm:$0xf0] }
 0x4f7   : > { %11513 = vst [vmem:[#allocation19_spill] sm:$0xff] %v10264_v35 }
 0x4f8   : > { %v5201_v49 = vadd.f32 %v10220_v47, %v3924_v51  ;;  %v10272_v3 = vpop.f32.mrf.mxu0 }
 0x4f9   : > { %11515 = vst [vmem:[#allocation24_spill] sm:$0xff] %v10272_v3 }
 0x4fa   : > { %v5265_v27 = vmax.f32 %v5201_v49, 0.0  ;;  %v3855_v49 = vadd.f32 %v9380_v40, %v9891_v20 }
 0x4fb   : > { %v3349_v60 = vpop.f32.mrf.mxu2 }
 0x4fc   : > { %v3350_v18 = vadd.f32 %v3349_v60, %v3261_v50  ;;  %v10254_v13 = vpop.f32.mrf.mxu3  ;;  %v3853_v50 = vadd.f32 %v11512_v46, %v9883_v36  ;;  %v2913_v60 = vadd.f32 %v9923_v58, %v11514_v33  ;;  %v7151_v36 = vld [vmem:[#allocation2 + $0xb8] sm:$0xf0]  ;;  %v7709_v58 = vld [vmem:[#allocation2 + $0x1e0] sm:$0xf] }
 0x4fd   : > { %v11518_v33 = vld [vmem:[#allocation21_spill] sm:$0xff] }
 0x4fe   : > { %v3925_v26 = vadd.f32 %v3850_v9, %v3350_v18  ;;  %v11516_v9 = vld [vmem:[#allocation20_spill] sm:$0xff] }
 0x4ff   : > { %v3266_v18 = vadd.f32 %v11516_v9, %v2913_v60 }
 0x500   : > { %v5202_v2 = vadd.f32 %v10220_v47, %v3925_v26  ;;  %7245 = vmatmul.msk.bf16.gmra.mxu2 %vm1931_vm9, %v7146_v25  ;;  %v7845_v25 = vld [vmem:[#allocation2 + $0x1f0] sm:$0xf] }
 0x501   : > { %5043 = vmatmul.bf16.gmra.mxu1 %v7838_v12  ;;  %4645 = vmatmul.bf16.gmra.mxu3 %v7702_v39  ;;  %v8240_v39 = vld [vmem:[#allocation2 + $0x1e4] sm:$0xf0] }
 0x502   : > { %v5266_v19 = vmax.f32 %v5202_v2, 0.0  ;;  %v7154_v2 = vor.u32 %v8105_v17, %v7151_v36  ;;  %v7710_v46 = vor.u32 %v8240_v39, %v7709_v58  ;;  %v2918_v17 = vadd.f32 %v9954_v44, %v9390_v61  ;;  %v8316_v61 = vld [vmem:[%s11315_s3 + $0x24] sm:$0xf0]  ;;  %v7853_v58 = vld [vmem:[#allocation2 + $0x200] sm:$0xf] }
 0x503   : > { %v3352_v59 = vpop.f32.mrf.mxu2  ;;  %v8304_v39 = vld [vmem:[#allocation2 + $0x204] sm:$0xf0] }
 0x504   : > { %v3353_v5 = vadd.f32 %v3352_v59, %v3264_v14  ;;  %v10266_v51 = vpop.f32.mrf.mxu3  ;;  %v10268_v45 = vpack.c.bf16 %v5266_v19, %v5265_v27  ;;  %v2916_v27 = vadd.f32 %v9942_v41, %v9368_v53  ;;  %v10283_v19 = vpop.f32.mrf.mxu1  ;;  %v7846_v59 = vor.u32 %v8302_v30, %v7845_v25  ;;  %v8107_v25 = vld [vmem:[#allocation2 + $0xc4] sm:$0xf] }
 0x505   : > { %v3858_v41 = vadd.f32 %v9407_v38, %v9908_v1  ;;  %v7159_v38 = vld [vmem:[#allocation2 + $0xc8] sm:$0xf0]  ;;  %v7917_v1 = vld [vmem:[%s11315_s3 + $0x20] sm:$0xf] }
 0x506   : > { %v3926_v16 = vadd.f32 %v3853_v50, %v3353_v5  ;;  %7964 = vmatmul.msk.bf16.gmra.mxu0 %vm1931_vm9, %v10268_v45  ;;  %v10286_v50 = vpop.f32.mrf.mxu0  ;;  %v3269_v60 = vadd.f32 %v11518_v33, %v2916_v27  ;;  %v3860_v27 = vadd.f32 %v9426_v31, %v9925_v28 }
 0x507   : > { %11517 = vst [vmem:[#allocation22_spill] sm:$0xff] %v10286_v50 }
 0x508   : > { %v5203_v37 = vadd.f32 %v10220_v47, %v3926_v16 }
 0x50a   : > { %v5267_v20 = vmax.f32 %v5203_v37, 0.0 }
 0x50b   : > { %v3354_v43 = vpop.f32.mrf.mxu2 }
 0x50c   : > { %v3355_v26 = vadd.f32 %v3354_v43, %v3266_v18  ;;  %v10279_v12 = vpop.f32.mrf.mxu3  ;;  %v10301_v43 = vpop.f32.mrf.mxu1 }
 0x50e   : > { %v3927_v14 = vadd.f32 %v3855_v49, %v3355_v26  ;;  %v10303_v30 = vpop.f32.mrf.mxu0  ;;  %v11520_v49 = vld [vmem:[#allocation23_spill] sm:$0xff] }
 0x50f   : > { %11519 = vst [vmem:[#allocation20_spill] sm:$0xff] %v10303_v30  ;;  %v3271_v26 = vadd.f32 %v11520_v49, %v2918_v17  ;;  %v5367_v30 = vld [vmem:[%s8637_s16] sm:$0xff] }
 0x510   : > { %v5204_v40 = vadd.f32 %v10220_v47, %v3927_v14  ;;  %7246 = vmatmul.msk.bf16.gmra.mxu2 %vm1931_vm9, %v7154_v2  ;;  %v7918_v2 = vor.u32 %v8316_v61, %v7917_v1  ;;  %v11523_v1 = vld [vmem:[#allocation99_spill] sm:$0xff] }
 0x511   : > { %5048 = vmatmul.bf16.gmra.mxu1 %v7846_v59  ;;  %4650 = vmatmul.bf16.gmra.mxu3 %v7710_v46  ;;  %v7717_v59 = vld [vmem:[#allocation2 + $0x1f0] sm:$0xf]  ;;  %v8242_v46 = vld [vmem:[#allocation2 + $0x1f4] sm:$0xf0] }
 0x512   : > { %v5268_v5 = vmax.f32 %v5204_v40, 0.0  ;;  %v7162_v40 = vor.u32 %v8107_v25, %v7159_v38  ;;  %5706 = vmatpush.bf16.msrb.mxu3 %v7918_v2  ;;  %v11522_v38 = vld [vmem:[#allocation27_spill] sm:$0xff]  ;;  %v7167_v2 = vld [vmem:[#allocation2 + $0xd8] sm:$0xf0] }
 0x513   : > { %v3357_v53 = vpop.f32.mrf.mxu2  ;;  %v2923_v61 = vadd.f32 %v11523_v1, %v11522_v38 }
 0x514   : > { %v3358_v16 = vadd.f32 %v3357_v53, %v3269_v60  ;;  %v10293_v9 = vpop.f32.mrf.mxu3  ;;  %v10295_v18 = vpack.c.bf16 %v5268_v5, %v5267_v20  ;;  %v2921_v20 = vadd.f32 %v9964_v54, %v9418_v22  ;;  %v7854_v60 = vor.u32 %v8304_v39, %v7853_v58  ;;  %v10321_v31 = vpop.f32.mrf.mxu1  ;;  %v8109_v58 = vld [vmem:[#allocation2 + $0xd4] sm:$0xf] }
 0x515   : > { %v7718_v53 = vor.u32 %v8242_v46, %v7717_v59  ;;  %v3863_v22 = vadd.f32 %v9446_v63, %v9944_v8  ;;  %v7909_v63 = vld [vmem:[%s11315_s3 + $0x10] sm:$0xf]  ;;  %v8314_v8 = vld [vmem:[%s11315_s3 + $0x14] sm:$0xf0] }
 0x516   : > { %v3928_v36 = vadd.f32 %v3858_v41, %v3358_v16  ;;  %7965 = vmatmul.msk.bf16.gmra.mxu0 %vm1931_vm9, %v10295_v18  ;;  %v3274_v17 = vadd.f32 %v9370_v57, %v2921_v20  ;;  %v10326_v54 = vpop.f32.mrf.mxu0  ;;  %v11524_v57 = vld [vmem:[#allocation25_spill] sm:$0xff]  ;;  %v7910_v46 = vor.u32 %v8314_v8, %v7909_v63  ;;  %v11526_v20 = vld [vmem:[#allocation31_spill] sm:$0xff]  ;;  %v11529_v63 = vld [vmem:[#allocation26_spill] sm:$0xff] }
 0x517   : > { %11521 = vst [vmem:[#allocation21_spill] sm:$0xff] %v10326_v54  ;;  %v3276_v39 = vadd.f32 %v11524_v57, %v2923_v61  ;;  %v8306_v59 = vld [vmem:[#allocation2 + $0x214] sm:$0xf0] }
 0x518   : > { %v5205_v5 = vadd.f32 %v10220_v47, %v3928_v36  ;;  %5707 = vmatpush.bf16.msrb.mxu3 %v7910_v46 }
 0x51a   : > { %v5269_v28 = vmax.f32 %v5205_v5, 0.0 }
 0x51b   : > { %v3359_v44 = vpop.f32.mrf.mxu2 }
 0x51c   : > { %v3360_v37 = vadd.f32 %v3359_v44, %v3271_v26  ;;  %v10314_v14 = vpop.f32.mrf.mxu3 }
 0x51e   : > { %v3929_v33 = vadd.f32 %v3860_v27, %v3360_v37  ;;  %v7861_v37 = vld [vmem:[#allocation2 + $0x210] sm:$0xf] }
 0x51f   : > { %v7862_v1 = vor.u32 %v8306_v59, %v7861_v37  ;;  %v11530_v37 = vld [vmem:[#allocation96_spill] sm:$0xff]  ;;  %v11531_v59 = vld [vmem:[#allocation34_spill] sm:$0xff] }
 0x520   : > { %v5206_v41 = vadd.f32 %v10220_v47, %v3929_v33  ;;  %7247 = vmatmul.msk.bf16.gmra.mxu2 %vm1931_vm9, %v7162_v40  ;;  %v11525_v40 = vld [vmem:[#allocation94_spill] sm:$0xff]  ;;  %v10345_v33 = vpop.f32.mrf.mxu1  ;;  %v3868_v46 = vadd.f32 %v11531_v59, %v11530_v37  ;;  %v8246_v37 = vld [vmem:[#allocation2 + $0x214] sm:$0xf0] }
 0x521   : > { %5053 = vmatmul.bf16.gmra.mxu1 %v7854_v60  ;;  %4655 = vmatmul.bf16.gmra.mxu3 %v7718_v53  ;;  %v3865_v5 = vadd.f32 %v11526_v20, %v11525_v40 }
 0x522   : > { %v5270_v16 = vmax.f32 %v5206_v41, 0.0  ;;  %v7725_v41 = vld [vmem:[#allocation2 + $0x200] sm:$0xf] }
 0x523   : > { %v3362_v25 = vpop.f32.mrf.mxu2 }
 0x524   : > { %v3363_v36 = vadd.f32 %v3362_v25, %v3274_v17  ;;  %v10328_v49 = vpop.f32.mrf.mxu3  ;;  %v10330_v26 = vpack.c.bf16 %v5270_v16, %v5269_v28  ;;  %v8244_v28 = vld [vmem:[#allocation2 + $0x204] sm:$0xf0]  ;;  %v7170_v16 = vor.u32 %v8109_v58, %v7167_v2  ;;  %v11527_v17 = vld [vmem:[#allocation29_spill] sm:$0xff]  ;;  %v7901_v58 = vld [vmem:[%s11315_s3] sm:$0xf] }
 0x525   : > { %v2926_v25 = vadd.f32 %v9989_v15, %v11527_v17  ;;  %v7726_v61 = vor.u32 %v8244_v28, %v7725_v41  ;;  %v8312_v15 = vld [vmem:[%s11315_s3 + $0x4] sm:$0xf0]  ;;  %v11533_v41 = vld [vmem:[#allocation105_spill] sm:$0xff] }
 0x526   : > { %v3930_v44 = vadd.f32 %v3863_v22, %v3363_v36  ;;  %7966 = vmatmul.msk.bf16.gmra.mxu0 %vm1931_vm9, %v10330_v26  ;;  %v10351_v22 = vpop.f32.mrf.mxu0 }
 0x527   : > { %11528 = vst [vmem:[#allocation23_spill] sm:$0xff] %v10351_v22  ;;  %v3279_v8 = vadd.f32 %v11529_v63, %v2926_v25 }
 0x528   : > { %v5207_v36 = vadd.f32 %v10220_v47, %v3930_v44 }
 0x52a   : > { %v5271_v2 = vmax.f32 %v5207_v36, 0.0  ;;  %v11535_v36 = vld [vmem:[#allocation28_spill] sm:$0xff] }
 0x52b   : > { %v3364_v27 = vpop.f32.mrf.mxu2 }
 0x52c   : > { %v3365_v60 = vadd.f32 %v3364_v27, %v3276_v39  ;;  %v10347_v53 = vpop.f32.mrf.mxu3  ;;  %v7902_v39 = vor.u32 %v8312_v15, %v7901_v58  ;;  %v7869_v58 = vld [vmem:[#allocation2 + $0x220] sm:$0xf]  ;;  %v8308_v15 = vld [vmem:[#allocation2 + $0x224] sm:$0xf0] }
 0x52e   : > { %v3931_v38 = vadd.f32 %v3865_v5, %v3365_v60  ;;  %5708 = vmatpush.bf16.msrb.mxu3 %v7902_v39  ;;  %v11532_v60 = vld [vmem:[#allocation32_spill] sm:$0xff]  ;;  %v10375_v25 = vpop.f32.mrf.mxu0 }
 0x52f   : > { %v2928_v28 = vadd.f32 %v11533_v41, %v11532_v60  ;;  %11534 = vst [vmem:[#allocation27_spill] sm:$0xff] %v10375_v25  ;;  %v11536_v39 = vld [vmem:[#allocation100_spill] sm:$0xff] }
 0x530   : > { %v5208_v57 = vadd.f32 %v10220_v47, %v3931_v38  ;;  %7248 = vmatmul.msk.bf16.gmra.mxu2 %vm1931_vm9, %v7170_v16  ;;  %v10371_v16 = vpop.f32.mrf.mxu1 }
 0x531   : > { %5058 = vmatmul.bf16.gmra.mxu1 %v7862_v1  ;;  %4660 = vmatmul.bf16.gmra.mxu3 %v7726_v61  ;;  %v3281_v38 = vadd.f32 %v11535_v36, %v2928_v28  ;;  %v8111_v1 = vld [vmem:[#allocation2 + $0xe4] sm:$0xf]  ;;  %v7175_v61 = vld [vmem:[#allocation2 + $0xe8] sm:$0xf0]  ;;  %v7870_v28 = vor.u32 %v8308_v15, %v7869_v58 }
 0x532   : > { %v5272_v44 = vmax.f32 %v5208_v57, 0.0  ;;  %v7178_v59 = vor.u32 %v8111_v1, %v7175_v61  ;;  %v11540_v61 = vld [vmem:[#allocation30_spill] sm:$0xff] }
 0x533   : > { %v3367_v27 = vpop.f32.mrf.mxu2 }
 0x534   : > { %v3368_v40 = vadd.f32 %v3367_v27, %v3279_v8  ;;  %v10365_v20 = vpop.f32.mrf.mxu3  ;;  %v10367_v5 = vpack.c.bf16 %v5272_v44, %v5271_v2  ;;  %v11537_v2 = vld [vmem:[#allocation37_spill] sm:$0xff]  ;;  %v7733_v27 = vld [vmem:[#allocation2 + $0x210] sm:$0xf] }
 0x535   : > { %v3870_v44 = vadd.f32 %v11537_v2, %v11536_v39  ;;  %v7734_v36 = vor.u32 %v8246_v37, %v7733_v27  ;;  %v11541_v2 = vld [vmem:[#allocation103_spill] sm:$0xff]  ;;  %v11543_v27 = vld [vmem:[#allocation38_spill] sm:$0xff] }
 0x536   : > { %v3932_v17 = vadd.f32 %v3868_v46, %v3368_v40  ;;  %7967 = vmatmul.msk.bf16.gmra.mxu0 %vm1931_vm9, %v10367_v5  ;;  %v11538_v46 = vld [vmem:[#allocation35_spill] sm:$0xff]  ;;  %v2933_v37 = vadd.f32 %v10024_v4, %v11543_v27 }
 0x537   : > { %v2931_v40 = vadd.f32 %v10014_v6, %v11538_v46  ;;  %v11544_v46 = vld [vmem:[#allocation33_spill] sm:$0xff] }
 0x538   : > { %v5209_v60 = vadd.f32 %v10220_v47, %v3932_v17  ;;  %v10385_v35 = vpop.f32.mrf.mxu1  ;;  %v11542_v17 = vld [vmem:[#allocation40_spill] sm:$0xff] }
 0x539   : > { %v3284_v39 = vadd.f32 %v11540_v61, %v2931_v40  ;;  %v8113_v40 = vld [vmem:[#allocation2 + $0xf4] sm:$0xf] }
 0x53b   : > { %v3369_v57 = vpop.f32.mrf.mxu2 }
 0x53c   : > { %v3370_v63 = vadd.f32 %v3369_v57, %v3281_v38  ;;  %v10380_v8 = vpop.f32.mrf.mxu3  ;;  %v10389_v38 = vpop.f32.mrf.mxu0  ;;  %v5273_v57 = vmax.f32 %v5209_v60, 0.0 }
 0x53d   : > { %11539 = vst [vmem:[#allocation99_spill] sm:$0xff] %v10389_v38 }
 0x53e   : > { %v3933_v41 = vadd.f32 %v3870_v44, %v3370_v63  ;;  %v3873_v44 = vadd.f32 %v11542_v17, %v11541_v2 }
 0x540   : > { %v5210_v42 = vadd.f32 %v10220_v47, %v3933_v41  ;;  %7249 = vmatmul.msk.bf16.gmra.mxu2 %vm1931_vm9, %v7178_v59  ;;  %v7183_v41 = vld [vmem:[#allocation2 + $0xf8] sm:$0xf0] }
 0x541   : > { %5063 = vmatmul.bf16.gmra.mxu1 %v7870_v28  ;;  %4665 = vmatmul.bf16.gmra.mxu3 %v7734_v36  ;;  %v11545_v28 = vld [vmem:[#allocation107_spill] sm:$0xff]  ;;  %v11546_v36 = vld [vmem:[#allocation45_spill] sm:$0xff] }
 0x542   : > { %v5274_v1 = vmax.f32 %v5210_v42, 0.0  ;;  %v3286_v42 = vadd.f32 %v11544_v46, %v2933_v37  ;;  %v3875_v61 = vadd.f32 %v11546_v36, %v11545_v28  ;;  %v11549_v46 = vld [vmem:[#allocation36_spill] sm:$0xff] }
 0x543   : > { %v3372_v6 = vpop.f32.mrf.mxu2  ;;  %v11550_v28 = vld [vmem:[#allocation48_spill] sm:$0xff] }
 0x544   : > { %v3373_v58 = vadd.f32 %v3372_v6, %v3284_v39  ;;  %v10394_v15 = vpop.f32.mrf.mxu3  ;;  %v10396_v63 = vpack.c.bf16 %v5274_v1, %v5273_v57  ;;  %v10405_v39 = vpop.f32.mrf.mxu0  ;;  %v11548_v1 = vld [vmem:[#allocation41_spill] sm:$0xff]  ;;  %v3878_v36 = vadd.f32 %v11550_v28, %v10016_v56  ;;  %v11554_v56 = vld [vmem:[#allocation51_spill] sm:$0xff] }
 0x545   : > { %11547 = vst [vmem:[#allocation25_spill] sm:$0xff] %v10405_v39  ;;  %v2936_v4 = vadd.f32 %v10034_v32, %v11548_v1 }
 0x546   : > { %v3934_v59 = vadd.f32 %v3873_v44, %v3373_v58  ;;  %7968 = vmatmul.msk.bf16.gmra.mxu0 %vm1931_vm9, %v10396_v63  ;;  %v7186_v44 = vor.u32 %v8113_v40, %v7183_v41  ;;  %v11551_v40 = vld [vmem:[#allocation43_spill] sm:$0xff] }
 0x547   : > { %v2938_v41 = vadd.f32 %v10042_v62, %v11551_v40 }
 0x548   : > { %v5211_v2 = vadd.f32 %v10220_v47, %v3934_v59 }
 0x54a   : > { %v5275_v27 = vmax.f32 %v5211_v2, 0.0 }
 0x54b   : > { %v3374_v60 = vpop.f32.mrf.mxu2 }
 0x54c   : > { %v3375_v6 = vadd.f32 %v3374_v60, %v3286_v42  ;;  %v10407_v57 = vpop.f32.mrf.mxu3  ;;  %v3289_v42 = vadd.f32 %v11549_v46, %v2936_v4 }
 0x54e   : > { %v3935_v17 = vadd.f32 %v3875_v61, %v3375_v6  ;;  %v10425_v61 = vpop.f32.mrf.mxu0 }
 0x54f   : > { %11552 = vst [vmem:[#allocation94_spill] sm:$0xff] %v10425_v61  ;;  %v11574_v61 = vld [vmem:[#allocation60_spill] sm:$0xff] }
 0x550   : > { %v5212_v58 = vadd.f32 %v10220_v47, %v3935_v17  ;;  %7250 = vmatmul.msk.bf16.gmra.mxu2 %vm1931_vm9, %v7186_v44  ;;  %v8247_v17 = vld [vmem:[#allocation2 + $0x134] sm:$0xf]  ;;  %v7471_v44 = vld [vmem:[#allocation2 + $0x138] sm:$0xf0] }
 0x551   : > { %7931 = vmatmul.msk.bf16.vlgmr.msrb.gmra.mxu3 %vm1931_vm9, %v10239_v0  ;;  %v11553_v0 = vld [vmem:[#allocation39_spill] sm:$0xff] }
 0x552   : > { %v5276_v37 = vmax.f32 %v5212_v58, 0.0  ;;  %v3291_v4 = vadd.f32 %v11553_v0, %v2938_v41  ;;  %v3880_v58 = vadd.f32 %v11554_v56, %v10026_v10  ;;  %v11559_v0 = vld [vmem:[#allocation42_spill] sm:$0xff]  ;;  %v11560_v56 = vld [vmem:[#allocation112_spill] sm:$0xff] }
 0x553   : > { %v3377_v60 = vpop.f32.mrf.mxu2 }
 0x554   : > { %v3378_v32 = vadd.f32 %v3377_v60, %v3289_v42  ;;  %v10419_v1 = vpop.f32.mrf.mxu3  ;;  %v10421_v59 = vpack.c.bf16 %v5276_v37, %v5275_v27  ;;  %v11556_v37 = vld [vmem:[#allocation46_spill] sm:$0xff]  ;;  %v11557_v42 = vld [vmem:[#allocation117_spill] sm:$0xff] }
 0x555   : > { %v2941_v62 = vadd.f32 %v11557_v42, %v11556_v37  ;;  %v11561_v37 = vld [vmem:[#allocation54_spill] sm:$0xff] }
 0x556   : > { %v3936_v6 = vadd.f32 %v3878_v36, %v3378_v32  ;;  %7969 = vmatmul.msk.bf16.gmra.mxu0 %vm1931_vm9, %v10421_v59  ;;  %v7474_v36 = vor.u32 %v8247_v17, %v7471_v44  ;;  %v10437_v32 = vpop.f32.mrf.mxu0  ;;  %v3883_v42 = vadd.f32 %v11561_v37, %v11560_v56  ;;  %v11563_v44 = vld [vmem:[#allocation49_spill] sm:$0xff]  ;;  %v11567_v56 = vld [vmem:[#allocation115_spill] sm:$0xff] }
 0x557   : > { %11558 = vst [vmem:[#allocation29_spill] sm:$0xff] %v10437_v32  ;;  %v11571_v32 = vld [vmem:[#allocation123_spill] sm:$0xff] }
 0x558   : > { %v5213_v60 = vadd.f32 %v10220_v47, %v3936_v6 }
 0x55a   : > { %v5277_v10 = vmax.f32 %v5213_v60, 0.0  ;;  %v11566_v60 = vld [vmem:[#allocation44_spill] sm:$0xff] }
 0x55b   : > { %v3379_v2 = vpop.f32.mrf.mxu2 }
 0x55c   : > { %v3380_v46 = vadd.f32 %v3379_v2, %v3291_v4  ;;  %v10432_v27 = vpop.f32.mrf.mxu3  ;;  %v3294_v4 = vadd.f32 %v11559_v0, %v2941_v62  ;;  %v8249_v0 = vld [vmem:[#allocation2 + $0x144] sm:$0xf] }
 0x55d   : > { %11555 = vst [vmem:[#allocation31_spill] sm:$0xff] %v10432_v27 }
 0x55e   : > { %v3937_v28 = vadd.f32 %v3880_v58, %v3380_v46  ;;  %v11564_v46 = vld [vmem:[#allocation120_spill] sm:$0xff] }
 0x560   : > { %v5214_v40 = vadd.f32 %v10220_v47, %v3937_v28  ;;  %7595 = vmatmul.msk.bf16.vlgmr.msrb.gmra.mxu2 %vm1931_vm9, %v7474_v36  ;;  %v2943_v28 = vadd.f32 %v11564_v46, %v11563_v44  ;;  %v7482_v46 = vor.u32 %v8249_v0, %v7479_v52  ;;  %v11577_v0 = vld [vmem:[#allocation55_spill] sm:$0xff] }
 0x561   : > { %7932 = vmatmul.msk.bf16.gmra.mxu3 %vm1931_vm9, %v10268_v45  ;;  %v10454_v45 = vpop.f32.mrf.mxu0 }
 0x562   : > { %v5278_v41 = vmax.f32 %v5214_v40, 0.0  ;;  %11565 = vst [vmem:[#allocation96_spill] sm:$0xff] %v10454_v45  ;;  %v3296_v62 = vadd.f32 %v11566_v60, %v2943_v28 }
 0x563   : > { %v3382_v2 = vpop.f32.mrf.mxu2 }
 0x564   : > { %v3383_v6 = vadd.f32 %v3382_v2, %v3294_v4  ;;  %v10446_v58 = vpop.f32.mrf.mxu3  ;;  %v10448_v17 = vpack.c.bf16 %v5278_v41, %v5277_v10  ;;  %v11568_v4 = vld [vmem:[#allocation58_spill] sm:$0xff]  ;;  %v11570_v41 = vld [vmem:[#allocation52_spill] sm:$0xff] }
 0x565   : > { %11562 = vst [vmem:[#allocation26_spill] sm:$0xff] %v10446_v58  ;;  %v3885_v2 = vadd.f32 %v11568_v4, %v11567_v56  ;;  %v2946_v44 = vadd.f32 %v11571_v32, %v11570_v41  ;;  %v11572_v56 = vld [vmem:[#allocation47_spill] sm:$0xff]  ;;  %v11649_v58 = vld [vmem:[#allocation78_spill] sm:$0xff] }
 0x566   : > { %v3938_v36 = vadd.f32 %v3883_v42, %v3383_v6  ;;  %7970 = vmatmul.msk.bf16.gmra.mxu0 %vm1931_vm9, %v10448_v17  ;;  %v11573_v4 = vld [vmem:[#allocation119_spill] sm:$0xff] }
 0x567   : > { %v3888_v39 = vadd.f32 %v11574_v61, %v11573_v4  ;;  %v11580_v61 = vld [vmem:[#allocation121_spill] sm:$0xff] }
 0x568   : > { %v5215_v42 = vadd.f32 %v10220_v47, %v3938_v36 }
 0x569   : > { %v10471_v32 = vpop.f32.mrf.mxu0 }
 0x56a   : > { %v5279_v28 = vmax.f32 %v5215_v42, 0.0  ;;  %11575 = vst [vmem:[#allocation32_spill] sm:$0xff] %v10471_v32  ;;  %v8251_v42 = vld [vmem:[#allocation2 + $0x154] sm:$0xf] }
 0x56b   : > { %v3384_v40 = vpop.f32.mrf.mxu2 }
 0x56c   : > { %v3385_v37 = vadd.f32 %v3384_v40, %v3296_v62  ;;  %v10459_v10 = vpop.f32.mrf.mxu3  ;;  %v3299_v62 = vadd.f32 %v11572_v56, %v2946_v44  ;;  %v11581_v56 = vld [vmem:[#allocation62_spill] sm:$0xff] }
 0x56d   : > { %11569 = vst [vmem:[#allocation34_spill] sm:$0xff] %v10459_v10  ;;  %v3890_v4 = vadd.f32 %v11581_v56, %v11580_v61  ;;  %v11587_v56 = vld [vmem:[#allocation124_spill] sm:$0xff] }
 0x56e   : > { %v3939_v6 = vadd.f32 %v3885_v2, %v3385_v37  ;;  %v11578_v37 = vld [vmem:[#allocation126_spill] sm:$0xff] }
 0x56f   : > { %v2948_v41 = vadd.f32 %v11578_v37, %v11577_v0 }
 0x570   : > { %v5216_v45 = vadd.f32 %v10220_v47, %v3939_v6  ;;  %7596 = vmatmul.msk.bf16.gmra.mxu2 %vm1931_vm9, %v7482_v46  ;;  %v7487_v46 = vld [vmem:[#allocation2 + $0x158] sm:$0xf0] }
 0x571   : > { %7933 = vmatmul.msk.bf16.gmra.mxu3 %vm1931_vm9, %v10295_v18  ;;  %v11579_v18 = vld [vmem:[#allocation50_spill] sm:$0xff]  ;;  %v10488_v38 = vpop.f32.mrf.mxu0  ;;  %v7490_v0 = vor.u32 %v8251_v42, %v7487_v46  ;;  %v11590_v42 = vld [vmem:[#allocation11_spill] sm:$0xff] }
 0x572   : > { %v5280_v60 = vmax.f32 %v5216_v45, 0.0  ;;  %v3301_v45 = vadd.f32 %v11579_v18, %v2948_v41  ;;  %11585 = vst [vmem:[#allocation100_spill] sm:$0xff] %v10488_v38  ;;  %v11591_v46 = vld [vmem:[#allocation131_spill] sm:$0xff] }
 0x573   : > { %v3387_v40 = vpop.f32.mrf.mxu2 }
 0x574   : > { %v3388_v36 = vadd.f32 %v3387_v40, %v3299_v62  ;;  %v10473_v2 = vpop.f32.mrf.mxu3  ;;  %v10475_v52 = vpack.c.bf16 %v5280_v60, %v5279_v28  ;;  %v11583_v28 = vld [vmem:[#allocation10_spill] sm:$0xff]  ;;  %v11584_v60 = vld [vmem:[#allocation129_spill] sm:$0xff] }
 0x575   : > { %11576 = vst [vmem:[#allocation105_spill] sm:$0xff] %v10473_v2  ;;  %v2951_v32 = vadd.f32 %v11584_v60, %v11583_v28  ;;  %v11588_v28 = vld [vmem:[#allocation14_spill] sm:$0xff] }
 0x576   : > { %v3940_v6 = vadd.f32 %v3888_v39, %v3388_v36  ;;  %7971 = vmatmul.msk.bf16.gmra.mxu0 %vm1931_vm9, %v10475_v52  ;;  %v3893_v60 = vadd.f32 %v11588_v28, %v11587_v56 }
 0x578   : > { %v5217_v39 = vadd.f32 %v10220_v47, %v3940_v6 }
 0x57a   : > { %v5281_v41 = vmax.f32 %v5217_v39, 0.0  ;;  %v11593_v39 = vld [vmem:[#allocation56_spill] sm:$0xff] }
 0x57b   : > { %v3389_v44 = vpop.f32.mrf.mxu2 }
 0x57c   : > { %v3390_v62 = vadd.f32 %v3389_v44, %v3301_v45  ;;  %v10484_v40 = vpop.f32.mrf.mxu3  ;;  %v11586_v45 = vld [vmem:[#allocation53_spill] sm:$0xff] }
 0x57d   : > { %11582 = vst [vmem:[#allocation28_spill] sm:$0xff] %v10484_v40  ;;  %v3304_v44 = vadd.f32 %v11586_v45, %v2951_v32  ;;  %v11594_v45 = vld [vmem:[#allocation127_spill] sm:$0xff] }
 0x57e   : > { %v3941_v36 = vadd.f32 %v3890_v4, %v3390_v62  ;;  %v2953_v4 = vadd.f32 %v11591_v46, %v11590_v42 }
 0x580   : > { %v5218_v37 = vadd.f32 %v10220_v47, %v3941_v36  ;;  %7597 = vmatmul.msk.bf16.gmra.mxu2 %vm1931_vm9, %v7490_v0  ;;  %v3306_v32 = vadd.f32 %v11593_v39, %v2953_v4  ;;  %v8253_v0 = vld [vmem:[#allocation2 + $0x164] sm:$0xf] }
 0x581   : > { %7934 = vmatmul.msk.bf16.gmra.mxu3 %vm1931_vm9, %v10330_v26  ;;  %v10506_v26 = vpop.f32.mrf.mxu0 }
 0x582   : > { %v5282_v18 = vmax.f32 %v5218_v37, 0.0  ;;  %11592 = vst [vmem:[#allocation35_spill] sm:$0xff] %v10506_v26  ;;  %v7495_v37 = vld [vmem:[#allocation2 + $0x168] sm:$0xf0]  ;;  %v11599_v26 = vld [vmem:[#allocation130_spill] sm:$0xff] }
 0x583   : > { %v3392_v61 = vpop.f32.mrf.mxu2  ;;  %v7498_v42 = vor.u32 %v8253_v0, %v7495_v37  ;;  %v11602_v37 = vld [vmem:[#allocation13_spill] sm:$0xff] }
 0x584   : > { %v3393_v38 = vadd.f32 %v3392_v61, %v3304_v44  ;;  %v10498_v25 = vpop.f32.mrf.mxu3  ;;  %v10500_v6 = vpack.c.bf16 %v5282_v18, %v5281_v41  ;;  %v11595_v44 = vld [vmem:[#allocation67_spill] sm:$0xff]  ;;  %v11597_v18 = vld [vmem:[#allocation12_spill] sm:$0xff] }
 0x585   : > { %11589 = vst [vmem:[#allocation37_spill] sm:$0xff] %v10498_v25  ;;  %v3895_v61 = vadd.f32 %v11595_v44, %v11594_v45  ;;  %v2956_v28 = vadd.f32 %v10099_v29, %v11597_v18  ;;  %v11600_v29 = vld [vmem:[#allocation69_spill] sm:$0xff] }
 0x586   : > { %v3942_v62 = vadd.f32 %v3893_v60, %v3393_v38  ;;  %7972 = vmatmul.msk.bf16.gmra.mxu0 %vm1931_vm9, %v10500_v6  ;;  %v3898_v18 = vadd.f32 %v11600_v29, %v11599_v26  ;;  %v11605_v26 = vld [vmem:[#allocation133_spill] sm:$0xff] }
 0x588   : > { %v5219_v38 = vadd.f32 %v10220_v47, %v3942_v62 }
 0x589   : > { %v10516_v46 = vpop.f32.mrf.mxu0 }
 0x58a   : > { %v5283_v39 = vmax.f32 %v5219_v38, 0.0  ;;  %v11604_v38 = vld [vmem:[#allocation59_spill] sm:$0xff] }
 0x58b   : > { %v3394_v36 = vpop.f32.mrf.mxu2 }
 0x58c   : > { %v3395_v56 = vadd.f32 %v3394_v36, %v3306_v32  ;;  %v10511_v41 = vpop.f32.mrf.mxu3  ;;  %v11598_v36 = vld [vmem:[#allocation57_spill] sm:$0xff] }
 0x58d   : > { %11596 = vst [vmem:[#allocation30_spill] sm:$0xff] %v10511_v41  ;;  %v3309_v45 = vadd.f32 %v11598_v36, %v2956_v28  ;;  %v8255_v36 = vld [vmem:[#allocation2 + $0x174] sm:$0xf]  ;;  %v7503_v41 = vld [vmem:[#allocation2 + $0x178] sm:$0xf0] }
 0x58e   : > { %v3943_v60 = vadd.f32 %v3895_v61, %v3395_v56  ;;  %v11603_v56 = vld [vmem:[#allocation136_spill] sm:$0xff] }
 0x590   : > { %v5220_v4 = vadd.f32 %v10220_v47, %v3943_v60  ;;  %7598 = vmatmul.msk.bf16.gmra.mxu2 %vm1931_vm9, %v7498_v42  ;;  %v2958_v60 = vadd.f32 %v11603_v56, %v11602_v37  ;;  %v7506_v56 = vor.u32 %v8255_v36, %v7503_v41  ;;  %v11614_v36 = vld [vmem:[#allocation15_spill] sm:$0xff] }
 0x591   : > { %7935 = vmatmul.msk.bf16.gmra.mxu3 %vm1931_vm9, %v10367_v5  ;;  %v10533_v5 = vpop.f32.mrf.mxu0 }
 0x592   : > { %v5284_v32 = vmax.f32 %v5220_v4, 0.0  ;;  %v3311_v28 = vadd.f32 %v11604_v38, %v2958_v60 }
 0x593   : > { %v3397_v44 = vpop.f32.mrf.mxu2 }
 0x594   : > { %v3398_v62 = vadd.f32 %v3397_v44, %v3309_v45  ;;  %v10525_v61 = vpop.f32.mrf.mxu3  ;;  %v10527_v0 = vpack.c.bf16 %v5284_v32, %v5283_v39  ;;  %v11606_v45 = vld [vmem:[#allocation18_spill] sm:$0xff]  ;;  %v11608_v32 = vld [vmem:[#allocation64_spill] sm:$0xff] }
 0x595   : > { %11601 = vst [vmem:[#allocation103_spill] sm:$0xff] %v10525_v61  ;;  %v3900_v44 = vadd.f32 %v11606_v45, %v11605_v26  ;;  %v11609_v61 = vld [vmem:[#allocation140_spill] sm:$0xff]  ;;  %v11610_v26 = vld [vmem:[#allocation61_spill] sm:$0xff]  ;;  %v11611_v45 = vld [vmem:[#allocation134_spill] sm:$0xff] }
 0x596   : > { %v3944_v42 = vadd.f32 %v3898_v18, %v3398_v62  ;;  %7973 = vmatmul.msk.bf16.gmra.mxu0 %vm1931_vm9, %v10527_v0  ;;  %v2961_v37 = vadd.f32 %v11609_v61, %v11608_v32 }
 0x598   : > { %v5221_v18 = vadd.f32 %v10220_v47, %v3944_v42 }
 0x599   : > { %v10550_v61 = vpop.f32.mrf.mxu0 }
 0x59a   : > { %v5285_v60 = vmax.f32 %v5221_v18, 0.0  ;;  %v8257_v18 = vld [vmem:[#allocation2 + $0x184] sm:$0xf] }
 0x59b   : > { %v3399_v4 = vpop.f32.mrf.mxu2 }
 0x59c   : > { %v3400_v29 = vadd.f32 %v3399_v4, %v3311_v28  ;;  %v10538_v39 = vpop.f32.mrf.mxu3  ;;  %v3314_v28 = vadd.f32 %v11610_v26, %v2961_v37  ;;  %v11618_v26 = vld [vmem:[#allocation77_spill] sm:$0xff] }
 0x59d   : > { %11607 = vst [vmem:[#allocation40_spill] sm:$0xff] %v10538_v39  ;;  %v11612_v39 = vld [vmem:[#allocation73_spill] sm:$0xff] }
 0x59e   : > { %v3945_v62 = vadd.f32 %v3900_v44, %v3400_v29  ;;  %v3903_v25 = vadd.f32 %v11612_v39, %v11611_v45  ;;  %v11615_v29 = vld [vmem:[#allocation143_spill] sm:$0xff]  ;;  %v11617_v39 = vld [vmem:[#allocation137_spill] sm:$0xff] }
 0x59f   : > { %v2963_v32 = vadd.f32 %v11615_v29, %v11614_v36  ;;  %v3905_v45 = vadd.f32 %v11618_v26, %v11617_v39  ;;  %v11623_v26 = vld [vmem:[#allocation141_spill] sm:$0xff] }
 0x5a0   : > { %v5222_v22 = vadd.f32 %v10220_v47, %v3945_v62  ;;  %7599 = vmatmul.msk.bf16.gmra.mxu2 %vm1931_vm9, %v7506_v56  ;;  %v7511_v56 = vld [vmem:[#allocation2 + $0x188] sm:$0xf0] }
 0x5a1   : > { %7936 = vmatmul.msk.bf16.gmra.mxu3 %vm1931_vm9, %v10396_v63  ;;  %v10567_v54 = vpop.f32.mrf.mxu0  ;;  %v7514_v36 = vor.u32 %v8257_v18, %v7511_v56  ;;  %v11626_v18 = vld [vmem:[#allocation17_spill] sm:$0xff]  ;;  %v11627_v56 = vld [vmem:[#allocation150_spill] sm:$0xff] }
 0x5a2   : > { %v5286_v38 = vmax.f32 %v5222_v22, 0.0  ;;  %v11616_v22 = vld [vmem:[#allocation63_spill] sm:$0xff] }
 0x5a3   : > { %v3402_v4 = vpop.f32.mrf.mxu2  ;;  %v3316_v63 = vadd.f32 %v11616_v22, %v2963_v32 }
 0x5a4   : > { %v3403_v42 = vadd.f32 %v3402_v4, %v3314_v28  ;;  %v10552_v44 = vpop.f32.mrf.mxu3  ;;  %v10554_v41 = vpack.c.bf16 %v5286_v38, %v5285_v60  ;;  %v11620_v60 = vld [vmem:[#allocation16_spill] sm:$0xff]  ;;  %v11621_v38 = vld [vmem:[#allocation146_spill] sm:$0xff] }
 0x5a5   : > { %11613 = vst [vmem:[#allocation38_spill] sm:$0xff] %v10552_v44  ;;  %v2966_v44 = vadd.f32 %v11621_v38, %v11620_v60  ;;  %v11624_v60 = vld [vmem:[#allocation80_spill] sm:$0xff] }
 0x5a6   : > { %v3946_v62 = vadd.f32 %v3903_v25, %v3403_v42  ;;  %7974 = vmatmul.msk.bf16.gmra.mxu0 %vm1931_vm9, %v10554_v41  ;;  %v3908_v38 = vadd.f32 %v11624_v60, %v11623_v26  ;;  %v11633_v60 = vld [vmem:[#allocation154_spill] sm:$0xff] }
 0x5a8   : > { %v5223_v25 = vadd.f32 %v10220_v47, %v3946_v62 }
 0x5aa   : > { %v5287_v32 = vmax.f32 %v5223_v25, 0.0  ;;  %v11628_v25 = vld [vmem:[#allocation66_spill] sm:$0xff] }
 0x5ab   : > { %v3404_v37 = vpop.f32.mrf.mxu2 }
 0x5ac   : > { %v3405_v28 = vadd.f32 %v3404_v37, %v3316_v63  ;;  %v10563_v4 = vpop.f32.mrf.mxu3  ;;  %v11622_v63 = vld [vmem:[#allocation65_spill] sm:$0xff] }
 0x5ad   : > { %11619 = vst [vmem:[#allocation33_spill] sm:$0xff] %v10563_v4  ;;  %v3319_v37 = vadd.f32 %v11622_v63, %v2966_v44  ;;  %v11629_v63 = vld [vmem:[#allocation145_spill] sm:$0xff] }
 0x5ae   : > { %v3947_v42 = vadd.f32 %v3905_v45, %v3405_v28  ;;  %v2968_v45 = vadd.f32 %v11627_v56, %v11626_v18 }
 0x5b0   : > { %v5224_v29 = vadd.f32 %v10220_v47, %v3947_v42  ;;  %7600 = vmatmul.msk.bf16.gmra.mxu2 %vm1931_vm9, %v7514_v36  ;;  %v3321_v44 = vadd.f32 %v11628_v25, %v2968_v45  ;;  %v8259_v36 = vld [vmem:[#allocation2 + $0x194] sm:$0xf] }
 0x5b1   : > { %7937 = vmatmul.msk.bf16.gmra.mxu3 %vm1931_vm9, %v10421_v59  ;;  %v10585_v59 = vpop.f32.mrf.mxu0 }
 0x5b2   : > { %v5288_v22 = vmax.f32 %v5224_v29, 0.0  ;;  %v7519_v29 = vld [vmem:[#allocation2 + $0x198] sm:$0xf0] }
 0x5b3   : > { %v3407_v39 = vpop.f32.mrf.mxu2  ;;  %v7522_v56 = vor.u32 %v8259_v36, %v7519_v29  ;;  %v11638_v29 = vld [vmem:[#allocation74_spill] sm:$0xff] }
 0x5b4   : > { %v3408_v4 = vadd.f32 %v3407_v39, %v3319_v37  ;;  %v10577_v40 = vpop.f32.mrf.mxu3  ;;  %v10579_v62 = vpack.c.bf16 %v5288_v22, %v5287_v32  ;;  %v11630_v37 = vld [vmem:[#allocation82_spill] sm:$0xff]  ;;  %v11632_v22 = vld [vmem:[#allocation71_spill] sm:$0xff] }
 0x5b5   : > { %11625 = vst [vmem:[#allocation107_spill] sm:$0xff] %v10577_v40  ;;  %v3910_v39 = vadd.f32 %v11630_v37, %v11629_v63  ;;  %v2971_v18 = vadd.f32 %v11633_v60, %v11632_v22  ;;  %v11636_v22 = vld [vmem:[#allocation84_spill] sm:$0xff] }
 0x5b6   : > { %v3948_v28 = vadd.f32 %v3908_v38, %v3408_v4  ;;  %7975 = vmatmul.msk.bf16.gmra.mxu0 %vm1931_vm9, %v10579_v62 }
 0x5b8   : > { %v5225_v4 = vadd.f32 %v10220_v47, %v3948_v28 }
 0x5b9   : > { %v10599_v45 = vpop.f32.mrf.mxu0 }
 0x5ba   : > { %v5289_v25 = vmax.f32 %v5225_v4, 0.0 }
 0x5bb   : > { %v3409_v42 = vpop.f32.mrf.mxu2 }
 0x5bc   : > { %v3410_v26 = vadd.f32 %v3409_v42, %v3321_v44  ;;  %v10590_v32 = vpop.f32.mrf.mxu3  ;;  %v11634_v42 = vld [vmem:[#allocation68_spill] sm:$0xff] }
 0x5bd   : > { %11631 = vst [vmem:[#allocation45_spill] sm:$0xff] %v10590_v32  ;;  %v3324_v63 = vadd.f32 %v11634_v42, %v2971_v18  ;;  %v11635_v32 = vld [vmem:[#allocation148_spill] sm:$0xff]  ;;  %v11640_v18 = vld [vmem:[#allocation70_spill] sm:$0xff]  ;;  %v7527_v42 = vld [vmem:[#allocation2 + $0x1a8] sm:$0xf0] }
 0x5be   : > { %v3949_v38 = vadd.f32 %v3910_v39, %v3410_v26  ;;  %v3913_v60 = vadd.f32 %v11636_v22, %v11635_v32  ;;  %v11639_v26 = vld [vmem:[#allocation158_spill] sm:$0xff] }
 0x5c0   : > { %v5226_v40 = vadd.f32 %v10220_v47, %v3949_v38  ;;  %7601 = vmatmul.msk.bf16.gmra.mxu2 %vm1931_vm9, %v7522_v56  ;;  %v2973_v38 = vadd.f32 %v11639_v26, %v11638_v29  ;;  %v8261_v56 = vld [vmem:[#allocation2 + $0x1a4] sm:$0xf]  ;;  %v11645_v26 = vld [vmem:[#allocation161_spill] sm:$0xff] }
 0x5c1   : > { %7938 = vmatmul.msk.bf16.gmra.mxu3 %vm1931_vm9, %v10448_v17 }
 0x5c2   : > { %v5290_v44 = vmax.f32 %v5226_v40, 0.0  ;;  %v5559_v40 = vld [vmem:[%s11318_s6] sm:$0x3]  ;;  %v3326_v4 = vadd.f32 %v11640_v18, %v2973_v38  ;;  %v7530_v18 = vor.u32 %v8261_v56, %v7527_v42  ;;  %v5431_v56 = vunpack.c.l.bf16 %v5367_v30  ;;  %v11647_v42 = vld [vmem:[#allocation155_spill] sm:$0xff] }
 0x5c3   : > { %v3412_v37 = vpop.f32.mrf.mxu2 }
 0x5c4   : > { %v3413_v28 = vadd.f32 %v3412_v37, %v3324_v63  ;;  %v10604_v39 = vpop.f32.mrf.mxu3  ;;  %v10606_v36 = vpack.c.bf16 %v5290_v44, %v5289_v25  ;;  %v11641_v63 = vld [vmem:[#allocation151_spill] sm:$0xff]  ;;  %v11642_v37 = vld [vmem:[#allocation86_spill] sm:$0xff]  ;;  %v10618_v44 = vpop.f32.mrf.mxu0 }
 0x5c5   : > { %11637 = vst [vmem:[#allocation41_spill] sm:$0xff] %v10604_v39  ;;  %v3915_v25 = vadd.f32 %v11642_v37, %v11641_v63  ;;  %v5432_v63 = vunpack.c.h.bf16 %v5367_v30 }
 0x5c6   : > { %v3950_v17 = vadd.f32 %v3913_v60, %v3413_v28  ;;  %7976 = vmatmul.msk.bf16.gmra.mxu0 %vm1931_vm9, %v10606_v36  ;;  %v10622_v60 = vperm.slane %v5559_v40, 1  ;;  %v11644_v28 = vld [vmem:[#allocation76_spill] sm:$0xff] }
 0x5c7   : > { %v2976_v39 = vadd.f32 %v11645_v26, %v11644_v28  ;;  %v11646_v26 = vld [vmem:[#allocation72_spill] sm:$0xff] }
 0x5c8   : > { %v5227_v2 = vadd.f32 %v10220_v47, %v3950_v17 }
 0x5c9   : > { %v3329_v17 = vadd.f32 %v11646_v26, %v2976_v39 }
 0x5ca   : > { %v5291_v37 = vmax.f32 %v5227_v2, 0.0 }
 0x5cb   : > { %v3414_v32 = vpop.f32.mrf.mxu2 }
 0x5cc   : > { %v3415_v22 = vadd.f32 %v3414_v32, %v3326_v4  ;;  %v10620_v29 = vpop.f32.mrf.mxu3  ;;  %v5880_v4 = vadd.f32 %v10516_v46, %v10622_v60  ;;  %v10634_v32 = vperm.slane %v5559_v40, 0  ;;  %v5368_v40 = vld [vmem:[%s8637_s16 + $0x8] sm:$0xff]  ;;  %v10645_v2 = vpop.f32.mrf.mxu0 }
 0x5cd   : > { %11643 = vst [vmem:[#allocation36_spill] sm:$0xff] %v10620_v29  ;;  %v5434_v26 = vunpack.c.h.bf16 %v5368_v40 }
 0x5ce   : > { %v3951_v38 = vadd.f32 %v3915_v25, %v3415_v22  ;;  %v11648_v22 = vld [vmem:[#allocation89_spill] sm:$0xff]  ;;  %v6040_v3 = vadd.f32 %v5880_v4, %v5432_v63  ;;  %v5882_v63 = vadd.f32 %v10533_v5, %v10622_v60  ;;  %v5369_v5 = vld [vmem:[%s8637_s16 + $0x10] sm:$0xff] }
 0x5d0   : > { %v5228_v50 = vadd.f32 %v10220_v47, %v3951_v38  ;;  %7602 = vmatmul.msk.bf16.gmra.mxu2 %vm1931_vm9, %v7530_v18  ;;  %v3918_v38 = vadd.f32 %v11648_v22, %v11647_v42  ;;  %v6168_v39 = vmax.f32 %v6040_v3, 0.0  ;;  %v11651_v42 = vld [vmem:[#allocation159_spill] sm:$0xff] }
 0x5d1   : > { %7939 = vmatmul.msk.bf16.gmra.mxu3 %vm1931_vm9, %v10475_v52  ;;  %v2978_v52 = vadd.f32 %v10195_v34, %v11649_v58  ;;  %v5433_v58 = vunpack.c.l.bf16 %v5368_v40  ;;  %v11652_v22 = vld [vmem:[#allocation91_spill] sm:$0xff] }
 0x5d2   : > { %v5292_v28 = vmax.f32 %v5228_v50, 0.0 }
 0x5d3   : > { %v3417_v25 = vpop.f32.mrf.mxu2 }
 0x5d4   : > { %v3418_v18 = vadd.f32 %v3417_v25, %v3329_v17  ;;  %v5710_v29 = vpop.f32.mrf.mxu3  ;;  %v10639_v10 = vpack.c.bf16 %v5292_v28, %v5291_v37  ;;  %v8263_v17 = vld [vmem:[#allocation2 + $0x1b4] sm:$0xf]  ;;  %v7535_v25 = vld [vmem:[#allocation2 + $0x1b8] sm:$0xf0] }
 0x5d5   : > { %v5711_v46 = vadd.f32 %v5710_v29, %v10634_v32  ;;  %v11650_v29 = vld [vmem:[#allocation75_spill] sm:$0xff]  ;;  %v7538_v40 = vor.u32 %v8263_v17, %v7535_v25 }
 0x5d6   : > { %v3952_v50 = vadd.f32 %v3918_v38, %v3418_v18  ;;  %7977 = vmatmul.msk.bf16.gmra.mxu0 %vm1931_vm9, %v10639_v10  ;;  %v3331_v37 = vadd.f32 %v11650_v29, %v2978_v52  ;;  %v3920_v38 = vadd.f32 %v11652_v22, %v11651_v42  ;;  %v5885_v29 = vadd.f32 %v10550_v61, %v10622_v60  ;;  %v5370_v22 = vld [vmem:[%s8637_s16 + $0x18] sm:$0xff] }
 0x5d7   : > { %v6039_v30 = vadd.f32 %v5711_v46, %v5431_v56  ;;  %v6042_v56 = vadd.f32 %v5882_v63, %v5434_v26  ;;  %v5436_v63 = vunpack.c.h.bf16 %v5369_v5 }
 0x5d8   : > { %v5229_v46 = vadd.f32 %v10220_v47, %v3952_v50 }
 0x5d9   : > { %v6167_v4 = vmax.f32 %v6039_v30, 0.0  ;;  %v6170_v26 = vmax.f32 %v6042_v56, 0.0  ;;  %v6044_v25 = vadd.f32 %v5885_v29, %v5436_v63  ;;  %v5371_v29 = vld [vmem:[%s8637_s16 + $0x20] sm:$0xff] }
 0x5da   : > { %v5293_v50 = vmax.f32 %v5229_v46, 0.0 }
 0x5db   : > { %v6295_v28 = vpack.c.bf16 %v6168_v39, %v6167_v4  ;;  %v3419_v34 = vpop.f32.mrf.mxu2  ;;  %v10662_v39 = vpop.f32.mrf.mxu0  ;;  %v6172_v61 = vmax.f32 %v6044_v25, 0.0 }
 0x5dc   : > { %v3420_v18 = vadd.f32 %v3419_v34, %v3331_v37  ;;  %v5712_v21 = vpop.f32.mrf.mxu3 }
 0x5dd   : > { %6359 = vst [vmem:[%s10656_s11] sm:$0xff] %v6295_v28  ;;  %v5713_v3 = vadd.f32 %v5712_v21, %v10634_v32 }
 0x5de   : > { %v3953_v52 = vadd.f32 %v3920_v38, %v3420_v18  ;;  %v5438_v38 = vunpack.c.h.bf16 %v5370_v22  ;;  %v5887_v18 = vadd.f32 %v10567_v54, %v10622_v60 }
 0x5df   : > { %v6041_v30 = vadd.f32 %v5713_v3, %v5433_v58  ;;  %v5435_v58 = vunpack.c.l.bf16 %v5369_v5 }
 0x5e0   : > { %v5230_v4 = vadd.f32 %v10220_v47, %v3953_v52  ;;  %7603 = vmatmul.msk.bf16.gmra.mxu2 %vm1931_vm9, %v7538_v40  ;;  %v5437_v52 = vunpack.c.l.bf16 %v5370_v22  ;;  %v8265_v40 = vld [vmem:[#allocation2 + $0x1c4] sm:$0xf] }
 0x5e1   : > { %v6169_v21 = vmax.f32 %v6041_v30, 0.0  ;;  %7940 = vmatmul.msk.bf16.gmra.mxu3 %vm1931_vm9, %v10500_v6  ;;  %v7543_v30 = vld [vmem:[#allocation2 + $0x1c8] sm:$0xf0] }
 0x5e2   : > { %v5294_v37 = vmax.f32 %v5230_v4, 0.0 }
 0x5e3   : > { %v6296_v28 = vpack.c.bf16 %v6170_v26, %v6169_v21  ;;  %v10670_v34 = vpop.f32.mrf.mxu2  ;;  %v10681_v3 = vpop.f32.mrf.mxu0  ;;  %v6046_v26 = vadd.f32 %v5887_v18, %v5438_v38  ;;  %v7546_v21 = vor.u32 %v8265_v40, %v7543_v30  ;;  %v5372_v18 = vld [vmem:[%s8637_s16 + $0x28] sm:$0xff] }
 0x5e4   : > { %v5715_v17 = vpop.f32.mrf.mxu3  ;;  %v10672_v47 = vpack.c.bf16 %v5294_v37, %v5293_v50  ;;  %v5440_v37 = vunpack.c.h.bf16 %v5371_v29 }
 0x5e5   : > { %6360 = vst [vmem:[%s10656_s11 + $0x8] sm:$0xff] %v6296_v28  ;;  %v5716_v42 = vadd.f32 %v5715_v17, %v10634_v32  ;;  %v6174_v54 = vmax.f32 %v6046_v26, 0.0  ;;  %v5890_v28 = vadd.f32 %v10585_v59, %v10622_v60  ;;  %v8267_v26 = vld [vmem:[#allocation2 + $0x1d4] sm:$0xf] }
 0x5e6   : > { %7978 = vmatmul.msk.bf16.gmra.mxu0 %vm1931_vm9, %v10672_v47 }
 0x5e7   : > { %v6043_v6 = vadd.f32 %v5716_v42, %v5435_v58  ;;  %v5439_v42 = vunpack.c.l.bf16 %v5371_v29 }
 0x5e9   : > { %v6171_v56 = vmax.f32 %v6043_v6, 0.0 }
 0x5eb   : > { %v6297_v5 = vpack.c.bf16 %v6172_v61, %v6171_v56  ;;  %v10683_v46 = vpop.f32.mrf.mxu2  ;;  %v10695_v22 = vpop.f32.mrf.mxu0  ;;  %v6048_v61 = vadd.f32 %v5890_v28, %v5440_v37 }
 0x5ec   : > { %v5717_v4 = vpop.f32.mrf.mxu3 }
 0x5ed   : > { %6361 = vst [vmem:[%s10656_s11 + $0x10] sm:$0xff] %v6297_v5  ;;  %v5718_v63 = vadd.f32 %v5717_v4, %v10634_v32  ;;  %v6176_v59 = vmax.f32 %v6048_v61, 0.0  ;;  %v5442_v5 = vunpack.c.h.bf16 %v5372_v18  ;;  %v5441_v4 = vunpack.c.l.bf16 %v5372_v18 }
 0x5ef   : > { %v6045_v50 = vadd.f32 %v5718_v63, %v5437_v52  ;;  %v7551_v63 = vld [vmem:[#allocation2 + $0x1d8] sm:$0xf0] }
 0x5f0   : > { %7604 = vmatmul.msk.bf16.gmra.mxu2 %vm1931_vm9, %v7546_v21  ;;  %v7554_v28 = vor.u32 %v8267_v26, %v7551_v63 }
 0x5f1   : > { %v6173_v58 = vmax.f32 %v6045_v50, 0.0  ;;  %7941 = vmatmul.msk.bf16.gmra.mxu3 %vm1931_vm9, %v10527_v0  ;;  %v5892_v0 = vadd.f32 %v10599_v45, %v10622_v60 }
 0x5f3   : > { %v6298_v17 = vpack.c.bf16 %v6174_v54, %v6173_v58  ;;  %v10693_v25 = vpop.f32.mrf.mxu2  ;;  %v6050_v21 = vadd.f32 %v5892_v0, %v5442_v5  ;;  %v5373_v54 = vld [vmem:[%s8637_s16 + $0x30] sm:$0xff]  ;;  %v10707_v37 = vpop.f32.mrf.mxu0  ;;  %v5374_v0 = vld [vmem:[%s8637_s16 + $0x38] sm:$0xff] }
 0x5f4   : > { %v5720_v6 = vpop.f32.mrf.mxu3  ;;  %v5443_v18 = vunpack.c.l.bf16 %v5373_v54 }
 0x5f5   : > { %6362 = vst [vmem:[%s10656_s11 + $0x18] sm:$0xff] %v6298_v17  ;;  %v5721_v38 = vadd.f32 %v5720_v6, %v10634_v32  ;;  %v6178_v45 = vmax.f32 %v6050_v21, 0.0  ;;  %v5444_v17 = vunpack.c.h.bf16 %v5373_v54  ;;  %v5445_v21 = vunpack.c.l.bf16 %v5374_v0  ;;  %v7559_v54 = vld [vmem:[#allocation2 + $0x1e8] sm:$0xf0] }
 0x5f7   : > { %v6047_v56 = vadd.f32 %v5721_v38, %v5439_v42  ;;  %v5895_v42 = vadd.f32 %v10618_v44, %v10622_v60 }
 0x5f9   : > { %v6175_v52 = vmax.f32 %v6047_v56, 0.0 }
 0x5fb   : > { %v6299_v40 = vpack.c.bf16 %v6176_v59, %v6175_v52  ;;  %v10702_v30 = vpop.f32.mrf.mxu2  ;;  %v6052_v59 = vadd.f32 %v5895_v42, %v5444_v17  ;;  %v5375_v17 = vld [vmem:[%s8637_s16 + $0x40] sm:$0xff] }
 0x5fc   : > { %v5722_v29 = vpop.f32.mrf.mxu3 }
 0x5fd   : > { %6363 = vst [vmem:[%s10656_s11 + $0x20] sm:$0xff] %v6299_v40  ;;  %v5723_v50 = vadd.f32 %v5722_v29, %v10634_v32  ;;  %v10719_v40 = vpop.f32.mrf.mxu0  ;;  %v6180_v44 = vmax.f32 %v6052_v59, 0.0 }
 0x5ff   : > { %v6049_v58 = vadd.f32 %v5723_v50, %v5441_v4  ;;  %v5446_v4 = vunpack.c.h.bf16 %v5374_v0  ;;  %v8269_v50 = vld [vmem:[#allocation2 + $0x1e4] sm:$0xf] }
 0x600   : > { %7605 = vmatmul.msk.bf16.gmra.mxu2 %vm1931_vm9, %v7554_v28  ;;  %v7562_v42 = vor.u32 %v8269_v50, %v7559_v54 }
 0x601   : > { %v6177_v6 = vmax.f32 %v6049_v58, 0.0  ;;  %7942 = vmatmul.msk.bf16.gmra.mxu3 %vm1931_vm9, %v10554_v41  ;;  %v5897_v41 = vadd.f32 %v10645_v2, %v10622_v60 }
 0x603   : > { %v6300_v61 = vpack.c.bf16 %v6178_v45, %v6177_v6  ;;  %v10714_v38 = vpop.f32.mrf.mxu2  ;;  %v6054_v58 = vadd.f32 %v5897_v41, %v5446_v4 }
 0x604   : > { %v5725_v56 = vpop.f32.mrf.mxu3 }
 0x605   : > { %6364 = vst [vmem:[%s10656_s11 + $0x28] sm:$0xff] %v6300_v61  ;;  %v5726_v5 = vadd.f32 %v5725_v56, %v10634_v32  ;;  %v6182_v2 = vmax.f32 %v6054_v58, 0.0  ;;  %v5448_v61 = vunpack.c.h.bf16 %v5375_v17  ;;  %v10733_v59 = vpop.f32.mrf.mxu0 }
 0x607   : > { %v6051_v52 = vadd.f32 %v5726_v5, %v5443_v18  ;;  %v5900_v18 = vadd.f32 %v10662_v39, %v10622_v60 }
 0x609   : > { %v6179_v26 = vmax.f32 %v6051_v52, 0.0  ;;  %v5447_v52 = vunpack.c.l.bf16 %v5375_v17  ;;  %v6056_v4 = vadd.f32 %v5900_v18, %v5448_v61  ;;  %v7567_v17 = vld [vmem:[#allocation2 + $0x1f8] sm:$0xf0]  ;;  %v5377_v18 = vld [vmem:[%s8637_s16 + $0x50] sm:$0xff] }
 0x60b   : > { %v6301_v63 = vpack.c.bf16 %v6180_v44, %v6179_v26  ;;  %v10723_v29 = vpop.f32.mrf.mxu2  ;;  %v5376_v26 = vld [vmem:[%s8637_s16 + $0x48] sm:$0xff]  ;;  %v6184_v39 = vmax.f32 %v6056_v4, 0.0 }
 0x60c   : > { %v5727_v28 = vpop.f32.mrf.mxu3  ;;  %v5449_v58 = vunpack.c.l.bf16 %v5376_v26 }
 0x60d   : > { %6365 = vst [vmem:[%s10656_s11 + $0x30] sm:$0xff] %v6301_v63  ;;  %v5728_v45 = vadd.f32 %v5727_v28, %v10634_v32 }
 0x60f   : > { %v6053_v6 = vadd.f32 %v5728_v45, %v5445_v21  ;;  %v5450_v21 = vunpack.c.h.bf16 %v5376_v26  ;;  %v8271_v45 = vld [vmem:[#allocation2 + $0x1f4] sm:$0xf] }
 0x610   : > { %7606 = vmatmul.msk.bf16.gmra.mxu2 %vm1931_vm9, %v7562_v42  ;;  %v10744_v42 = vpop.f32.mrf.mxu0 }
 0x611   : > { %v6181_v56 = vmax.f32 %v6053_v6, 0.0  ;;  %7943 = vmatmul.msk.bf16.gmra.mxu3 %vm1931_vm9, %v10579_v62  ;;  %v5902_v62 = vadd.f32 %v10681_v3, %v10622_v60 }
 0x613   : > { %v6302_v5 = vpack.c.bf16 %v6182_v2, %v6181_v56  ;;  %v10735_v0 = vpop.f32.mrf.mxu2  ;;  %v6058_v2 = vadd.f32 %v5902_v62, %v5450_v21  ;;  %v7570_v56 = vor.u32 %v8271_v45, %v7567_v17 }
 0x614   : > { %v5730_v44 = vpop.f32.mrf.mxu3 }
 0x615   : > { %6366 = vst [vmem:[%s10656_s11 + $0x38] sm:$0xff] %v6302_v5  ;;  %v5731_v41 = vadd.f32 %v5730_v44, %v10634_v32  ;;  %v6186_v3 = vmax.f32 %v6058_v2, 0.0  ;;  %v5905_v44 = vadd.f32 %v10695_v22, %v10622_v60 }
 0x617   : > { %v6055_v63 = vadd.f32 %v5731_v41, %v5447_v52  ;;  %v5452_v52 = vunpack.c.h.bf16 %v5377_v18 }
 0x619   : > { %v6183_v50 = vmax.f32 %v6055_v63, 0.0  ;;  %v5451_v63 = vunpack.c.l.bf16 %v5377_v18  ;;  %v6060_v21 = vadd.f32 %v5905_v44, %v5452_v52  ;;  %v8273_v18 = vld [vmem:[#allocation2 + $0x204] sm:$0xf] }
 0x61a   : > { %v5379_v44 = vld [vmem:[%s8637_s16 + $0x60] sm:$0xff] }
 0x61b   : > { %v6303_v54 = vpack.c.bf16 %v6184_v39, %v6183_v50  ;;  %v10742_v28 = vpop.f32.mrf.mxu2  ;;  %v5378_v50 = vld [vmem:[%s8637_s16 + $0x58] sm:$0xff]  ;;  %v6188_v22 = vmax.f32 %v6060_v21, 0.0  ;;  %v5910_v21 = vadd.f32 %v10719_v40, %v10622_v60  ;;  %v5912_v40 = vadd.f32 %v10733_v59, %v10622_v60 }
 0x61c   : > { %v5732_v6 = vpop.f32.mrf.mxu3  ;;  %v5454_v45 = vunpack.c.h.bf16 %v5378_v50 }
 0x61d   : > { %6367 = vst [vmem:[%s10656_s11 + $0x40] sm:$0xff] %v6303_v54  ;;  %v5733_v61 = vadd.f32 %v5732_v6, %v10634_v32  ;;  %v10759_v54 = vpop.f32.mrf.mxu0 }
 0x61f   : > { %v6057_v5 = vadd.f32 %v5733_v61, %v5449_v58  ;;  %v5453_v61 = vunpack.c.l.bf16 %v5378_v50 }
 0x620   : > { %7607 = vmatmul.msk.bf16.gmra.mxu2 %vm1931_vm9, %v7570_v56  ;;  %v7575_v56 = vld [vmem:[#allocation2 + $0x208] sm:$0xf0] }
 0x621   : > { %v6185_v4 = vmax.f32 %v6057_v5, 0.0  ;;  %7944 = vmatmul.msk.bf16.gmra.mxu3 %vm1931_vm9, %v10606_v36  ;;  %v5907_v36 = vadd.f32 %v10707_v37, %v10622_v60 }
 0x623   : > { %v6304_v41 = vpack.c.bf16 %v6186_v3, %v6185_v4  ;;  %v10754_v26 = vpop.f32.mrf.mxu2  ;;  %v6062_v3 = vadd.f32 %v5907_v36, %v5454_v45  ;;  %v7578_v4 = vor.u32 %v8273_v18, %v7575_v56 }
 0x624   : > { %v5735_v39 = vpop.f32.mrf.mxu3 }
 0x625   : > { %6368 = vst [vmem:[%s10656_s11 + $0x48] sm:$0xff] %v6304_v41  ;;  %v5736_v62 = vadd.f32 %v5735_v39, %v10634_v32  ;;  %v6190_v37 = vmax.f32 %v6062_v3, 0.0  ;;  %v5456_v39 = vunpack.c.h.bf16 %v5379_v44 }
 0x627   : > { %v6059_v58 = vadd.f32 %v5736_v62, %v5451_v63  ;;  %v10768_v63 = vpop.f32.mrf.mxu0  ;;  %v6064_v36 = vadd.f32 %v5910_v21, %v5456_v39 }
 0x629   : > { %v6187_v17 = vmax.f32 %v6059_v58, 0.0  ;;  %v6192_v18 = vmax.f32 %v6064_v36, 0.0  ;;  %v5915_v36 = vadd.f32 %v10744_v42, %v10622_v60 }
 0x62b   : > { %v6305_v6 = vpack.c.bf16 %v6188_v22, %v6187_v17  ;;  %v10763_v2 = vpop.f32.mrf.mxu2  ;;  %v5455_v22 = vunpack.c.l.bf16 %v5379_v44 }
 0x62c   : > { %v5737_v5 = vpop.f32.mrf.mxu3 }
 0x62d   : > { %6369 = vst [vmem:[%s10656_s11 + $0x50] sm:$0xff] %v6305_v6  ;;  %v5738_v52 = vadd.f32 %v5737_v5, %v10634_v32  ;;  %v5380_v6 = vld [vmem:[%s8637_s16 + $0x68] sm:$0xff] }
 0x62e   : > { %v5458_v56 = vunpack.c.h.bf16 %v5380_v6  ;;  %v5457_v44 = vunpack.c.l.bf16 %v5380_v6 }
 0x62f   : > { %v6061_v41 = vadd.f32 %v5738_v52, %v5453_v61 }
 0x630   : > { %7608 = vmatmul.msk.bf16.gmra.mxu2 %vm1931_vm9, %v7578_v4  ;;  %v8275_v4 = vld [vmem:[#allocation2 + $0x214] sm:$0xf]  ;;  %v6066_v39 = vadd.f32 %v5912_v40, %v5458_v56 }
 0x631   : > { %v6189_v62 = vmax.f32 %v6061_v41, 0.0  ;;  %7945 = vmatmul.msk.bf16.gmra.mxu3 %vm1931_vm9, %v10639_v10  ;;  %v10782_v10 = vpop.f32.mrf.mxu0  ;;  %v7583_v41 = vld [vmem:[#allocation2 + $0x218] sm:$0xf0] }
 0x632   : > { %v6194_v59 = vmax.f32 %v6066_v39, 0.0 }
 0x633   : > { %v6306_v50 = vpack.c.bf16 %v6190_v37, %v6189_v62  ;;  %v10775_v58 = vpop.f32.mrf.mxu2  ;;  %v5381_v62 = vld [vmem:[%s8637_s16 + $0x70] sm:$0xff] }
 0x634   : > { %v5740_v45 = vpop.f32.mrf.mxu3 }
 0x635   : > { %6370 = vst [vmem:[%s10656_s11 + $0x58] sm:$0xff] %v6306_v50  ;;  %v5741_v17 = vadd.f32 %v5740_v45, %v10634_v32  ;;  %v7586_v50 = vor.u32 %v8275_v4, %v7583_v41  ;;  %v5460_v45 = vunpack.c.h.bf16 %v5381_v62 }
 0x637   : > { %v6063_v61 = vadd.f32 %v5741_v17, %v5455_v22 }
 0x639   : > { %v6191_v5 = vmax.f32 %v6063_v61, 0.0  ;;  %v5924_v56 = vpop.f32.mrf.mxu0 }
 0x63b   : > { %v6307_v3 = vpack.c.bf16 %v6192_v18, %v6191_v5  ;;  %v10784_v52 = vpop.f32.mrf.mxu2  ;;  %v5459_v18 = vunpack.c.l.bf16 %v5381_v62  ;;  %v6068_v5 = vadd.f32 %v5915_v36, %v5460_v45 }
 0x63c   : > { %v5742_v37 = vpop.f32.mrf.mxu3 }
 0x63d   : > { %6371 = vst [vmem:[%s10656_s11 + $0x60] sm:$0xff] %v6307_v3  ;;  %v5743_v21 = vadd.f32 %v5742_v37, %v10634_v32  ;;  %v6196_v41 = vmax.f32 %v6068_v5, 0.0  ;;  %v5917_v37 = vadd.f32 %v10759_v54, %v10622_v60 }
 0x63f   : > { %v6065_v22 = vadd.f32 %v5743_v21, %v5457_v44  ;;  %v5382_v44 = vld [vmem:[%s8637_s16 + $0x78] sm:$0xff] }
 0x640   : > { %7609 = vmatmul.msk.bf16.gmra.mxu2 %vm1931_vm9, %v7586_v50  ;;  %v5462_v42 = vunpack.c.h.bf16 %v5382_v44  ;;  %v5461_v62 = vunpack.c.l.bf16 %v5382_v44  ;;  %v8277_v50 = vld [vmem:[#allocation2 + $0x224] sm:$0xf] }
 0x641   : > { %v6193_v17 = vmax.f32 %v6065_v22, 0.0  ;;  %7946 = vmatmul.msk.bf16.gmra.mxu3 %vm1931_vm9, %v10672_v47  ;;  %v7591_v22 = vld [vmem:[#allocation2 + $0x228] sm:$0xf0] }
 0x642   : > { %v6070_v45 = vadd.f32 %v5917_v37, %v5462_v42 }
 0x643   : > { %v6308_v6 = vpack.c.bf16 %v6194_v59, %v6193_v17  ;;  %v10794_v61 = vpop.f32.mrf.mxu2  ;;  %v5383_v17 = vld [vmem:[%s8637_s16 + $0x80] sm:$0xff] }
 0x644   : > { %v5745_v40 = vpop.f32.mrf.mxu3  ;;  %v6198_v54 = vmax.f32 %v6070_v45, 0.0  ;;  %v5464_v5 = vunpack.c.h.bf16 %v5383_v17  ;;  %v5463_v42 = vunpack.c.l.bf16 %v5383_v17 }
 0x645   : > { %6372 = vst [vmem:[%s10656_s11 + $0x68] sm:$0xff] %v6308_v6  ;;  %v5746_v3 = vadd.f32 %v5745_v40, %v10634_v32  ;;  %v5926_v6 = vpop.f32.mrf.mxu0 }
 0x647   : > { %v6067_v4 = vadd.f32 %v5746_v3, %v5459_v18  ;;  %v7594_v18 = vor.u32 %v8277_v50, %v7591_v22  ;;  %v5920_v3 = vadd.f32 %v10768_v63, %v10622_v60  ;;  %v5384_v50 = vld [vmem:[%s8637_s16 + $0x88] sm:$0xff]  ;;  %v5922_v63 = vadd.f32 %v10782_v10, %v10622_v60 }
 0x648   : > { %v5466_v45 = vunpack.c.h.bf16 %v5384_v50  ;;  %v5465_v17 = vunpack.c.l.bf16 %v5384_v50 }
 0x649   : > { %v6195_v47 = vmax.f32 %v6067_v4, 0.0 }
 0x64b   : > { %v6309_v39 = vpack.c.bf16 %v6196_v41, %v6195_v47  ;;  %v10801_v21 = vpop.f32.mrf.mxu2  ;;  %v6072_v47 = vadd.f32 %v5920_v3, %v5464_v5  ;;  %v7759_v5 = vld [vmem:[#allocation2 + $0x148] sm:$0xf0] }
 0x64c   : > { %v5747_v59 = vpop.f32.mrf.mxu3 }
 0x64d   : > { %6373 = vst [vmem:[%s10656_s11 + $0x70] sm:$0xff] %v6309_v39  ;;  %v5748_v36 = vadd.f32 %v5747_v59, %v10634_v32  ;;  %v5929_v22 = vpop.f32.mrf.mxu0  ;;  %v6200_v59 = vmax.f32 %v6072_v47, 0.0 }
 0x64f   : > { %v6069_v40 = vadd.f32 %v5748_v36, %v5461_v62 }
 0x650   : > { %7610 = vmatmul.msk.bf16.gmra.mxu2 %vm1931_vm9, %v7594_v18 }
 0x651   : > { %v6197_v44 = vmax.f32 %v6069_v40, 0.0 }
 0x653   : > { %v6310_v4 = vpack.c.bf16 %v6198_v54, %v6197_v44  ;;  %v10809_v41 = vpop.f32.mrf.mxu2  ;;  %v8279_v54 = vld [vmem:[#allocation2 + $0x144] sm:$0xf]  ;;  %v6074_v44 = vadd.f32 %v5922_v63, %v5466_v45 }
 0x654   : > { %v5750_v37 = vpop.f32.mrf.mxu3 }
 0x655   : > { %6374 = vst [vmem:[%s10656_s11 + $0x78] sm:$0xff] %v6310_v4  ;;  %v5751_v39 = vadd.f32 %v5750_v37, %v10634_v32  ;;  %v7762_v37 = vor.u32 %v8279_v54, %v7759_v5  ;;  %v6202_v10 = vmax.f32 %v6074_v44, 0.0  ;;  %v5931_v50 = vpop.f32.mrf.mxu0  ;;  %v5386_v54 = vld [vmem:[%s8637_s16 + $0x98] sm:$0xff] }
 0x656   : > { %v5470_v44 = vunpack.c.h.bf16 %v5386_v54 }
 0x657   : > { %v6071_v62 = vadd.f32 %v5751_v39, %v5463_v42  ;;  %v5385_v42 = vld [vmem:[%s8637_s16 + $0x90] sm:$0xff] }
 0x658   : > { %v5468_v39 = vunpack.c.h.bf16 %v5385_v42  ;;  %v5467_v45 = vunpack.c.l.bf16 %v5385_v42  ;;  %v7767_v42 = vld [vmem:[#allocation2 + $0x158] sm:$0xf0] }
 0x659   : > { %v6199_v36 = vmax.f32 %v6071_v62, 0.0  ;;  %v5925_v62 = vadd.f32 %v5924_v56, %v10622_v60 }
 0x65b   : > { %v6311_v18 = vpack.c.bf16 %v6200_v59, %v6199_v36  ;;  %v10816_v40 = vpop.f32.mrf.mxu2 }
 0x65c   : > { %v5752_v3 = vpop.f32.mrf.mxu3 }
 0x65d   : > { %6375 = vst [vmem:[%s10656_s11 + $0x80] sm:$0xff] %v6311_v18  ;;  %v5753_v4 = vadd.f32 %v5752_v3, %v10634_v32  ;;  %v6076_v18 = vadd.f32 %v5925_v62, %v5468_v39  ;;  %v5934_v27 = vpop.f32.mrf.mxu0 }
 0x65f   : > { %v6073_v47 = vadd.f32 %v5753_v4, %v5465_v17  ;;  %v6204_v5 = vmax.f32 %v6076_v18, 0.0  ;;  %v5927_v4 = vadd.f32 %v5926_v6, %v10622_v60 }
 0x660   : > { %7883 = vmatmul.msk.bf16.vlgmr.msra.gmra.mxu2 %vm1931_vm9, %v7762_v37 }
 0x661   : > { %v6201_v59 = vmax.f32 %v6073_v47, 0.0  ;;  %v6078_v62 = vadd.f32 %v5927_v4, %v5470_v44 }
 0x663   : > { %v6312_v36 = vpack.c.bf16 %v6202_v10, %v6201_v59  ;;  %v10823_v23 = vpop.f32.mrf.mxu2  ;;  %v5469_v10 = vunpack.c.l.bf16 %v5386_v54  ;;  %v8281_v59 = vld [vmem:[#allocation2 + $0x154] sm:$0xf]  ;;  %v6206_v6 = vmax.f32 %v6078_v62, 0.0 }
 0x664   : > { %v5755_v63 = vpop.f32.mrf.mxu3 }
 0x665   : > { %6376 = vst [vmem:[%s10656_s11 + $0x88] sm:$0xff] %v6312_v36  ;;  %v5756_v3 = vadd.f32 %v5755_v63, %v10634_v32  ;;  %v7770_v63 = vor.u32 %v8281_v59, %v7767_v42 }
 0x667   : > { %v6075_v17 = vadd.f32 %v5756_v3, %v5467_v45  ;;  %v5387_v45 = vld [vmem:[%s8637_s16 + $0xa0] sm:$0xff] }
 0x668   : > { %v5472_v3 = vunpack.c.h.bf16 %v5387_v45 }
 0x669   : > { %v6203_v56 = vmax.f32 %v6075_v17, 0.0  ;;  %v5930_v17 = vadd.f32 %v5929_v22, %v10622_v60 }
 0x66b   : > { %v6313_v37 = vpack.c.bf16 %v6204_v5, %v6203_v56  ;;  %v10829_v47 = vpop.f32.mrf.mxu2  ;;  %v6080_v4 = vadd.f32 %v5930_v17, %v5472_v3 }
 0x66c   : > { %11653 = vst [vmem:[#allocation48_spill] sm:$0xff] %v10829_v47  ;;  %v5757_v39 = vpop.f32.mrf.mxu3  ;;  %v5471_v47 = vunpack.c.l.bf16 %v5387_v45  ;;  %v8283_v45 = vld [vmem:[#allocation2 + $0x164] sm:$0xf] }
 0x66d   : > { %6377 = vst [vmem:[%s10656_s11 + $0x90] sm:$0xff] %v6313_v37  ;;  %v5758_v36 = vadd.f32 %v5757_v39, %v10634_v32  ;;  %v5388_v39 = vld [vmem:[%s8637_s16 + $0xa8] sm:$0xff]  ;;  %v6208_v42 = vmax.f32 %v6080_v4, 0.0 }
 0x66e   : > { %v5474_v62 = vunpack.c.h.bf16 %v5388_v39 }
 0x66f   : > { %v6077_v18 = vadd.f32 %v5758_v36, %v5469_v10  ;;  %v5936_v10 = vpop.f32.mrf.mxu0  ;;  %v5932_v36 = vadd.f32 %v5931_v50, %v10622_v60 }
 0x670   : > { %7884 = vmatmul.msk.bf16.gmra.mxu2 %vm1931_vm9, %v7770_v63 }
 0x671   : > { %v6205_v54 = vmax.f32 %v6077_v18, 0.0  ;;  %v6082_v17 = vadd.f32 %v5932_v36, %v5474_v62 }
 0x673   : > { %v6314_v5 = vpack.c.bf16 %v6206_v6, %v6205_v54  ;;  %v10836_v56 = vpop.f32.mrf.mxu2  ;;  %v5473_v6 = vunpack.c.l.bf16 %v5388_v39  ;;  %v7775_v54 = vld [vmem:[#allocation2 + $0x168] sm:$0xf0]  ;;  %v6210_v50 = vmax.f32 %v6082_v17, 0.0  ;;  %v5937_v17 = vadd.f32 %v5936_v10, %v10622_v60 }
 0x674   : > { %v5760_v44 = vpop.f32.mrf.mxu3 }
 0x675   : > { %6378 = vst [vmem:[%s10656_s11 + $0x98] sm:$0xff] %v6314_v5  ;;  %v5761_v37 = vadd.f32 %v5760_v44, %v10634_v32  ;;  %v5389_v44 = vld [vmem:[%s8637_s16 + $0xb0] sm:$0xff] }
 0x676   : > { %v5475_v62 = vunpack.c.l.bf16 %v5389_v44 }
 0x677   : > { %v6079_v59 = vadd.f32 %v5761_v37, %v5471_v47  ;;  %v7778_v47 = vor.u32 %v8283_v45, %v7775_v54  ;;  %v5939_v37 = vpop.f32.mrf.mxu0  ;;  %v5390_v45 = vld [vmem:[%s8637_s16 + $0xb8] sm:$0xff] }
 0x679   : > { %v6207_v22 = vmax.f32 %v6079_v59, 0.0  ;;  %v5476_v59 = vunpack.c.h.bf16 %v5389_v44  ;;  %v8285_v44 = vld [vmem:[#allocation2 + $0x174] sm:$0xf] }
 0x67b   : > { %v6315_v63 = vpack.c.bf16 %v6208_v42, %v6207_v22  ;;  %v10842_v18 = vpop.f32.mrf.mxu2  ;;  %v5935_v42 = vadd.f32 %v5934_v27, %v10622_v60 }
 0x67c   : > { %11654 = vst [vmem:[#allocation43_spill] sm:$0xff] %v10842_v18  ;;  %v5762_v3 = vpop.f32.mrf.mxu3 }
 0x67d   : > { %6379 = vst [vmem:[%s10656_s11 + $0xa0] sm:$0xff] %v6315_v63  ;;  %v5763_v5 = vadd.f32 %v5762_v3, %v10634_v32  ;;  %v6084_v63 = vadd.f32 %v5935_v42, %v5476_v59 }
 0x67f   : > { %v6081_v4 = vadd.f32 %v5763_v5, %v5473_v6  ;;  %v6212_v54 = vmax.f32 %v6084_v63, 0.0  ;;  %v5478_v5 = vunpack.c.h.bf16 %v5390_v45  ;;  %v5941_v27 = vpop.f32.mrf.mxu0 }
 0x680   : > { %7885 = vmatmul.msk.bf16.gmra.mxu2 %vm1931_vm9, %v7778_v47 }
 0x681   : > { %v6209_v39 = vmax.f32 %v6081_v4, 0.0  ;;  %v6086_v42 = vadd.f32 %v5937_v17, %v5478_v5 }
 0x683   : > { %v6316_v22 = vpack.c.bf16 %v6210_v50, %v6209_v39  ;;  %v10849_v18 = vpop.f32.mrf.mxu2  ;;  %v5477_v39 = vunpack.c.l.bf16 %v5390_v45  ;;  %v6214_v10 = vmax.f32 %v6086_v42, 0.0 }
 0x684   : > { %11655 = vst [vmem:[#allocation39_spill] sm:$0xff] %v10849_v18  ;;  %v5765_v36 = vpop.f32.mrf.mxu3  ;;  %v7783_v18 = vld [vmem:[#allocation2 + $0x178] sm:$0xf0] }
 0x685   : > { %6380 = vst [vmem:[%s10656_s11 + $0xa8] sm:$0xff] %v6316_v22  ;;  %v5766_v3 = vadd.f32 %v5765_v36, %v10634_v32  ;;  %v5391_v36 = vld [vmem:[%s8637_s16 + $0xc0] sm:$0xff] }
 0x687   : > { %v6083_v6 = vadd.f32 %v5766_v3, %v5475_v62  ;;  %v7786_v62 = vor.u32 %v8285_v44, %v7783_v18  ;;  %v5480_v3 = vunpack.c.h.bf16 %v5391_v36  ;;  %v5944_v5 = vpop.f32.mrf.mxu0  ;;  %v5392_v18 = vld [vmem:[%s8637_s16 + $0xc8] sm:$0xff] }
 0x688   : > { %v5482_v42 = vunpack.c.h.bf16 %v5392_v18 }
 0x689   : > { %v6211_v47 = vmax.f32 %v6083_v6, 0.0  ;;  %v5940_v6 = vadd.f32 %v5939_v37, %v10622_v60 }
 0x68b   : > { %v6317_v4 = vpack.c.bf16 %v6212_v54, %v6211_v47  ;;  %v10855_v50 = vpop.f32.mrf.mxu2 }
 0x68c   : > { %11656 = vst [vmem:[#allocation51_spill] sm:$0xff] %v10855_v50  ;;  %v5767_v59 = vpop.f32.mrf.mxu3  ;;  %v5479_v50 = vunpack.c.l.bf16 %v5391_v36  ;;  %v8287_v36 = vld [vmem:[#allocation2 + $0x184] sm:$0xf] }
 0x68d   : > { %6381 = vst [vmem:[%s10656_s11 + $0xb0] sm:$0xff] %v6317_v4  ;;  %v5768_v22 = vadd.f32 %v5767_v59, %v10634_v32  ;;  %v6088_v4 = vadd.f32 %v5940_v6, %v5480_v3 }
 0x68f   : > { %v6085_v63 = vadd.f32 %v5768_v22, %v5477_v39  ;;  %v6216_v44 = vmax.f32 %v6088_v4, 0.0  ;;  %v5942_v22 = vadd.f32 %v5941_v27, %v10622_v60 }
 0x690   : > { %7886 = vmatmul.msk.bf16.gmra.mxu2 %vm1931_vm9, %v7786_v62 }
 0x691   : > { %v6213_v54 = vmax.f32 %v6085_v63, 0.0  ;;  %v6090_v3 = vadd.f32 %v5942_v22, %v5482_v42 }
 0x693   : > { %v6318_v45 = vpack.c.bf16 %v6214_v10, %v6213_v54  ;;  %v10862_v47 = vpop.f32.mrf.mxu2  ;;  %v5481_v10 = vunpack.c.l.bf16 %v5392_v18  ;;  %v7791_v54 = vld [vmem:[#allocation2 + $0x188] sm:$0xf0]  ;;  %v6218_v27 = vmax.f32 %v6090_v3, 0.0 }
 0x694   : > { %11657 = vst [vmem:[#allocation46_spill] sm:$0xff] %v10862_v47  ;;  %v5770_v17 = vpop.f32.mrf.mxu3 }
 0x695   : > { %6382 = vst [vmem:[%s10656_s11 + $0xb8] sm:$0xff] %v6318_v45  ;;  %v5771_v59 = vadd.f32 %v5770_v17, %v10634_v32  ;;  %v5393_v45 = vld [vmem:[%s8637_s16 + $0xd0] sm:$0xff]  ;;  %v7794_v17 = vor.u32 %v8287_v36, %v7791_v54 }
 0x696   : > { %v5483_v42 = vunpack.c.l.bf16 %v5393_v45 }
 0x697   : > { %v6087_v39 = vadd.f32 %v5771_v59, %v5479_v50  ;;  %v5946_v50 = vpop.f32.mrf.mxu0  ;;  %v5484_v59 = vunpack.c.h.bf16 %v5393_v45  ;;  %v8289_v45 = vld [vmem:[#allocation2 + $0x194] sm:$0xf] }
 0x699   : > { %v6215_v37 = vmax.f32 %v6087_v39, 0.0  ;;  %v5945_v39 = vadd.f32 %v5944_v5, %v10622_v60 }
 0x69b   : > { %v6319_v62 = vpack.c.bf16 %v6216_v44, %v6215_v37  ;;  %v10868_v63 = vpop.f32.mrf.mxu2 }
 0x69c   : > { %11658 = vst [vmem:[#allocation117_spill] sm:$0xff] %v10868_v63  ;;  %v5772_v47 = vpop.f32.mrf.mxu3  ;;  %v5394_v63 = vld [vmem:[%s8637_s16 + $0xd8] sm:$0xff] }
 0x69d   : > { %6383 = vst [vmem:[%s10656_s11 + $0xc0] sm:$0xff] %v6319_v62  ;;  %v5773_v6 = vadd.f32 %v5772_v47, %v10634_v32  ;;  %v6092_v62 = vadd.f32 %v5945_v39, %v5484_v59  ;;  %v5486_v3 = vunpack.c.h.bf16 %v5394_v63 }
 0x69f   : > { %v6089_v4 = vadd.f32 %v5773_v6, %v5481_v10  ;;  %v5949_v36 = vpop.f32.mrf.mxu0  ;;  %v6220_v54 = vmax.f32 %v6092_v62, 0.0  ;;  %v5947_v6 = vadd.f32 %v5946_v50, %v10622_v60 }
 0x6a0   : > { %7887 = vmatmul.msk.bf16.gmra.mxu2 %vm1931_vm9, %v7794_v17 }
 0x6a1   : > { %v6217_v18 = vmax.f32 %v6089_v4, 0.0  ;;  %v6094_v39 = vadd.f32 %v5947_v6, %v5486_v3 }
 0x6a3   : > { %v6320_v44 = vpack.c.bf16 %v6218_v27, %v6217_v18  ;;  %v10875_v37 = vpop.f32.mrf.mxu2  ;;  %v5485_v27 = vunpack.c.l.bf16 %v5394_v63  ;;  %v7799_v18 = vld [vmem:[#allocation2 + $0x198] sm:$0xf0]  ;;  %v6222_v50 = vmax.f32 %v6094_v39, 0.0 }
 0x6a4   : > { %v5775_v22 = vpop.f32.mrf.mxu3 }
 0x6a5   : > { %6384 = vst [vmem:[%s10656_s11 + $0xc8] sm:$0xff] %v6320_v44  ;;  %v5776_v47 = vadd.f32 %v5775_v22, %v10634_v32  ;;  %v5395_v22 = vld [vmem:[%s8637_s16 + $0xe0] sm:$0xff] }
 0x6a6   : > { %v5487_v3 = vunpack.c.l.bf16 %v5395_v22 }
 0x6a7   : > { %v6091_v10 = vadd.f32 %v5776_v47, %v5483_v42  ;;  %v7802_v42 = vor.u32 %v8289_v45, %v7799_v18  ;;  %v5488_v47 = vunpack.c.h.bf16 %v5395_v22  ;;  %v5951_v63 = vpop.f32.mrf.mxu0  ;;  %v5396_v45 = vld [vmem:[%s8637_s16 + $0xe8] sm:$0xff] }
 0x6a8   : > { %v5490_v39 = vunpack.c.h.bf16 %v5396_v45  ;;  %v7807_v22 = vld [vmem:[#allocation2 + $0x1a8] sm:$0xf0] }
 0x6a9   : > { %v6219_v5 = vmax.f32 %v6091_v10, 0.0  ;;  %v5950_v10 = vadd.f32 %v5949_v36, %v10622_v60 }
 0x6ab   : > { %v6321_v17 = vpack.c.bf16 %v6220_v54, %v6219_v5  ;;  %v10881_v4 = vpop.f32.mrf.mxu2 }
 0x6ac   : > { %11659 = vst [vmem:[#allocation42_spill] sm:$0xff] %v10881_v4  ;;  %v5777_v59 = vpop.f32.mrf.mxu3 }
 0x6ad   : > { %6385 = vst [vmem:[%s10656_s11 + $0xd0] sm:$0xff] %v6321_v17  ;;  %v5778_v44 = vadd.f32 %v5777_v59, %v10634_v32  ;;  %v6096_v17 = vadd.f32 %v5950_v10, %v5488_v47 }
 0x6af   : > { %v6093_v62 = vadd.f32 %v5778_v44, %v5485_v27  ;;  %v6224_v18 = vmax.f32 %v6096_v17, 0.0  ;;  %v5952_v44 = vadd.f32 %v5951_v63, %v10622_v60 }
 0x6b0   : > { %7888 = vmatmul.msk.bf16.gmra.mxu2 %vm1931_vm9, %v7802_v42 }
 0x6b1   : > { %v6221_v54 = vmax.f32 %v6093_v62, 0.0  ;;  %v6098_v10 = vadd.f32 %v5952_v44, %v5490_v39 }
 0x6b3   : > { %v6322_v5 = vpack.c.bf16 %v6222_v50, %v6221_v54  ;;  %v10888_v4 = vpop.f32.mrf.mxu2  ;;  %v5489_v50 = vunpack.c.l.bf16 %v5396_v45  ;;  %v8291_v54 = vld [vmem:[#allocation2 + $0x1a4] sm:$0xf]  ;;  %v6226_v63 = vmax.f32 %v6098_v10, 0.0 }
 0x6b4   : > { %11660 = vst [vmem:[#allocation112_spill] sm:$0xff] %v10888_v4  ;;  %v5780_v6 = vpop.f32.mrf.mxu3  ;;  %v5954_v4 = vpop.f32.mrf.mxu0 }
 0x6b5   : > { %6386 = vst [vmem:[%s10656_s11 + $0xd8] sm:$0xff] %v6322_v5  ;;  %v5781_v59 = vadd.f32 %v5780_v6, %v10634_v32  ;;  %v7810_v6 = vor.u32 %v8291_v54, %v7807_v22 }
 0x6b7   : > { %v6095_v27 = vadd.f32 %v5781_v59, %v5487_v3  ;;  %v5397_v3 = vld [vmem:[%s8637_s16 + $0xf0] sm:$0xff] }
 0x6b8   : > { %v5492_v59 = vunpack.c.h.bf16 %v5397_v3 }
 0x6b9   : > { %v6223_v36 = vmax.f32 %v6095_v27, 0.0  ;;  %v5955_v27 = vadd.f32 %v5954_v4, %v10622_v60 }
 0x6bb   : > { %v6323_v42 = vpack.c.bf16 %v6224_v18, %v6223_v36  ;;  %v10894_v62 = vpop.f32.mrf.mxu2  ;;  %v6100_v44 = vadd.f32 %v5955_v27, %v5492_v59 }
 0x6bc   : > { %11661 = vst [vmem:[#allocation54_spill] sm:$0xff] %v10894_v62  ;;  %v5782_v47 = vpop.f32.mrf.mxu3  ;;  %v5491_v62 = vunpack.c.l.bf16 %v5397_v3  ;;  %v5956_v54 = vpop.f32.mrf.mxu0  ;;  %v8293_v3 = vld [vmem:[#allocation2 + $0x1b4] sm:$0xf] }
 0x6bd   : > { %6387 = vst [vmem:[%s10656_s11 + $0xe0] sm:$0xff] %v6323_v42  ;;  %v5783_v5 = vadd.f32 %v5782_v47, %v10634_v32  ;;  %v5398_v47 = vld [vmem:[%s8637_s16 + $0xf8] sm:$0xff]  ;;  %v6228_v22 = vmax.f32 %v6100_v44, 0.0  ;;  %v5957_v10 = vadd.f32 %v5956_v54, %v10622_v60 }
 0x6bf   : > { %v6097_v17 = vadd.f32 %v5783_v5, %v5489_v50  ;;  %v5494_v5 = vunpack.c.h.bf16 %v5398_v47 }
 0x6c0   : > { %7889 = vmatmul.msk.bf16.gmra.mxu2 %vm1931_vm9, %v7810_v6 }
 0x6c1   : > { %v6225_v45 = vmax.f32 %v6097_v17, 0.0  ;;  %v6102_v27 = vadd.f32 %v5957_v10, %v5494_v5  ;;  %v10920_v10 = vpop.f32.mrf.mxu1 }
 0x6c3   : > { %v6324_v18 = vpack.c.bf16 %v6226_v63, %v6225_v45  ;;  %v10901_v36 = vpop.f32.mrf.mxu2  ;;  %v5493_v63 = vunpack.c.l.bf16 %v5398_v47  ;;  %v7815_v45 = vld [vmem:[#allocation2 + $0x1b8] sm:$0xf0]  ;;  %v8295_v47 = vld [vmem:[#allocation2 + $0x1c4] sm:$0xf] }
 0x6c4   : > { %11662 = vst [vmem:[#allocation49_spill] sm:$0xff] %v10901_v36  ;;  %v5785_v39 = vpop.f32.mrf.mxu3 }
 0x6c5   : > { %6388 = vst [vmem:[%s10656_s11 + $0xe8] sm:$0xff] %v6324_v18  ;;  %v5786_v42 = vadd.f32 %v5785_v39, %v10634_v32  ;;  %v7818_v39 = vor.u32 %v8293_v3, %v7815_v45 }
 0x6c7   : > { %v6099_v50 = vadd.f32 %v5786_v42, %v5491_v62  ;;  %v6230_v62 = vmax.f32 %v6102_v27, 0.0  ;;  %v11668_v27 = vld [vmem:[#allocation165_spill] sm:$0xff] }
 0x6c9   : > { %v6227_v6 = vmax.f32 %v6099_v50, 0.0 }
 0x6cb   : > { %v6325_v4 = vpack.c.bf16 %v6228_v22, %v6227_v6  ;;  %v10907_v17 = vpop.f32.mrf.mxu2  ;;  %v7823_v22 = vld [vmem:[#allocation2 + $0x1c8] sm:$0xf0] }
 0x6cc   : > { %11663 = vst [vmem:[#allocation120_spill] sm:$0xff] %v10907_v17  ;;  %v5787_v59 = vpop.f32.mrf.mxu3  ;;  %v7826_v6 = vor.u32 %v8295_v47, %v7823_v22  ;;  %v11665_v17 = vld [vmem:[#allocation79_spill] sm:$0xff]  ;;  %v8297_v47 = vld [vmem:[#allocation2 + $0x1d4] sm:$0xf]  ;;  %v11670_v22 = vld [vmem:[#allocation97_spill] sm:$0xff] }
 0x6cd   : > { %6389 = vst [vmem:[%s10656_s11 + $0xf0] sm:$0xff] %v6325_v4  ;;  %v5788_v18 = vadd.f32 %v5787_v59, %v10634_v32  ;;  %v4311_v5 = vadd.f32 %v10670_v34, %v11665_v17  ;;  %v7831_v34 = vld [vmem:[#allocation2 + $0x1d8] sm:$0xf0]  ;;  %v10928_v17 = vpop.f32.mrf.mxu1 }
 0x6cf   : > { %v6101_v36 = vadd.f32 %v5788_v18, %v5493_v63  ;;  %v11666_v63 = vld [vmem:[#allocation163_spill] sm:$0xff] }
 0x6d0   : > { %7890 = vmatmul.msk.bf16.gmra.mxu2 %vm1931_vm9, %v7818_v39  ;;  %v4592_v3 = vadd.f32 %v11666_v63, %v4311_v5  ;;  %v11669_v39 = vld [vmem:[#allocation93_spill] sm:$0xff]  ;;  %v11671_v63 = vld [vmem:[#allocation83_spill] sm:$0xff] }
 0x6d1   : > { %v6229_v44 = vmax.f32 %v6101_v36, 0.0  ;;  %v11667_v36 = vld [vmem:[#allocation81_spill] sm:$0xff] }
 0x6d2   : > { %v4313_v45 = vadd.f32 %v10683_v46, %v11667_v36  ;;  %v10935_v46 = vld [vmem:[%s11317_s5] ss:$0 sm:$0xff] }
 0x6d3   : > { %v6326_v42 = vpack.c.bf16 %v6230_v62, %v6229_v44  ;;  %v10912_v54 = vpop.f32.mrf.mxu2  ;;  %v4681_v62 = vadd.f32 %v11669_v39, %v4592_v3  ;;  %v4316_v3 = vadd.f32 %v10693_v25, %v11671_v63 }
 0x6d4   : > { %v4594_v18 = vadd.f32 %v11668_v27, %v4313_v45 }
 0x6d5   : > { %6390 = vst [vmem:[%s10656_s11 + $0xf8] sm:$0xff] %v6326_v42 }
 0x6db   : > { %v10915_v50 = vpop.f32.mrf.mxu2 }
 0x6dc   : > { %11664 = vst [vmem:[#allocation44_spill] sm:$0xff] %v10915_v50 }
 0x6e0   : > { %7891 = vmatmul.msk.bf16.gmra.mxu2 %vm1931_vm9, %v7826_v6  ;;  %v4683_v6 = vadd.f32 %v11670_v22, %v4594_v18  ;;  %v11672_v18 = vld [vmem:[#allocation85_spill] sm:$0xff] }
 0x6e1   : > { %v4318_v39 = vadd.f32 %v10702_v30, %v11672_v18 }
 0x6e3   : > { %v5083_v4 = vpop.f32.mrf.mxu2  ;;  %v4599_v25 = vadd.f32 %v10225_v11, %v4318_v39  ;;  %v11676_v39 = vld [vmem:[#allocation88_spill] sm:$0xff] }
 0x6e4   : > { %v5084_v59 = vadd.f32 %v5083_v4, %v10283_v19  ;;  %v7834_v4 = vor.u32 %v8297_v47, %v7831_v34 }
 0x6e6   : > { %v5163_v44 = vadd.f32 %v5084_v59, %v4681_v62 }
 0x6e8   : > { %v5231_v19 = vadd.f32 %v10935_v46, %v5163_v44  ;;  %v11673_v44 = vld [vmem:[#allocation101_spill] sm:$0xff] }
 0x6ea   : > { %v5295_v45 = vmax.f32 %v5231_v19, 0.0  ;;  %v11674_v19 = vld [vmem:[#allocation104_spill] sm:$0xff] }
 0x6eb   : > { %v5085_v42 = vpop.f32.mrf.mxu2 }
 0x6ec   : > { %v5086_v50 = vadd.f32 %v5085_v42, %v10301_v43  ;;  %v4597_v43 = vadd.f32 %v10209_v55, %v4316_v3  ;;  %v10945_v42 = vpop.f32.mrf.mxu1  ;;  %v7839_v55 = vld [vmem:[#allocation2 + $0x1e8] sm:$0xf0] }
 0x6ee   : > { %v5164_v5 = vadd.f32 %v5086_v50, %v4683_v6  ;;  %v4686_v47 = vadd.f32 %v11673_v44, %v4597_v43  ;;  %v8299_v6 = vld [vmem:[#allocation2 + $0x1e4] sm:$0xf] }
 0x6f0   : > { %v5232_v36 = vadd.f32 %v10935_v46, %v5164_v5  ;;  %7892 = vmatmul.msk.bf16.gmra.mxu2 %vm1931_vm9, %v7834_v4  ;;  %v4688_v5 = vadd.f32 %v11674_v19, %v4599_v25  ;;  %v11677_v25 = vld [vmem:[#allocation108_spill] sm:$0xff] }
 0x6f2   : > { %v5296_v59 = vmax.f32 %v5232_v36, 0.0  ;;  %v11675_v36 = vld [vmem:[#allocation87_spill] sm:$0xff] }
 0x6f3   : > { %v5088_v27 = vpop.f32.mrf.mxu2 }
 0x6f4   : > { %v5343_v62 = vpack.c.bf16 %v5296_v59, %v5295_v45  ;;  %v5089_v50 = vadd.f32 %v5088_v27, %v10321_v31  ;;  %v7842_v31 = vor.u32 %v8299_v6, %v7839_v55  ;;  %v10955_v3 = vpop.f32.mrf.mxu1  ;;  %v4321_v45 = vadd.f32 %v10714_v38, %v11675_v36  ;;  %v8301_v6 = vld [vmem:[#allocation2 + $0x1f4] sm:$0xf]  ;;  %v11678_v55 = vld [vmem:[#allocation110_spill] sm:$0xff] }
 0x6f6   : > { %7947 = vmatmul.msk.bf16.gmra.mxu3 %vm1931_vm9, %v5343_v62  ;;  %7979 = vmatmul.msk.bf16.gmra.mxu0 %vm1931_vm9, %v5343_v62  ;;  %v5165_v34 = vadd.f32 %v5089_v50, %v4686_v47  ;;  %v4602_v18 = vadd.f32 %v10241_v48, %v4321_v45  ;;  %v7847_v48 = vld [vmem:[#allocation2 + $0x1f8] sm:$0xf0] }
 0x6f8   : > { %v5233_v4 = vadd.f32 %v10935_v46, %v5165_v34  ;;  %v4691_v44 = vadd.f32 %v11677_v25, %v4602_v18  ;;  %v7855_v25 = vld [vmem:[#allocation2 + $0x208] sm:$0xf0] }
 0x6fa   : > { %v5297_v59 = vmax.f32 %v5233_v4, 0.0  ;;  %v11679_v4 = vld [vmem:[#allocation90_spill] sm:$0xff] }
 0x6fb   : > { %v5090_v22 = vpop.f32.mrf.mxu2 }
 0x6fc   : > { %v5091_v30 = vadd.f32 %v5090_v22, %v10345_v33  ;;  %v4323_v33 = vadd.f32 %v10723_v29, %v11676_v39  ;;  %v10969_v47 = vpop.f32.mrf.mxu1  ;;  %v11681_v39 = vld [vmem:[#allocation113_spill] sm:$0xff] }
 0x6fe   : > { %v5166_v63 = vadd.f32 %v5091_v30, %v4688_v5  ;;  %v4604_v38 = vadd.f32 %v10254_v13, %v4323_v33  ;;  %v7850_v30 = vor.u32 %v8301_v6, %v7847_v48  ;;  %v11683_v48 = vld [vmem:[#allocation95_spill] sm:$0xff] }
 0x700   : > { %v5234_v11 = vadd.f32 %v10935_v46, %v5166_v63  ;;  %7893 = vmatmul.msk.bf16.gmra.mxu2 %vm1931_vm9, %v7842_v31  ;;  %v4693_v19 = vadd.f32 %v11678_v55, %v4604_v38  ;;  %v4326_v63 = vadd.f32 %v10735_v0, %v11679_v4  ;;  %v8303_v38 = vld [vmem:[#allocation2 + $0x204] sm:$0xf]  ;;  %v4331_v55 = vadd.f32 %v10754_v26, %v11683_v48 }
 0x701   : > { %v7858_v6 = vor.u32 %v8303_v38, %v7855_v25 }
 0x702   : > { %v5298_v27 = vmax.f32 %v5234_v11, 0.0 }
 0x703   : > { %v5093_v43 = vpop.f32.mrf.mxu2 }
 0x704   : > { %v5344_v62 = vpack.c.bf16 %v5298_v27, %v5297_v59  ;;  %v5094_v50 = vadd.f32 %v5093_v43, %v10371_v16  ;;  %v10978_v11 = vpop.f32.mrf.mxu1  ;;  %v4607_v59 = vadd.f32 %v10266_v51, %v4326_v63  ;;  %v11680_v27 = vld [vmem:[#allocation92_spill] sm:$0xff] }
 0x706   : > { %7948 = vmatmul.msk.bf16.gmra.mxu3 %vm1931_vm9, %v5344_v62  ;;  %7980 = vmatmul.msk.bf16.gmra.mxu0 %vm1931_vm9, %v5344_v62  ;;  %v5167_v34 = vadd.f32 %v5094_v50, %v4691_v44  ;;  %v4696_v33 = vadd.f32 %v11681_v39, %v4607_v59  ;;  %v11682_v44 = vld [vmem:[#allocation116_spill] sm:$0xff]  ;;  %v11687_v39 = vld [vmem:[#allocation102_spill] sm:$0xff] }
 0x708   : > { %v5235_v16 = vadd.f32 %v10935_v46, %v5167_v34 }
 0x70a   : > { %v5299_v31 = vmax.f32 %v5235_v16, 0.0 }
 0x70b   : > { %v5095_v22 = vpop.f32.mrf.mxu2 }
 0x70c   : > { %v5096_v29 = vadd.f32 %v5095_v22, %v10385_v35  ;;  %v4328_v35 = vadd.f32 %v10742_v28, %v11680_v27  ;;  %v10990_v28 = vpop.f32.mrf.mxu1  ;;  %v8305_v27 = vld [vmem:[#allocation2 + $0x214] sm:$0xf] }
 0x70e   : > { %v5168_v5 = vadd.f32 %v5096_v29, %v4693_v19  ;;  %v4609_v0 = vadd.f32 %v10279_v12, %v4328_v35  ;;  %v7863_v35 = vld [vmem:[#allocation2 + $0x218] sm:$0xf0] }
 0x710   : > { %v5236_v13 = vadd.f32 %v10935_v46, %v5168_v5  ;;  %7894 = vmatmul.msk.bf16.gmra.mxu2 %vm1931_vm9, %v7850_v30  ;;  %v4698_v51 = vadd.f32 %v11682_v44, %v4609_v0  ;;  %v4612_v5 = vadd.f32 %v10293_v9, %v4331_v55  ;;  %v11684_v30 = vld [vmem:[#allocation98_spill] sm:$0xff]  ;;  %v11686_v9 = vld [vmem:[#allocation144_spill] sm:$0xff]  ;;  %v7866_v0 = vor.u32 %v8305_v27, %v7863_v35  ;;  %v11689_v55 = vld [vmem:[#allocation149_spill] sm:$0xff] }
 0x711   : > { %v11692_v35 = vld [vmem:[#allocation111_spill] sm:$0xff] }
 0x712   : > { %v5300_v36 = vmax.f32 %v5236_v13, 0.0 }
 0x713   : > { %v5098_v45 = vpop.f32.mrf.mxu2 }
 0x714   : > { %v5345_v43 = vpack.c.bf16 %v5300_v36, %v5299_v31  ;;  %v5099_v18 = vadd.f32 %v5098_v45, %v10920_v10  ;;  %v5026_v26 = vpop.f32.mrf.mxu1  ;;  %v11685_v31 = vld [vmem:[#allocation139_spill] sm:$0xff] }
 0x715   : > { %v4701_v36 = vadd.f32 %v11685_v31, %v4612_v5  ;;  %v7871_v5 = vld [vmem:[#allocation2 + $0x228] sm:$0xf0] }
 0x716   : > { %7949 = vmatmul.msk.bf16.gmra.mxu3 %vm1931_vm9, %v5345_v43  ;;  %7981 = vmatmul.msk.bf16.gmra.mxu0 %vm1931_vm9, %v5345_v43  ;;  %v5169_v62 = vadd.f32 %v5099_v18, %v4696_v33  ;;  %v4336_v33 = vadd.f32 %v10775_v58, %v11687_v39  ;;  %v7879_v39 = vld [vmem:[#allocation2 + $0x238] sm:$0xf0] }
 0x718   : > { %v5237_v10 = vadd.f32 %v10935_v46, %v5169_v62 }
 0x71a   : > { %v5301_v19 = vmax.f32 %v5237_v10, 0.0  ;;  %v11688_v10 = vld [vmem:[#allocation106_spill] sm:$0xff] }
 0x71b   : > { %v5100_v50 = vpop.f32.mrf.mxu2 }
 0x71c   : > { %v5101_v34 = vadd.f32 %v5100_v50, %v10928_v17  ;;  %v4333_v17 = vadd.f32 %v10763_v2, %v11684_v30  ;;  %v8310_v50 = vld [vmem:[#allocation2 + $0x234] sm:$0xf0]  ;;  %v5029_v38 = vpop.f32.mrf.mxu1 }
 0x71d   : > { %v11690_v30 = vld [vmem:[#allocation153_spill] sm:$0xff] }
 0x71e   : > { %v5170_v22 = vadd.f32 %v5101_v34, %v4698_v51  ;;  %v4614_v13 = vadd.f32 %v10314_v14, %v4333_v17  ;;  %v7877_v14 = vld [vmem:[#allocation2 + $0x230] sm:$0xf] }
 0x71f   : > { %v7878_v51 = vor.u32 %v8310_v50, %v7877_v14 }
 0x720   : > { %v5238_v12 = vadd.f32 %v10935_v46, %v5170_v22  ;;  %7895 = vmatmul.msk.bf16.gmra.mxu2 %vm1931_vm9, %v7858_v6  ;;  %v4703_v43 = vadd.f32 %v11686_v9, %v4614_v13  ;;  %v4338_v22 = vadd.f32 %v10784_v52, %v11688_v10  ;;  %v11691_v13 = vld [vmem:[#allocation109_spill] sm:$0xff]  ;;  %v4343_v9 = vadd.f32 %v10801_v21, %v11692_v35 }
 0x721   : > { %5068 = vmatmul.bf16.gmra.mxu1 %v7878_v51  ;;  %v4341_v31 = vadd.f32 %v10794_v61, %v11691_v13  ;;  %v11695_v51 = vld [vmem:[#allocation114_spill] sm:$0xff]  ;;  %v11698_v13 = vld [vmem:[#allocation125_spill] sm:$0xff] }
 0x722   : > { %v5302_v29 = vmax.f32 %v5238_v12, 0.0  ;;  %v4619_v48 = vadd.f32 %v10347_v53, %v4338_v22  ;;  %v4624_v61 = vadd.f32 %v10380_v8, %v4343_v9  ;;  %v11702_v9 = vld [vmem:[#allocation170_spill] sm:$0xff] }
 0x723   : > { %v5103_v16 = vpop.f32.mrf.mxu2  ;;  %v4622_v27 = vadd.f32 %v10365_v20, %v4341_v31  ;;  %v11694_v20 = vld [vmem:[#allocation162_spill] sm:$0xff]  ;;  %v11699_v31 = vld [vmem:[#allocation48_spill] sm:$0xff] }
 0x724   : > { %v5346_v4 = vpack.c.bf16 %v5302_v29, %v5301_v19  ;;  %v5104_v63 = vadd.f32 %v5103_v16, %v10945_v42  ;;  %v8307_v16 = vld [vmem:[#allocation2 + $0x224] sm:$0xf]  ;;  %v4708_v17 = vadd.f32 %v11690_v30, %v4619_v48  ;;  %v4713_v14 = vadd.f32 %v11694_v20, %v4624_v61 }
 0x726   : > { %7950 = vmatmul.msk.bf16.gmra.mxu3 %vm1931_vm9, %v5346_v4  ;;  %7982 = vmatmul.msk.bf16.gmra.mxu0 %vm1931_vm9, %v5346_v4  ;;  %v5171_v45 = vadd.f32 %v5104_v63, %v4701_v36  ;;  %v7874_v63 = vor.u32 %v8307_v16, %v7871_v5 }
 0x728   : > { %v5239_v18 = vadd.f32 %v10935_v46, %v5171_v45 }
 0x72a   : > { %v5303_v25 = vmax.f32 %v5239_v18, 0.0  ;;  %v11693_v18 = vld [vmem:[#allocation157_spill] sm:$0xff] }
 0x72b   : > { %v5105_v59 = vpop.f32.mrf.mxu2 }
 0x72c   : > { %v5106_v2 = vadd.f32 %v5105_v59, %v10955_v3  ;;  %v4617_v3 = vadd.f32 %v10328_v49, %v4336_v33  ;;  %v5031_v49 = vpop.f32.mrf.mxu1 }
 0x72e   : > { %v5172_v42 = vadd.f32 %v5106_v2, %v4703_v43  ;;  %v4706_v12 = vadd.f32 %v11689_v55, %v4617_v3 }
 0x730   : > { %v5240_v62 = vadd.f32 %v10935_v46, %v5172_v42  ;;  %7896 = vmatmul.msk.bf16.gmra.mxu2 %vm1931_vm9, %v7866_v0  ;;  %v4711_v42 = vadd.f32 %v11693_v18, %v4622_v27  ;;  %v8309_v0 = vld [vmem:[#allocation2 + $0x234] sm:$0xf] }
 0x731   : > { %v7882_v21 = vor.u32 %v8309_v0, %v7879_v39 }
 0x732   : > { %v5304_v44 = vmax.f32 %v5240_v62, 0.0 }
 0x733   : > { %v5108_v34 = vpop.f32.mrf.mxu2 }
 0x734   : > { %v5347_v6 = vpack.c.bf16 %v5304_v44, %v5303_v25  ;;  %v5109_v58 = vadd.f32 %v5108_v34, %v10969_v47  ;;  %v5034_v43 = vpop.f32.mrf.mxu1  ;;  %v4346_v34 = vadd.f32 %v10809_v41, %v11695_v51 }
 0x736   : > { %7951 = vmatmul.msk.bf16.gmra.mxu3 %vm1931_vm9, %v5347_v6  ;;  %7983 = vmatmul.msk.bf16.gmra.mxu0 %vm1931_vm9, %v5347_v6  ;;  %v5173_v19 = vadd.f32 %v5109_v58, %v4706_v12  ;;  %v4627_v6 = vadd.f32 %v10394_v15, %v4346_v34  ;;  %v11696_v58 = vld [vmem:[#allocation118_spill] sm:$0xff] }
 0x738   : > { %v5241_v4 = vadd.f32 %v10935_v46, %v5173_v19  ;;  %v4716_v12 = vadd.f32 %v10203_v7, %v4627_v6  ;;  %v11708_v6 = vld [vmem:[#allocation34_spill] sm:$0xff] }
 0x73a   : > { %v5305_v36 = vmax.f32 %v5241_v4, 0.0 }
 0x73b   : > { %v5110_v29 = vpop.f32.mrf.mxu2 }
 0x73c   : > { %v5111_v52 = vadd.f32 %v5110_v29, %v10978_v11 }
 0x73e   : > { %v5174_v47 = vadd.f32 %v5111_v52, %v4708_v17 }
 0x740   : > { %v5242_v53 = vadd.f32 %v10935_v46, %v5174_v47  ;;  %7897 = vmatmul.msk.bf16.gmra.mxu2 %vm1931_vm9, %v7874_v63 }
 0x742   : > { %v5306_v45 = vmax.f32 %v5242_v53, 0.0  ;;  %v4353_v53 = vadd.f32 %v11699_v31, %v11698_v13  ;;  %v11711_v13 = vld [vmem:[#allocation39_spill] sm:$0xff] }
 0x743   : > { %v5113_v59 = vpop.f32.mrf.mxu2 }
 0x744   : > { %v5348_v11 = vpack.c.bf16 %v5306_v45, %v5305_v36  ;;  %v5114_v2 = vadd.f32 %v5113_v59, %v10990_v28  ;;  %v5036_v28 = vpop.f32.mrf.mxu1  ;;  %v11701_v45 = vld [vmem:[#allocation168_spill] sm:$0xff] }
 0x746   : > { %7952 = vmatmul.msk.bf16.gmra.mxu3 %vm1931_vm9, %v5348_v11  ;;  %7984 = vmatmul.msk.bf16.gmra.mxu0 %vm1931_vm9, %v5348_v11  ;;  %v5175_v33 = vadd.f32 %v5114_v2, %v4711_v42  ;;  %v11703_v42 = vld [vmem:[#allocation128_spill] sm:$0xff] }
 0x748   : > { %v5243_v25 = vadd.f32 %v10935_v46, %v5175_v33 }
 0x74a   : > { %v5307_v8 = vmax.f32 %v5243_v25, 0.0  ;;  %v11705_v25 = vld [vmem:[#allocation132_spill] sm:$0xff] }
 0x74b   : > { %v5115_v62 = vpop.f32.mrf.mxu2 }
 0x74c   : > { %v5116_v50 = vadd.f32 %v5115_v62, %v5026_v26  ;;  %v4348_v26 = vadd.f32 %v10816_v40, %v11696_v58  ;;  %v5039_v19 = vpop.f32.mrf.mxu1  ;;  %v11697_v40 = vld [vmem:[#allocation122_spill] sm:$0xff] }
 0x74d   : > { %v11704_v62 = vld [vmem:[#allocation26_spill] sm:$0xff] }
 0x74e   : > { %v5176_v44 = vadd.f32 %v5116_v50, %v4713_v14  ;;  %v4629_v41 = vadd.f32 %v10407_v57, %v4348_v26  ;;  %v5399_v50 = vld [vmem:[%s8637_s16 + $0x100] sm:$0xff] }
 0x74f   : > { %v5495_v26 = vunpack.c.l.bf16 %v5399_v50 }
 0x750   : > { %v5244_v3 = vadd.f32 %v10935_v46, %v5176_v44  ;;  %7898 = vmatmul.msk.bf16.gmra.mxu2 %vm1931_vm9, %v7882_v21  ;;  %v4718_v5 = vadd.f32 %v10215_v24, %v4629_v41  ;;  %v11706_v44 = vld [vmem:[#allocation43_spill] sm:$0xff] }
 0x752   : > { %v5308_v10 = vmax.f32 %v5244_v3, 0.0  ;;  %v5496_v3 = vunpack.c.h.bf16 %v5399_v50 }
 0x753   : > { %v5118_v22 = vpop.f32.mrf.mxu2 }
 0x754   : > { %v5349_v48 = vpack.c.bf16 %v5308_v10, %v5307_v8  ;;  %v5119_v55 = vadd.f32 %v5118_v22, %v5029_v38  ;;  %v4351_v38 = vadd.f32 %v10823_v23, %v11697_v40  ;;  %v5041_v57 = vpop.f32.mrf.mxu1 }
 0x756   : > { %7953 = vmatmul.msk.bf16.gmra.mxu3 %vm1931_vm9, %v5349_v48  ;;  %7985 = vmatmul.msk.bf16.gmra.mxu0 %vm1931_vm9, %v5349_v48  ;;  %v5177_v29 = vadd.f32 %v5119_v55, %v4716_v12  ;;  %v4632_v7 = vadd.f32 %v10419_v1, %v4351_v38 }
 0x758   : > { %v5245_v15 = vadd.f32 %v10935_v46, %v5177_v29  ;;  %v4721_v59 = vadd.f32 %v11701_v45, %v4632_v7  ;;  %v5400_v29 = vld [vmem:[%s8637_s16 + $0x108] sm:$0xff] }
 0x759   : > { %v5498_v38 = vunpack.c.h.bf16 %v5400_v29  ;;  %v11710_v7 = vld [vmem:[#allocation135_spill] sm:$0xff] }
 0x75a   : > { %v5309_v4 = vmax.f32 %v5245_v15, 0.0  ;;  %v4361_v31 = vadd.f32 %v11711_v13, %v11710_v7 }
 0x75b   : > { %v5120_v16 = vpop.f32.mrf.mxu2 }
 0x75c   : > { %v5121_v30 = vadd.f32 %v5120_v16, %v5031_v49  ;;  %v11700_v49 = vld [vmem:[#allocation31_spill] sm:$0xff]  ;;  %v5044_v1 = vpop.f32.mrf.mxu1 }
 0x75d   : > { %v4634_v23 = vadd.f32 %v11700_v49, %v4353_v53 }
 0x75e   : > { %v5178_v17 = vadd.f32 %v5121_v30, %v4718_v5  ;;  %v11709_v30 = vld [vmem:[#allocation22_spill] sm:$0xff] }
 0x75f   : > { %v4723_v11 = vadd.f32 %v11702_v9, %v4634_v23 }
 0x760   : > { %v5246_v52 = vadd.f32 %v10935_v46, %v5178_v17 }
 0x762   : > { %v5310_v47 = vmax.f32 %v5246_v52, 0.0 }
 0x763   : > { %v5123_v63 = vpop.f32.mrf.mxu2 }
 0x764   : > { %v5350_v36 = vpack.c.bf16 %v5310_v47, %v5309_v4  ;;  %v5124_v24 = vadd.f32 %v5123_v63, %v5034_v43  ;;  %v4356_v43 = vadd.f32 %v10836_v56, %v11703_v42  ;;  %v11707_v56 = vld [vmem:[#allocation24_spill] sm:$0xff]  ;;  %v5046_v22 = vpop.f32.mrf.mxu1  ;;  %v11714_v42 = vld [vmem:[#allocation51_spill] sm:$0xff] }
 0x766   : > { %7954 = vmatmul.msk.bf16.gmra.mxu3 %vm1931_vm9, %v5350_v36  ;;  %7986 = vmatmul.msk.bf16.gmra.mxu0 %vm1931_vm9, %v5350_v36  ;;  %v5179_v27 = vadd.f32 %v5124_v24, %v4721_v59  ;;  %v4637_v20 = vadd.f32 %v11704_v62, %v4356_v43  ;;  %v5497_v24 = vunpack.c.l.bf16 %v5400_v29 }
 0x768   : > { %v5247_v61 = vadd.f32 %v10935_v46, %v5179_v27  ;;  %v4726_v10 = vadd.f32 %v11707_v56, %v4637_v20 }
 0x76a   : > { %v5311_v39 = vmax.f32 %v5247_v61, 0.0 }
 0x76b   : > { %v5125_v35 = vpop.f32.mrf.mxu2 }
 0x76c   : > { %v5126_v2 = vadd.f32 %v5125_v35, %v5036_v28  ;;  %v4358_v28 = vadd.f32 %v11706_v44, %v11705_v25  ;;  %v5049_v23 = vpop.f32.mrf.mxu1  ;;  %v11712_v35 = vld [vmem:[#allocation105_spill] sm:$0xff]  ;;  %v11716_v44 = vld [vmem:[#allocation28_spill] sm:$0xff] }
 0x76d   : > { %v4642_v9 = vadd.f32 %v11712_v35, %v4361_v31 }
 0x76e   : > { %v5180_v18 = vadd.f32 %v5126_v2, %v4723_v11  ;;  %v4639_v58 = vadd.f32 %v11708_v6, %v4358_v28  ;;  %v5401_v2 = vld [vmem:[%s8637_s16 + $0x110] sm:$0xff] }
 0x770   : > { %v5248_v0 = vadd.f32 %v10935_v46, %v5180_v18  ;;  %v4728_v15 = vadd.f32 %v11709_v30, %v4639_v58  ;;  %v11713_v18 = vld [vmem:[#allocation138_spill] sm:$0xff] }
 0x771   : > { %v4363_v43 = vadd.f32 %v11714_v42, %v11713_v18 }
 0x772   : > { %v5312_v33 = vmax.f32 %v5248_v0, 0.0 }
 0x773   : > { %v5128_v14 = vpop.f32.mrf.mxu2  ;;  %v5959_v21 = vpop.f32.mrf.mxu0  ;;  %v4644_v28 = vadd.f32 %v11716_v44, %v4363_v43  ;;  %v5404_v44 = vld [vmem:[%s8637_s16 + $0x128] sm:$0xff] }
 0x774   : > { %v5351_v51 = vpack.c.bf16 %v5312_v33, %v5311_v39  ;;  %v5129_v34 = vadd.f32 %v5128_v14, %v5039_v19  ;;  %v5960_v8 = vadd.f32 %v5959_v21, %v10622_v60  ;;  %v5500_v14 = vunpack.c.h.bf16 %v5401_v2  ;;  %v11715_v21 = vld [vmem:[#allocation20_spill] sm:$0xff] }
 0x775   : > { %v4731_v25 = vadd.f32 %v11715_v21, %v4642_v9 }
 0x776   : > { %7955 = vmatmul.msk.bf16.gmra.mxu3 %vm1931_vm9, %v5351_v51  ;;  %7987 = vmatmul.msk.bf16.gmra.mxu0 %vm1931_vm9, %v5351_v51  ;;  %v5181_v48 = vadd.f32 %v5129_v34, %v4726_v10  ;;  %v6104_v41 = vadd.f32 %v5960_v8, %v5496_v3  ;;  %v5499_v34 = vunpack.c.l.bf16 %v5401_v2  ;;  %v5402_v10 = vld [vmem:[%s8637_s16 + $0x118] sm:$0xff] }
 0x778   : > { %v5249_v40 = vadd.f32 %v10935_v46, %v5181_v48  ;;  %v6232_v52 = vmax.f32 %v6104_v41, 0.0 }
 0x779   : > { %v5790_v55 = vpop.f32.mrf.mxu3 }
 0x77a   : > { %v5791_v12 = vadd.f32 %v5790_v55, %v10634_v32  ;;  %v5313_v45 = vmax.f32 %v5249_v40, 0.0  ;;  %v11717_v55 = vld [vmem:[#allocation21_spill] sm:$0xff]  ;;  %v11719_v40 = vld [vmem:[#allocation46_spill] sm:$0xff] }
 0x77b   : > { %v5130_v19 = vpop.f32.mrf.mxu2  ;;  %v5961_v16 = vpop.f32.mrf.mxu0  ;;  %v4733_v41 = vadd.f32 %v11717_v55, %v4644_v28 }
 0x77c   : > { %v6103_v5 = vadd.f32 %v5791_v12, %v5495_v26  ;;  %v5131_v17 = vadd.f32 %v5130_v19, %v5041_v57  ;;  %v5962_v63 = vadd.f32 %v5961_v16, %v10622_v60  ;;  %v5051_v26 = vpop.f32.mrf.mxu1  ;;  %v5502_v19 = vunpack.c.h.bf16 %v5402_v10 }
 0x77e   : > { %v6231_v4 = vmax.f32 %v6103_v5, 0.0  ;;  %v5182_v47 = vadd.f32 %v5131_v17, %v4728_v15  ;;  %v6106_v59 = vadd.f32 %v5962_v63, %v5498_v38  ;;  %v11718_v17 = vld [vmem:[#allocation142_spill] sm:$0xff] }
 0x77f   : > { %v4366_v38 = vadd.f32 %v11719_v40, %v11718_v17 }
 0x780   : > { %v6327_v53 = vpack.c.bf16 %v6232_v52, %v6231_v4  ;;  %v5250_v36 = vadd.f32 %v10935_v46, %v5182_v47  ;;  %v6234_v62 = vmax.f32 %v6106_v59, 0.0  ;;  %v5501_v47 = vunpack.c.l.bf16 %v5402_v10  ;;  %v11722_v59 = vld [vmem:[#allocation117_spill] sm:$0xff] }
 0x781   : > { %v5792_v49 = vpop.f32.mrf.mxu3  ;;  %v5506_v10 = vunpack.c.h.bf16 %v5404_v44 }
 0x782   : > { %6391 = vst [vmem:[%s10656_s11 + $0x100] sm:$0xff] %v6327_v53  ;;  %v5314_v57 = vmax.f32 %v5250_v36, 0.0  ;;  %v5793_v27 = vadd.f32 %v5792_v49, %v10634_v32  ;;  %v11720_v53 = vld [vmem:[#allocation37_spill] sm:$0xff]  ;;  %v5403_v49 = vld [vmem:[%s8637_s16 + $0x120] sm:$0xff] }
 0x783   : > { %v5133_v11 = vpop.f32.mrf.mxu2  ;;  %v5964_v61 = vpop.f32.mrf.mxu0  ;;  %v4647_v36 = vadd.f32 %v11720_v53, %v4366_v38  ;;  %v5504_v42 = vunpack.c.h.bf16 %v5403_v49  ;;  %v11727_v38 = vld [vmem:[#allocation103_spill] sm:$0xff] }
 0x784   : > { %v5352_v0 = vpack.c.bf16 %v5314_v57, %v5313_v45  ;;  %v6105_v39 = vadd.f32 %v5793_v27, %v5497_v24  ;;  %v5134_v33 = vadd.f32 %v5133_v11, %v5044_v1  ;;  %v5965_v50 = vadd.f32 %v5964_v61, %v10622_v60  ;;  %v11721_v57 = vld [vmem:[#allocation147_spill] sm:$0xff]  ;;  %v5054_v2 = vpop.f32.mrf.mxu1 }
 0x785   : > { %v4368_v27 = vadd.f32 %v11722_v59, %v11721_v57  ;;  %v11730_v57 = vld [vmem:[#allocation99_spill] sm:$0xff] }
 0x786   : > { %v6233_v20 = vmax.f32 %v6105_v39, 0.0  ;;  %7956 = vmatmul.msk.bf16.gmra.mxu3 %vm1931_vm9, %v5352_v0  ;;  %7988 = vmatmul.msk.bf16.gmra.mxu0 %vm1931_vm9, %v5352_v0  ;;  %v5183_v3 = vadd.f32 %v5134_v33, %v4731_v25  ;;  %v6108_v1 = vadd.f32 %v5965_v50, %v5500_v14  ;;  %v11723_v0 = vld [vmem:[#allocation23_spill] sm:$0xff]  ;;  %v11724_v33 = vld [vmem:[#allocation30_spill] sm:$0xff]  ;;  %v5503_v14 = vunpack.c.l.bf16 %v5403_v49 }
 0x787   : > { %v4736_v39 = vadd.f32 %v11723_v0, %v4647_v36  ;;  %v5406_v0 = vld [vmem:[%s8637_s16 + $0x138] sm:$0xff] }
 0x788   : > { %v6328_v51 = vpack.c.bf16 %v6234_v62, %v6233_v20  ;;  %v5251_v29 = vadd.f32 %v10935_v46, %v5183_v3  ;;  %v6236_v16 = vmax.f32 %v6108_v1, 0.0  ;;  %v4649_v62 = vadd.f32 %v11724_v33, %v4368_v27  ;;  %v11725_v3 = vld [vmem:[#allocation27_spill] sm:$0xff]  ;;  %v11731_v27 = vld [vmem:[#allocation40_spill] sm:$0xff] }
 0x789   : > { %v5795_v8 = vpop.f32.mrf.mxu3 }
 0x78a   : > { %6392 = vst [vmem:[%s10656_s11 + $0x108] sm:$0xff] %v6328_v51  ;;  %v5796_v56 = vadd.f32 %v5795_v8, %v10634_v32  ;;  %v5315_v7 = vmax.f32 %v5251_v29, 0.0  ;;  %v4738_v8 = vadd.f32 %v11725_v3, %v4649_v62  ;;  %v11734_v3 = vld [vmem:[#allocation112_spill] sm:$0xff] }
 0x78b   : > { %v5135_v6 = vpop.f32.mrf.mxu2  ;;  %v5966_v58 = vpop.f32.mrf.mxu0 }
 0x78c   : > { %v6107_v48 = vadd.f32 %v5796_v56, %v5499_v34  ;;  %v5136_v12 = vadd.f32 %v5135_v6, %v5046_v22  ;;  %v5967_v15 = vadd.f32 %v5966_v58, %v10622_v60  ;;  %v5056_v29 = vpop.f32.mrf.mxu1 }
 0x78e   : > { %v6235_v5 = vmax.f32 %v6107_v48, 0.0  ;;  %v5184_v30 = vadd.f32 %v5136_v12, %v4733_v41  ;;  %v6110_v13 = vadd.f32 %v5967_v15, %v5502_v19  ;;  %v11726_v41 = vld [vmem:[#allocation152_spill] sm:$0xff] }
 0x78f   : > { %v4371_v12 = vadd.f32 %v10875_v37, %v11726_v41 }
 0x790   : > { %v6329_v52 = vpack.c.bf16 %v6236_v16, %v6235_v5  ;;  %v5252_v4 = vadd.f32 %v10935_v46, %v5184_v30  ;;  %v6238_v61 = vmax.f32 %v6110_v13, 0.0  ;;  %v5505_v5 = vunpack.c.l.bf16 %v5404_v44 }
 0x791   : > { %v5797_v63 = vpop.f32.mrf.mxu3 }
 0x792   : > { %6393 = vst [vmem:[%s10656_s11 + $0x110] sm:$0xff] %v6329_v52  ;;  %v5316_v22 = vmax.f32 %v5252_v4, 0.0  ;;  %v5798_v31 = vadd.f32 %v5797_v63, %v10634_v32  ;;  %v4652_v52 = vadd.f32 %v11727_v38, %v4371_v12  ;;  %v11735_v12 = vld [vmem:[#allocation38_spill] sm:$0xff] }
 0x793   : > { %v5138_v24 = vpop.f32.mrf.mxu2  ;;  %v5969_v45 = vpop.f32.mrf.mxu0 }
 0x794   : > { %v5353_v35 = vpack.c.bf16 %v5316_v22, %v5315_v7  ;;  %v6109_v9 = vadd.f32 %v5798_v31, %v5501_v47  ;;  %v5139_v11 = vadd.f32 %v5138_v24, %v5049_v23  ;;  %v5970_v43 = vadd.f32 %v5969_v45, %v10622_v60  ;;  %v5405_v47 = vld [vmem:[%s8637_s16 + $0x130] sm:$0xff]  ;;  %v11729_v22 = vld [vmem:[#allocation42_spill] sm:$0xff] }
 0x795   : > { %v11728_v7 = vld [vmem:[#allocation156_spill] sm:$0xff]  ;;  %v5508_v49 = vunpack.c.h.bf16 %v5405_v47  ;;  %v4741_v59 = vadd.f32 %v11730_v57, %v4652_v52 }
 0x796   : > { %v6237_v18 = vmax.f32 %v6109_v9, 0.0  ;;  %7957 = vmatmul.msk.bf16.gmra.mxu3 %vm1931_vm9, %v5353_v35  ;;  %7989 = vmatmul.msk.bf16.gmra.mxu0 %vm1931_vm9, %v5353_v35  ;;  %v5185_v50 = vadd.f32 %v5139_v11, %v4736_v39  ;;  %v6112_v23 = vadd.f32 %v5970_v43, %v5504_v42  ;;  %v4373_v37 = vadd.f32 %v11729_v22, %v11728_v7  ;;  %v5059_v42 = vpop.f32.mrf.mxu1  ;;  %v11738_v22 = vld [vmem:[#allocation94_spill] sm:$0xff] }
 0x797   : > { %v5507_v11 = vunpack.c.l.bf16 %v5405_v47 }
 0x798   : > { %v6330_v20 = vpack.c.bf16 %v6238_v61, %v6237_v18  ;;  %v5253_v56 = vadd.f32 %v10935_v46, %v5185_v50  ;;  %v6240_v6 = vmax.f32 %v6112_v23, 0.0  ;;  %v4654_v35 = vadd.f32 %v11731_v27, %v4373_v37 }
 0x799   : > { %v5800_v21 = vpop.f32.mrf.mxu3  ;;  %v5510_v23 = vunpack.c.h.bf16 %v5406_v0 }
 0x79a   : > { %6394 = vst [vmem:[%s10656_s11 + $0x118] sm:$0xff] %v6330_v20  ;;  %v5801_v25 = vadd.f32 %v5800_v21, %v10634_v32  ;;  %v5317_v15 = vmax.f32 %v5253_v56, 0.0  ;;  %v11732_v20 = vld [vmem:[#allocation25_spill] sm:$0xff] }
 0x79b   : > { %v5140_v28 = vpop.f32.mrf.mxu2  ;;  %v5971_v51 = vpop.f32.mrf.mxu0 }
 0x79c   : > { %v6111_v34 = vadd.f32 %v5801_v25, %v5503_v14  ;;  %v5141_v1 = vadd.f32 %v5140_v28, %v5051_v26  ;;  %v5972_v55 = vadd.f32 %v5971_v51, %v10622_v60  ;;  %v4743_v14 = vadd.f32 %v11732_v20, %v4654_v35  ;;  %v11741_v20 = vld [vmem:[#allocation166_spill] sm:$0xff] }
 0x79e   : > { %v6239_v58 = vmax.f32 %v6111_v34, 0.0  ;;  %v5186_v48 = vadd.f32 %v5141_v1, %v4738_v8  ;;  %v6114_v17 = vadd.f32 %v5972_v55, %v5506_v10  ;;  %v11733_v34 = vld [vmem:[#allocation160_spill] sm:$0xff]  ;;  %v5509_v10 = vunpack.c.l.bf16 %v5406_v0 }
 0x79f   : > { %v4376_v8 = vadd.f32 %v11734_v3, %v11733_v34 }
 0x7a0   : > { %v6331_v19 = vpack.c.bf16 %v6240_v6, %v6239_v58  ;;  %v5254_v16 = vadd.f32 %v10935_v46, %v5186_v48  ;;  %v6242_v36 = vmax.f32 %v6114_v17, 0.0 }
 0x7a1   : > { %v5802_v30 = vpop.f32.mrf.mxu3 }
 0x7a2   : > { %6395 = vst [vmem:[%s10656_s11 + $0x120] sm:$0xff] %v6331_v19  ;;  %v5318_v26 = vmax.f32 %v5254_v16, 0.0  ;;  %v5803_v40 = vadd.f32 %v5802_v30, %v10634_v32  ;;  %v5407_v16 = vld [vmem:[%s8637_s16 + $0x140] sm:$0xff]  ;;  %v5061_v30 = vpop.f32.mrf.mxu1 }
 0x7a3   : > { %v5143_v4 = vpop.f32.mrf.mxu2  ;;  %v5974_v63 = vpop.f32.mrf.mxu0 }
 0x7a4   : > { %v5354_v13 = vpack.c.bf16 %v5318_v26, %v5317_v15  ;;  %v6113_v31 = vadd.f32 %v5803_v40, %v5505_v5  ;;  %v5144_v53 = vadd.f32 %v5143_v4, %v5054_v2  ;;  %v5975_v45 = vadd.f32 %v5974_v63, %v10622_v60  ;;  %v11736_v15 = vld [vmem:[#allocation164_spill] sm:$0xff]  ;;  %v11737_v26 = vld [vmem:[#allocation54_spill] sm:$0xff] }
 0x7a5   : > { %v4378_v17 = vadd.f32 %v11737_v26, %v11736_v15  ;;  %v5512_v63 = vunpack.c.h.bf16 %v5407_v16  ;;  %v11746_v15 = vld [vmem:[#allocation96_spill] sm:$0xff] }
 0x7a6   : > { %v6241_v24 = vmax.f32 %v6113_v31, 0.0  ;;  %7958 = vmatmul.msk.bf16.gmra.mxu3 %vm1931_vm9, %v5354_v13  ;;  %7990 = vmatmul.msk.bf16.gmra.mxu0 %vm1931_vm9, %v5354_v13  ;;  %v5187_v61 = vadd.f32 %v5144_v53, %v4741_v59  ;;  %v6116_v2 = vadd.f32 %v5975_v45, %v5508_v49  ;;  %v11739_v13 = vld [vmem:[#allocation33_spill] sm:$0xff]  ;;  %v5408_v59 = vld [vmem:[%s8637_s16 + $0x148] sm:$0xff] }
 0x7a7   : > { %v4659_v31 = vadd.f32 %v11739_v13, %v4378_v17 }
 0x7a8   : > { %v6332_v9 = vpack.c.bf16 %v6242_v36, %v6241_v24  ;;  %v5255_v21 = vadd.f32 %v10935_v46, %v5187_v61  ;;  %v6244_v25 = vmax.f32 %v6116_v2, 0.0  ;;  %v5511_v36 = vunpack.c.l.bf16 %v5407_v16 }
 0x7a9   : > { %v5805_v18 = vpop.f32.mrf.mxu3  ;;  %v5514_v2 = vunpack.c.h.bf16 %v5408_v59 }
 0x7aa   : > { %6396 = vst [vmem:[%s10656_s11 + $0x128] sm:$0xff] %v6332_v9  ;;  %v5806_v43 = vadd.f32 %v5805_v18, %v10634_v32  ;;  %v5319_v58 = vmax.f32 %v5255_v21, 0.0 }
 0x7ab   : > { %v5145_v39 = vpop.f32.mrf.mxu2  ;;  %v5976_v33 = vpop.f32.mrf.mxu0 }
 0x7ac   : > { %v6115_v62 = vadd.f32 %v5806_v43, %v5507_v11  ;;  %v5146_v50 = vadd.f32 %v5145_v39, %v5056_v29  ;;  %v5977_v51 = vadd.f32 %v5976_v33, %v10622_v60  ;;  %v4657_v29 = vadd.f32 %v11735_v12, %v4376_v8  ;;  %v11740_v11 = vld [vmem:[#allocation29_spill] sm:$0xff]  ;;  %v5064_v43 = vpop.f32.mrf.mxu1  ;;  %v11743_v8 = vld [vmem:[#allocation107_spill] sm:$0xff] }
 0x7ad   : > { %v4748_v61 = vadd.f32 %v11740_v11, %v4659_v31  ;;  %v11749_v11 = vld [vmem:[#allocation169_spill] sm:$0xff] }
 0x7ae   : > { %v6243_v44 = vmax.f32 %v6115_v62, 0.0  ;;  %v5188_v28 = vadd.f32 %v5146_v50, %v4743_v14  ;;  %v6118_v55 = vadd.f32 %v5977_v51, %v5510_v23  ;;  %v4746_v37 = vadd.f32 %v11738_v22, %v4657_v29  ;;  %v11742_v14 = vld [vmem:[#allocation49_spill] sm:$0xff] }
 0x7af   : > { %v4381_v50 = vadd.f32 %v11742_v14, %v11741_v20  ;;  %v11750_v14 = vld [vmem:[#allocation41_spill] sm:$0xff] }
 0x7b0   : > { %v6333_v1 = vpack.c.bf16 %v6244_v25, %v6243_v44  ;;  %v5256_v56 = vadd.f32 %v10935_v46, %v5188_v28  ;;  %v6246_v4 = vmax.f32 %v6118_v55, 0.0  ;;  %v5513_v25 = vunpack.c.l.bf16 %v5408_v59 }
 0x7b1   : > { %v5807_v6 = vpop.f32.mrf.mxu3 }
 0x7b2   : > { %6397 = vst [vmem:[%s10656_s11 + $0x130] sm:$0xff] %v6333_v1  ;;  %v5320_v48 = vmax.f32 %v5256_v56, 0.0  ;;  %v5808_v41 = vadd.f32 %v5807_v6, %v10634_v32  ;;  %v4662_v1 = vadd.f32 %v11743_v8, %v4381_v50 }
 0x7b3   : > { %v5148_v19 = vpop.f32.mrf.mxu2  ;;  %v5979_v5 = vpop.f32.mrf.mxu0 }
 0x7b4   : > { %v5355_v40 = vpack.c.bf16 %v5320_v48, %v5319_v58  ;;  %v6117_v38 = vadd.f32 %v5808_v41, %v5509_v10  ;;  %v5149_v52 = vadd.f32 %v5148_v19, %v5059_v42  ;;  %v5980_v7 = vadd.f32 %v5979_v5, %v10622_v60  ;;  %v5409_v10 = vld [vmem:[%s8637_s16 + $0x150] sm:$0xff]  ;;  %v11744_v58 = vld [vmem:[#allocation167_spill] sm:$0xff]  ;;  %v5066_v17 = vpop.f32.mrf.mxu1 }
 0x7b5   : > { %v11745_v48 = vld [vmem:[#allocation120_spill] sm:$0xff]  ;;  %v5516_v5 = vunpack.c.h.bf16 %v5409_v10  ;;  %v4751_v26 = vadd.f32 %v11746_v15, %v4662_v1  ;;  %v5412_v15 = vld [vmem:[%s8637_s16 + $0x168] sm:$0xff] }
 0x7b6   : > { %v6245_v47 = vmax.f32 %v6117_v38, 0.0  ;;  %7959 = vmatmul.msk.bf16.gmra.mxu3 %vm1931_vm9, %v5355_v40  ;;  %7991 = vmatmul.msk.bf16.gmra.mxu0 %vm1931_vm9, %v5355_v40  ;;  %v5189_v24 = vadd.f32 %v5149_v52, %v4746_v37  ;;  %v6120_v45 = vadd.f32 %v5980_v7, %v5512_v63  ;;  %v4383_v55 = vadd.f32 %v11745_v48, %v11744_v58  ;;  %v11747_v40 = vld [vmem:[#allocation45_spill] sm:$0xff]  ;;  %v11754_v48 = vld [vmem:[#allocation36_spill] sm:$0xff] }
 0x7b7   : > { %v5410_v37 = vld [vmem:[%s8637_s16 + $0x158] sm:$0xff] }
 0x7b8   : > { %v6334_v53 = vpack.c.bf16 %v6246_v4, %v6245_v47  ;;  %v5257_v42 = vadd.f32 %v10935_v46, %v5189_v24  ;;  %v6248_v0 = vmax.f32 %v6120_v45, 0.0  ;;  %v4664_v38 = vadd.f32 %v11747_v40, %v4383_v55 }
 0x7b9   : > { %v5810_v49 = vpop.f32.mrf.mxu3  ;;  %v5515_v4 = vunpack.c.l.bf16 %v5409_v10 }
 0x7ba   : > { %6398 = vst [vmem:[%s10656_s11 + $0x138] sm:$0xff] %v6334_v53  ;;  %v5811_v57 = vadd.f32 %v5810_v49, %v10634_v32  ;;  %v5321_v28 = vmax.f32 %v5257_v42, 0.0 }
 0x7bb   : > { %v5150_v27 = vpop.f32.mrf.mxu2  ;;  %v5981_v35 = vpop.f32.mrf.mxu0 }
 0x7bc   : > { %v6119_v9 = vadd.f32 %v5811_v57, %v5511_v36  ;;  %v5151_v18 = vadd.f32 %v5150_v27, %v5061_v30  ;;  %v5982_v62 = vadd.f32 %v5981_v35, %v10622_v60  ;;  %v11748_v36 = vld [vmem:[#allocation32_spill] sm:$0xff]  ;;  %v5518_v57 = vunpack.c.h.bf16 %v5410_v37  ;;  %v5069_v42 = vpop.f32.mrf.mxu1 }
 0x7bd   : > { %v4753_v24 = vadd.f32 %v11748_v36, %v4664_v38  ;;  %v11755_v38 = vld [vmem:[#allocation35_spill] sm:$0xff] }
 0x7be   : > { %v6247_v39 = vmax.f32 %v6119_v9, 0.0  ;;  %v5190_v33 = vadd.f32 %v5151_v18, %v4748_v61  ;;  %v6122_v34 = vadd.f32 %v5982_v62, %v5514_v2  ;;  %v4386_v61 = vadd.f32 %v10912_v54, %v11749_v11 }
 0x7c0   : > { %v6335_v21 = vpack.c.bf16 %v6248_v0, %v6247_v39  ;;  %v5258_v23 = vadd.f32 %v10935_v46, %v5190_v33  ;;  %v6250_v19 = vmax.f32 %v6122_v34, 0.0  ;;  %v4667_v50 = vadd.f32 %v11750_v14, %v4386_v61 }
 0x7c1   : > { %v5812_v44 = vpop.f32.mrf.mxu3 }
 0x7c2   : > { %6399 = vst [vmem:[%s10656_s11 + $0x140] sm:$0xff] %v6335_v21  ;;  %v5322_v51 = vmax.f32 %v5258_v23, 0.0  ;;  %v5813_v3 = vadd.f32 %v5812_v44, %v10634_v32  ;;  %v5411_v23 = vld [vmem:[%s8637_s16 + $0x160] sm:$0xff]  ;;  %v11751_v44 = vld [vmem:[#allocation19_spill] sm:$0xff] }
 0x7c3   : > { %v5153_v56 = vpop.f32.mrf.mxu2  ;;  %v5984_v6 = vpop.f32.mrf.mxu0 }
 0x7c4   : > { %v5356_v41 = vpack.c.bf16 %v5322_v51, %v5321_v28  ;;  %v6121_v12 = vadd.f32 %v5813_v3, %v5513_v25  ;;  %v5154_v29 = vadd.f32 %v5153_v56, %v5064_v43  ;;  %v5985_v30 = vadd.f32 %v5984_v6, %v10622_v60  ;;  %v11752_v28 = vld [vmem:[#allocation44_spill] sm:$0xff] }
 0x7c5   : > { %v5517_v43 = vunpack.c.l.bf16 %v5410_v37  ;;  %v4388_v54 = vadd.f32 %v11752_v28, %v11751_v44  ;;  %v5520_v56 = vunpack.c.h.bf16 %v5411_v23  ;;  %v11753_v6 = vld [vmem:[#allocation100_spill] sm:$0xff] }
 0x7c6   : > { %v6249_v16 = vmax.f32 %v6121_v12, 0.0  ;;  %7960 = vmatmul.msk.bf16.gmra.mxu3 %vm1931_vm9, %v5356_v41  ;;  %7992 = vmatmul.msk.bf16.gmra.mxu0 %vm1931_vm9, %v5356_v41  ;;  %v5191_v47 = vadd.f32 %v5154_v29, %v4751_v26  ;;  %v6124_v7 = vadd.f32 %v5985_v30, %v5516_v5  ;;  %v4756_v58 = vadd.f32 %v11753_v6, %v4667_v50 }
 0x7c7   : > { %v4669_v55 = vadd.f32 %v11754_v48, %v4388_v54  ;;  %v5519_v12 = vunpack.c.l.bf16 %v5411_v23 }
 0x7c8   : > { %v6336_v52 = vpack.c.bf16 %v6250_v19, %v6249_v16  ;;  %v5259_v45 = vadd.f32 %v10935_v46, %v5191_v47  ;;  %v6252_v59 = vmax.f32 %v6124_v7, 0.0  ;;  %v5071_v16 = vpop.f32.mrf.mxu1 }
 0x7c9   : > { %v5815_v63 = vpop.f32.mrf.mxu3 }
 0x7ca   : > { %6400 = vst [vmem:[%s10656_s11 + $0x148] sm:$0xff] %v6336_v52  ;;  %v5816_v22 = vadd.f32 %v5815_v63, %v10634_v32  ;;  %v5323_v39 = vmax.f32 %v5259_v45, 0.0  ;;  %v4758_v52 = vadd.f32 %v11755_v38, %v4669_v55  ;;  %v5522_v63 = vunpack.c.h.bf16 %v5412_v15 }
 0x7cb   : > { %v5155_v13 = vpop.f32.mrf.mxu2  ;;  %v5986_v31 = vpop.f32.mrf.mxu0 }
 0x7cc   : > { %v6123_v53 = vadd.f32 %v5816_v22, %v5515_v4  ;;  %v5156_v49 = vadd.f32 %v5155_v13, %v5066_v17  ;;  %v5987_v9 = vadd.f32 %v5986_v31, %v10622_v60 }
 0x7ce   : > { %v6251_v27 = vmax.f32 %v6123_v53, 0.0  ;;  %v5192_v35 = vadd.f32 %v5156_v49, %v4753_v24  ;;  %v6126_v62 = vadd.f32 %v5987_v9, %v5518_v57  ;;  %v8401_v53 = vld [vmem:[%s11317_s5] ss:$0 sm:$0xff]  ;;  %v5521_v24 = vunpack.c.l.bf16 %v5412_v15 }
 0x7d0   : > { %v6337_v18 = vpack.c.bf16 %v6252_v59, %v6251_v27  ;;  %v5260_v2 = vadd.f32 %v10935_v46, %v5192_v35  ;;  %v6254_v8 = vmax.f32 %v6126_v62, 0.0  ;;  %v5413_v27 = vld [vmem:[%s8637_s16 + $0x170] sm:$0xff] }
 0x7d1   : > { %v5817_v0 = vpop.f32.mrf.mxu3 }
 0x7d2   : > { %6401 = vst [vmem:[%s10656_s11 + $0x150] sm:$0xff] %v6337_v18  ;;  %v5324_v33 = vmax.f32 %v5260_v2, 0.0  ;;  %v5818_v20 = vadd.f32 %v5817_v0, %v10634_v32  ;;  %v5523_v0 = vunpack.c.l.bf16 %v5413_v27 }
 0x7d3   : > { %v5158_v21 = vpop.f32.mrf.mxu2  ;;  %v5989_v25 = vpop.f32.mrf.mxu0 }
 0x7d4   : > { %v5357_v51 = vpack.c.bf16 %v5324_v33, %v5323_v39  ;;  %v6125_v34 = vadd.f32 %v5818_v20, %v5517_v43  ;;  %v5159_v3 = vadd.f32 %v5158_v21, %v5069_v42  ;;  %v5990_v10 = vadd.f32 %v5989_v25, %v10622_v60  ;;  %v5414_v20 = vld [vmem:[%s8637_s16 + $0x178] sm:$0xff] }
 0x7d5   : > { %v5524_v42 = vunpack.c.h.bf16 %v5413_v27  ;;  %v5526_v25 = vunpack.c.h.bf16 %v5414_v20  ;;  %v5525_v54 = vunpack.c.l.bf16 %v5414_v20 }
 0x7d6   : > { %v6253_v1 = vmax.f32 %v6125_v34, 0.0  ;;  %7961 = vmatmul.msk.bf16.gmra.mxu3 %vm1931_vm9, %v5357_v51  ;;  %7993 = vmatmul.msk.bf16.gmra.mxu0 %vm1931_vm9, %v5357_v51  ;;  %v5193_v29 = vadd.f32 %v5159_v3, %v4756_v58  ;;  %v6128_v5 = vadd.f32 %v5990_v10, %v5520_v56 }
 0x7d8   : > { %v6338_v41 = vpack.c.bf16 %v6254_v8, %v6253_v1  ;;  %v5261_v47 = vadd.f32 %v10935_v46, %v5193_v29  ;;  %v6256_v7 = vmax.f32 %v6128_v5, 0.0  ;;  %v5415_v8 = vld [vmem:[%s8637_s16 + $0x180] sm:$0xff] }
 0x7d9   : > { %v5820_v19 = vpop.f32.mrf.mxu3  ;;  %v5528_v58 = vunpack.c.h.bf16 %v5415_v8 }
 0x7da   : > { %6402 = vst [vmem:[%s10656_s11 + $0x158] sm:$0xff] %v6338_v41  ;;  %v5821_v30 = vadd.f32 %v5820_v19, %v10634_v32  ;;  %v5325_v45 = vmax.f32 %v5261_v47, 0.0  ;;  %v5527_v41 = vunpack.c.l.bf16 %v5415_v8 }
 0x7db   : > { %v5160_v26 = vpop.f32.mrf.mxu2  ;;  %v5991_v17 = vpop.f32.mrf.mxu0 }
 0x7dc   : > { %v6127_v40 = vadd.f32 %v5821_v30, %v5519_v12  ;;  %v5161_v4 = vadd.f32 %v5160_v26, %v5071_v16  ;;  %v5992_v13 = vadd.f32 %v5991_v17, %v10622_v60  ;;  %v5416_v16 = vld [vmem:[%s8637_s16 + $0x188] sm:$0xff] }
 0x7dd   : > { %v5530_v17 = vunpack.c.h.bf16 %v5416_v16 }
 0x7de   : > { %v6255_v22 = vmax.f32 %v6127_v40, 0.0  ;;  %v5194_v37 = vadd.f32 %v5161_v4, %v4758_v52  ;;  %v6130_v46 = vadd.f32 %v5992_v13, %v5522_v63  ;;  %v5529_v52 = vunpack.c.l.bf16 %v5416_v16 }
 0x7e0   : > { %v6339_v31 = vpack.c.bf16 %v6256_v7, %v6255_v22  ;;  %v5262_v36 = vadd.f32 %v8401_v53, %v5194_v37  ;;  %v6258_v61 = vmax.f32 %v6130_v46, 0.0  ;;  %v5417_v7 = vld [vmem:[%s8637_s16 + $0x190] sm:$0xff] }
 0x7e1   : > { %v5822_v49 = vpop.f32.mrf.mxu3  ;;  %v5532_v53 = vunpack.c.h.bf16 %v5417_v7 }
 0x7e2   : > { %6403 = vst [vmem:[%s10656_s11 + $0x160] sm:$0xff] %v6339_v31  ;;  %v5326_v57 = vmax.f32 %v5262_v36, 0.0  ;;  %v5823_v59 = vadd.f32 %v5822_v49, %v10634_v32  ;;  %v5531_v49 = vunpack.c.l.bf16 %v5417_v7 }
 0x7e3   : > { %v5994_v35 = vpop.f32.mrf.mxu0 }
 0x7e4   : > { %v5358_v9 = vpack.c.bf16 %v5326_v57, %v5325_v45  ;;  %v6129_v11 = vadd.f32 %v5823_v59, %v5521_v24  ;;  %v5995_v2 = vadd.f32 %v5994_v35, %v10622_v60  ;;  %v5418_v59 = vld [vmem:[%s8637_s16 + $0x198] sm:$0xff] }
 0x7e6   : > { %v6257_v18 = vmax.f32 %v6129_v11, 0.0  ;;  %7962 = vmatmul.msk.bf16.gmra.mxu3 %vm1931_vm9, %v5358_v9  ;;  %7994 = vmatmul.msk.bf16.gmra.mxu0 %vm1931_vm9, %v5358_v9  ;;  %v6132_v33 = vadd.f32 %v5995_v2, %v5524_v42  ;;  %v5533_v2 = vunpack.c.l.bf16 %v5418_v59 }
 0x7e8   : > { %v6340_v43 = vpack.c.bf16 %v6258_v61, %v6257_v18  ;;  %v6260_v21 = vmax.f32 %v6132_v33, 0.0  ;;  %v5534_v61 = vunpack.c.h.bf16 %v5418_v59  ;;  %v5419_v33 = vld [vmem:[%s8637_s16 + $0x1a0] sm:$0xff] }
 0x7e9   : > { %v5825_v39 = vpop.f32.mrf.mxu3 }
 0x7ea   : > { %6404 = vst [vmem:[%s10656_s11 + $0x168] sm:$0xff] %v6340_v43  ;;  %v5826_v62 = vadd.f32 %v5825_v39, %v10634_v32 }
 0x7eb   : > { %v5996_v14 = vpop.f32.mrf.mxu0 }
 0x7ec   : > { %v6131_v50 = vadd.f32 %v5826_v62, %v5523_v0  ;;  %v5997_v44 = vadd.f32 %v5996_v14, %v10622_v60 }
 0x7ee   : > { %v6259_v23 = vmax.f32 %v6131_v50, 0.0  ;;  %v6134_v34 = vadd.f32 %v5997_v44, %v5526_v25  ;;  %v5535_v44 = vunpack.c.l.bf16 %v5419_v33 }
 0x7f0   : > { %v6341_v28 = vpack.c.bf16 %v6260_v21, %v6259_v23  ;;  %v6262_v10 = vmax.f32 %v6134_v34, 0.0  ;;  %v5536_v21 = vunpack.c.h.bf16 %v5419_v33  ;;  %v5420_v34 = vld [vmem:[%s8637_s16 + $0x1a8] sm:$0xff] }
 0x7f1   : > { %v5827_v51 = vpop.f32.mrf.mxu3 }
 0x7f2   : > { %6405 = vst [vmem:[%s10656_s11 + $0x170] sm:$0xff] %v6341_v28  ;;  %v5828_v3 = vadd.f32 %v5827_v51, %v10634_v32 }
 0x7f3   : > { %v5999_v1 = vpop.f32.mrf.mxu0 }
 0x7f4   : > { %v6133_v56 = vadd.f32 %v5828_v3, %v5525_v54  ;;  %v6000_v48 = vadd.f32 %v5999_v1, %v10622_v60 }
 0x7f6   : > { %v6261_v6 = vmax.f32 %v6133_v56, 0.0  ;;  %v6136_v29 = vadd.f32 %v6000_v48, %v5528_v58  ;;  %v5537_v48 = vunpack.c.l.bf16 %v5420_v34 }
 0x7f8   : > { %v6342_v55 = vpack.c.bf16 %v6262_v10, %v6261_v6  ;;  %v6264_v15 = vmax.f32 %v6136_v29, 0.0  ;;  %v5538_v10 = vunpack.c.h.bf16 %v5420_v34  ;;  %v5421_v29 = vld [vmem:[%s8637_s16 + $0x1b0] sm:$0xff] }
 0x7f9   : > { %v5830_v12 = vpop.f32.mrf.mxu3 }
 0x7fa   : > { %6406 = vst [vmem:[%s10656_s11 + $0x178] sm:$0xff] %v6342_v55  ;;  %v5831_v19 = vadd.f32 %v5830_v12, %v10634_v32 }
 0x7fb   : > { %v6001_v5 = vpop.f32.mrf.mxu0 }
 0x7fc   : > { %v6135_v30 = vadd.f32 %v5831_v19, %v5527_v41  ;;  %v6002_v40 = vadd.f32 %v6001_v5, %v10622_v60 }
 0x7fe   : > { %v6263_v26 = vmax.f32 %v6135_v30, 0.0  ;;  %v6138_v47 = vadd.f32 %v6002_v40, %v5530_v17  ;;  %v5539_v40 = vunpack.c.l.bf16 %v5421_v29 }
 0x800   : > { %v6343_v38 = vpack.c.bf16 %v6264_v15, %v6263_v26  ;;  %v6266_v13 = vmax.f32 %v6138_v47, 0.0  ;;  %v5540_v15 = vunpack.c.h.bf16 %v5421_v29  ;;  %v5422_v47 = vld [vmem:[%s8637_s16 + $0x1b8] sm:$0xff] }
 0x801   : > { %v5832_v4 = vpop.f32.mrf.mxu3 }
 0x802   : > { %6407 = vst [vmem:[%s10656_s11 + $0x180] sm:$0xff] %v6343_v38  ;;  %v5833_v63 = vadd.f32 %v5832_v4, %v10634_v32 }
 0x803   : > { %v6004_v22 = vpop.f32.mrf.mxu0 }
 0x804   : > { %v6137_v37 = vadd.f32 %v5833_v63, %v5529_v52  ;;  %v6005_v36 = vadd.f32 %v6004_v22, %v10622_v60 }
 0x806   : > { %v6265_v31 = vmax.f32 %v6137_v37, 0.0  ;;  %v6140_v57 = vadd.f32 %v6005_v36, %v5532_v53  ;;  %v5541_v36 = vunpack.c.l.bf16 %v5422_v47 }
 0x808   : > { %v6344_v24 = vpack.c.bf16 %v6266_v13, %v6265_v31  ;;  %v6268_v9 = vmax.f32 %v6140_v57, 0.0  ;;  %v5542_v13 = vunpack.c.h.bf16 %v5422_v47  ;;  %v5423_v57 = vld [vmem:[%s8637_s16 + $0x1c0] sm:$0xff] }
 0x809   : > { %v5835_v45 = vpop.f32.mrf.mxu3 }
 0x80a   : > { %6408 = vst [vmem:[%s10656_s11 + $0x188] sm:$0xff] %v6344_v24  ;;  %v5836_v46 = vadd.f32 %v5835_v45, %v10634_v32 }
 0x80b   : > { %v6006_v27 = vpop.f32.mrf.mxu0 }
 0x80c   : > { %v6139_v35 = vadd.f32 %v5836_v46, %v5531_v49  ;;  %v6007_v18 = vadd.f32 %v6006_v27, %v10622_v60 }
 0x80e   : > { %v6267_v11 = vmax.f32 %v6139_v35, 0.0  ;;  %v6142_v0 = vadd.f32 %v6007_v18, %v5534_v61  ;;  %v5543_v18 = vunpack.c.l.bf16 %v5423_v57 }
 0x810   : > { %v6345_v42 = vpack.c.bf16 %v6268_v9, %v6267_v11  ;;  %v6270_v14 = vmax.f32 %v6142_v0, 0.0  ;;  %v5544_v9 = vunpack.c.h.bf16 %v5423_v57  ;;  %v5424_v0 = vld [vmem:[%s8637_s16 + $0x1c8] sm:$0xff] }
 0x811   : > { %v5837_v43 = vpop.f32.mrf.mxu3 }
 0x812   : > { %6409 = vst [vmem:[%s10656_s11 + $0x190] sm:$0xff] %v6345_v42  ;;  %v5838_v39 = vadd.f32 %v5837_v43, %v10634_v32 }
 0x813   : > { %v6009_v62 = vpop.f32.mrf.mxu0 }
 0x814   : > { %v6141_v20 = vadd.f32 %v5838_v39, %v5533_v2  ;;  %v6010_v23 = vadd.f32 %v6009_v62, %v10622_v60 }
 0x816   : > { %v6269_v50 = vmax.f32 %v6141_v20, 0.0  ;;  %v6144_v54 = vadd.f32 %v6010_v23, %v5536_v21  ;;  %v5545_v23 = vunpack.c.l.bf16 %v5424_v0 }
 0x818   : > { %v6346_v25 = vpack.c.bf16 %v6270_v14, %v6269_v50  ;;  %v6272_v1 = vmax.f32 %v6144_v54, 0.0  ;;  %v5546_v14 = vunpack.c.h.bf16 %v5424_v0  ;;  %v5425_v54 = vld [vmem:[%s8637_s16 + $0x1d0] sm:$0xff] }
 0x819   : > { %v5840_v28 = vpop.f32.mrf.mxu3 }
 0x81a   : > { %6410 = vst [vmem:[%s10656_s11 + $0x198] sm:$0xff] %v6346_v25  ;;  %v5841_v51 = vadd.f32 %v5840_v28, %v10634_v32 }
 0x81b   : > { %v6011_v3 = vpop.f32.mrf.mxu0 }
 0x81c   : > { %v6143_v8 = vadd.f32 %v5841_v51, %v5535_v44  ;;  %v6012_v6 = vadd.f32 %v6011_v3, %v10622_v60 }
 0x81e   : > { %v6271_v56 = vmax.f32 %v6143_v8, 0.0  ;;  %v6146_v41 = vadd.f32 %v6012_v6, %v5538_v10  ;;  %v5547_v6 = vunpack.c.l.bf16 %v5425_v54 }
 0x820   : > { %v6347_v58 = vpack.c.bf16 %v6272_v1, %v6271_v56  ;;  %v6274_v5 = vmax.f32 %v6146_v41, 0.0  ;;  %v5548_v1 = vunpack.c.h.bf16 %v5425_v54  ;;  %v5426_v41 = vld [vmem:[%s8637_s16 + $0x1d8] sm:$0xff] }
 0x821   : > { %v5842_v55 = vpop.f32.mrf.mxu3 }
 0x822   : > { %6411 = vst [vmem:[%s10656_s11 + $0x1a0] sm:$0xff] %v6347_v58  ;;  %v5843_v12 = vadd.f32 %v5842_v55, %v10634_v32 }
 0x823   : > { %v6014_v19 = vpop.f32.mrf.mxu0 }
 0x824   : > { %v6145_v16 = vadd.f32 %v5843_v12, %v5537_v48  ;;  %v6015_v26 = vadd.f32 %v6014_v19, %v10622_v60 }
 0x826   : > { %v6273_v30 = vmax.f32 %v6145_v16, 0.0  ;;  %v6148_v52 = vadd.f32 %v6015_v26, %v5540_v15  ;;  %v5549_v26 = vunpack.c.l.bf16 %v5426_v41 }
 0x828   : > { %v6348_v17 = vpack.c.bf16 %v6274_v5, %v6273_v30  ;;  %v6276_v22 = vmax.f32 %v6148_v52, 0.0  ;;  %v5550_v5 = vunpack.c.h.bf16 %v5426_v41  ;;  %v5427_v52 = vld [vmem:[%s8637_s16 + $0x1e0] sm:$0xff] }
 0x829   : > { %v5845_v38 = vpop.f32.mrf.mxu3 }
 0x82a   : > { %6412 = vst [vmem:[%s10656_s11 + $0x1a8] sm:$0xff] %v6348_v17  ;;  %v5846_v4 = vadd.f32 %v5845_v38, %v10634_v32 }
 0x82b   : > { %v6016_v63 = vpop.f32.mrf.mxu0 }
 0x82c   : > { %v6147_v7 = vadd.f32 %v5846_v4, %v5539_v40  ;;  %v6017_v31 = vadd.f32 %v6016_v63, %v10622_v60 }
 0x82e   : > { %v6275_v37 = vmax.f32 %v6147_v7, 0.0  ;;  %v6150_v49 = vadd.f32 %v6017_v31, %v5542_v13  ;;  %v5551_v31 = vunpack.c.l.bf16 %v5427_v52 }
 0x830   : > { %v6349_v53 = vpack.c.bf16 %v6276_v22, %v6275_v37  ;;  %v6278_v27 = vmax.f32 %v6150_v49, 0.0  ;;  %v5552_v22 = vunpack.c.h.bf16 %v5427_v52  ;;  %v5428_v49 = vld [vmem:[%s8637_s16 + $0x1e8] sm:$0xff] }
 0x831   : > { %v5847_v24 = vpop.f32.mrf.mxu3 }
 0x832   : > { %6413 = vst [vmem:[%s10656_s11 + $0x1b0] sm:$0xff] %v6349_v53  ;;  %v5848_v45 = vadd.f32 %v5847_v24, %v10634_v32 }
 0x833   : > { %v6019_v46 = vpop.f32.mrf.mxu0 }
 0x834   : > { %v6149_v59 = vadd.f32 %v5848_v45, %v5541_v36  ;;  %v6020_v11 = vadd.f32 %v6019_v46, %v10622_v60 }
 0x836   : > { %v6277_v35 = vmax.f32 %v6149_v59, 0.0  ;;  %v6152_v2 = vadd.f32 %v6020_v11, %v5544_v9  ;;  %v5553_v11 = vunpack.c.l.bf16 %v5428_v49 }
 0x838   : > { %v6350_v61 = vpack.c.bf16 %v6278_v27, %v6277_v35  ;;  %v6280_v62 = vmax.f32 %v6152_v2, 0.0  ;;  %v5554_v27 = vunpack.c.h.bf16 %v5428_v49  ;;  %v5429_v2 = vld [vmem:[%s8637_s16 + $0x1f0] sm:$0xff] }
 0x839   : > { %v5850_v42 = vpop.f32.mrf.mxu3 }
 0x83a   : > { %6414 = vst [vmem:[%s10656_s11 + $0x1b8] sm:$0xff] %v6350_v61  ;;  %v5851_v43 = vadd.f32 %v5850_v42, %v10634_v32 }
 0x83b   : > { %v6021_v39 = vpop.f32.mrf.mxu0 }
 0x83c   : > { %v6151_v33 = vadd.f32 %v5851_v43, %v5543_v18  ;;  %v6022_v50 = vadd.f32 %v6021_v39, %v10622_v60 }
 0x83e   : > { %v6279_v20 = vmax.f32 %v6151_v33, 0.0  ;;  %v6154_v44 = vadd.f32 %v6022_v50, %v5546_v14  ;;  %v5555_v50 = vunpack.c.l.bf16 %v5429_v2 }
 0x840   : > { %v6351_v21 = vpack.c.bf16 %v6280_v62, %v6279_v20  ;;  %v6282_v3 = vmax.f32 %v6154_v44, 0.0  ;;  %v5556_v62 = vunpack.c.h.bf16 %v5429_v2  ;;  %v5430_v44 = vld [vmem:[%s8637_s16 + $0x1f8] sm:$0xff]  ;;  %s6437_s16 = sshll.u32 %s10656_s11, 4  ;;  %s6438_s16 = int_to_ptr.vmem [resolvable:$true] %s6437_s16 }
 0x841   : > { %v5852_v25 = vpop.f32.mrf.mxu3 }
 0x842   : > { %6415 = vst [vmem:[%s10656_s11 + $0x1c0] sm:$0xff] %v6351_v21  ;;  %v5853_v28 = vadd.f32 %v5852_v25, %v10634_v32 }
 0x843   : > { %v6024_v51 = vpop.f32.mrf.mxu0 }
 0x844   : > { %v6153_v34 = vadd.f32 %v5853_v28, %v5545_v23  ;;  %v6025_v56 = vadd.f32 %v6024_v51, %v10622_v60 }
 0x846   : > { %v6281_v8 = vmax.f32 %v6153_v34, 0.0  ;;  %v6156_v48 = vadd.f32 %v6025_v56, %v5548_v1  ;;  %v5557_v56 = vunpack.c.l.bf16 %v5430_v44 }
 0x848   : > { %v6352_v10 = vpack.c.bf16 %v6282_v3, %v6281_v8  ;;  %v6284_v19 = vmax.f32 %v6156_v48, 0.0  ;;  %v5558_v3 = vunpack.c.h.bf16 %v5430_v44 }
 0x849   : > { %v5855_v58 = vpop.f32.mrf.mxu3 }
 0x84a   : > { %6416 = vst [vmem:[%s10656_s11 + $0x1c8] sm:$0xff] %v6352_v10  ;;  %v5856_v55 = vadd.f32 %v5855_v58, %v10634_v32 }
 0x84b   : > { %v6026_v12 = vpop.f32.mrf.mxu0 }
 0x84c   : > { %v6155_v29 = vadd.f32 %v5856_v55, %v5547_v6  ;;  %v6027_v30 = vadd.f32 %v6026_v12, %v10622_v60 }
 0x84e   : > { %v6283_v16 = vmax.f32 %v6155_v29, 0.0  ;;  %v6158_v40 = vadd.f32 %v6027_v30, %v5550_v5 }
 0x850   : > { %v6353_v15 = vpack.c.bf16 %v6284_v19, %v6283_v16  ;;  %v6286_v63 = vmax.f32 %v6158_v40, 0.0 }
 0x851   : > { %v5857_v17 = vpop.f32.mrf.mxu3 }
 0x852   : > { %6417 = vst [vmem:[%s10656_s11 + $0x1d0] sm:$0xff] %v6353_v15  ;;  %v5858_v38 = vadd.f32 %v5857_v17, %v10634_v32 }
 0x853   : > { %v6029_v4 = vpop.f32.mrf.mxu0 }
 0x854   : > { %v6157_v47 = vadd.f32 %v5858_v38, %v5549_v26  ;;  %v6030_v37 = vadd.f32 %v6029_v4, %v10622_v60 }
 0x856   : > { %v6285_v7 = vmax.f32 %v6157_v47, 0.0  ;;  %v6160_v36 = vadd.f32 %v6030_v37, %v5552_v22 }
 0x858   : > { %v6354_v13 = vpack.c.bf16 %v6286_v63, %v6285_v7  ;;  %v6288_v46 = vmax.f32 %v6160_v36, 0.0 }
 0x859   : > { %v5860_v53 = vpop.f32.mrf.mxu3 }
 0x85a   : > { %6418 = vst [vmem:[%s10656_s11 + $0x1d8] sm:$0xff] %v6354_v13  ;;  %v5861_v24 = vadd.f32 %v5860_v53, %v10634_v32 }
 0x85b   : > { %v6031_v45 = vpop.f32.mrf.mxu0 }
 0x85c   : > { %v6159_v57 = vadd.f32 %v5861_v24, %v5551_v31  ;;  %v6032_v35 = vadd.f32 %v6031_v45, %v10622_v60 }
 0x85e   : > { %v6287_v59 = vmax.f32 %v6159_v57, 0.0  ;;  %v6162_v18 = vadd.f32 %v6032_v35, %v5554_v27 }
 0x860   : > { %v6355_v9 = vpack.c.bf16 %v6288_v46, %v6287_v59  ;;  %v6290_v39 = vmax.f32 %v6162_v18, 0.0 }
 0x861   : > { %v5862_v61 = vpop.f32.mrf.mxu3 }
 0x862   : > { %6419 = vst [vmem:[%s10656_s11 + $0x1e0] sm:$0xff] %v6355_v9  ;;  %v5863_v42 = vadd.f32 %v5862_v61, %v10634_v32 }
 0x863   : > { %v6034_v43 = vpop.f32.mrf.mxu0 }
 0x864   : > { %v6161_v0 = vadd.f32 %v5863_v42, %v5553_v11  ;;  %v6035_v20 = vadd.f32 %v6034_v43, %v10622_v60 }
 0x866   : > { %v6289_v33 = vmax.f32 %v6161_v0, 0.0  ;;  %v6164_v23 = vadd.f32 %v6035_v20, %v5556_v62 }
 0x868   : > { %v6356_v14 = vpack.c.bf16 %v6290_v39, %v6289_v33  ;;  %v6292_v51 = vmax.f32 %v6164_v23, 0.0 }
 0x869   : > { %v5865_v21 = vpop.f32.mrf.mxu3 }
 0x86a   : > { %6420 = vst [vmem:[%s10656_s11 + $0x1e8] sm:$0xff] %v6356_v14  ;;  %v5866_v25 = vadd.f32 %v5865_v21, %v10634_v32 }
 0x86b   : > { %v6036_v28 = vpop.f32.mrf.mxu0 }
 0x86c   : > { %v6163_v54 = vadd.f32 %v5866_v25, %v5555_v50  ;;  %v6037_v8 = vadd.f32 %v6036_v28, %v10622_v60 }
 0x86e   : > { %v6291_v34 = vmax.f32 %v6163_v54, 0.0  ;;  %v6166_v6 = vadd.f32 %v6037_v8, %v5558_v3 }
 0x870   : > { %v6357_v1 = vpack.c.bf16 %v6292_v51, %v6291_v34  ;;  %v6294_v55 = vmax.f32 %v6166_v6, 0.0 }
 0x871   : > { %v5867_v10 = vpop.f32.mrf.mxu3 }
 0x872   : > { %6421 = vst [vmem:[%s10656_s11 + $0x1f0] sm:$0xff] %v6357_v1  ;;  %v5868_v58 = vadd.f32 %v5867_v10, %v10634_v32 }
 0x874   : > { %v6165_v48 = vadd.f32 %v5868_v58, %v5557_v56 }
 0x876   : > { %v6293_v60 = vmax.f32 %v6165_v48, 0.0 }
 0x878   : > { %v6358_v41 = vpack.c.bf16 %v6294_v55, %v6293_v60 }
 0x87a   : > { %6422 = vst [vmem:[%s10656_s11 + $0x1f8] sm:$0xff] %v6358_v41 }
 0x87b   : > { %8459 = shalt.err (!%p8456_p4)
}
 0x87c   : > { %s8504_s22 = smov 128   ;;  %s8505_s11 = smov 8  }
 0x87d   : > { %8331 = dma.vmem_to_hbm [thread:$0]  (%p8595_p10), %s6438_s16, 8192, %s6440_s23, %s6424_s28, %s8504_s22, %s8504_s22, %s8505_s11  }
 0x87e PF: > { %p8342_p5 = scmp.ge.s32.totalorder %s8498_s27, 2  ;;  %s6454_s20 = sand.u32 1, %s8486_s24  }
 0x87f   : > { %s6455_s15 = scalar_lea.sflag [#allocation5], %s6454_s20 }
 0x880   : > { %p8338_p7 = pnand %p8342_p5, %p8599_p11 }
 0x882   : > { %p8339_p8 = pneg %p8338_p7 }
 0x884   : > { %8481 = dma.done.wait (%p8339_p8), %s6455_s15, 8192  }
 0x885   : > { %8483 = vsyncadd (%p8339_p8), %s6455_s15, 4294959104  ;;  %s11756_s9 = sld [smem:[#allocation9_spill]]  ;;  %p20_p9 = scmp.ge.s32.totalorder %s8571_s30, 6  }
 0x886   : > { %s11757_s24 = smov %s8490_s25  ;;  %s11758_s25 = smov %s8494_s26 }
 0x887   : > { %s11760_s27 = smov %s8571_s30  ;;  %22 = sbr.rel (!%p20_p9) target bundleno = 5 (0x5), region = 101 }
 0x88b   : > { %s11759_s26 = smov %s11756_s9 }
 0x88c   :  { %6461 = vsyncpa [#allocation4], 1 }
 0x88d   :  { %6463 = vsyncpa [#allocation4 + $0x1], 1 }
 0x88e   :  { %6464 = vsyncpa [#allocation5], 1 }
 0x88f   :  { %6466 = vsyncpa [#allocation5 + $0x1], 1 }

</bundles_post_ra>
